<compile_context>
chip_gen: v7x
topology: tpu7x:2x2x1
jax: 0.10.0
libtpu: 0.0.40
codegen_flags: <defaults>
</compile_context>

<pallas_src>
import math

import jax
import jax.numpy as jnp
from jax.experimental import pallas as pl
from jax.experimental.pallas import tpu as pltpu


def _round_up(x, m):
    return ((x + m - 1) // m) * m


# ----------------------------------------------------------------------------- kernel
def _multicell_lstm_kernel(
    x_ref,        # (T_BLK, Bblk, Din)   time-major input chunk
    wx_ref,       # (Din, N)             fused x-side weights (compute dtype)
    wh_ref,       # (Hp, N)              fused h-side weights (compute dtype)
    bbig_ref,     # (1, N)               fused biases (f32)
    watt_ref,     # (Hp + C*Hp, C*Kp)    block-diag attention projection (compute dtype)
    attv_ref,     # (C*Kp, 128)          block-diag atten_v (scores land as (B,128))
    reph_ref,     # (Hp, C*Hp)           c_pre lane-replication matrix (f32)
    repsel_ref,   # (128, C*Hp)          probs -> per-cell lane-broadcast matrix (f32)
    sbias_ref,    # (1, 128)             0 on first C lanes, -1e30 on padding lanes
    out_ref,      # (T_BLK, Bblk, OUTW)  packed [hidden | C cell states | probs]
    netx_sc,      # (T_BLK*Bblk, N) f32  hoisted x-side GEMM result
    h_sc, c_sc,   # (Bblk, Hp) f32       recurrent carries (persist across time chunks)
):
    ti = pl.program_id(1)                 # time-chunk index (sequential "arbitrary" axis)
    t_blk, bsz, din = x_ref.shape
    hp = reph_ref.shape[0]
    chp = reph_ref.shape[1]
    c_num = chp // hp
    cdt = wx_ref.dtype                    # matmul operand dtype (f32 or bf16)

    @pl.when(ti == 0)
    def _():
        h_sc[...] = jnp.zeros_like(h_sc)
        c_sc[...] = jnp.zeros_like(c_sc)

    def dotf(a, b):
        return jnp.dot(a, b, preferred_element_type=jnp.float32)

    # ---- Hoisted x-side projection: one well-shaped GEMM (M = T_BLK*Bblk) per chunk,
    # bias folded in. Only the h-side GEMM remains on the serial recurrence.
    x_flat = x_ref[...].reshape(t_blk * bsz, din).astype(cdt)
    netx_sc[...] = dotf(x_flat, wx_ref[...]) + bbig_ref[...]

    # Loop-invariant operands / broadcasts hoisted out of the unrolled loop.
    w_h = wh_ref[...]
    w_att = watt_ref[...]
    attv = attv_ref[...]
    rep_h = reph_ref[...]
    repsel = repsel_ref[...]
    sbias = jnp.broadcast_to(sbias_ref[...], (bsz, 128))

    h = h_sc[...]           # (B, Hp) f32
    c_pre = c_sc[...]       # (B, Hp) f32

    # net column layout (all offsets 128-lane aligned):
    #   [0, chp)              per-cell input gates
    #   [chp, 2*chp)          per-cell cell inputs
    #   [2*chp, +hp)          composition input gate
    #   [2*chp+hp, +hp)       composition output gate
    #   [2*chp+2*hp, +hp)     composition cell candidate
    for tt in range(t_blk):  # statically unrolled; t_blk <= 4 keeps live ranges bounded
        net = netx_sc[tt * bsz:(tt + 1) * bsz, :] + dotf(h.astype(cdt), w_h)   # (B, N) f32

        ig_all = jax.nn.sigmoid(net[:, :chp])
        cin_all = jnp.tanh(net[:, chp:2 * chp])
        i_g = jax.nn.sigmoid(net[:, 2 * chp:2 * chp + hp])
        o_g = jax.nn.sigmoid(net[:, 2 * chp + hp:2 * chp + 2 * hp])
        c_c = jnp.tanh(net[:, 2 * chp + 2 * hp:2 * chp + 3 * hp])

        # Per-cell LSTM cell states, lane-stacked (B, C*Hp).  c_pre is replicated
        # across the C slabs with one exact f32 MXU op (no lane concat on the
        # serial path).
        c_rep = dotf(c_pre, rep_h)                                   # (B, C*Hp)
        st_all = ig_all * cin_all + (1.0 - ig_all) * c_rep           # (B, C*Hp)

        # ---- Compute_Add_Attention (Source path; cell_proj == input_proj_S as in the
        # PyTorch code).  Block-diagonal projection keeps everything lane-stacked and
        # scores land directly as a (B, 128) lane slab (first C lanes real).
        att_in = jnp.concatenate([c_c, st_all], axis=1).astype(cdt)  # aligned concat
        s_all = jnp.tanh(dotf(att_in, w_att))                        # (B, C*Kp)
        scores = dotf(s_all, attv) + sbias                           # (B, 128)
        m = jnp.max(scores, axis=-1, keepdims=True)
        e = jnp.exp(scores - m)
        probs = e / jnp.sum(e, axis=-1, keepdims=True)               # (B, 128), lanes >= C are 0

        # Attention-weighted sum of cell states: one matmul lane-broadcast of probs,
        # then (C-1) aligned slab adds.
        weighted = dotf(probs, repsel) * st_all                      # (B, C*Hp)
        atten = weighted[:, :hp]
        for ci in range(1, c_num):
            atten = atten + weighted[:, ci * hp:(ci + 1) * hp]       # (B, Hp)

        c_new = (1.0 - i_g) * c_pre + i_g * atten
        h_new = o_g * jnp.tanh(c_new)

        # ONE lane-dense store per step: [hidden | C cell states | probs].
        out_ref[tt] = jnp.concatenate([h_new, st_all, probs], axis=1).astype(out_ref.dtype)

        h = h_new
        c_pre = c_new

    h_sc[...] = h
    c_sc[...] = c_pre


# ----------------------------------------------------------------------------- packing
def _prepare_packed_weights(params, compute_dtype):
    """Pack per-cell / per-gate weights into fused, 128-lane-padded kernel operands."""
    c_num, din, h = params["wgxi"].shape
    hp = _round_up(h, 128)
    kp = _round_up(2 * h, 128)
    chp = c_num * hp
    n_cols = 2 * chp + 3 * hp

    w_x = jnp.zeros((din, n_cols), jnp.float32)
    w_h = jnp.zeros((hp, n_cols), jnp.float32)
    b_big = jnp.zeros((1, n_cols), jnp.float32)
    for ci in range(c_num):
        w_x = w_x.at[:, ci * hp:ci * hp + h].set(params["wgxi"][ci])
        w_x = w_x.at[:, chp + ci * hp:chp + ci * hp + h].set(params["wgxc"][ci])
        w_h = w_h.at[:h, ci * hp:ci * hp + h].set(params["wghi"][ci])
        w_h = w_h.at[:h, chp + ci * hp:chp + ci * hp + h].set(params["wghc"][ci])
        b_big = b_big.at[:, ci * hp:ci * hp + h].set(params["bgi"][ci])
        b_big = b_big.at[:, chp + ci * hp:chp + ci * hp + h].set(params["bgc"][ci])
    off = 2 * chp
    w_x = w_x.at[:, off:off + h].set(params["wcxi"])
    w_x = w_x.at[:, off + hp:off + hp + h].set(params["wcxo"])
    w_x = w_x.at[:, off + 2 * hp:off + 2 * hp + h].set(params["wcxc"])
    w_h = w_h.at[:h, off:off + h].set(params["wchi"])
    w_h = w_h.at[:h, off + hp:off + hp + h].set(params["wcho"])
    w_h = w_h.at[:h, off + 2 * hp:off + 2 * hp + h].set(params["wchc"])
    b_big = b_big.at[:, off:off + h].set(params["bci"])
    b_big = b_big.at[:, off + hp:off + hp + h].set(params["bco"])
    b_big = b_big.at[:, off + 2 * hp:off + 2 * hp + h].set(params["bcc"])

    wip = params["wip"]            # (H, 2H)  (input_proj_S == cell_proj in Source path)
    attv = params["attv"][0]       # (2H,)

    # Rows [0:Hp) take c_c (replicated wip per cell); rows [Hp + ci*Hp, ...) take st_ci.
    w_att = jnp.zeros((hp + chp, c_num * kp), jnp.float32)
    attv_bd = jnp.zeros((c_num * kp, 128), jnp.float32)
    for ci in range(c_num):
        w_att = w_att.at[:h, ci * kp:ci * kp + 2 * h].set(wip)
        w_att = w_att.at[hp + ci * hp:hp + ci * hp + h, ci * kp:ci * kp + 2 * h].set(wip)
        attv_bd = attv_bd.at[ci * kp:ci * kp + 2 * h, ci].set(attv)

    rep_h = jnp.concatenate([jnp.eye(hp, dtype=jnp.float32)] * c_num, axis=1)  # (Hp, C*Hp)
    repsel = jnp.zeros((128, chp), jnp.float32)
    for ci in range(c_num):
        repsel = repsel.at[ci, ci * hp:(ci + 1) * hp].set(1.0)
    sbias = jnp.where(jnp.arange(128) < c_num, 0.0, -1e30).astype(jnp.float32)[None, :]

    packed = dict(
        wx=w_x.astype(compute_dtype), wh=w_h.astype(compute_dtype), bbig=b_big,
        watt=w_att.astype(compute_dtype), attv=attv_bd,
        reph=rep_h, repsel=repsel, sbias=sbias,
    )
    dims = dict(h=h, hp=hp, kp=kp, chp=chp, n_cols=n_cols, c_num=c_num)
    return packed, dims


# ----------------------------------------------------------------------------- wrapper
def multicell_lstm_forward(x, mask, params, *, t_blk=4, b_blk=None,
                           compute_dtype=jnp.float32, out_dtype=jnp.float32):
    """x: (B, S, Din) f32 -> (hidden (B,S,H), cell_states (B,S,C,H), probs (B,S,C))."""
    del mask  # TODO(synk): left2right=False (reverse + mask-driven gather reorder) path not implemented.
    b, s, din = x.shape
    packed, dims = _prepare_packed_weights(params, compute_dtype)
    h, hp, chp, c_num, n_cols = dims["h"], dims["hp"], dims["chp"], dims["c_num"], dims["n_cols"]
    assert c_num <= 128
    outw = hp + chp + 128          # [hidden | C cell states | probs(padded to 128)]

    # ---- chunk sizes: pad instead of degrading; cap t_blk; grow b_blk (recurrent-GEMM M).
    t_blk = max(1, min(int(t_blk), 4))
    s_pad = _round_up(s, t_blk)
    if b_blk is None:
        b_blk = min(128, _round_up(b, 8))
    b_blk = _round_up(int(b_blk), 8)
    b_pad = _round_up(b, b_blk)
    if b_pad // b_blk < 2 and b_blk >= 16:
        # keep >= 2 batch tiles so v7x's two TensorCores both get work (harmless on v5e/v6e)
        b_blk = _round_up(max(8, b_blk // 2), 8)
        b_pad = _round_up(b, b_blk)

    xp = jnp.zeros((b_pad, s_pad, din), x.dtype).at[:b, :s].set(x)
    xt = jnp.transpose(xp, (1, 0, 2))   # time-major (S, B, Din): dense leading-axis kernel I/O

    grid = (b_pad // b_blk, s_pad // t_blk)   # (batch tiles, time chunks)

    def const2d(arr):   # loop-invariant weight: constant block index -> no per-step refetch
        return pl.BlockSpec(arr.shape, lambda bi, ti: (0, 0))

    weight_order = ("wx", "wh", "bbig", "watt", "attv", "reph", "repsel", "sbias")
    weights = [packed[k] for k in weight_order]

    in_specs = [pl.BlockSpec((t_blk, b_blk, din), lambda bi, ti: (ti, bi, 0))]
    in_specs += [const2d(w) for w in weights]
    out_specs = pl.BlockSpec((t_blk, b_blk, outw), lambda bi, ti: (ti, bi, 0))
    out_shape = jax.ShapeDtypeStruct((s_pad, b_pad, outw), out_dtype)

    scratch_shapes = [
        pltpu.VMEM((t_blk * b_blk, n_cols), jnp.float32),   # hoisted x-side GEMM result
        pltpu.VMEM((b_blk, hp), jnp.float32),               # h carry
        pltpu.VMEM((b_blk, hp), jnp.float32),               # c carry
    ]

    # Explicit VMEM budget: weights (x2 buffers), input/output chunks (x2 double buffer),
    # plus scratch; clamped so the request is valid on v7x's 64 MiB per-TC VMEM.
    est = (2 * sum(w.size * w.dtype.itemsize for w in weights)
           + 2 * t_blk * b_blk * din * x.dtype.itemsize
           + 2 * t_blk * b_blk * outw * jnp.dtype(out_dtype).itemsize
           + (t_blk * b_blk * n_cols + 2 * b_blk * hp) * 4)
    vmem_limit = int(min(96 * 2 ** 20, max(48 * 2 ** 20, est * 3 // 2)))

    out = pl.pallas_call(
        _multicell_lstm_kernel,
        grid=grid,
        in_specs=in_specs,
        out_specs=out_specs,
        out_shape=out_shape,
        scratch_shapes=scratch_shapes,
        compiler_params=pltpu.CompilerParams(
            dimension_semantics=("parallel", "arbitrary"),  # batch || cores, time sequential
            vmem_limit_bytes=vmem_limit),
    )(xt, *weights)

    # Unpack to the PyTorch module's batch-major layout (one fused XLA pass; kept out of
    # the kernel so in-kernel stores stay a single lane-dense write per step).
    o = jnp.transpose(out, (1, 0, 2))[:b, :s].astype(jnp.float32)
    hidden_output_seq = o[..., :h]                                            # (B, S, H)
    cell_states_seq = o[..., hp:hp + chp].reshape(b, s, c_num, hp)[..., :h]   # (B, S, C, H)
    atten_probs_seq = o[..., hp + chp:hp + chp + c_num]                       # (B, S, C)
    return hidden_output_seq, cell_states_seq, atten_probs_seq


# ----------------------------------------------------------------------------- params
def init_params(key, input_size, hidden_size, cell_num, entity_mask_S):
    """Deterministic synthetic init matching the PyTorch module's parameter shapes
    (Linear weights stored transposed, i.e. (in, out)), with the Source-active cell
    subset already selected (cell_list_S_x / cell_list_S_h)."""
    H, Din = hidden_size, input_size
    ks = jax.random.split(key, 8)

    def u(k, shape, fan_in):
        b = 1.0 / math.sqrt(fan_in)
        return jax.random.uniform(k, shape, jnp.float32, -b, b)

    # Compute_Gate: per-cell Linear(Din, 2H) + Linear(H, 2H, no bias)
    wg_x = u(ks[0], (cell_num, Din, 2 * H), Din)
    bg = u(ks[1], (cell_num, 1, 2 * H), Din)
    wg_h = u(ks[2], (cell_num, H, 2 * H), H)
    src_idx = jnp.asarray([i for i in range(cell_num) if entity_mask_S[i] == 1], dtype=jnp.int32)
    wg_x, bg, wg_h = wg_x[src_idx], bg[src_idx], wg_h[src_idx]

    # Composition_Cell: Linear(Din, 3H) + Linear(H, 3H, no bias)
    wc_x = u(ks[3], (Din, 3 * H), Din)
    bc = u(ks[4], (1, 3 * H), Din)
    wc_h = u(ks[5], (H, 3 * H), H)

    # Compute_Add_Attention: input_proj_S (H, 2H), atten_v_S (2H,)
    wip = u(ks[6], (H, 2 * H), H)
    attv = u(ks[7], (1, 2 * H), 2 * H)

    return dict(
        wgxi=wg_x[:, :, :H], wgxc=wg_x[:, :, H:],
        bgi=bg[:, :, :H], bgc=bg[:, :, H:],
        wghi=wg_h[:, :, :H], wghc=wg_h[:, :, H:],
        wcxi=wc_x[:, :H], wcxo=wc_x[:, H:2 * H], wcxc=wc_x[:, 2 * H:],
        bci=bc[:, :H], bco=bc[:, H:2 * H], bcc=bc[:, 2 * H:],
        wchi=wc_h[:, :H], wcho=wc_h[:, H:2 * H], wchc=wc_h[:, 2 * H:],
        wip=wip, attv=attv,
    )


# ----------------------------------------------------------------------------- reference
def reference_forward(x, p):
    B, S, _ = x.shape
    H = p["wcxi"].shape[1]
    C = p["wgxi"].shape[0]
    h = jnp.zeros((B, H), jnp.float32)
    c = jnp.zeros((B, H), jnp.float32)
    hs, css, prs = [], [], []
    for t in range(S):
        xt = x[:, t]
        states = []
        for ci in range(C):
            ni = xt @ p["wgxi"][ci] + p["bgi"][ci] + h @ p["wghi"][ci]
            nc = xt @ p["wgxc"][ci] + p["bgc"][ci] + h @ p["wghc"][ci]
            ig = jax.nn.sigmoid(ni)
            cin = jnp.tanh(nc)
            states.append(ig * cin + (1.0 - ig) * c)
        cell_states = jnp.stack(states, axis=1)                     # (B, C, H)
        i_g = jax.nn.sigmoid(xt @ p["wcxi"] + p["bci"] + h @ p["wchi"])
        o_g = jax.nn.sigmoid(xt @ p["wcxo"] + p["bco"] + h @ p["wcho"])
        c_c = jnp.tanh(xt @ p["wcxc"] + p["bcc"] + h @ p["wchc"])
        ai = c_c @ p["wip"]                                         # (B, 2H)
        ac = jnp.einsum("bch,hk->bck", cell_states, p["wip"])
        sc = jnp.tanh(ai[:, None, :] + ac)
        scores = jnp.einsum("k,bck->bc", p["attv"][0], sc)
        probs = jax.nn.softmax(scores, axis=1)
        atten = jnp.einsum("bc,bch->bh", probs, cell_states)
        c = (1.0 - i_g) * c + i_g * atten
        h = o_g * jnp.tanh(c)
        hs.append(h)
        css.append(cell_states)
        prs.append(probs)
    return jnp.stack(hs, 1), jnp.stack(css, 1), jnp.stack(prs, 1)


# ----------------------------------------------------------------------------- main
if __name__ == "__main__":
    B, S, Din, H = 16, 8, 16, 32
    cell_num = 4
    entity_mask_S = [1, 1, 0, 1]   # Source-domain active cells -> cell_num_S = 3
    entity_mask_T = [1, 0, 1, 1]   # (Target path not exercised)

    key = jax.random.PRNGKey(0)
    k_x, k_p = jax.random.split(key)
    x = jax.random.normal(k_x, (B, S, Din), dtype=jnp.float32)
    mask = jnp.ones((B, S), dtype=jnp.float32)  # unused when left2right=True, as in PyTorch
    params = init_params(k_p, Din, H, cell_num, entity_mask_S)

    ref_hid, ref_cst, ref_prb = reference_forward(x, params)

    # f32 matmul operands: tight correctness check.
    hid, cst, prb = multicell_lstm_forward(x, mask, params, compute_dtype=jnp.float32)
    jax.block_until_ready((hid, cst, prb))
    assert hid.shape == (B, S, H) and cst.shape == (B, S, 3, H) and prb.shape == (B, S, 3)
    err = max(float(jnp.max(jnp.abs(hid - ref_hid))),
              float(jnp.max(jnp.abs(cst - ref_cst))),
              float(jnp.max(jnp.abs(prb - ref_prb))))
    assert err < 1e-2, f"f32 mismatch vs reference: max abs err = {err}"

    # bf16 matmul operands (v6e/v7x fast path); recurrent carries, element-wise math and
    # accumulation (preferred_element_type=f32) stay f32.
    hid_b, cst_b, prb_b = multicell_lstm_forward(x, mask, params, compute_dtype=jnp.bfloat16)
    jax.block_until_ready((hid_b, cst_b, prb_b))
    err_b = max(float(jnp.max(jnp.abs(hid_b - ref_hid))),
                float(jnp.max(jnp.abs(cst_b - ref_cst))),
                float(jnp.max(jnp.abs(prb_b - ref_prb))))
    assert err_b < 5e-2, f"bf16 mismatch vs reference: max abs err = {err_b}"

    print("KERNEL_OK")
</pallas_src>

<mosaic_0001>
module attributes {stable_mosaic.version = 11 : i64} {
  func.func @_multicell_lstm_kernel(%arg0: i32, %arg1: i32, %arg2: memref<4x8x16xf32, #tpu.memory_space<vmem>>, %arg3: memref<16x1152xf32, #tpu.memory_space<vmem>>, %arg4: memref<128x1152xf32, #tpu.memory_space<vmem>>, %arg5: memref<1x1152xf32, #tpu.memory_space<vmem>>, %arg6: memref<512x384xf32, #tpu.memory_space<vmem>>, %arg7: memref<384x128xf32, #tpu.memory_space<vmem>>, %arg8: memref<128x384xf32, #tpu.memory_space<vmem>>, %arg9: memref<128x384xf32, #tpu.memory_space<vmem>>, %arg10: memref<1x128xf32, #tpu.memory_space<vmem>>, %arg11: memref<4x8x640xf32, #tpu.memory_space<vmem>>, %arg12: memref<32x1152xf32, #tpu.memory_space<vmem>>, %arg13: memref<8x128xf32, #tpu.memory_space<vmem>>, %arg14: memref<8x128xf32, #tpu.memory_space<vmem>>) attributes {dimension_semantics = [#tpu.dimension_semantics<parallel>, #tpu.dimension_semantics<arbitrary>], iteration_bounds = array<i64: 2, 2>, scalar_prefetch = 0 : i64, scratch_operands = 3 : i64, tpu.core_type = #tpu.core_type<tc>, window_params = [{transform_indices = @transform_0, window_bounds = array<i64: 4, 8, 16>}, {pipeline_mode = #tpu.pipeline_mode<synchronous>, transform_indices = @transform_1, window_bounds = array<i64: 16, 1152>}, {pipeline_mode = #tpu.pipeline_mode<synchronous>, transform_indices = @transform_2, window_bounds = array<i64: 128, 1152>}, {pipeline_mode = #tpu.pipeline_mode<synchronous>, transform_indices = @transform_3, window_bounds = array<i64: 1, 1152>}, {pipeline_mode = #tpu.pipeline_mode<synchronous>, transform_indices = @transform_4, window_bounds = array<i64: 512, 384>}, {pipeline_mode = #tpu.pipeline_mode<synchronous>, transform_indices = @transform_5, window_bounds = array<i64: 384, 128>}, {pipeline_mode = #tpu.pipeline_mode<synchronous>, transform_indices = @transform_6, window_bounds = array<i64: 128, 384>}, {pipeline_mode = #tpu.pipeline_mode<synchronous>, transform_indices = @transform_7, window_bounds = array<i64: 128, 384>}, {pipeline_mode = #tpu.pipeline_mode<synchronous>, transform_indices = @transform_8, window_bounds = array<i64: 1, 128>}, {transform_indices = @transform_9, window_bounds = array<i64: 4, 8, 640>}]} {
    %c0_i32 = arith.constant 0 : i32
    %0 = arith.cmpi eq, %arg1, %c0_i32 : i32
    %1 = arith.extui %0 : i1 to i32
    %c0_i32_0 = arith.constant 0 : i32
    %2 = arith.cmpi ne, %1, %c0_i32_0 : i32
    scf.if %2 {
      %cst_91 = arith.constant 0.000000e+00 : f32
      %275 = vector.broadcast %cst_91 : f32 to vector<8x128xf32>
      %c0_92 = arith.constant 0 : index
      %c0_93 = arith.constant 0 : index
      %276 = vector.load %arg13[%c0_92, %c0_93] : memref<8x128xf32, #tpu.memory_space<vmem>>, vector<8x128xf32>
      tpu.vector_store %arg13[%c0_92, %c0_93], %275 {strides = array<i32>} : memref<8x128xf32, #tpu.memory_space<vmem>>, vector<8x128xf32>,
      %cst_94 = arith.constant 0.000000e+00 : f32
      %277 = vector.broadcast %cst_94 : f32 to vector<8x128xf32>
      %c0_95 = arith.constant 0 : index
      %c0_96 = arith.constant 0 : index
      %278 = vector.load %arg14[%c0_95, %c0_96] : memref<8x128xf32, #tpu.memory_space<vmem>>, vector<8x128xf32>
      tpu.vector_store %arg14[%c0_95, %c0_96], %277 {strides = array<i32>} : memref<8x128xf32, #tpu.memory_space<vmem>>, vector<8x128xf32>,
    } else {
    }
    %c0 = arith.constant 0 : index
    %c0_1 = arith.constant 0 : index
    %c0_2 = arith.constant 0 : index
    %3 = vector.load %arg2[%c0, %c0_1, %c0_2] : memref<4x8x16xf32, #tpu.memory_space<vmem>>, vector<4x8x16xf32>
    %4 = vector.shape_cast %3 : vector<4x8x16xf32> to vector<32x16xf32>
    %c0_3 = arith.constant 0 : index
    %c0_4 = arith.constant 0 : index
    %5 = vector.load %arg3[%c0_3, %c0_4] : memref<16x1152xf32, #tpu.memory_space<vmem>>, vector<16x1152xf32>
    %cst = arith.constant dense<0.000000e+00> : vector<32x1152xf32>
    %6 = tpu.matmul %4, %5, %cst {dimension_numbers = #tpu.dot_dimension_numbers<[1], [0], [0], [1], [0, 0, 1, 1], [], []>} : vector<32x16xf32>, vector<16x1152xf32>, vector<32x1152xf32> -> vector<32x1152xf32>
    %c0_5 = arith.constant 0 : index
    %c0_6 = arith.constant 0 : index
    %7 = vector.load %arg5[%c0_5, %c0_6] : memref<1x1152xf32, #tpu.memory_space<vmem>>, vector<1x1152xf32>
    %8 = vector.broadcast %7 : vector<1x1152xf32> to vector<32x1152xf32>
    %9 = arith.addf %6, %8 : vector<32x1152xf32>
    %c0_7 = arith.constant 0 : index
    %c0_8 = arith.constant 0 : index
    %10 = vector.load %arg12[%c0_7, %c0_8] : memref<32x1152xf32, #tpu.memory_space<vmem>>, vector<32x1152xf32>
    tpu.vector_store %arg12[%c0_7, %c0_8], %9 {strides = array<i32>} : memref<32x1152xf32, #tpu.memory_space<vmem>>, vector<32x1152xf32>,
    %c0_9 = arith.constant 0 : index
    %c0_10 = arith.constant 0 : index
    %11 = vector.load %arg4[%c0_9, %c0_10] : memref<128x1152xf32, #tpu.memory_space<vmem>>, vector<128x1152xf32>
    %c0_11 = arith.constant 0 : index
    %c0_12 = arith.constant 0 : index
    %12 = vector.load %arg6[%c0_11, %c0_12] : memref<512x384xf32, #tpu.memory_space<vmem>>, vector<512x384xf32>
    %c0_13 = arith.constant 0 : index
    %c0_14 = arith.constant 0 : index
    %13 = vector.load %arg7[%c0_13, %c0_14] : memref<384x128xf32, #tpu.memory_space<vmem>>, vector<384x128xf32>
    %c0_15 = arith.constant 0 : index
    %c0_16 = arith.constant 0 : index
    %14 = vector.load %arg8[%c0_15, %c0_16] : memref<128x384xf32, #tpu.memory_space<vmem>>, vector<128x384xf32>
    %c0_17 = arith.constant 0 : index
    %c0_18 = arith.constant 0 : index
    %15 = vector.load %arg9[%c0_17, %c0_18] : memref<128x384xf32, #tpu.memory_space<vmem>>, vector<128x384xf32>
    %c0_19 = arith.constant 0 : index
    %c0_20 = arith.constant 0 : index
    %16 = vector.load %arg10[%c0_19, %c0_20] : memref<1x128xf32, #tpu.memory_space<vmem>>, vector<1x128xf32>
    %17 = vector.shape_cast %16 : vector<1x128xf32> to vector<1x128xf32>
    %18 = vector.broadcast %17 : vector<1x128xf32> to vector<8x128xf32>
    %c0_21 = arith.constant 0 : index
    %c0_22 = arith.constant 0 : index
    %19 = vector.load %arg13[%c0_21, %c0_22] : memref<8x128xf32, #tpu.memory_space<vmem>>, vector<8x128xf32>
    %c0_23 = arith.constant 0 : index
    %c0_24 = arith.constant 0 : index
    %20 = vector.load %arg14[%c0_23, %c0_24] : memref<8x128xf32, #tpu.memory_space<vmem>>, vector<8x128xf32>
    %c0_25 = arith.constant 0 : index
    %c0_26 = arith.constant 0 : index
    %21 = vector.load %arg12[%c0_25, %c0_26] : memref<32x1152xf32, #tpu.memory_space<vmem>>, vector<8x1152xf32>
    %cst_27 = arith.constant dense<0.000000e+00> : vector<8x1152xf32>
    %22 = tpu.matmul %19, %11, %cst_27 {dimension_numbers = #tpu.dot_dimension_numbers<[1], [0], [0], [1], [0, 0, 1, 1], [], []>} : vector<8x128xf32>, vector<128x1152xf32>, vector<8x1152xf32> -> vector<8x1152xf32>
    %23 = arith.addf %21, %22 : vector<8x1152xf32>
    %24 = vector.extract_strided_slice %23 {offsets = [0, 0], sizes = [8, 384], strides = [1, 1]} : vector<8x1152xf32> to vector<8x384xf32>
    %25 = arith.negf %24 : vector<8x384xf32>
    %26 = math.exp %25 : vector<8x384xf32>
    %cst_28 = arith.constant 1.000000e+00 : f32
    %27 = vector.broadcast %cst_28 : f32 to vector<8x384xf32>
    %28 = arith.addf %27, %26 : vector<8x384xf32>
    %29 = arith.divf %27, %28 : vector<8x384xf32>
    %30 = vector.extract_strided_slice %23 {offsets = [0, 384], sizes = [8, 384], strides = [1, 1]} : vector<8x1152xf32> to vector<8x384xf32>
    %31 = math.tanh %30 : vector<8x384xf32>
    %32 = vector.extract_strided_slice %23 {offsets = [0, 768], sizes = [8, 128], strides = [1, 1]} : vector<8x1152xf32> to vector<8x128xf32>
    %33 = arith.negf %32 : vector<8x128xf32>
    %34 = math.exp %33 : vector<8x128xf32>
    %cst_29 = arith.constant 1.000000e+00 : f32
    %35 = vector.broadcast %cst_29 : f32 to vector<8x128xf32>
    %36 = arith.addf %35, %34 : vector<8x128xf32>
    %37 = arith.divf %35, %36 : vector<8x128xf32>
    %38 = vector.extract_strided_slice %23 {offsets = [0, 896], sizes = [8, 128], strides = [1, 1]} : vector<8x1152xf32> to vector<8x128xf32>
    %39 = arith.negf %38 : vector<8x128xf32>
    %40 = math.exp %39 : vector<8x128xf32>
    %cst_30 = arith.constant 1.000000e+00 : f32
    %41 = vector.broadcast %cst_30 : f32 to vector<8x128xf32>
    %42 = arith.addf %41, %40 : vector<8x128xf32>
    %43 = arith.divf %41, %42 : vector<8x128xf32>
    %44 = vector.extract_strided_slice %23 {offsets = [0, 1024], sizes = [8, 128], strides = [1, 1]} : vector<8x1152xf32> to vector<8x128xf32>
    %45 = math.tanh %44 : vector<8x128xf32>
    %cst_31 = arith.constant dense<0.000000e+00> : vector<8x384xf32>
    %46 = tpu.matmul %20, %14, %cst_31 {dimension_numbers = #tpu.dot_dimension_numbers<[1], [0], [0], [1], [0, 0, 1, 1], [], []>} : vector<8x128xf32>, vector<128x384xf32>, vector<8x384xf32> -> vector<8x384xf32>
    %47 = arith.mulf %29, %31 : vector<8x384xf32>
    %cst_32 = arith.constant 1.000000e+00 : f32
    %48 = vector.broadcast %cst_32 : f32 to vector<8x384xf32>
    %49 = arith.subf %48, %29 : vector<8x384xf32>
    %50 = arith.mulf %49, %46 : vector<8x384xf32>
    %51 = arith.addf %47, %50 : vector<8x384xf32>
    %52 = tpu.concatenate %45, %51 in 1 : vector<8x128xf32>, vector<8x384xf32> -> vector<8x512xf32>
    %cst_33 = arith.constant dense<0.000000e+00> : vector<8x384xf32>
    %53 = tpu.matmul %52, %12, %cst_33 {dimension_numbers = #tpu.dot_dimension_numbers<[1], [0], [0], [1], [0, 0, 1, 1], [], []>} : vector<8x512xf32>, vector<512x384xf32>, vector<8x384xf32> -> vector<8x384xf32>
    %54 = math.tanh %53 : vector<8x384xf32>
    %cst_34 = arith.constant dense<0.000000e+00> : vector<8x128xf32>
    %55 = tpu.matmul %54, %13, %cst_34 {dimension_numbers = #tpu.dot_dimension_numbers<[1], [0], [0], [1], [0, 0, 1, 1], [], []>} : vector<8x384xf32>, vector<384x128xf32>, vector<8x128xf32> -> vector<8x128xf32>
    %56 = arith.addf %55, %18 : vector<8x128xf32>
    %cst_35 = arith.constant dense<0xFF800000> : vector<8xf32>
    %57 = vector.multi_reduction <maximumf>, %56, %cst_35 [1] : vector<8x128xf32> to vector<8xf32>
    %58 = vector.shape_cast %57 : vector<8xf32> to vector<8x1xf32>
    %59 = vector.broadcast %58 : vector<8x1xf32> to vector<8x128xf32>
    %60 = arith.subf %56, %59 : vector<8x128xf32>
    %61 = math.exp %60 : vector<8x128xf32>
    %cst_36 = arith.constant dense<0.000000e+00> : vector<8xf32>
    %62 = vector.multi_reduction <add>, %61, %cst_36 [1] : vector<8x128xf32> to vector<8xf32>
    %63 = vector.shape_cast %62 : vector<8xf32> to vector<8x1xf32>
    %64 = vector.broadcast %63 : vector<8x1xf32> to vector<8x128xf32>
    %65 = arith.divf %61, %64 : vector<8x128xf32>
    %cst_37 = arith.constant dense<0.000000e+00> : vector<8x384xf32>
    %66 = tpu.matmul %65, %15, %cst_37 {dimension_numbers = #tpu.dot_dimension_numbers<[1], [0], [0], [1], [0, 0, 1, 1], [], []>} : vector<8x128xf32>, vector<128x384xf32>, vector<8x384xf32> -> vector<8x384xf32>
    %67 = arith.mulf %66, %51 : vector<8x384xf32>
    %68 = vector.extract_strided_slice %67 {offsets = [0, 0], sizes = [8, 128], strides = [1, 1]} : vector<8x384xf32> to vector<8x128xf32>
    %69 = vector.extract_strided_slice %67 {offsets = [0, 128], sizes = [8, 128], strides = [1, 1]} : vector<8x384xf32> to vector<8x128xf32>
    %70 = arith.addf %68, %69 : vector<8x128xf32>
    %71 = vector.extract_strided_slice %67 {offsets = [0, 256], sizes = [8, 128], strides = [1, 1]} : vector<8x384xf32> to vector<8x128xf32>
    %72 = arith.addf %70, %71 : vector<8x128xf32>
    %cst_38 = arith.constant 1.000000e+00 : f32
    %73 = vector.broadcast %cst_38 : f32 to vector<8x128xf32>
    %74 = arith.subf %73, %37 : vector<8x128xf32>
    %75 = arith.mulf %74, %20 : vector<8x128xf32>
    %76 = arith.mulf %37, %72 : vector<8x128xf32>
    %77 = arith.addf %75, %76 : vector<8x128xf32>
    %78 = math.tanh %77 : vector<8x128xf32>
    %79 = arith.mulf %43, %78 : vector<8x128xf32>
    %80 = tpu.concatenate %79, %51, %65 in 1 : vector<8x128xf32>, vector<8x384xf32>, vector<8x128xf32> -> vector<8x640xf32>
    %c0_39 = arith.constant 0 : index
    %c0_40 = arith.constant 0 : index
    %c0_41 = arith.constant 0 : index
    %81 = vector.load %arg11[%c0_39, %c0_40, %c0_41] : memref<4x8x640xf32, #tpu.memory_space<vmem>>, vector<1x8x640xf32>
    %82 = vector.shape_cast %81 : vector<1x8x640xf32> to vector<8x640xf32>
    %83 = vector.shape_cast %80 : vector<8x640xf32> to vector<1x8x640xf32>
    tpu.vector_store %arg11[%c0_39, %c0_40, %c0_41], %83 {strides = array<i32>} : memref<4x8x640xf32, #tpu.memory_space<vmem>>, vector<1x8x640xf32>,
    %c8 = arith.constant 8 : index
    %c0_42 = arith.constant 0 : index
    %84 = vector.load %arg12[%c8, %c0_42] : memref<32x1152xf32, #tpu.memory_space<vmem>>, vector<8x1152xf32>
    %cst_43 = arith.constant dense<0.000000e+00> : vector<8x1152xf32>
    %85 = tpu.matmul %79, %11, %cst_43 {dimension_numbers = #tpu.dot_dimension_numbers<[1], [0], [0], [1], [0, 0, 1, 1], [], []>} : vector<8x128xf32>, vector<128x1152xf32>, vector<8x1152xf32> -> vector<8x1152xf32>
    %86 = arith.addf %84, %85 : vector<8x1152xf32>
    %87 = vector.extract_strided_slice %86 {offsets = [0, 0], sizes = [8, 384], strides = [1, 1]} : vector<8x1152xf32> to vector<8x384xf32>
    %88 = arith.negf %87 : vector<8x384xf32>
    %89 = math.exp %88 : vector<8x384xf32>
    %cst_44 = arith.constant 1.000000e+00 : f32
    %90 = vector.broadcast %cst_44 : f32 to vector<8x384xf32>
    %91 = arith.addf %90, %89 : vector<8x384xf32>
    %92 = arith.divf %90, %91 : vector<8x384xf32>
    %93 = vector.extract_strided_slice %86 {offsets = [0, 384], sizes = [8, 384], strides = [1, 1]} : vector<8x1152xf32> to vector<8x384xf32>
    %94 = math.tanh %93 : vector<8x384xf32>
    %95 = vector.extract_strided_slice %86 {offsets = [0, 768], sizes = [8, 128], strides = [1, 1]} : vector<8x1152xf32> to vector<8x128xf32>
    %96 = arith.negf %95 : vector<8x128xf32>
    %97 = math.exp %96 : vector<8x128xf32>
    %cst_45 = arith.constant 1.000000e+00 : f32
    %98 = vector.broadcast %cst_45 : f32 to vector<8x128xf32>
    %99 = arith.addf %98, %97 : vector<8x128xf32>
    %100 = arith.divf %98, %99 : vector<8x128xf32>
    %101 = vector.extract_strided_slice %86 {offsets = [0, 896], sizes = [8, 128], strides = [1, 1]} : vector<8x1152xf32> to vector<8x128xf32>
    %102 = arith.negf %101 : vector<8x128xf32>
    %103 = math.exp %102 : vector<8x128xf32>
    %cst_46 = arith.constant 1.000000e+00 : f32
    %104 = vector.broadcast %cst_46 : f32 to vector<8x128xf32>
    %105 = arith.addf %104, %103 : vector<8x128xf32>
    %106 = arith.divf %104, %105 : vector<8x128xf32>
    %107 = vector.extract_strided_slice %86 {offsets = [0, 1024], sizes = [8, 128], strides = [1, 1]} : vector<8x1152xf32> to vector<8x128xf32>
    %108 = math.tanh %107 : vector<8x128xf32>
    %cst_47 = arith.constant dense<0.000000e+00> : vector<8x384xf32>
    %109 = tpu.matmul %77, %14, %cst_47 {dimension_numbers = #tpu.dot_dimension_numbers<[1], [0], [0], [1], [0, 0, 1, 1], [], []>} : vector<8x128xf32>, vector<128x384xf32>, vector<8x384xf32> -> vector<8x384xf32>
    %110 = arith.mulf %92, %94 : vector<8x384xf32>
    %cst_48 = arith.constant 1.000000e+00 : f32
    %111 = vector.broadcast %cst_48 : f32 to vector<8x384xf32>
    %112 = arith.subf %111, %92 : vector<8x384xf32>
    %113 = arith.mulf %112, %109 : vector<8x384xf32>
    %114 = arith.addf %110, %113 : vector<8x384xf32>
    %115 = tpu.concatenate %108, %114 in 1 : vector<8x128xf32>, vector<8x384xf32> -> vector<8x512xf32>
    %cst_49 = arith.constant dense<0.000000e+00> : vector<8x384xf32>
    %116 = tpu.matmul %115, %12, %cst_49 {dimension_numbers = #tpu.dot_dimension_numbers<[1], [0], [0], [1], [0, 0, 1, 1], [], []>} : vector<8x512xf32>, vector<512x384xf32>, vector<8x384xf32> -> vector<8x384xf32>
    %117 = math.tanh %116 : vector<8x384xf32>
    %cst_50 = arith.constant dense<0.000000e+00> : vector<8x128xf32>
    %118 = tpu.matmul %117, %13, %cst_50 {dimension_numbers = #tpu.dot_dimension_numbers<[1], [0], [0], [1], [0, 0, 1, 1], [], []>} : vector<8x384xf32>, vector<384x128xf32>, vector<8x128xf32> -> vector<8x128xf32>
    %119 = arith.addf %118, %18 : vector<8x128xf32>
    %cst_51 = arith.constant dense<0xFF800000> : vector<8xf32>
    %120 = vector.multi_reduction <maximumf>, %119, %cst_51 [1] : vector<8x128xf32> to vector<8xf32>
    %121 = vector.shape_cast %120 : vector<8xf32> to vector<8x1xf32>
    %122 = vector.broadcast %121 : vector<8x1xf32> to vector<8x128xf32>
    %123 = arith.subf %119, %122 : vector<8x128xf32>
    %124 = math.exp %123 : vector<8x128xf32>
    %cst_52 = arith.constant dense<0.000000e+00> : vector<8xf32>
    %125 = vector.multi_reduction <add>, %124, %cst_52 [1] : vector<8x128xf32> to vector<8xf32>
    %126 = vector.shape_cast %125 : vector<8xf32> to vector<8x1xf32>
    %127 = vector.broadcast %126 : vector<8x1xf32> to vector<8x128xf32>
    %128 = arith.divf %124, %127 : vector<8x128xf32>
    %cst_53 = arith.constant dense<0.000000e+00> : vector<8x384xf32>
    %129 = tpu.matmul %128, %15, %cst_53 {dimension_numbers = #tpu.dot_dimension_numbers<[1], [0], [0], [1], [0, 0, 1, 1], [], []>} : vector<8x128xf32>, vector<128x384xf32>, vector<8x384xf32> -> vector<8x384xf32>
    %130 = arith.mulf %129, %114 : vector<8x384xf32>
    %131 = vector.extract_strided_slice %130 {offsets = [0, 0], sizes = [8, 128], strides = [1, 1]} : vector<8x384xf32> to vector<8x128xf32>
    %132 = vector.extract_strided_slice %130 {offsets = [0, 128], sizes = [8, 128], strides = [1, 1]} : vector<8x384xf32> to vector<8x128xf32>
    %133 = arith.addf %131, %132 : vector<8x128xf32>
    %134 = vector.extract_strided_slice %130 {offsets = [0, 256], sizes = [8, 128], strides = [1, 1]} : vector<8x384xf32> to vector<8x128xf32>
    %135 = arith.addf %133, %134 : vector<8x128xf32>
    %cst_54 = arith.constant 1.000000e+00 : f32
    %136 = vector.broadcast %cst_54 : f32 to vector<8x128xf32>
    %137 = arith.subf %136, %100 : vector<8x128xf32>
    %138 = arith.mulf %137, %77 : vector<8x128xf32>
    %139 = arith.mulf %100, %135 : vector<8x128xf32>
    %140 = arith.addf %138, %139 : vector<8x128xf32>
    %141 = math.tanh %140 : vector<8x128xf32>
    %142 = arith.mulf %106, %141 : vector<8x128xf32>
    %143 = tpu.concatenate %142, %114, %128 in 1 : vector<8x128xf32>, vector<8x384xf32>, vector<8x128xf32> -> vector<8x640xf32>
    %c1 = arith.constant 1 : index
    %c0_55 = arith.constant 0 : index
    %c0_56 = arith.constant 0 : index
    %144 = vector.load %arg11[%c1, %c0_55, %c0_56] : memref<4x8x640xf32, #tpu.memory_space<vmem>>, vector<1x8x640xf32>
    %145 = vector.shape_cast %144 : vector<1x8x640xf32> to vector<8x640xf32>
    %146 = vector.shape_cast %143 : vector<8x640xf32> to vector<1x8x640xf32>
    tpu.vector_store %arg11[%c1, %c0_55, %c0_56], %146 {strides = array<i32>} : memref<4x8x640xf32, #tpu.memory_space<vmem>>, vector<1x8x640xf32>,
    %c16 = arith.constant 16 : index
    %c0_57 = arith.constant 0 : index
    %147 = vector.load %arg12[%c16, %c0_57] : memref<32x1152xf32, #tpu.memory_space<vmem>>, vector<8x1152xf32>
    %cst_58 = arith.constant dense<0.000000e+00> : vector<8x1152xf32>
    %148 = tpu.matmul %142, %11, %cst_58 {dimension_numbers = #tpu.dot_dimension_numbers<[1], [0], [0], [1], [0, 0, 1, 1], [], []>} : vector<8x128xf32>, vector<128x1152xf32>, vector<8x1152xf32> -> vector<8x1152xf32>
    %149 = arith.addf %147, %148 : vector<8x1152xf32>
    %150 = vector.extract_strided_slice %149 {offsets = [0, 0], sizes = [8, 384], strides = [1, 1]} : vector<8x1152xf32> to vector<8x384xf32>
    %151 = arith.negf %150 : vector<8x384xf32>
    %152 = math.exp %151 : vector<8x384xf32>
    %cst_59 = arith.constant 1.000000e+00 : f32
    %153 = vector.broadcast %cst_59 : f32 to vector<8x384xf32>
    %154 = arith.addf %153, %152 : vector<8x384xf32>
    %155 = arith.divf %153, %154 : vector<8x384xf32>
    %156 = vector.extract_strided_slice %149 {offsets = [0, 384], sizes = [8, 384], strides = [1, 1]} : vector<8x1152xf32> to vector<8x384xf32>
    %157 = math.tanh %156 : vector<8x384xf32>
    %158 = vector.extract_strided_slice %149 {offsets = [0, 768], sizes = [8, 128], strides = [1, 1]} : vector<8x1152xf32> to vector<8x128xf32>
    %159 = arith.negf %158 : vector<8x128xf32>
    %160 = math.exp %159 : vector<8x128xf32>
    %cst_60 = arith.constant 1.000000e+00 : f32
    %161 = vector.broadcast %cst_60 : f32 to vector<8x128xf32>
    %162 = arith.addf %161, %160 : vector<8x128xf32>
    %163 = arith.divf %161, %162 : vector<8x128xf32>
    %164 = vector.extract_strided_slice %149 {offsets = [0, 896], sizes = [8, 128], strides = [1, 1]} : vector<8x1152xf32> to vector<8x128xf32>
    %165 = arith.negf %164 : vector<8x128xf32>
    %166 = math.exp %165 : vector<8x128xf32>
    %cst_61 = arith.constant 1.000000e+00 : f32
    %167 = vector.broadcast %cst_61 : f32 to vector<8x128xf32>
    %168 = arith.addf %167, %166 : vector<8x128xf32>
    %169 = arith.divf %167, %168 : vector<8x128xf32>
    %170 = vector.extract_strided_slice %149 {offsets = [0, 1024], sizes = [8, 128], strides = [1, 1]} : vector<8x1152xf32> to vector<8x128xf32>
    %171 = math.tanh %170 : vector<8x128xf32>
    %cst_62 = arith.constant dense<0.000000e+00> : vector<8x384xf32>
    %172 = tpu.matmul %140, %14, %cst_62 {dimension_numbers = #tpu.dot_dimension_numbers<[1], [0], [0], [1], [0, 0, 1, 1], [], []>} : vector<8x128xf32>, vector<128x384xf32>, vector<8x384xf32> -> vector<8x384xf32>
    %173 = arith.mulf %155, %157 : vector<8x384xf32>
    %cst_63 = arith.constant 1.000000e+00 : f32
    %174 = vector.broadcast %cst_63 : f32 to vector<8x384xf32>
    %175 = arith.subf %174, %155 : vector<8x384xf32>
    %176 = arith.mulf %175, %172 : vector<8x384xf32>
    %177 = arith.addf %173, %176 : vector<8x384xf32>
    %178 = tpu.concatenate %171, %177 in 1 : vector<8x128xf32>, vector<8x384xf32> -> vector<8x512xf32>
    %cst_64 = arith.constant dense<0.000000e+00> : vector<8x384xf32>
    %179 = tpu.matmul %178, %12, %cst_64 {dimension_numbers = #tpu.dot_dimension_numbers<[1], [0], [0], [1], [0, 0, 1, 1], [], []>} : vector<8x512xf32>, vector<512x384xf32>, vector<8x384xf32> -> vector<8x384xf32>
    %180 = math.tanh %179 : vector<8x384xf32>
    %cst_65 = arith.constant dense<0.000000e+00> : vector<8x128xf32>
    %181 = tpu.matmul %180, %13, %cst_65 {dimension_numbers = #tpu.dot_dimension_numbers<[1], [0], [0], [1], [0, 0, 1, 1], [], []>} : vector<8x384xf32>, vector<384x128xf32>, vector<8x128xf32> -> vector<8x128xf32>
    %182 = arith.addf %181, %18 : vector<8x128xf32>
    %cst_66 = arith.constant dense<0xFF800000> : vector<8xf32>
    %183 = vector.multi_reduction <maximumf>, %182, %cst_66 [1] : vector<8x128xf32> to vector<8xf32>
    %184 = vector.shape_cast %183 : vector<8xf32> to vector<8x1xf32>
    %185 = vector.broadcast %184 : vector<8x1xf32> to vector<8x128xf32>
    %186 = arith.subf %182, %185 : vector<8x128xf32>
    %187 = math.exp %186 : vector<8x128xf32>
    %cst_67 = arith.constant dense<0.000000e+00> : vector<8xf32>
    %188 = vector.multi_reduction <add>, %187, %cst_67 [1] : vector<8x128xf32> to vector<8xf32>
    %189 = vector.shape_cast %188 : vector<8xf32> to vector<8x1xf32>
    %190 = vector.broadcast %189 : vector<8x1xf32> to vector<8x128xf32>
    %191 = arith.divf %187, %190 : vector<8x128xf32>
    %cst_68 = arith.constant dense<0.000000e+00> : vector<8x384xf32>
    %192 = tpu.matmul %191, %15, %cst_68 {dimension_numbers = #tpu.dot_dimension_numbers<[1], [0], [0], [1], [0, 0, 1, 1], [], []>} : vector<8x128xf32>, vector<128x384xf32>, vector<8x384xf32> -> vector<8x384xf32>
    %193 = arith.mulf %192, %177 : vector<8x384xf32>
    %194 = vector.extract_strided_slice %193 {offsets = [0, 0], sizes = [8, 128], strides = [1, 1]} : vector<8x384xf32> to vector<8x128xf32>
    %195 = vector.extract_strided_slice %193 {offsets = [0, 128], sizes = [8, 128], strides = [1, 1]} : vector<8x384xf32> to vector<8x128xf32>
    %196 = arith.addf %194, %195 : vector<8x128xf32>
    %197 = vector.extract_strided_slice %193 {offsets = [0, 256], sizes = [8, 128], strides = [1, 1]} : vector<8x384xf32> to vector<8x128xf32>
    %198 = arith.addf %196, %197 : vector<8x128xf32>
    %cst_69 = arith.constant 1.000000e+00 : f32
    %199 = vector.broadcast %cst_69 : f32 to vector<8x128xf32>
    %200 = arith.subf %199, %163 : vector<8x128xf32>
    %201 = arith.mulf %200, %140 : vector<8x128xf32>
    %202 = arith.mulf %163, %198 : vector<8x128xf32>
    %203 = arith.addf %201, %202 : vector<8x128xf32>
    %204 = math.tanh %203 : vector<8x128xf32>
    %205 = arith.mulf %169, %204 : vector<8x128xf32>
    %206 = tpu.concatenate %205, %177, %191 in 1 : vector<8x128xf32>, vector<8x384xf32>, vector<8x128xf32> -> vector<8x640xf32>
    %c2 = arith.constant 2 : index
    %c0_70 = arith.constant 0 : index
    %c0_71 = arith.constant 0 : index
    %207 = vector.load %arg11[%c2, %c0_70, %c0_71] : memref<4x8x640xf32, #tpu.memory_space<vmem>>, vector<1x8x640xf32>
    %208 = vector.shape_cast %207 : vector<1x8x640xf32> to vector<8x640xf32>
    %209 = vector.shape_cast %206 : vector<8x640xf32> to vector<1x8x640xf32>
    tpu.vector_store %arg11[%c2, %c0_70, %c0_71], %209 {strides = array<i32>} : memref<4x8x640xf32, #tpu.memory_space<vmem>>, vector<1x8x640xf32>,
    %c24 = arith.constant 24 : index
    %c0_72 = arith.constant 0 : index
    %210 = vector.load %arg12[%c24, %c0_72] : memref<32x1152xf32, #tpu.memory_space<vmem>>, vector<8x1152xf32>
    %cst_73 = arith.constant dense<0.000000e+00> : vector<8x1152xf32>
    %211 = tpu.matmul %205, %11, %cst_73 {dimension_numbers = #tpu.dot_dimension_numbers<[1], [0], [0], [1], [0, 0, 1, 1], [], []>} : vector<8x128xf32>, vector<128x1152xf32>, vector<8x1152xf32> -> vector<8x1152xf32>
    %212 = arith.addf %210, %211 : vector<8x1152xf32>
    %213 = vector.extract_strided_slice %212 {offsets = [0, 0], sizes = [8, 384], strides = [1, 1]} : vector<8x1152xf32> to vector<8x384xf32>
    %214 = arith.negf %213 : vector<8x384xf32>
    %215 = math.exp %214 : vector<8x384xf32>
    %cst_74 = arith.constant 1.000000e+00 : f32
    %216 = vector.broadcast %cst_74 : f32 to vector<8x384xf32>
    %217 = arith.addf %216, %215 : vector<8x384xf32>
    %218 = arith.divf %216, %217 : vector<8x384xf32>
    %219 = vector.extract_strided_slice %212 {offsets = [0, 384], sizes = [8, 384], strides = [1, 1]} : vector<8x1152xf32> to vector<8x384xf32>
    %220 = math.tanh %219 : vector<8x384xf32>
    %221 = vector.extract_strided_slice %212 {offsets = [0, 768], sizes = [8, 128], strides = [1, 1]} : vector<8x1152xf32> to vector<8x128xf32>
    %222 = arith.negf %221 : vector<8x128xf32>
    %223 = math.exp %222 : vector<8x128xf32>
    %cst_75 = arith.constant 1.000000e+00 : f32
    %224 = vector.broadcast %cst_75 : f32 to vector<8x128xf32>
    %225 = arith.addf %224, %223 : vector<8x128xf32>
    %226 = arith.divf %224, %225 : vector<8x128xf32>
    %227 = vector.extract_strided_slice %212 {offsets = [0, 896], sizes = [8, 128], strides = [1, 1]} : vector<8x1152xf32> to vector<8x128xf32>
    %228 = arith.negf %227 : vector<8x128xf32>
    %229 = math.exp %228 : vector<8x128xf32>
    %cst_76 = arith.constant 1.000000e+00 : f32
    %230 = vector.broadcast %cst_76 : f32 to vector<8x128xf32>
    %231 = arith.addf %230, %229 : vector<8x128xf32>
    %232 = arith.divf %230, %231 : vector<8x128xf32>
    %233 = vector.extract_strided_slice %212 {offsets = [0, 1024], sizes = [8, 128], strides = [1, 1]} : vector<8x1152xf32> to vector<8x128xf32>
    %234 = math.tanh %233 : vector<8x128xf32>
    %cst_77 = arith.constant dense<0.000000e+00> : vector<8x384xf32>
    %235 = tpu.matmul %203, %14, %cst_77 {dimension_numbers = #tpu.dot_dimension_numbers<[1], [0], [0], [1], [0, 0, 1, 1], [], []>} : vector<8x128xf32>, vector<128x384xf32>, vector<8x384xf32> -> vector<8x384xf32>
    %236 = arith.mulf %218, %220 : vector<8x384xf32>
    %cst_78 = arith.constant 1.000000e+00 : f32
    %237 = vector.broadcast %cst_78 : f32 to vector<8x384xf32>
    %238 = arith.subf %237, %218 : vector<8x384xf32>
    %239 = arith.mulf %238, %235 : vector<8x384xf32>
    %240 = arith.addf %236, %239 : vector<8x384xf32>
    %241 = tpu.concatenate %234, %240 in 1 : vector<8x128xf32>, vector<8x384xf32> -> vector<8x512xf32>
    %cst_79 = arith.constant dense<0.000000e+00> : vector<8x384xf32>
    %242 = tpu.matmul %241, %12, %cst_79 {dimension_numbers = #tpu.dot_dimension_numbers<[1], [0], [0], [1], [0, 0, 1, 1], [], []>} : vector<8x512xf32>, vector<512x384xf32>, vector<8x384xf32> -> vector<8x384xf32>
    %243 = math.tanh %242 : vector<8x384xf32>
    %cst_80 = arith.constant dense<0.000000e+00> : vector<8x128xf32>
    %244 = tpu.matmul %243, %13, %cst_80 {dimension_numbers = #tpu.dot_dimension_numbers<[1], [0], [0], [1], [0, 0, 1, 1], [], []>} : vector<8x384xf32>, vector<384x128xf32>, vector<8x128xf32> -> vector<8x128xf32>
    %245 = arith.addf %244, %18 : vector<8x128xf32>
    %cst_81 = arith.constant dense<0xFF800000> : vector<8xf32>
    %246 = vector.multi_reduction <maximumf>, %245, %cst_81 [1] : vector<8x128xf32> to vector<8xf32>
    %247 = vector.shape_cast %246 : vector<8xf32> to vector<8x1xf32>
    %248 = vector.broadcast %247 : vector<8x1xf32> to vector<8x128xf32>
    %249 = arith.subf %245, %248 : vector<8x128xf32>
    %250 = math.exp %249 : vector<8x128xf32>
    %cst_82 = arith.constant dense<0.000000e+00> : vector<8xf32>
    %251 = vector.multi_reduction <add>, %250, %cst_82 [1] : vector<8x128xf32> to vector<8xf32>
    %252 = vector.shape_cast %251 : vector<8xf32> to vector<8x1xf32>
    %253 = vector.broadcast %252 : vector<8x1xf32> to vector<8x128xf32>
    %254 = arith.divf %250, %253 : vector<8x128xf32>
    %cst_83 = arith.constant dense<0.000000e+00> : vector<8x384xf32>
    %255 = tpu.matmul %254, %15, %cst_83 {dimension_numbers = #tpu.dot_dimension_numbers<[1], [0], [0], [1], [0, 0, 1, 1], [], []>} : vector<8x128xf32>, vector<128x384xf32>, vector<8x384xf32> -> vector<8x384xf32>
    %256 = arith.mulf %255, %240 : vector<8x384xf32>
    %257 = vector.extract_strided_slice %256 {offsets = [0, 0], sizes = [8, 128], strides = [1, 1]} : vector<8x384xf32> to vector<8x128xf32>
    %258 = vector.extract_strided_slice %256 {offsets = [0, 128], sizes = [8, 128], strides = [1, 1]} : vector<8x384xf32> to vector<8x128xf32>
    %259 = arith.addf %257, %258 : vector<8x128xf32>
    %260 = vector.extract_strided_slice %256 {offsets = [0, 256], sizes = [8, 128], strides = [1, 1]} : vector<8x384xf32> to vector<8x128xf32>
    %261 = arith.addf %259, %260 : vector<8x128xf32>
    %cst_84 = arith.constant 1.000000e+00 : f32
    %262 = vector.broadcast %cst_84 : f32 to vector<8x128xf32>
    %263 = arith.subf %262, %226 : vector<8x128xf32>
    %264 = arith.mulf %263, %203 : vector<8x128xf32>
    %265 = arith.mulf %226, %261 : vector<8x128xf32>
    %266 = arith.addf %264, %265 : vector<8x128xf32>
    %267 = math.tanh %266 : vector<8x128xf32>
    %268 = arith.mulf %232, %267 : vector<8x128xf32>
    %269 = tpu.concatenate %268, %240, %254 in 1 : vector<8x128xf32>, vector<8x384xf32>, vector<8x128xf32> -> vector<8x640xf32>
    %c3 = arith.constant 3 : index
    %c0_85 = arith.constant 0 : index
    %c0_86 = arith.constant 0 : index
    %270 = vector.load %arg11[%c3, %c0_85, %c0_86] : memref<4x8x640xf32, #tpu.memory_space<vmem>>, vector<1x8x640xf32>
    %271 = vector.shape_cast %270 : vector<1x8x640xf32> to vector<8x640xf32>
    %272 = vector.shape_cast %269 : vector<8x640xf32> to vector<1x8x640xf32>
    tpu.vector_store %arg11[%c3, %c0_85, %c0_86], %272 {strides = array<i32>} : memref<4x8x640xf32, #tpu.memory_space<vmem>>, vector<1x8x640xf32>,
    %c0_87 = arith.constant 0 : index
    %c0_88 = arith.constant 0 : index
    %273 = vector.load %arg13[%c0_87, %c0_88] : memref<8x128xf32, #tpu.memory_space<vmem>>, vector<8x128xf32>
    tpu.vector_store %arg13[%c0_87, %c0_88], %268 {strides = array<i32>} : memref<8x128xf32, #tpu.memory_space<vmem>>, vector<8x128xf32>,
    %c0_89 = arith.constant 0 : index
    %c0_90 = arith.constant 0 : index
    %274 = vector.load %arg14[%c0_89, %c0_90] : memref<8x128xf32, #tpu.memory_space<vmem>>, vector<8x128xf32>
    tpu.vector_store %arg14[%c0_89, %c0_90], %266 {strides = array<i32>} : memref<8x128xf32, #tpu.memory_space<vmem>>, vector<8x128xf32>,
    return
  }
  func.func @transform_0(%arg0: i32, %arg1: i32) -> (i32, i32, i32) {
    %c0_i32 = arith.constant 0 : i32
    %c0_i32_0 = arith.constant 0 : i32
    return %arg1, %arg0, %c0_i32 : i32, i32, i32
  }
  func.func @transform_1(%arg0: i32, %arg1: i32) -> (i32, i32) {
    %c0_i32 = arith.constant 0 : i32
    %c0_i32_0 = arith.constant 0 : i32
    %c0_i32_1 = arith.constant 0 : i32
    return %c0_i32, %c0_i32_0 : i32, i32
  }
  func.func @transform_2(%arg0: i32, %arg1: i32) -> (i32, i32) {
    %c0_i32 = arith.constant 0 : i32
    %c0_i32_0 = arith.constant 0 : i32
    %c0_i32_1 = arith.constant 0 : i32
    return %c0_i32, %c0_i32_0 : i32, i32
  }
  func.func @transform_3(%arg0: i32, %arg1: i32) -> (i32, i32) {
    %c0_i32 = arith.constant 0 : i32
    %c0_i32_0 = arith.constant 0 : i32
    %c0_i32_1 = arith.constant 0 : i32
    return %c0_i32, %c0_i32_0 : i32, i32
  }
  func.func @transform_4(%arg0: i32, %arg1: i32) -> (i32, i32) {
    %c0_i32 = arith.constant 0 : i32
    %c0_i32_0 = arith.constant 0 : i32
    %c0_i32_1 = arith.constant 0 : i32
    return %c0_i32, %c0_i32_0 : i32, i32
  }
  func.func @transform_5(%arg0: i32, %arg1: i32) -> (i32, i32) {
    %c0_i32 = arith.constant 0 : i32
    %c0_i32_0 = arith.constant 0 : i32
    %c0_i32_1 = arith.constant 0 : i32
    return %c0_i32, %c0_i32_0 : i32, i32
  }
  func.func @transform_6(%arg0: i32, %arg1: i32) -> (i32, i32) {
    %c0_i32 = arith.constant 0 : i32
    %c0_i32_0 = arith.constant 0 : i32
    %c0_i32_1 = arith.constant 0 : i32
    return %c0_i32, %c0_i32_0 : i32, i32
  }
  func.func @transform_7(%arg0: i32, %arg1: i32) -> (i32, i32) {
    %c0_i32 = arith.constant 0 : i32
    %c0_i32_0 = arith.constant 0 : i32
    %c0_i32_1 = arith.constant 0 : i32
    return %c0_i32, %c0_i32_0 : i32, i32
  }
  func.func @transform_8(%arg0: i32, %arg1: i32) -> (i32, i32) {
    %c0_i32 = arith.constant 0 : i32
    %c0_i32_0 = arith.constant 0 : i32
    %c0_i32_1 = arith.constant 0 : i32
    return %c0_i32, %c0_i32_0 : i32, i32
  }
  func.func @transform_9(%arg0: i32, %arg1: i32) -> (i32, i32, i32) {
    %c0_i32 = arith.constant 0 : i32
    %c0_i32_0 = arith.constant 0 : i32
    return %arg1, %arg0, %c0_i32 : i32, i32, i32
  }
}

</mosaic_0001>

<bundles_post_ra>
// kernel: tpu_custom_call.1
= control target key start
LH: loop header
LB: loop body
LE: loop exit
PB: predicated region body
PF: predicated region fallthrough
CT: control target
= control target key end

     0   :  { %s12843_s0 = inlined_call_operand.hbm [shape: f32[8,16,16], index: 0, kind: input, shape index: {}]   ;;  %s12844_s1 = inlined_call_operand.hbm [shape: f32[16,1152], index: 1, kind: input, shape index: {}]   ;;  %s12845_s2 = inlined_call_operand.hbm [shape: f32[128,1152], index: 2, kind: input, shape index: {}]   ;;  %s12846_s3 = inlined_call_operand.vmem [shape: f32[1,1152], index: 3, kind: input, shape index: {}]   ;;  %s12847_s4 = inlined_call_operand.hbm [shape: f32[512,384], index: 4, kind: input, shape index: {}]   ;;  %s12848_s5 = inlined_call_operand.hbm [shape: f32[384,128], index: 5, kind: input, shape index: {}]   ;;  %s12849_s6 = inlined_call_operand.hbm [shape: f32[128,384], index: 6, kind: input, shape index: {}]   ;;  %s12850_s7 = inlined_call_operand.hbm [shape: f32[128,384], index: 7, kind: input, shape index: {}]   ;;  %s12851_s8 = inlined_call_operand.vmem [shape: f32[1,128], index: 8, kind: input, shape index: {}]   ;;  %s12852_s9 = inlined_call_operand.hbm [shape: f32[8,16,640], index: 9, kind: output, shape index: {}]  }
   0x1   :  { %13319 = sst [smem:[#allocation257_spill]] %s12844_s1 }
   0x2   :  { %13320 = sst [smem:[#allocation258_spill]] %s12845_s2 }
   0x3   :  { %13321 = sst [smem:[#allocation259_spill]] %s12846_s3 }
   0x4   :  { %13322 = sst [smem:[#allocation260_spill]] %s12847_s4 }
   0x5   :  { %13323 = sst [smem:[#allocation261_spill]] %s12848_s5 }
   0x6   :  { %13324 = sst [smem:[#allocation262_spill]] %s12849_s6 }
   0x7   :  { %13325 = sst [smem:[#allocation263_spill]] %s12850_s7 }
   0x8   :  { %13326 = sst [smem:[#allocation264_spill]] %s12851_s8 }
   0x9   :  { %13327 = sst [smem:[#allocation265_spill]] %s12852_s9 }
   0xa   :  { %14 = vsyncpa [#allocation6], 0 }
   0xb   :  { %16 = vsyncpa [#allocation6 + $0x1], 0 }
   0xc   :  { %17 = vsyncpa [#allocation9], 0 }
   0xd   :  { %18 = vsyncpa [#allocation12], 0 }
   0xe   :  { %19 = vsyncpa [#allocation15], 0 }
   0xf   :  { %20 = vsyncpa [#allocation7], 0 }
  0x10   :  { %22 = vsyncpa [#allocation7 + $0x1], 0  ;;  %s10480_s30 = smov 0   ;;  %s10482_s10 = smov 0  }
  0x11   :  { %s10484_s11 = smov 0   ;;  %s10486_s12 = smov 0  }
  0x12   :  { %s10488_s13 = smov 0   ;;  %s10490_s14 = smov 0  }
  0x13   :  { %s10492_s15 = smov 0   ;;  %s10494_s16 = smov 0  }
  0x14 LB: > { %13328 = sst [smem:[#allocation23_spill]] %s10394_s13  ;;  %s12853_s17 = sadd.s32 4294967295, %s10406_s16   ;;  %s10406_s16 = sphi %s10494_s16, %s28_s16   ;;  %s10402_s15 = sphi %s10492_s15, %s14221_s15   ;;  %s10398_s14 = sphi %s10490_s14, %s14220_s14   ;;  %s10394_s13 = sphi %s10488_s13, %s14219_s13   ;;  %s10390_s12 = sphi %s10486_s12, %s14218_s12   ;;  %s10386_s11 = sphi %s10484_s11, %s14217_s11   ;;  %s10382_s10 = sphi %s10482_s10, %s14216_s10   ;;  %s10378_s30 = sphi %s10480_s30, %s14215_s30  }
  0x15   : > { %p6284_p0 = scmp.ge.s32.totalorder %s10406_s16, 1  ;;  %p10524_p1 = scmp.eq.s32.totalorder %s12853_s17, 0 }
  0x16   : > { %p269_p2 = scmp.lt.s32.totalorder %s10406_s16, 5  ;;  %s10408_s20 = smov [#allocation8]  }
  0x17   : > { %s13329_s18 = scalar_select %p10524_p1, 1, 0 }
  0x18   : > { %p10529_p3 = pnand %p6284_p0, %p269_p2  ;;  %s281_s21 = sshll.u32 %s10408_s20, 4  ;;  %s282_s21 = int_to_ptr.vmem [resolvable:$true] %s281_s21 }
  0x19   : > { %s10409_s23 = smov [#allocation11]   ;;  %s13332_s1 = sld [smem:[#allocation257_spill]] }
  0x1a   : > { %s13330_s19 = scalar_select %p10529_p3, 1, 0 }
  0x1b   : > { %p9809_p4 = pneg %p10529_p3  ;;  %s310_s24 = sshll.u32 %s10409_s23, 4  ;;  %s10541_s24 = int_to_ptr.vmem [resolvable:$true] %s310_s24 }
  0x1d   : > { %p10537_p5 = pnand %p9809_p4, %p10524_p1 }
  0x1f   : > { %s10098_s27 = scalar_lea.hbm %s13332_s1, 2304  ;;  %p10551_p7 = pneg %p10537_p5 }
  0x20   : > { %p10099_p6 = scmp.ne.s32.totalorder %s13332_s1, %s10098_s27  ;;  %p10105_p10 = scmp.lt.u32.totalorder %s10098_s27, %s13332_s1 }
  0x22   : > { %p10101_p8 = pnand %p10551_p7, %p10099_p6 }
  0x24   : > { %p10102_p9 = pneg %p10101_p8 }
  0x26   : > { %p10107_p11 = pnand %p10105_p10, %p10102_p9 }
  0x28   : > { %10110 = shalt.err (!%p10107_p11)
}
  0x29   : > { %s10111_s25 = scalar_lea.vmem %s282_s21, 2304  ;;  %p10119_p2 = scmp.lt.s32.totalorder %s282_s21, %s282_s21 }
  0x2a   : > { %p10112_p12 = scmp.ne.s32.totalorder %s282_s21, %s10111_s25  ;;  %p10120_p4 = scmp.lt.s32.totalorder %s10111_s25, %s10111_s25 }
  0x2c   : > { %p10114_p13 = pnand %p10112_p12, %p10551_p7  ;;  %p10121_p3 = por %p10120_p4, %p10119_p2 }
  0x2e   : > { %p10115_p0 = pneg %p10114_p13 }
  0x30   : > { %p10122_p1 = pnand %p10121_p3, %p10115_p0 }
  0x32   : > { %10125 = shalt.err (!%p10122_p1)
}
  0x33   : > { %s12860_s26 = smov 1152   ;;  %s12861_s28 = smov 72  }
  0x34   : > { %9812 = dma.hbm_to_vmem [thread:$0]  (!%p10537_p5), %s13332_s1, 2304, %s282_s21, [#allocation9], %s12860_s26, %s12860_s26, %s12861_s28  }
  0x35   : > { %s13334_s4 = sld [smem:[#allocation260_spill]] }
  0x3b   : > { %s10126_s9 = scalar_lea.hbm %s13334_s4, 24576 }
  0x3c   : > { %p10127_p1 = scmp.ne.s32.totalorder %s13334_s4, %s10126_s9  ;;  %p10133_p8 = scmp.lt.u32.totalorder %s10126_s9, %s13334_s4 }
  0x3e   : > { %p10129_p3 = pnand %p10127_p1, %p10551_p7 }
  0x40   : > { %p10130_p6 = pneg %p10129_p3 }
  0x42   : > { %p10135_p9 = pnand %p10133_p8, %p10130_p6 }
  0x44   : > { %10138 = shalt.err (!%p10135_p9)
}
  0x45   : > { %s10139_s21 = scalar_lea.vmem %s10541_s24, 24576  ;;  %p10147_p13 = scmp.lt.s32.totalorder %s10541_s24, %s10541_s24 }
  0x46   : > { %p10140_p10 = scmp.ne.s32.totalorder %s10541_s24, %s10139_s21  ;;  %p10148_p0 = scmp.lt.s32.totalorder %s10139_s21, %s10139_s21 }
  0x48   : > { %p10142_p11 = pnand %p10140_p10, %p10551_p7  ;;  %p10149_p2 = por %p10148_p0, %p10147_p13 }
  0x4a   : > { %p10143_p12 = pneg %p10142_p11 }
  0x4c   : > { %p10150_p4 = pnand %p10149_p2, %p10143_p12 }
  0x4e   : > { %10153 = shalt.err (!%p10150_p4)
}
  0x4f   : > { %s12862_s13 = smov 384   ;;  %s12863_s3 = smov 24  }
  0x50   : > { %9818 = dma.hbm_to_vmem [thread:$0]  (!%p10537_p5), %s13334_s4, 24576, %s10541_s24, [#allocation12], %s12862_s13, %s12862_s13, %s12863_s3  }
  0x51   : > { %s10414_s17 = smov [#allocation14]   ;;  %s10415_s29 = smov [#allocation10]  }
  0x52   : > { %s336_s27 = sshll.u32 %s10414_s17, 4  ;;  %s294_s23 = sshll.u32 %s10415_s29, 4  ;;  %s337_s27 = int_to_ptr.vmem [resolvable:$true] %s336_s27  ;;  %s10596_s23 = int_to_ptr.vmem [resolvable:$true] %s294_s23 }
  0x53   : > { %s13335_s6 = sld [smem:[#allocation262_spill]] }
  0x59   : > { %s10154_s26 = scalar_lea.hbm %s13335_s6, 6144 }
  0x5a   : > { %p10155_p1 = scmp.ne.s32.totalorder %s13335_s6, %s10154_s26  ;;  %p10161_p8 = scmp.lt.u32.totalorder %s10154_s26, %s13335_s6 }
  0x5c   : > { %p10157_p3 = pnand %p10155_p1, %p10551_p7 }
  0x5e   : > { %p10158_p6 = pneg %p10157_p3 }
  0x60   : > { %p10163_p9 = pnand %p10161_p8, %p10158_p6 }
  0x62   : > { %10166 = shalt.err (!%p10163_p9)
}
  0x63   : > { %s10167_s9 = scalar_lea.vmem %s337_s27, 6144  ;;  %p10175_p13 = scmp.lt.s32.totalorder %s337_s27, %s337_s27 }
  0x64   : > { %p10168_p10 = scmp.ne.s32.totalorder %s337_s27, %s10167_s9  ;;  %p10176_p0 = scmp.lt.s32.totalorder %s10167_s9, %s10167_s9 }
  0x66   : > { %p10170_p11 = pnand %p10168_p10, %p10551_p7  ;;  %p10177_p2 = por %p10176_p0, %p10175_p13 }
  0x68   : > { %p10171_p12 = pneg %p10170_p11 }
  0x6a   : > { %p10178_p4 = pnand %p10177_p2, %p10171_p12 }
  0x6c   : > { %10181 = shalt.err (!%p10178_p4)
}
  0x6d   : > { %9824 = dma.hbm_to_vmem [thread:$0]  (!%p10537_p5), %s13335_s6, 6144, %s337_s27, [#allocation15], %s12862_s13, %s12862_s13, %s12863_s3  }
  0x6e   : > { %s13336_s2 = sld [smem:[#allocation258_spill]] }
  0x74   : > { %s10182_s29 = scalar_lea.hbm %s13336_s2, 18432 }
  0x75   : > { %p10183_p1 = scmp.ne.s32.totalorder %s13336_s2, %s10182_s29  ;;  %p10189_p8 = scmp.lt.u32.totalorder %s10182_s29, %s13336_s2 }
  0x77   : > { %p10185_p3 = pnand %p10183_p1, %p10551_p7 }
  0x79   : > { %p10186_p6 = pneg %p10185_p3 }
  0x7b   : > { %p10191_p9 = pnand %p10189_p8, %p10186_p6 }
  0x7d   : > { %10194 = shalt.err (!%p10191_p9)
}
  0x7e   : > { %s10195_s27 = scalar_lea.vmem %s10596_s23, 18432  ;;  %p10203_p13 = scmp.lt.s32.totalorder %s10596_s23, %s10596_s23 }
  0x7f   : > { %p10196_p10 = scmp.ne.s32.totalorder %s10596_s23, %s10195_s27  ;;  %p10204_p0 = scmp.lt.s32.totalorder %s10195_s27, %s10195_s27 }
  0x81   : > { %p10198_p11 = pnand %p10196_p10, %p10551_p7  ;;  %p10205_p2 = por %p10204_p0, %p10203_p13 }
  0x83   : > { %p10199_p12 = pneg %p10198_p11 }
  0x85   : > { %p10206_p4 = pnand %p10205_p2, %p10199_p12 }
  0x87   : > { %10209 = shalt.err (!%p10206_p4)
}
  0x88   : > { %s13337_s9 = smov 72   ;;  %s13338_s1 = smov 1152  }
  0x89   : > { %9815 = dma.hbm_to_vmem [thread:$0]  (!%p10537_p5), %s13336_s2, 18432, %s10596_s23, [#allocation9], %s13338_s1, %s13338_s1, %s13337_s9  }
  0x8a   : > { %s10416_s17 = smov [#allocation13]   ;;  %s13339_s5 = sld [smem:[#allocation261_spill]] }
  0x8b   : > { %s323_s29 = sshll.u32 %s10416_s17, 4  ;;  %s324_s29 = int_to_ptr.vmem [resolvable:$true] %s323_s29 }
  0x90   : > { %s10210_s8 = scalar_lea.hbm %s13339_s5, 6144 }
  0x91   : > { %p10211_p1 = scmp.ne.s32.totalorder %s13339_s5, %s10210_s8  ;;  %p10217_p8 = scmp.lt.u32.totalorder %s10210_s8, %s13339_s5 }
  0x93   : > { %p10213_p3 = pnand %p10211_p1, %p10551_p7 }
  0x95   : > { %p10214_p6 = pneg %p10213_p3 }
  0x97   : > { %p10219_p9 = pnand %p10217_p8, %p10214_p6 }
  0x99   : > { %10222 = shalt.err (!%p10219_p9)
}
  0x9a   : > { %s10223_s23 = scalar_lea.vmem %s324_s29, 6144  ;;  %p10231_p13 = scmp.lt.s32.totalorder %s324_s29, %s324_s29 }
  0x9b   : > { %p10224_p10 = scmp.ne.s32.totalorder %s324_s29, %s10223_s23  ;;  %p10232_p0 = scmp.lt.s32.totalorder %s10223_s23, %s10223_s23 }
  0x9d   : > { %p10226_p11 = pnand %p10224_p10, %p10551_p7  ;;  %p10233_p2 = por %p10232_p0, %p10231_p13 }
  0x9f   : > { %p10227_p12 = pneg %p10226_p11 }
  0xa1   : > { %p10234_p4 = pnand %p10233_p2, %p10227_p12 }
  0xa3   : > { %10237 = shalt.err (!%p10234_p4)
}
  0xa4   : > { %s12864_s9 = smov 128   ;;  %s12865_s1 = smov 8  }
  0xa5   : > { %9821 = dma.hbm_to_vmem [thread:$0]  (!%p10537_p5), %s13339_s5, 6144, %s324_s29, [#allocation12], %s12864_s9, %s12864_s9, %s12865_s1  }
  0xa6   : > { %s10419_s26 = smov [#allocation16]   ;;  %s13340_s7 = sld [smem:[#allocation263_spill]] }
  0xa7   : > { %s349_s28 = sshll.u32 %s10419_s26, 4  ;;  %s350_s28 = int_to_ptr.vmem [resolvable:$true] %s349_s28 }
  0xac   : > { %s10238_s21 = scalar_lea.hbm %s13340_s7, 6144 }
  0xad   : > { %p10239_p1 = scmp.ne.s32.totalorder %s13340_s7, %s10238_s21  ;;  %p10245_p8 = scmp.lt.u32.totalorder %s10238_s21, %s13340_s7 }
  0xaf   : > { %p10241_p3 = pnand %p10239_p1, %p10551_p7 }
  0xb1   : > { %p10242_p6 = pneg %p10241_p3 }
  0xb3   : > { %p10247_p9 = pnand %p10245_p8, %p10242_p6 }
  0xb5   : > { %10250 = shalt.err (!%p10247_p9)
}
  0xb6   : > { %s10251_s29 = scalar_lea.vmem %s350_s28, 6144  ;;  %p10259_p13 = scmp.lt.s32.totalorder %s350_s28, %s350_s28 }
  0xb7   : > { %p10252_p10 = scmp.ne.s32.totalorder %s350_s28, %s10251_s29  ;;  %p10260_p0 = scmp.lt.s32.totalorder %s10251_s29, %s10251_s29 }
  0xb9   : > { %p10254_p11 = pnand %p10252_p10, %p10551_p7  ;;  %p10261_p2 = por %p10260_p0, %p10259_p13 }
  0xbb   : > { %p10255_p12 = pneg %p10254_p11 }
  0xbd   : > { %p10262_p4 = pnand %p10261_p2, %p10255_p12 }
  0xbf   : > { %10265 = shalt.err (!%p10262_p4)
}
  0xc0   : > { %s13341_s13 = smov 24   ;;  %s13342_s3 = smov 384  }
  0xc1   : > { %9827 = dma.hbm_to_vmem [thread:$0]  (!%p10537_p5), %s13340_s7, 6144, %s350_s28, [#allocation15], %s13342_s3, %s13342_s3, %s13341_s13  }
  0xc2   : > { %s6283_s22 = sadd.s32 4294967294, %s10406_s16   ;;  %s37_s20 = sadd.s32 1, %s10398_s14 }
  0xc3   : > { %p38_p7 = scmp.ge.s32.totalorder %s37_s20, 2  ;;  %s40_s25 = sadd.s32 1, %s10402_s15 }
  0xc4   : > { %s49_s21 = sadd.s32 1, %s10386_s11  ;;  %p56_p1 = scmp.ne.s32.totalorder %s10386_s11, %s10382_s10 }
  0xc5   : > { %s14223_s20 = smov (%p38_p7, %s37_s20), 0  ;;  %s14225_s25 = smov (!%p38_p7, %s40_s25), %s10402_s15 }
  0xc6   : > { %s44_s8 = ssub.s32 %s10398_s14, %s14223_s20  ;;  %p57_p3 = scmp.eq.s32.totalorder %s10406_s16, 0 }
  0xc7   : > { %p42_p6 = scmp.ge.s32.totalorder %s14225_s25, 2  ;;  %p62_p5 = scmp.ne.s32.totalorder %s10382_s10, %s10378_s30 }
  0xc8   : > { %p10701_p8 = por %p57_p3, %p56_p1  ;;  %s13344_s24 = sadd.s32 4294967295, %s10406_s16  }
  0xc9   : > { %p256_p9 = scmp.eq.s32.totalorder %s13344_s24, 3  ;;  %s14227_s25 = smov (%p42_p6, %s14225_s25), 0 }
  0xca   : > { %p13345_p10 = scmp.ne.s32.totalorder %s13329_s18, 0  ;;  %s45_s29 = ssub.s32 %s10402_s15, %s14227_s25 }
  0xcb   : > { %p10715_p12 = por %p256_p9, %p56_p1  ;;  %p262_p13 = scmp.eq.s32.totalorder %s6283_s22, 3 }
  0xcc   : > { %p10711_p11 = por %p13345_p10, %p62_p5  ;;  %s46_s13 = sor.u32 %s45_s29, %s44_s8 }
  0xcd   : > { %s13347_s23 = scalar_select %p10715_p12, 1, 0 }
  0xce   : > { %p9842_p0 = scmp.lt.s32.totalorder %s10406_s16, 4  ;;  %p47_p2 = scmp.eq.s32.totalorder %s46_s13, 0 }
  0xcf   : > { %p10722_p4 = por %p262_p13, %p62_p5  ;;  %s366_s26 = sand.u32 1, %s10386_s11  }
  0xd0   : > { %s6367_s17 = sshll.u32 %s10398_s14, 3  ;;  %s6292_s9 = sshll.u32 %s366_s26, 5 }
  0xd1   : > { %s13348_s3 = scalar_select %p10722_p4, 1, 0 }
  0xd2   : > { %s10729_s24 = scalar_select %p47_p2, %s10386_s11, %s49_s21  }
  0xd3   : > { %s376_s1 = sadd.s32 %s10402_s15, %s6367_s17  ;;  %s370_s4 = scalar_lea.vmem [#allocation5], %s6292_s9 }
  0xd4   : > { %s6295_s2 = sshll.u32 %s376_s1, 7  ;;  %s379_s5 = sshll.u32 %s370_s4, 4  ;;  %s10737_s5 = int_to_ptr.vmem [resolvable:$true] %s379_s5 }
  0xd5   : > { %s10735_s22 = scalar_lea.hbm %s12843_s0, %s6295_s2  ;;  %p10743_p7 = pnand %p9842_p0, %p10701_p8 }
  0xd6   : > { %s10747_s4 = scalar_lea.sflag [#allocation6], %s366_s26  ;;  %s10266_s9 = scalar_lea.hbm %s10735_s22, 512 }
  0xd7   : > { %p10267_p1 = scmp.ne.s32.totalorder %s10735_s22, %s10266_s9  ;;  %p10268_p3 = pneg %p10743_p7 }
  0xd8   : > { %s10271_s7 = scalar_lea.hbm %s12843_s0, 2048  ;;  %p10272_p8 = scmp.lt.u32.totalorder %s10735_s22, %s12843_s0 }
  0xd9   : > { %p10269_p6 = pnand %p10268_p3, %p10267_p1  ;;  %p10273_p9 = scmp.lt.u32.totalorder %s10271_s7, %s10266_s9 }
  0xda   : > { %p10275_p13 = scmp.lt.u32.totalorder %s10266_s9, %s10735_s22 }
  0xdb   : > { %p10270_p5 = pneg %p10269_p6  ;;  %p10274_p10 = por %p10273_p9, %p10272_p8 }
  0xdd   : > { %p10276_p0 = por %p10275_p13, %p10274_p10 }
  0xdf   : > { %p10277_p2 = pnand %p10276_p0, %p10270_p5 }
  0xe1   : > { %10280 = shalt.err (!%p10277_p2)
}
  0xe2   : > { %s10281_s28 = scalar_lea.vmem %s10737_s5, 512  ;;  %s10420_s29 = smov [#allocation5]  }
  0xe3   : > { %p10282_p1 = scmp.ne.s32.totalorder %s10737_s5, %s10281_s28  ;;  %s10286_s13 = sshll.u32 %s10420_s29, 4  ;;  %s10287_s13 = int_to_ptr.vmem [resolvable:$false] %s10286_s13 }
  0xe4   : > { %s10288_s26 = scalar_lea.vmem %s10287_s13, 1024  ;;  %p10289_p12 = scmp.lt.s32.totalorder %s10737_s5, %s10287_s13 }
  0xe5   : > { %p10284_p6 = pnand %p10282_p1, %p10268_p3  ;;  %p10290_p8 = scmp.lt.s32.totalorder %s10288_s26, %s10281_s28 }
  0xe7   : > { %p10285_p4 = pneg %p10284_p6  ;;  %p10291_p9 = por %p10290_p8, %p10289_p12 }
  0xe9   : > { %p10292_p10 = pnand %p10291_p9, %p10285_p4 }
  0xeb   : > { %10295 = shalt.err (!%p10292_p10)
}
  0xec   : > { %s10421_s17 = smov 256   ;;  %s13350_s9 = smov 8  }
  0xed   : > { %s13351_s2 = smov 128   ;;  %p13352_p3 = scmp.ne.s32.totalorder %s13330_s19, 0 }
  0xee   : > { %9831 = dma.hbm_to_vmem [thread:$0]  (!%p10743_p7), %s10735_s22, 512, %s10737_s5, %s10747_s4, %s10421_s17, %s13351_s2, %s13350_s9  }
  0xef   : > { %391 = sbr.rel (%p13352_p3) target bundleno = 5833 (0x16c9), region = 56 }
  0xf6   : > { %s10780_s6 = sand.u32 1, %s10382_s10  }
  0xf7   : > { %s6297_s7 = sshll.u32 %s10780_s6, 5  ;;  %s394_s1 = scalar_lea.sflag [#allocation6], %s10780_s6 }
  0xf8   : > { %s10784_s8 = scalar_lea.vmem [#allocation5], %s6297_s7 }
  0xf9   : > { %10357 = dma.done.wait (%p10711_p11), %s394_s1, 512  }
  0xfa   : > { %10359 = vsyncadd (%p10711_p11), %s394_s1, 4294966784  ;;  %p13353_p12 = scmp.ne.s32.totalorder %s13329_s18, 0 }
  0xfc   : > { %10361 = dma.done.wait (%p13353_p12), [#allocation9], 20736  }
  0xfd   : > { %10363 = vsyncadd (%p13353_p12), [#allocation9], 4294946560 }
  0xfe   : > { %10365 = dma.done.wait (%p13353_p12), [#allocation12], 30720  }
  0xff   : > { %10367 = vsyncadd (%p13353_p12), [#allocation12], 4294936576 }
 0x100   : > { %10369 = dma.done.wait (%p13353_p12), [#allocation15], 12288  }
 0x101   : > { %10371 = vsyncadd (%p13353_p12), [#allocation15], 4294955008  ;;  %s9778_s5 = smul.u32 160, %s10780_s6  ;;  %p6304_p11 = scmp.ne.s32.totalorder %s10390_s12, 0 }
 0x102   : > { %v10422_v0 = vmov (!%p6304_p11), 0.0  }
 0x103   : > { %s10803_s19 = scalar_lea.vmem [#allocation17], %s9778_s5  ;;  %461 = sbr.rel (%p6304_p11) target bundleno = 266 (0x10a), region = 88  ;;  %462 = vst [vmem:[#allocation3] sm:$0xff] (!%p6304_p11), %v10422_v0  ;;  %463 = vst [vmem:[#allocation4] sm:$0xff] (!%p6304_p11), %v10422_v0 }
 0x10a PF: > { %v469_v1 = vld [vmem:[#allocation8 + $0x8] sm:$0xff]  ;;  %v478_v2 = vld [vmem:[#allocation8 + $0x50] sm:$0xff]  ;;  %v468_v3 = vld [vmem:[#allocation8] sm:$0xff]  ;;  %v12867_v6 = vmov 0.0   ;;  %vm535_vm0 = vcmask 130048   ;;  %vm10425_vm1 = vmmov 0  }
 0x10b   : > { %v7636_v4 = vpack.c.bf16 %v478_v2, %v469_v1  ;;  %v477_v5 = vld [vmem:[#allocation8 + $0x48] sm:$0xff]  ;;  %612 = vmatprep.mubr.f32.mxu0 %v12867_v6  ;;  %624 = vmatprep.mubr.f32.mxu1 %v12867_v6  ;;  %v471_v8 = vld [vmem:[#allocation8 + $0x18] sm:$0xff]  ;;  %v480_v9 = vld [vmem:[#allocation8 + $0x60] sm:$0xff]  ;;  %s13483_s22 = sld [smem:[#allocation259_spill]]  ;;  %s13563_s13 = sld [smem:[#allocation264_spill]] }
 0x10c   : > { %v7638_v7 = vpack.c.bf16 %v477_v5, %v468_v3  ;;  %v470_v10 = vld [vmem:[#allocation8 + $0x10] sm:$0xff]  ;;  %v10809_v11 = vld [vmem:[%s10784_s8] sm:$0xff]  ;;  %v7640_v13 = vpack.c.bf16 %v480_v9, %v471_v8  ;;  %v479_v14 = vld [vmem:[#allocation8 + $0x58] sm:$0xff]  ;;  %s14211_s5 = sld [smem:[#allocation23_spill]]  ;;  %s9780_s27 = smul.u32 40, %s10390_s12 }
 0x10d   : > { %7637 = vmatprep.subr.bf16.mxu0 %v7636_v4  ;;  %9704 = vmatprep.subr.bf16.mxu1 %v7636_v4  ;;  %v10812_v12 = vld [vmem:[%s10784_s8 + $0x10] sm:$0xff]  ;;  %v7642_v15 = vpack.c.bf16 %v479_v14, %v470_v10  ;;  %v473_v16 = vld [vmem:[#allocation8 + $0x28] sm:$0xff]  ;;  %v472_v18 = vld [vmem:[#allocation8 + $0x20] sm:$0xff]  ;;  %s6136_s28 = sshll.u32 %s10803_s19, 4  ;;  %s14212_s17 = sld [smem:[#allocation265_spill]]  ;;  %s12788_s28 = int_to_ptr.vmem [resolvable:$true] %s6136_s28 }
 0x10e   : > { %7639 = vmatpush1.bf16.msra.mxu0 %v7638_v7  ;;  %9705 = vmatpush1.bf16.msra.mxu1 %v7638_v7  ;;  %v482_v17 = vld [vmem:[#allocation8 + $0x70] sm:$0xff]  ;;  %v481_v20 = vld [vmem:[#allocation8 + $0x68] sm:$0xff]  ;;  %v475_v21 = vld [vmem:[#allocation8 + $0x38] sm:$0xff]  ;;  %s6120_s12 = scalar_lea.sflag [#allocation7], %s10780_s6  ;;  %s10296_s2 = scalar_lea.vmem %s12788_s28, 2560 }
 0x10f   : > { %7641 = vmatprep.subr.bf16.mxu1 %v7640_v13  ;;  %v7644_v19 = vpack.c.bf16 %v482_v17, %v473_v16  ;;  %v484_v22 = vld [vmem:[#allocation8 + $0x80] sm:$0xff]  ;;  %v7646_v23 = vpack.c.bf16 %v481_v20, %v472_v18  ;;  %v485_v26 = vld [vmem:[#allocation8 + $0x88] sm:$0xff]  ;;  %v10823_v28 = vld [vmem:[%s10784_s8 + $0x18] sm:$0xff]  ;;  %p10297_p4 = scmp.ne.s32.totalorder %s12788_s28, %s10296_s2  ;;  %p14213_p7 = scmp.ne.s32.totalorder %s13347_s23, 0 }
 0x110   : > { %v7648_v24 = vpack.c.bf16 %v484_v22, %v475_v21  ;;  %v476_v25 = vld [vmem:[#allocation8 + $0x40] sm:$0xff]  ;;  %v10820_v27 = vld [vmem:[%s10784_s8 + $0x8] sm:$0xff]  ;;  %v474_v29 = vld [vmem:[#allocation8 + $0x30] sm:$0xff]  ;;  %s10426_s7 = smov [#allocation17]  }
 0x111   : > { %6306 = vmatmul.mubr.msk.f32.vlgmr.msra.gmra.mrb[0].mxu0 %vm535_vm0, %v10809_v11  ;;  %6308 = vmatmul.mubr.msk.f32.vlgmr.msra.gmra.mrb[0].mxu1 %vm535_vm0, %v10812_v12  ;;  %v483_v30 = vld [vmem:[#allocation8 + $0x78] sm:$0xff]  ;;  %v7652_v31 = vpack.c.bf16 %v485_v26, %v476_v25  ;;  %v1035_v33 = vld [vmem:[#allocation10 + $0x50] sm:$0xff]  ;;  %v1028_v34 = vld [vmem:[#allocation10 + $0x18] sm:$0xff]  ;;  %s13564_s26 = smov %s13563_s13  ;;  %p10298_p5 = pnand %p10297_p4, %p14213_p7 }
 0x112   : > { %7643 = vmatpush1.bf16.msra.mxu1 %v7642_v15  ;;  %618 = vmatprep.mubr.f32.mxu0 %v12867_v6  ;;  %v1026_v32 = vld [vmem:[#allocation10 + $0x8] sm:$0xff]  ;;  %v1037_v35 = vld [vmem:[#allocation10 + $0x60] sm:$0xff]  ;;  %v7650_v36 = vpack.c.bf16 %v483_v30, %v474_v29  ;;  %v1027_v41 = vld [vmem:[#allocation10 + $0x10] sm:$0xff]  ;;  %s9779_s18 = smul.u32 5, %s14211_s5  ;;  %s10300_s1 = sshll.u32 %s10426_s7, 4  ;;  %s10301_s1 = int_to_ptr.vmem [resolvable:$false] %s10300_s1 }
 0x113   : > { %630 = vmatprep.mubr.f32.mxu1 %v12867_v6  ;;  %7645 = vmatprep.subr.bf16.mxu0 %v7644_v19  ;;  %v10832_v37 = vpack.c.bf16 %v1035_v33, %v1026_v32  ;;  %v10834_v38 = vpack.c.bf16 %v1037_v35, %v1028_v34  ;;  %v1025_v39 = vld [vmem:[#allocation10] sm:$0xff]  ;;  %v1034_v40 = vld [vmem:[#allocation10 + $0x48] sm:$0xff]  ;;  %v1036_v42 = vld [vmem:[#allocation10 + $0x58] sm:$0xff]  ;;  %p10299_p13 = pneg %p10298_p5  ;;  %s10302_s8 = scalar_lea.vmem %s10301_s1, 5120 }
 0x114   : > { %7647 = vmatpush1.bf16.msra.mxu0 %v7646_v23  ;;  %7649 = vmatprep.subr.bf16.mxu1 %v7648_v24  ;;  %v1044_v43 = vld [vmem:[#allocation10 + $0x98] sm:$0xff]  ;;  %v1053_v44 = vld [vmem:[#allocation10 + $0xe0] sm:$0xff]  ;;  %v1046_v45 = vld [vmem:[#allocation10 + $0xa8] sm:$0xff]  ;;  %v10863_v47 = vpack.c.bf16 %v1034_v40, %v1025_v39  ;;  %v10865_v48 = vpack.c.bf16 %v1036_v42, %v1027_v41  ;;  %s6133_s21 = sadd.s32 %s9780_s27, %s9779_s18  ;;  %p10303_p0 = scmp.lt.s32.totalorder %s12788_s28, %s10301_s1 }
 0x115   : > { %6307 = vmatmul.mubr.msk.f32.gmra.mrb[2].mxu0 %vm535_vm0, %v10820_v27  ;;  %6309 = vmatmul.mubr.msk.f32.gmra.mrb[2].mxu1 %vm535_vm0, %v10823_v28  ;;  %13354 = vst [vmem:[#allocation24_spill] sm:$0xff] %v10834_v38  ;;  %v1055_v46 = vld [vmem:[#allocation10 + $0xf0] sm:$0xff]  ;;  %v1052_v50 = vld [vmem:[#allocation10 + $0xd8] sm:$0xff]  ;;  %v10867_v51 = vpack.c.bf16 %v1053_v44, %v1044_v43  ;;  %v1045_v53 = vld [vmem:[#allocation10 + $0xa0] sm:$0xff]  ;;  %s6364_s4 = sshll.u32 %s6133_s21, 7  ;;  %p10304_p2 = scmp.lt.s32.totalorder %s10302_s8, %s10296_s2 }
 0x116   : > { %701 = vmatprep.mubr.f32.mxu1 %v12867_v6  ;;  %790 = vmatprep.mubr.f32.mxu0 %v12867_v6  ;;  %v1043_v49 = vld [vmem:[#allocation10 + $0x90] sm:$0xff]  ;;  %v10869_v52 = vpack.c.bf16 %v1055_v46, %v1046_v45  ;;  %v1054_v54 = vld [vmem:[#allocation10 + $0xe8] sm:$0xff]  ;;  %v1064_v57 = vld [vmem:[#allocation10 + $0x138] sm:$0xff]  ;;  %s12786_s9 = scalar_lea.hbm %s14212_s17, %s6364_s4 }
 0x117   : > { %7653 = vmatprep.subr.bf16.mxu0 %v7652_v31  ;;  %v1062_v55 = vld [vmem:[#allocation10 + $0x128] sm:$0xff]  ;;  %v1071_v56 = vld [vmem:[#allocation10 + $0x170] sm:$0xff]  ;;  %v1073_v58 = vld [vmem:[#allocation10 + $0x180] sm:$0xff]  ;;  %v10877_v59 = vpack.c.bf16 %v1052_v50, %v1043_v49  ;;  %v10879_v60 = vpack.c.bf16 %v1054_v54, %v1045_v53  ;;  %p10305_p1 = por %p10304_p2, %p10303_p0 }
 0x118   : > { %v1061_v61 = vld [vmem:[#allocation10 + $0x120] sm:$0xff]  ;;  %v1070_v62 = vld [vmem:[#allocation10 + $0x168] sm:$0xff]  ;;  %v10883_v63 = vpack.c.bf16 %v1071_v56, %v1062_v55  ;;  %v10885_v0 = vpack.c.bf16 %v1073_v58, %v1064_v57  ;;  %v1063_v1 = vld [vmem:[#allocation10 + $0x130] sm:$0xff] }
 0x119   : > { %6310 = vmatmul.mubr.msk.f32.vlgmr.msra.gmra.mrb[4].mxu1 %vm535_vm0, %v10809_v11  ;;  %6314 = vmatmul.mubr.msk.f32.vlgmr.msra.gmra.mrb[4].mxu0 %vm535_vm0, %v10809_v11  ;;  %v1072_v2 = vld [vmem:[#allocation10 + $0x178] sm:$0xff]  ;;  %v1089_v4 = vld [vmem:[#allocation10 + $0x200] sm:$0xff]  ;;  %v1082_v5 = vld [vmem:[#allocation10 + $0x1c8] sm:$0xff]  ;;  %v10896_v8 = vpack.c.bf16 %v1070_v62, %v1061_v61  ;;  %p10306_p6 = pnand %p10305_p1, %p10299_p13 }
 0x11a   : > { %7651 = vmatpush1.bf16.msra.mxu1 %v7650_v36  ;;  %707 = vmatprep.mubr.f32.mxu1 %v12867_v6  ;;  %v1080_v3 = vld [vmem:[#allocation10 + $0x1b8] sm:$0xff]  ;;  %v1091_v7 = vld [vmem:[#allocation10 + $0x210] sm:$0xff]  ;;  %v10898_v9 = vpack.c.bf16 %v1072_v2, %v1063_v1  ;;  %v1081_v15 = vld [vmem:[#allocation10 + $0x1c0] sm:$0xff] }
 0x11b   : > { %796 = vmatprep.mubr.f32.mxu0 %v12867_v6  ;;  %7655 = vmatpush3.bf16.msra.mxu0 %v7652_v31  ;;  %v1079_v10 = vld [vmem:[#allocation10 + $0x1b0] sm:$0xff]  ;;  %v10902_v13 = vpack.c.bf16 %v1089_v4, %v1080_v3  ;;  %v10904_v14 = vpack.c.bf16 %v1091_v7, %v1082_v5  ;;  %v1090_v16 = vld [vmem:[#allocation10 + $0x208] sm:$0xff]  ;;  %v1100_v19 = vld [vmem:[#allocation10 + $0x258] sm:$0xff] }
 0x11c   : > { %7657 = vmatprep.subr.bf16.mxu0 %v10832_v37  ;;  %7689 = vmatprep.subr.bf16.mxu1 %v10834_v38  ;;  %v1098_v17 = vld [vmem:[#allocation10 + $0x248] sm:$0xff]  ;;  %v1107_v18 = vld [vmem:[#allocation10 + $0x290] sm:$0xff]  ;;  %v1109_v20 = vld [vmem:[#allocation10 + $0x2a0] sm:$0xff]  ;;  %v10914_v22 = vpack.c.bf16 %v1090_v16, %v1081_v15 }
 0x11d   : > { %6311 = vmatmul.mubr.msk.f32.gmra.mrb[6].mxu1 %vm535_vm0, %v10820_v27  ;;  %6315 = vmatmul.mubr.msk.f32.gmra.mrb[6].mxu0 %vm535_vm0, %v10820_v27  ;;  %v1097_v23 = vld [vmem:[#allocation10 + $0x240] sm:$0xff]  ;;  %v1106_v24 = vld [vmem:[#allocation10 + $0x288] sm:$0xff]  ;;  %v10918_v25 = vpack.c.bf16 %v1107_v18, %v1098_v17  ;;  %v10920_v26 = vpack.c.bf16 %v1109_v20, %v1100_v19  ;;  %v1116_v29 = vld [vmem:[#allocation10 + $0x2d8] sm:$0xff] }
 0x11e   : > { %713 = vmatprep.mubr.f32.mxu1 %v12867_v6  ;;  %802 = vmatprep.mubr.f32.mxu0 %v12867_v6  ;;  %v1125_v30 = vld [vmem:[#allocation10 + $0x320] sm:$0xff]  ;;  %v1118_v31 = vld [vmem:[#allocation10 + $0x2e8] sm:$0xff]  ;;  %v1127_v32 = vld [vmem:[#allocation10 + $0x330] sm:$0xff]  ;;  %v10927_v33 = vpack.c.bf16 %v1106_v24, %v1097_v23 }
 0x11f   : > { %v1115_v35 = vld [vmem:[#allocation10 + $0x2d0] sm:$0xff]  ;;  %v1124_v36 = vld [vmem:[#allocation10 + $0x318] sm:$0xff]  ;;  %v10933_v39 = vpack.c.bf16 %v1125_v30, %v1116_v29  ;;  %v10935_v40 = vpack.c.bf16 %v1127_v32, %v1118_v31  ;;  %v1117_v41 = vld [vmem:[#allocation10 + $0x2e0] sm:$0xff] }
 0x120   : > { %v1134_v42 = vld [vmem:[#allocation10 + $0x368] sm:$0xff]  ;;  %v1143_v43 = vld [vmem:[#allocation10 + $0x3b0] sm:$0xff]  ;;  %v1136_v44 = vld [vmem:[#allocation10 + $0x378] sm:$0xff]  ;;  %v10940_v46 = vpack.c.bf16 %v1124_v36, %v1115_v35 }
 0x121   : > { %6312 = vmatmul.mubr.msk.f32.gmra.mrb[8].mxu1 %vm535_vm0, %v10812_v12  ;;  %6316 = vmatmul.mubr.msk.f32.gmra.mrb[8].mxu0 %vm535_vm0, %v10812_v12  ;;  %v1145_v45 = vld [vmem:[#allocation10 + $0x3c0] sm:$0xff]  ;;  %v1142_v53 = vld [vmem:[#allocation10 + $0x3a8] sm:$0xff]  ;;  %v10946_v54 = vpack.c.bf16 %v1143_v43, %v1134_v42  ;;  %v1135_v56 = vld [vmem:[#allocation10 + $0x370] sm:$0xff] }
 0x122   : > { %719 = vmatprep.mubr.f32.mxu1 %v12867_v6  ;;  %808 = vmatprep.mubr.f32.mxu0 %v12867_v6  ;;  %v1133_v50 = vld [vmem:[#allocation10 + $0x360] sm:$0xff]  ;;  %v10948_v55 = vpack.c.bf16 %v1145_v45, %v1136_v44  ;;  %v1144_v57 = vld [vmem:[#allocation10 + $0x3b8] sm:$0xff]  ;;  %v1154_v62 = vld [vmem:[#allocation10 + $0x408] sm:$0xff] }
 0x123   : > { %13356 = vst [vmem:[#allocation26_spill] sm:$0xff] %v10946_v54  ;;  %v1152_v58 = vld [vmem:[#allocation10 + $0x3f8] sm:$0xff]  ;;  %v1161_v61 = vld [vmem:[#allocation10 + $0x440] sm:$0xff]  ;;  %v1163_v1 = vld [vmem:[#allocation10 + $0x450] sm:$0xff]  ;;  %v10952_v2 = vpack.c.bf16 %v1142_v53, %v1133_v50  ;;  %v10954_v3 = vpack.c.bf16 %v1144_v57, %v1135_v56 }
 0x124   : > { %13357 = vst [vmem:[#allocation27_spill] sm:$0xff] %v10948_v55  ;;  %v1151_v4 = vld [vmem:[#allocation10 + $0x3f0] sm:$0xff]  ;;  %v1160_v5 = vld [vmem:[#allocation10 + $0x438] sm:$0xff]  ;;  %v10958_v7 = vpack.c.bf16 %v1161_v61, %v1152_v58  ;;  %v1162_v15 = vld [vmem:[#allocation10 + $0x448] sm:$0xff] }
 0x125   : > { %6313 = vmatmul.mubr.msk.f32.gmra.mrb[10].mxu1 %vm535_vm0, %v10823_v28  ;;  %6317 = vmatmul.mubr.msk.f32.gmra.mrb[10].mxu0 %vm535_vm0, %v10823_v28  ;;  %13358 = vst [vmem:[#allocation28_spill] sm:$0xff] %v10952_v2  ;;  %13359 = vst [vmem:[#allocation29_spill] sm:$0xff] %v10954_v3  ;;  %v1030_v16 = vld [vmem:[#allocation10 + $0x28] sm:$0xff]  ;;  %v1039_v17 = vld [vmem:[#allocation10 + $0x70] sm:$0xff]  ;;  %v10964_v20 = vpack.c.bf16 %v1160_v5, %v1151_v4 }
 0x126   : > { %879 = vmatprep.mubr.f32.mxu1 %v12867_v6  ;;  %7070 = vmatprep.mubr.msk.f32.mxu0 %vm535_vm0, %v10809_v11  ;;  %13360 = vst [vmem:[#allocation30_spill] sm:$0xff] %v10958_v7  ;;  %v1032_v18 = vld [vmem:[#allocation10 + $0x38] sm:$0xff]  ;;  %v1041_v19 = vld [vmem:[#allocation10 + $0x80] sm:$0xff]  ;;  %v1031_v30 = vld [vmem:[#allocation10 + $0x30] sm:$0xff] }
 0x127   : > { %13362 = vst [vmem:[#allocation32_spill] sm:$0xff] %v10964_v20  ;;  %v1029_v24 = vld [vmem:[#allocation10 + $0x20] sm:$0xff]  ;;  %v10972_v29 = vpack.c.bf16 %v1041_v19, %v1032_v18  ;;  %v1040_v31 = vld [vmem:[#allocation10 + $0x78] sm:$0xff]  ;;  %v1050_v36 = vld [vmem:[#allocation10 + $0xc8] sm:$0xff] }
 0x128   : > { %v1048_v32 = vld [vmem:[#allocation10 + $0xb8] sm:$0xff]  ;;  %v1057_v35 = vld [vmem:[#allocation10 + $0x100] sm:$0xff]  ;;  %v10980_v43 = vpack.c.bf16 %v1040_v31, %v1031_v30  ;;  %v1047_v44 = vld [vmem:[#allocation10 + $0xb0] sm:$0xff] }
 0x129   : > { %6318 = vmatmul.mubr.msk.f32.vlgmr.msra.gmra.mrb[12].mxu1 %vm535_vm0, %v10809_v11  ;;  %7071 = vmatmul.mubr.msk.f32.vlgmr.msra.gmra.mrb[12].mxu0 %vm535_vm0, %v10820_v27  ;;  %v1088_v11 = vld [vmem:[#allocation10 + $0x1f8] sm:$0xff]  ;;  %13365 = vst [vmem:[#allocation35_spill] sm:$0xff] %v10972_v29  ;;  %v10984_v50 = vpack.c.bf16 %v1057_v35, %v1048_v32  ;;  %v1049_v56 = vld [vmem:[#allocation10 + $0xc0] sm:$0xff]  ;;  %v1058_v57 = vld [vmem:[#allocation10 + $0x108] sm:$0xff] }
 0x12a   : > { %7659 = vmatpush1.bf16.msra.mxu0 %v10863_v47  ;;  %7691 = vmatpush1.bf16.msra.mxu1 %v10865_v48  ;;  %v10912_v21 = vpack.c.bf16 %v1088_v11, %v1079_v10  ;;  %v10960_v10 = vpack.c.bf16 %v1163_v1, %v1154_v62  ;;  %v1153_v11 = vld [vmem:[#allocation10 + $0x400] sm:$0xff]  ;;  %13367 = vst [vmem:[#allocation37_spill] sm:$0xff] %v10980_v43  ;;  %v1056_v45 = vld [vmem:[#allocation10 + $0xf8] sm:$0xff]  ;;  %v1066_v58 = vld [vmem:[#allocation10 + $0x148] sm:$0xff] }
 0x12b   : > { %7661 = vmatprep.subr.bf16.mxu0 %v10867_v51  ;;  %7693 = vmatprep.subr.bf16.mxu1 %v10869_v52  ;;  %v10966_v23 = vpack.c.bf16 %v1162_v15, %v1153_v11  ;;  %13368 = vst [vmem:[#allocation38_spill] sm:$0xff] %v10984_v50  ;;  %v1075_v61 = vld [vmem:[#allocation10 + $0x190] sm:$0xff]  ;;  %v1068_v62 = vld [vmem:[#allocation10 + $0x158] sm:$0xff]  ;;  %v1077_v1 = vld [vmem:[#allocation10 + $0x1a0] sm:$0xff]  ;;  %v10992_v4 = vpack.c.bf16 %v1056_v45, %v1047_v44 }
 0x12c   : > { %885 = vmatprep.mubr.f32.mxu1 %v12867_v6  ;;  %7073 = vmatprep.mubr.msk.f32.mxu0 %vm535_vm0, %v10812_v12  ;;  %13361 = vst [vmem:[#allocation31_spill] sm:$0xff] %v10960_v10  ;;  %v10994_v5 = vpack.c.bf16 %v1058_v57, %v1049_v56  ;;  %v1065_v11 = vld [vmem:[#allocation10 + $0x140] sm:$0xff]  ;;  %v1074_v15 = vld [vmem:[#allocation10 + $0x188] sm:$0xff]  ;;  %v1067_v18 = vld [vmem:[#allocation10 + $0x150] sm:$0xff] }
 0x12d   : > { %6319 = vmatmul.mubr.msk.f32.gmra.mrb[14].mxu1 %vm535_vm0, %v10820_v27  ;;  %7074 = vmatmul.mubr.msk.f32.gmra.mrb[14].mxu0 %vm535_vm0, %v10823_v28  ;;  %v1099_v27 = vld [vmem:[#allocation10 + $0x250] sm:$0xff]  ;;  %13363 = vst [vmem:[#allocation33_spill] sm:$0xff] %v10966_v23  ;;  %13370 = vst [vmem:[#allocation40_spill] sm:$0xff] %v10992_v4  ;;  %v1076_v19 = vld [vmem:[#allocation10 + $0x198] sm:$0xff]  ;;  %v11006_v32 = vpack.c.bf16 %v1074_v15, %v1065_v11 }
 0x12e   : > { %7663 = vmatpush1.bf16.msra.mxu0 %v10877_v59  ;;  %7695 = vmatpush1.bf16.msra.mxu1 %v10879_v60  ;;  %13371 = vst [vmem:[#allocation41_spill] sm:$0xff] %v10994_v5  ;;  %v1086_v30 = vld [vmem:[#allocation10 + $0x1e8] sm:$0xff]  ;;  %v1095_v31 = vld [vmem:[#allocation10 + $0x230] sm:$0xff]  ;;  %v11008_v35 = vpack.c.bf16 %v1076_v19, %v1067_v18  ;;  %v1085_v56 = vld [vmem:[#allocation10 + $0x1e0] sm:$0xff] }
 0x12f   : > { %7665 = vmatprep.subr.bf16.mxu0 %v10883_v63  ;;  %7697 = vmatprep.subr.bf16.mxu1 %v10885_v0  ;;  %13374 = vst [vmem:[#allocation44_spill] sm:$0xff] %v11006_v32  ;;  %v11014_v45 = vpack.c.bf16 %v1095_v31, %v1086_v30  ;;  %v1094_v57 = vld [vmem:[#allocation10 + $0x228] sm:$0xff]  ;;  %v1101_v18 = vld [vmem:[#allocation10 + $0x260] sm:$0xff]  ;;  %v1103_v30 = vld [vmem:[#allocation10 + $0x270] sm:$0xff] }
 0x130   : > { %891 = vmatprep.mubr.f32.mxu1 %v12867_v6  ;;  %1587 = vmatprep.mubr.f32.mxu0 %v12867_v6  ;;  %13375 = vst [vmem:[#allocation45_spill] sm:$0xff] %v11008_v35  ;;  %v11020_v15 = vpack.c.bf16 %v1094_v57, %v1085_v56  ;;  %v1110_v19 = vld [vmem:[#allocation10 + $0x2a8] sm:$0xff]  ;;  %v1112_v31 = vld [vmem:[#allocation10 + $0x2b8] sm:$0xff]  ;;  %v1119_v56 = vld [vmem:[#allocation10 + $0x2f0] sm:$0xff] }
 0x131   : > { %6320 = vmatmul.mubr.msk.f32.gmra.mrb[16].mxu1 %vm535_vm0, %v10812_v12  ;;  %v1108_v12 = vld [vmem:[#allocation10 + $0x298] sm:$0xff]  ;;  %13377 = vst [vmem:[#allocation47_spill] sm:$0xff] %v11014_v45 }
 0x132   : > { %7667 = vmatpush1.bf16.msra.mxu0 %v10896_v8  ;;  %7699 = vmatpush1.bf16.msra.mxu1 %v10898_v9  ;;  %v10929_v34 = vpack.c.bf16 %v1108_v12, %v1099_v27  ;;  %v1038_v27 = vld [vmem:[#allocation10 + $0x68] sm:$0xff]  ;;  %v10970_v12 = vpack.c.bf16 %v1039_v17, %v1030_v16  ;;  %v10998_v16 = vpack.c.bf16 %v1075_v61, %v1066_v58  ;;  %v1111_v61 = vld [vmem:[#allocation10 + $0x2b0] sm:$0xff]  ;;  %v1128_v57 = vld [vmem:[#allocation10 + $0x338] sm:$0xff] }
 0x133   : > { %7669 = vmatprep.subr.bf16.mxu0 %v10902_v13  ;;  %7701 = vmatprep.subr.bf16.mxu1 %v10904_v14  ;;  %v10978_v42 = vpack.c.bf16 %v1038_v27, %v1029_v24  ;;  %v11000_v17 = vpack.c.bf16 %v1077_v1, %v1068_v62  ;;  %v1084_v24 = vld [vmem:[#allocation10 + $0x1d8] sm:$0xff]  ;;  %v1093_v27 = vld [vmem:[#allocation10 + $0x220] sm:$0xff]  ;;  %v1102_v58 = vld [vmem:[#allocation10 + $0x268] sm:$0xff]  ;;  %13379 = vst [vmem:[#allocation49_spill] sm:$0xff] %v11020_v15 }
 0x134   : > { %897 = vmatprep.mubr.f32.mxu1 %v12867_v6  ;;  %13364 = vst [vmem:[#allocation34_spill] sm:$0xff] %v10970_v12  ;;  %13372 = vst [vmem:[#allocation42_spill] sm:$0xff] %v10998_v16  ;;  %v11012_v44 = vpack.c.bf16 %v1093_v27, %v1084_v24  ;;  %v1104_v62 = vld [vmem:[#allocation10 + $0x278] sm:$0xff]  ;;  %v1113_v1 = vld [vmem:[#allocation10 + $0x2c0] sm:$0xff]  ;;  %v11024_v24 = vpack.c.bf16 %v1111_v61, %v1102_v58 }
 0x135   : > { %6321 = vmatmul.mubr.msk.f32.gmra.mrb[18].mxu1 %vm535_vm0, %v10823_v28  ;;  %v1126_v28 = vld [vmem:[#allocation10 + $0x328] sm:$0xff]  ;;  %13366 = vst [vmem:[#allocation36_spill] sm:$0xff] %v10978_v42  ;;  %13373 = vst [vmem:[#allocation43_spill] sm:$0xff] %v11000_v17  ;;  %v11026_v27 = vpack.c.bf16 %v1113_v1, %v1104_v62  ;;  %v1121_v62 = vld [vmem:[#allocation10 + $0x300] sm:$0xff] }
 0x136   : > { %7671 = vmatpush1.bf16.msra.mxu0 %v10912_v21  ;;  %7703 = vmatpush1.bf16.msra.mxu1 %v10914_v22  ;;  %v10942_v49 = vpack.c.bf16 %v1126_v28, %v1117_v41  ;;  %v1059_v41 = vld [vmem:[#allocation10 + $0x110] sm:$0xff]  ;;  %v10976_v28 = vld [vmem:[#allocation3] sm:$0xff]  ;;  %13376 = vst [vmem:[#allocation46_spill] sm:$0xff] %v11012_v44  ;;  %13380 = vst [vmem:[#allocation50_spill] sm:$0xff] %v11024_v24 }
 0x137   : > { %7673 = vmatprep.subr.bf16.mxu0 %v10918_v25  ;;  %7705 = vmatprep.subr.bf16.mxu1 %v10920_v26  ;;  %v10986_v53 = vpack.c.bf16 %v1059_v41, %v1050_v36  ;;  %v1083_v36 = vld [vmem:[#allocation10 + $0x1d0] sm:$0xff]  ;;  %v1092_v41 = vld [vmem:[#allocation10 + $0x218] sm:$0xff]  ;;  %13381 = vst [vmem:[#allocation51_spill] sm:$0xff] %v11026_v27  ;;  %v1130_v1 = vld [vmem:[#allocation10 + $0x348] sm:$0xff] }
 0x138   : > { %1658 = vmatprep.mubr.f32.mxu1 %v12867_v6  ;;  %13355 = vst [vmem:[#allocation25_spill] sm:$0xff] %v10942_v49  ;;  %v11018_v11 = vpack.c.bf16 %v1092_v41, %v1083_v36  ;;  %v11030_v36 = vpack.c.bf16 %v1110_v19, %v1101_v18  ;;  %v11032_v41 = vpack.c.bf16 %v1112_v31, %v1103_v30  ;;  %v1137_v30 = vld [vmem:[#allocation10 + $0x380] sm:$0xff]  ;;  %v1146_v31 = vld [vmem:[#allocation10 + $0x3c8] sm:$0xff] }
 0x139   : > { %13369 = vst [vmem:[#allocation39_spill] sm:$0xff] %v10986_v53  ;;  %v11042_v18 = vpack.c.bf16 %v1128_v57, %v1119_v56  ;;  %v11044_v19 = vpack.c.bf16 %v1130_v1, %v1121_v62  ;;  %v11054_v56 = vpack.c.bf16 %v1146_v31, %v1137_v30  ;;  %v1155_v62 = vld [vmem:[#allocation10 + $0x410] sm:$0xff]  ;;  %v1166_v1 = vld [vmem:[#allocation10 + $0x468] sm:$0xff] }
 0x13a   : > { %7675 = vmatpush1.bf16.msra.mxu0 %v10927_v33  ;;  %7707 = vmatpush1.bf16.msra.mxu1 %v10929_v34  ;;  %13378 = vst [vmem:[#allocation48_spill] sm:$0xff] %v11018_v11  ;;  %13382 = vst [vmem:[#allocation52_spill] sm:$0xff] %v11030_v36 }
 0x13b   : > { %7677 = vmatprep.subr.bf16.mxu0 %v10933_v39  ;;  %7709 = vmatprep.subr.bf16.mxu1 %v10935_v40  ;;  %13383 = vst [vmem:[#allocation53_spill] sm:$0xff] %v11032_v41  ;;  %13386 = vst [vmem:[#allocation56_spill] sm:$0xff] %v11042_v18 }
 0x13c   : > { %13387 = vst [vmem:[#allocation57_spill] sm:$0xff] %v11044_v19  ;;  %13390 = vst [vmem:[#allocation60_spill] sm:$0xff] %v11054_v56 }
 0x13e   : > { %7679 = vmatpush1.bf16.msra.mxu0 %v10940_v46  ;;  %7711 = vmatpush1.bf16.msra.mxu1 %v10942_v49 }
 0x13f   : > { %7681 = vmatprep.subr.bf16.mxu0 %v10946_v54  ;;  %7713 = vmatprep.subr.bf16.mxu1 %v10948_v55 }
 0x142   : > { %7683 = vmatpush1.bf16.msra.mxu0 %v10952_v2  ;;  %7715 = vmatpush1.bf16.msra.mxu1 %v10954_v3 }
 0x143   : > { %7685 = vmatprep.subr.bf16.mxu0 %v10958_v7  ;;  %7717 = vmatprep.subr.bf16.mxu1 %v10960_v10 }
 0x146   : > { %7687 = vmatpush1.bf16.msra.mxu0 %v10964_v20  ;;  %7719 = vmatpush1.bf16.msra.mxu1 %v10966_v23 }
 0x147   : > { %7721 = vmatprep.subr.bf16.mxu0 %v10970_v12  ;;  %7753 = vmatprep.subr.bf16.mxu1 %v10972_v29 }
 0x149   : > { %1588 = vmatmul.mubr.f32.vlgmr.msra.gmra.mrb[0].mxu0 %v10976_v28  ;;  %1659 = vmatmul.mubr.f32.vlgmr.msra.gmra.mrb[4].mxu1 %v10976_v28 }
 0x14a   : > { %7723 = vmatpush1.bf16.msra.mxu0 %v10978_v42  ;;  %7755 = vmatpush1.bf16.msra.mxu1 %v10980_v43  ;;  %v1330_v43 = vld [vmem:[#allocation11 + $0x508] sm:$0xff]  ;;  %v1333_v42 = vld [vmem:[#allocation11 + $0x520] sm:$0xff] }
 0x14b   : > { %7725 = vmatprep.subr.bf16.mxu0 %v10984_v50  ;;  %7757 = vmatprep.subr.bf16.mxu1 %v10986_v53  ;;  %v1281_v53 = vld [vmem:[#allocation11 + $0x380] sm:$0xff]  ;;  %v1327_v50 = vld [vmem:[#allocation11 + $0x4f0] sm:$0xff] }
 0x14c   : > { %1729 = vmatprep.mubr.f32.mxu0 %v12867_v6  ;;  %1800 = vmatprep.mubr.f32.mxu1 %v12867_v6  ;;  %v1120_v6 = vld [vmem:[#allocation10 + $0x2f8] sm:$0xff] }
 0x14e   : > { %7727 = vmatpush1.bf16.msra.mxu0 %v10992_v4  ;;  %7759 = vmatpush1.bf16.msra.mxu1 %v10994_v5 }
 0x14f   : > { %7729 = vmatprep.subr.bf16.mxu0 %v10998_v16  ;;  %7761 = vmatprep.subr.bf16.mxu1 %v11000_v17  ;;  %v1122_v17 = vld [vmem:[#allocation10 + $0x308] sm:$0xff] }
 0x152   : > { %7731 = vmatpush1.bf16.msra.mxu0 %v11006_v32  ;;  %7763 = vmatpush1.bf16.msra.mxu1 %v11008_v35  ;;  %v1129_v32 = vld [vmem:[#allocation10 + $0x340] sm:$0xff]  ;;  %v1131_v35 = vld [vmem:[#allocation10 + $0x350] sm:$0xff] }
 0x153   : > { %7733 = vmatprep.subr.bf16.mxu0 %v11012_v44  ;;  %7765 = vmatprep.subr.bf16.mxu1 %v11014_v45  ;;  %v11036_v58 = vpack.c.bf16 %v1129_v32, %v1120_v6  ;;  %v11038_v61 = vpack.c.bf16 %v1131_v35, %v1122_v17  ;;  %v1138_v45 = vld [vmem:[#allocation10 + $0x388] sm:$0xff]  ;;  %v1140_v44 = vld [vmem:[#allocation10 + $0x398] sm:$0xff]  ;;  %v1139_v32 = vld [vmem:[#allocation10 + $0x390] sm:$0xff] }
 0x154   : > { %v1148_v35 = vld [vmem:[#allocation10 + $0x3d8] sm:$0xff] }
 0x155   : > { %13384 = vst [vmem:[#allocation54_spill] sm:$0xff] %v11036_v58  ;;  %13385 = vst [vmem:[#allocation55_spill] sm:$0xff] %v11038_v61  ;;  %v11056_v57 = vpack.c.bf16 %v1148_v35, %v1139_v32  ;;  %v1033_v32 = vld [vmem:[#allocation10 + $0x40] sm:$0xff]  ;;  %v1416_v35 = vld [vmem:[#allocation14 + $0x38] sm:$0xff] }
 0x156   : > { %7735 = vmatpush1.bf16.msra.mxu0 %v11018_v11  ;;  %7767 = vmatpush1.bf16.msra.mxu1 %v11020_v15  ;;  %v1147_v11 = vld [vmem:[#allocation10 + $0x3d0] sm:$0xff]  ;;  %v1149_v15 = vld [vmem:[#allocation10 + $0x3e0] sm:$0xff] }
 0x157   : > { %7737 = vmatprep.subr.bf16.mxu0 %v11024_v24  ;;  %7769 = vmatprep.subr.bf16.mxu1 %v11026_v27  ;;  %v11048_v6 = vpack.c.bf16 %v1147_v11, %v1138_v45  ;;  %v11050_v17 = vpack.c.bf16 %v1149_v15, %v1140_v44  ;;  %v1156_v27 = vld [vmem:[#allocation10 + $0x418] sm:$0xff]  ;;  %v1158_v24 = vld [vmem:[#allocation10 + $0x428] sm:$0xff]  ;;  %13391 = vst [vmem:[#allocation61_spill] sm:$0xff] %v11056_v57  ;;  %v1157_v15 = vld [vmem:[#allocation10 + $0x420] sm:$0xff] }
 0x158   : > { %v1164_v11 = vld [vmem:[#allocation10 + $0x458] sm:$0xff]  ;;  %v11068_v31 = vpack.c.bf16 %v1166_v1, %v1157_v15  ;;  %v1051_v15 = vld [vmem:[#allocation10 + $0xd0] sm:$0xff]  ;;  %v12957_v1 = vmov 0.0|0.0  }
 0x159   : > { %13388 = vst [vmem:[#allocation58_spill] sm:$0xff] %v11048_v6  ;;  %13389 = vst [vmem:[#allocation59_spill] sm:$0xff] %v11050_v17  ;;  %v11066_v30 = vpack.c.bf16 %v1164_v11, %v1155_v62 }
 0x15a   : > { %7739 = vmatpush1.bf16.msra.mxu0 %v11030_v36  ;;  %7771 = vmatpush1.bf16.msra.mxu1 %v11032_v41  ;;  %v1165_v36 = vld [vmem:[#allocation10 + $0x460] sm:$0xff]  ;;  %v1167_v41 = vld [vmem:[#allocation10 + $0x470] sm:$0xff]  ;;  %13395 = vst [vmem:[#allocation65_spill] sm:$0xff] %v11068_v31 }
 0x15b   : > { %7741 = vmatprep.subr.bf16.mxu0 %v11036_v58  ;;  %7773 = vmatprep.subr.bf16.mxu1 %v11038_v61  ;;  %v11060_v44 = vpack.c.bf16 %v1165_v36, %v1156_v27  ;;  %v11062_v45 = vpack.c.bf16 %v1167_v41, %v1158_v24  ;;  %v1410_v61 = vld [vmem:[#allocation14 + $0x8] sm:$0xff]  ;;  %13394 = vst [vmem:[#allocation64_spill] sm:$0xff] %v11066_v30  ;;  %v1409_v36 = vld [vmem:[#allocation14] sm:$0xff]  ;;  %v1412_v41 = vld [vmem:[#allocation14 + $0x18] sm:$0xff] }
 0x15c   : > { %v1042_v27 = vld [vmem:[#allocation10 + $0x88] sm:$0xff]  ;;  %v11078_v11 = vpack.c.bf16 %v1412_v41, %v1409_v36  ;;  %v1069_v36 = vld [vmem:[#allocation10 + $0x160] sm:$0xff] }
 0x15d   : > { %13392 = vst [vmem:[#allocation62_spill] sm:$0xff] %v11060_v44  ;;  %13393 = vst [vmem:[#allocation63_spill] sm:$0xff] %v11062_v45  ;;  %v11076_v62 = vpack.c.bf16 %v1042_v27, %v1033_v32  ;;  %v1078_v41 = vld [vmem:[#allocation10 + $0x1a8] sm:$0xff] }
 0x15e   : > { %7743 = vmatpush1.bf16.msra.mxu0 %v11042_v18  ;;  %7775 = vmatpush1.bf16.msra.mxu1 %v11044_v19  ;;  %v1413_v18 = vld [vmem:[#allocation14 + $0x20] sm:$0xff]  ;;  %13398 = vst [vmem:[#allocation68_spill] sm:$0xff] %v11078_v11 }
 0x15f   : > { %7745 = vmatprep.subr.bf16.mxu0 %v11048_v6  ;;  %7777 = vmatprep.subr.bf16.mxu1 %v11050_v17  ;;  %v11072_v24 = vpack.c.bf16 %v1413_v18, %v1410_v61  ;;  %v1419_v17 = vld [vmem:[#allocation14 + $0x50] sm:$0xff]  ;;  %13397 = vst [vmem:[#allocation67_spill] sm:$0xff] %v11076_v62  ;;  %v1060_v18 = vld [vmem:[#allocation10 + $0x118] sm:$0xff]  ;;  %v1437_v6 = vld [vmem:[#allocation14 + $0xe0] sm:$0xff] }
 0x160   : > { %v11082_v61 = vpack.c.bf16 %v1419_v17, %v1416_v35  ;;  %v11088_v32 = vpack.c.bf16 %v1060_v18, %v1051_v15  ;;  %v1421_v35 = vld [vmem:[#allocation14 + $0x60] sm:$0xff]  ;;  %v1096_v15 = vld [vmem:[#allocation10 + $0x238] sm:$0xff]  ;;  %v1427_v18 = vld [vmem:[#allocation14 + $0x90] sm:$0xff] }
 0x161   : > { %13396 = vst [vmem:[#allocation66_spill] sm:$0xff] %v11072_v24 }
 0x162   : > { %7747 = vmatpush1.bf16.msra.mxu0 %v11054_v56  ;;  %7779 = vmatpush1.bf16.msra.mxu1 %v11056_v57  ;;  %13399 = vst [vmem:[#allocation69_spill] sm:$0xff] %v11082_v61  ;;  %v1422_v57 = vld [vmem:[#allocation14 + $0x68] sm:$0xff]  ;;  %v1425_v56 = vld [vmem:[#allocation14 + $0x80] sm:$0xff]  ;;  %13400 = vst [vmem:[#allocation70_spill] sm:$0xff] %v11088_v32 }
 0x163   : > { %7749 = vmatprep.subr.bf16.mxu0 %v11060_v44  ;;  %7781 = vmatprep.subr.bf16.mxu1 %v11062_v45  ;;  %v1415_v45 = vld [vmem:[#allocation14 + $0x30] sm:$0xff]  ;;  %v1418_v44 = vld [vmem:[#allocation14 + $0x48] sm:$0xff]  ;;  %v11094_v17 = vpack.c.bf16 %v1425_v56, %v1422_v57 }
 0x164   : > { %v11090_v27 = vpack.c.bf16 %v1418_v44, %v1415_v45  ;;  %v11101_v44 = vpack.c.bf16 %v1078_v41, %v1069_v36  ;;  %v1087_v56 = vld [vmem:[#allocation10 + $0x1f0] sm:$0xff]  ;;  %v1105_v41 = vld [vmem:[#allocation10 + $0x280] sm:$0xff] }
 0x165   : > { %13402 = vst [vmem:[#allocation72_spill] sm:$0xff] %v11094_v17  ;;  %v11111_v36 = vpack.c.bf16 %v1096_v15, %v1087_v56  ;;  %v1123_v15 = vld [vmem:[#allocation10 + $0x310] sm:$0xff] }
 0x166   : > { %7751 = vmatpush1.bf16.msra.mxu0 %v11066_v30  ;;  %7783 = vmatpush1.bf16.msra.mxu1 %v11068_v31  ;;  %13401 = vst [vmem:[#allocation71_spill] sm:$0xff] %v11090_v27  ;;  %v1428_v31 = vld [vmem:[#allocation14 + $0x98] sm:$0xff]  ;;  %v1431_v30 = vld [vmem:[#allocation14 + $0xb0] sm:$0xff]  ;;  %13404 = vst [vmem:[#allocation73_spill] sm:$0xff] %v11101_v44 }
 0x167   : > { %7784 = vmatprep.subr.bf16.mxu1 %v12957_v1  ;;  %7809 = vmatprep.subr.bf16.mxu0 %v11072_v24  ;;  %v1424_v24 = vld [vmem:[#allocation14 + $0x78] sm:$0xff]  ;;  %v11107_v57 = vpack.c.bf16 %v1431_v30, %v1428_v31  ;;  %13407 = vst [vmem:[#allocation76_spill] sm:$0xff] %v11111_v36  ;;  %v1114_v31 = vld [vmem:[#allocation10 + $0x2c8] sm:$0xff] }
 0x168   : > { %v11103_v45 = vpack.c.bf16 %v1424_v24, %v1421_v35  ;;  %v1433_v35 = vld [vmem:[#allocation14 + $0xc0] sm:$0xff]  ;;  %v11121_v56 = vpack.c.bf16 %v1114_v31, %v1105_v41 }
 0x169   : > { %1730 = vmatmul.mubr.f32.vlgmr.msra.gmra.mrb[4].mxu0 %v10976_v28  ;;  %1801 = vmatmul.mubr.f32.vlgmr.msra.gmra.mrb[12].mxu1 %v10976_v28  ;;  %13406 = vst [vmem:[#allocation75_spill] sm:$0xff] %v11107_v57  ;;  %v1141_v31 = vld [vmem:[#allocation10 + $0x3a0] sm:$0xff] }
 0x16a   : > { %7786 = vmatpush3.bf16.msra.mxu1 %v11076_v62  ;;  %7811 = vmatpush1.bf16.msra.mxu0 %v11078_v11  ;;  %v13403_v62 = vmov 0.0   ;;  %13405 = vst [vmem:[#allocation74_spill] sm:$0xff] %v11103_v45  ;;  %v1434_v11 = vld [vmem:[#allocation14 + $0xc8] sm:$0xff]  ;;  %13410 = vst [vmem:[#allocation79_spill] sm:$0xff] %v11121_v56 }
 0x16b   : > { %7787 = vmatprep.subr.bf16.mxu1 %v12957_v1  ;;  %7813 = vmatprep.subr.bf16.mxu0 %v11082_v61  ;;  %v1430_v61 = vld [vmem:[#allocation14 + $0xa8] sm:$0xff]  ;;  %v11117_v30 = vpack.c.bf16 %v1437_v6, %v1434_v11  ;;  %v1132_v11 = vld [vmem:[#allocation10 + $0x358] sm:$0xff] }
 0x16c   : > { %7108 = vmatprep.mubr.msk.f32.mxu1 %vm10425_vm1, %v13403_v62  ;;  %1984 = vmatprep.mubr.f32.mxu0 %v13403_v62  ;;  %v11113_v24 = vpack.c.bf16 %v1430_v61, %v1427_v18  ;;  %v1439_v18 = vld [vmem:[#allocation14 + $0xf0] sm:$0xff]  ;;  %v11131_v41 = vpack.c.bf16 %v1132_v11, %v1123_v15 }
 0x16d   : > { %13409 = vst [vmem:[#allocation78_spill] sm:$0xff] %v11117_v30  ;;  %v1159_v11 = vld [vmem:[#allocation10 + $0x430] sm:$0xff] }
 0x16e   : > { %7789 = vmatpush3.bf16.msra.mxu1 %v11088_v32  ;;  %7815 = vmatpush1.bf16.msra.mxu0 %v11090_v27  ;;  %13408 = vst [vmem:[#allocation77_spill] sm:$0xff] %v11113_v24  ;;  %v1440_v27 = vld [vmem:[#allocation14 + $0xf8] sm:$0xff]  ;;  %v1443_v32 = vld [vmem:[#allocation14 + $0x110] sm:$0xff]  ;;  %13413 = vst [vmem:[#allocation82_spill] sm:$0xff] %v11131_v41 }
 0x16f   : > { %7790 = vmatprep.subr.bf16.mxu1 %v12957_v1  ;;  %7817 = vmatprep.subr.bf16.mxu0 %v11094_v17  ;;  %v1436_v17 = vld [vmem:[#allocation14 + $0xd8] sm:$0xff]  ;;  %v11127_v6 = vpack.c.bf16 %v1443_v32, %v1440_v27  ;;  %v1150_v27 = vld [vmem:[#allocation10 + $0x3e8] sm:$0xff] }
 0x170   : > { %v11123_v61 = vpack.c.bf16 %v1436_v17, %v1433_v35  ;;  %v1445_v35 = vld [vmem:[#allocation14 + $0x120] sm:$0xff]  ;;  %v11141_v15 = vpack.c.bf16 %v1150_v27, %v1141_v31  ;;  %v1414_v27 = vld [vmem:[#allocation14 + $0x28] sm:$0xff] }
 0x171   : > { %13412 = vst [vmem:[#allocation81_spill] sm:$0xff] %v11127_v6 }
 0x172   : > { %7792 = vmatpush3.bf16.msra.mxu1 %v11101_v44  ;;  %7819 = vmatpush1.bf16.msra.mxu0 %v11103_v45  ;;  %13411 = vst [vmem:[#allocation80_spill] sm:$0xff] %v11123_v61  ;;  %v1446_v45 = vld [vmem:[#allocation14 + $0x128] sm:$0xff]  ;;  %v1449_v44 = vld [vmem:[#allocation14 + $0x140] sm:$0xff]  ;;  %13416 = vst [vmem:[#allocation85_spill] sm:$0xff] %v11141_v15 }
 0x173   : > { %7793 = vmatprep.subr.bf16.mxu1 %v12957_v1  ;;  %7821 = vmatprep.subr.bf16.mxu0 %v11107_v57  ;;  %v1442_v57 = vld [vmem:[#allocation14 + $0x108] sm:$0xff]  ;;  %v11137_v32 = vpack.c.bf16 %v1449_v44, %v1446_v45  ;;  %v1168_v45 = vld [vmem:[#allocation10 + $0x478] sm:$0xff] }
 0x174   : > { %v11133_v17 = vpack.c.bf16 %v1442_v57, %v1439_v18  ;;  %v1451_v18 = vld [vmem:[#allocation14 + $0x150] sm:$0xff] }
 0x175   : > { %13415 = vst [vmem:[#allocation84_spill] sm:$0xff] %v11137_v32 }
 0x176   : > { %7795 = vmatpush3.bf16.msra.mxu1 %v11111_v36  ;;  %7823 = vmatpush1.bf16.msra.mxu0 %v11113_v24  ;;  %13414 = vst [vmem:[#allocation83_spill] sm:$0xff] %v11133_v17  ;;  %v1452_v24 = vld [vmem:[#allocation14 + $0x158] sm:$0xff]  ;;  %v1455_v36 = vld [vmem:[#allocation14 + $0x170] sm:$0xff] }
 0x177   : > { %7796 = vmatprep.subr.bf16.mxu1 %v12957_v1  ;;  %7825 = vmatprep.subr.bf16.mxu0 %v11117_v30  ;;  %v1448_v30 = vld [vmem:[#allocation14 + $0x138] sm:$0xff]  ;;  %v11147_v44 = vpack.c.bf16 %v1455_v36, %v1452_v24  ;;  %v1513_v36 = vld [vmem:[#allocation4] sm:$0xff] }
 0x178   : > { %v11143_v57 = vpack.c.bf16 %v1448_v30, %v1445_v35  ;;  %v1411_v30 = vld [vmem:[#allocation14 + $0x10] sm:$0xff]  ;;  %v1417_v35 = vld [vmem:[#allocation14 + $0x40] sm:$0xff] }
 0x179   : > { %13418 = vst [vmem:[#allocation87_spill] sm:$0xff] %v11147_v44  ;;  %v11159_v24 = vpack.c.bf16 %v1414_v27, %v1411_v30  ;;  %v1429_v27 = vld [vmem:[#allocation14 + $0xa0] sm:$0xff] }
 0x17a   : > { %7798 = vmatpush3.bf16.msra.mxu1 %v11121_v56  ;;  %7827 = vmatpush1.bf16.msra.mxu0 %v11123_v61  ;;  %13417 = vst [vmem:[#allocation86_spill] sm:$0xff] %v11143_v57 }
 0x17b   : > { %7799 = vmatprep.subr.bf16.mxu1 %v12957_v1  ;;  %7829 = vmatprep.subr.bf16.mxu0 %v11127_v6  ;;  %v1454_v6 = vld [vmem:[#allocation14 + $0x168] sm:$0xff]  ;;  %13421 = vst [vmem:[#allocation90_spill] sm:$0xff] %v11159_v24 }
 0x17c   : > { %v11153_v31 = vpack.c.bf16 %v1454_v6, %v1451_v18  ;;  %v1426_v18 = vld [vmem:[#allocation14 + $0x88] sm:$0xff] }
 0x17e   : > { %7801 = vmatpush3.bf16.msra.mxu1 %v11131_v41  ;;  %7831 = vmatpush1.bf16.msra.mxu0 %v11133_v17  ;;  %v11151_v41 = vpack.c.bf16 %v1168_v45, %v1159_v11  ;;  %13420 = vst [vmem:[#allocation89_spill] sm:$0xff] %v11153_v31  ;;  %v1420_v11 = vld [vmem:[#allocation14 + $0x58] sm:$0xff]  ;;  %v1423_v45 = vld [vmem:[#allocation14 + $0x70] sm:$0xff] }
 0x17f   : > { %7802 = vmatprep.subr.bf16.mxu1 %v12957_v1  ;;  %7833 = vmatprep.subr.bf16.mxu0 %v11137_v32  ;;  %v11164_v6 = vpack.c.bf16 %v1420_v11, %v1417_v35  ;;  %v11170_v30 = vpack.c.bf16 %v1426_v18, %v1423_v45  ;;  %v1435_v35 = vld [vmem:[#allocation14 + $0xd0] sm:$0xff]  ;;  %v1438_v11 = vld [vmem:[#allocation14 + $0xe8] sm:$0xff]  ;;  %v1441_v45 = vld [vmem:[#allocation14 + $0x100] sm:$0xff] }
 0x180   : > { %13419 = vst [vmem:[#allocation88_spill] sm:$0xff] %v11151_v41  ;;  %v1444_v18 = vld [vmem:[#allocation14 + $0x118] sm:$0xff] }
 0x181   : > { %13422 = vst [vmem:[#allocation91_spill] sm:$0xff] %v11164_v6  ;;  %13423 = vst [vmem:[#allocation92_spill] sm:$0xff] %v11170_v30  ;;  %v1240_v32 = vld [vmem:[#allocation11 + $0x238] sm:$0xff] }
 0x182   : > { %7804 = vmatpush3.bf16.msra.mxu1 %v11141_v15  ;;  %7835 = vmatpush1.bf16.msra.mxu0 %v11143_v57  ;;  %v1174_v57 = vld [vmem:[#allocation11 + $0x28] sm:$0xff]  ;;  %v1237_v15 = vld [vmem:[#allocation11 + $0x220] sm:$0xff] }
 0x183   : > { %7805 = vmatprep.subr.bf16.mxu1 %v12957_v1  ;;  %7837 = vmatprep.subr.bf16.mxu0 %v11147_v44  ;;  %v1191_v44 = vld [vmem:[#allocation11 + $0xb0] sm:$0xff] }
 0x186   : > { %7807 = vmatpush3.bf16.msra.mxu1 %v11151_v41  ;;  %7839 = vmatpush1.bf16.msra.mxu0 %v11153_v31  ;;  %v11178_v31 = vpack.c.bf16 %v1438_v11, %v1435_v35  ;;  %v1453_v35 = vld [vmem:[#allocation14 + $0x160] sm:$0xff]  ;;  %v1456_v11 = vld [vmem:[#allocation14 + $0x178] sm:$0xff] }
 0x187   : > { %7840 = vmatprep.subr.bf16.mxu1 %v12957_v1  ;;  %v1169_v41 = vld [vmem:[#allocation11] sm:$0xff] }
 0x188   : > { %13425 = vst [vmem:[#allocation94_spill] sm:$0xff] %v11178_v31 }
 0x189   : > { %7109 = vmatmul.mubr.f32.vlgmr.msra.gmra.mrb[20].mxu1 %v10976_v28  ;;  %1985 = vmatmul.mubr.f32.vlgmr.msra.gmra.mrb[16].mxu0 %v1513_v36  ;;  %v1432_v28 = vld [vmem:[#allocation14 + $0xb8] sm:$0xff] }
 0x18a   : > { %7842 = vmatpush3.bf16.msra.mxu1 %v11159_v24  ;;  %7143 = vmatprep.mubr.msk.f32.mxu1 %vm10425_vm1, %v13403_v62  ;;  %v11174_v24 = vpack.c.bf16 %v1432_v28, %v1429_v27  ;;  %v1447_v27 = vld [vmem:[#allocation14 + $0x130] sm:$0xff]  ;;  %v1450_v28 = vld [vmem:[#allocation14 + $0x148] sm:$0xff] }
 0x18b   : > { %7843 = vmatprep.subr.bf16.mxu1 %v12957_v1 }
 0x18c   : > { %13424 = vst [vmem:[#allocation93_spill] sm:$0xff] %v11174_v24 }
 0x18e   : > { %7845 = vmatpush3.bf16.msra.mxu1 %v11164_v6  ;;  %v11182_v6 = vpack.c.bf16 %v1444_v18, %v1441_v45  ;;  %v1170_v45 = vld [vmem:[#allocation11 + $0x8] sm:$0xff]  ;;  %v1173_v18 = vld [vmem:[#allocation11 + $0x20] sm:$0xff] }
 0x18f   : > { %7846 = vmatprep.subr.bf16.mxu1 %v12957_v1 }
 0x190   : > { %13426 = vst [vmem:[#allocation95_spill] sm:$0xff] %v11182_v6 }
 0x192   : > { %7848 = vmatpush3.bf16.msra.mxu1 %v11170_v30  ;;  %v11186_v30 = vpack.c.bf16 %v1450_v28, %v1447_v27  ;;  %v1176_v28 = vld [vmem:[#allocation11 + $0x38] sm:$0xff] }
 0x193   : > { %7849 = vmatprep.subr.bf16.mxu1 %v12957_v1 }
 0x194   : > { %13427 = vst [vmem:[#allocation96_spill] sm:$0xff] %v11186_v30 }
 0x196   : > { %7851 = vmatpush3.bf16.msra.mxu1 %v11174_v24  ;;  %v11190_v24 = vpack.c.bf16 %v1456_v11, %v1453_v35  ;;  %v1179_v35 = vld [vmem:[#allocation11 + $0x50] sm:$0xff] }
 0x197   : > { %7852 = vmatprep.subr.bf16.mxu1 %v12957_v1  ;;  %v11200_v11 = vpack.c.bf16 %v1179_v35, %v1176_v28  ;;  %v1187_v28 = vld [vmem:[#allocation11 + $0x90] sm:$0xff]  ;;  %v1190_v35 = vld [vmem:[#allocation11 + $0xa8] sm:$0xff] }
 0x198   : > { %13428 = vst [vmem:[#allocation97_spill] sm:$0xff] %v11190_v24 }
 0x199   : > { %13431 = vst [vmem:[#allocation100_spill] sm:$0xff] %v11200_v11 }
 0x19a   : > { %7854 = vmatpush3.bf16.msra.mxu1 %v11178_v31  ;;  %v11194_v31 = vpack.c.bf16 %v1173_v18, %v1170_v45  ;;  %v1182_v45 = vld [vmem:[#allocation11 + $0x68] sm:$0xff]  ;;  %v1184_v18 = vld [vmem:[#allocation11 + $0x78] sm:$0xff] }
 0x19b   : > { %7855 = vmatprep.subr.bf16.mxu1 %v12957_v1 }
 0x19c   : > { %13429 = vst [vmem:[#allocation98_spill] sm:$0xff] %v11194_v31  ;;  %7865 = vmatprep.subr.bf16.mxu0 %v11194_v31  ;;  %v1188_v31 = vld [vmem:[#allocation11 + $0x98] sm:$0xff] }
 0x19e   : > { %7857 = vmatpush3.bf16.msra.mxu1 %v11182_v6  ;;  %v1172_v6 = vld [vmem:[#allocation11 + $0x18] sm:$0xff] }
 0x19f   : > { %7858 = vmatprep.subr.bf16.mxu1 %v12957_v1  ;;  %v11196_v27 = vpack.c.bf16 %v1172_v6, %v1169_v41  ;;  %v1181_v6 = vld [vmem:[#allocation11 + $0x60] sm:$0xff] }
 0x1a1   : > { %13430 = vst [vmem:[#allocation99_spill] sm:$0xff] %v11196_v27  ;;  %7867 = vmatpush1.bf16.msra.mxu0 %v11196_v27  ;;  %v11208_v27 = vpack.c.bf16 %v1184_v18, %v1181_v6  ;;  %v1196_v6 = vld [vmem:[#allocation11 + $0xd8] sm:$0xff] }
 0x1a2   : > { %7860 = vmatpush3.bf16.msra.mxu1 %v11186_v30  ;;  %v1178_v30 = vld [vmem:[#allocation11 + $0x48] sm:$0xff]  ;;  %7869 = vmatprep.subr.bf16.mxu0 %v11200_v11  ;;  %v1197_v11 = vld [vmem:[#allocation11 + $0xe0] sm:$0xff] }
 0x1a3   : > { %7861 = vmatprep.subr.bf16.mxu1 %v12957_v1  ;;  %v1175_v1 = vld [vmem:[#allocation11 + $0x30] sm:$0xff]  ;;  %13434 = vst [vmem:[#allocation103_spill] sm:$0xff] %v11208_v27 }
 0x1a6   : > { %7863 = vmatpush3.bf16.msra.mxu1 %v11190_v24  ;;  %v11202_v24 = vpack.c.bf16 %v1178_v30, %v1175_v1  ;;  %v11211_v1 = vpack.c.bf16 %v1191_v44, %v1188_v31  ;;  %v1194_v30 = vld [vmem:[#allocation11 + $0xc8] sm:$0xff]  ;;  %v1200_v44 = vld [vmem:[#allocation11 + $0xf8] sm:$0xff]  ;;  %v1203_v31 = vld [vmem:[#allocation11 + $0x110] sm:$0xff] }
 0x1a8   : > { %13432 = vst [vmem:[#allocation101_spill] sm:$0xff] %v11202_v24  ;;  %7871 = vmatpush1.bf16.msra.mxu0 %v11202_v24  ;;  %13435 = vst [vmem:[#allocation104_spill] sm:$0xff] %v11211_v1  ;;  %v11214_v24 = vpack.c.bf16 %v1190_v35, %v1187_v28  ;;  %v1199_v28 = vld [vmem:[#allocation11 + $0xf0] sm:$0xff]  ;;  %v1202_v35 = vld [vmem:[#allocation11 + $0x108] sm:$0xff] }
 0x1a9   : > { %7144 = vmatmul.mubr.f32.vlgmr.msra.gmra.mrb[22].mxu1 %v1513_v36  ;;  %v1185_v36 = vld [vmem:[#allocation11 + $0x80] sm:$0xff] }
 0x1aa   : > { %v11206_v41 = vpack.c.bf16 %v1185_v36, %v1182_v45  ;;  %13436 = vst [vmem:[#allocation105_spill] sm:$0xff] %v11214_v24  ;;  %v11217_v45 = vpack.c.bf16 %v1197_v11, %v1194_v30  ;;  %v1193_v36 = vld [vmem:[#allocation11 + $0xc0] sm:$0xff]  ;;  %v1206_v11 = vld [vmem:[#allocation11 + $0x128] sm:$0xff] }
 0x1ab   : > { %v11220_v18 = vpack.c.bf16 %v1196_v6, %v1193_v36  ;;  %v1209_v30 = vld [vmem:[#allocation11 + $0x140] sm:$0xff] }
 0x1ac   : > { %13433 = vst [vmem:[#allocation102_spill] sm:$0xff] %v11206_v41  ;;  %7873 = vmatprep.subr.bf16.mxu0 %v11206_v41  ;;  %13437 = vst [vmem:[#allocation106_spill] sm:$0xff] %v11217_v45  ;;  %v11224_v41 = vpack.c.bf16 %v1203_v31, %v1200_v44  ;;  %v11230_v36 = vpack.c.bf16 %v1209_v30, %v1206_v11  ;;  %v1205_v6 = vld [vmem:[#allocation11 + $0x120] sm:$0xff]  ;;  %v1212_v44 = vld [vmem:[#allocation11 + $0x158] sm:$0xff] }
 0x1ad   : > { %7875 = vmatpush1.bf16.msra.mxu0 %v11208_v27  ;;  %13438 = vst [vmem:[#allocation107_spill] sm:$0xff] %v11220_v18  ;;  %v11226_v27 = vpack.c.bf16 %v1202_v35, %v1199_v28  ;;  %v1215_v31 = vld [vmem:[#allocation11 + $0x170] sm:$0xff]  ;;  %v1218_v11 = vld [vmem:[#allocation11 + $0x188] sm:$0xff]  ;;  %v1221_v30 = vld [vmem:[#allocation11 + $0x1a0] sm:$0xff] }
 0x1ae   : > { %7877 = vmatprep.subr.bf16.mxu0 %v11211_v1  ;;  %13439 = vst [vmem:[#allocation108_spill] sm:$0xff] %v11224_v41  ;;  %13441 = vst [vmem:[#allocation110_spill] sm:$0xff] %v11230_v36  ;;  %v11236_v28 = vpack.c.bf16 %v1215_v31, %v1212_v44  ;;  %v1211_v35 = vld [vmem:[#allocation11 + $0x150] sm:$0xff] }
 0x1af   : > { %13440 = vst [vmem:[#allocation109_spill] sm:$0xff] %v11226_v27  ;;  %v1171_v31 = vld [vmem:[#allocation11 + $0x10] sm:$0xff] }
 0x1b0   : > { %13443 = vst [vmem:[#allocation112_spill] sm:$0xff] %v11236_v28 }
 0x1b1   : > { %7879 = vmatpush1.bf16.msra.mxu0 %v11214_v24 }
 0x1b2   : > { %7881 = vmatprep.subr.bf16.mxu0 %v11217_v45  ;;  %v1208_v45 = vld [vmem:[#allocation11 + $0x138] sm:$0xff] }
 0x1b3   : > { %v11232_v24 = vpack.c.bf16 %v1208_v45, %v1205_v6  ;;  %v1219_v45 = vld [vmem:[#allocation11 + $0x190] sm:$0xff]  ;;  %v11242_v6 = vpack.c.bf16 %v1221_v30, %v1218_v11  ;;  %v1225_v30 = vld [vmem:[#allocation11 + $0x1c0] sm:$0xff] }
 0x1b4   : > { %v1227_v11 = vld [vmem:[#allocation11 + $0x1d0] sm:$0xff] }
 0x1b5   : > { %7883 = vmatpush1.bf16.msra.mxu0 %v11220_v18  ;;  %13442 = vst [vmem:[#allocation111_spill] sm:$0xff] %v11232_v24  ;;  %13445 = vst [vmem:[#allocation114_spill] sm:$0xff] %v11242_v6 }
 0x1b6   : > { %7885 = vmatprep.subr.bf16.mxu0 %v11224_v41  ;;  %v1214_v41 = vld [vmem:[#allocation11 + $0x168] sm:$0xff] }
 0x1b7   : > { %v11238_v18 = vpack.c.bf16 %v1214_v41, %v1211_v35  ;;  %v11249_v41 = vpack.c.bf16 %v1174_v57, %v1171_v31  ;;  %v1224_v35 = vld [vmem:[#allocation11 + $0x1b8] sm:$0xff]  ;;  %v1177_v57 = vld [vmem:[#allocation11 + $0x40] sm:$0xff] }
 0x1b8   : > { %v1180_v31 = vld [vmem:[#allocation11 + $0x58] sm:$0xff] }
 0x1b9   : > { %7887 = vmatpush1.bf16.msra.mxu0 %v11226_v27  ;;  %13444 = vst [vmem:[#allocation113_spill] sm:$0xff] %v11238_v18  ;;  %v1217_v27 = vld [vmem:[#allocation11 + $0x180] sm:$0xff]  ;;  %13448 = vst [vmem:[#allocation117_spill] sm:$0xff] %v11249_v41 }
 0x1ba   : > { %7889 = vmatprep.subr.bf16.mxu0 %v11230_v36  ;;  %v1222_v36 = vld [vmem:[#allocation11 + $0x1a8] sm:$0xff] }
 0x1bb   : > { %v11244_v1 = vpack.c.bf16 %v1222_v36, %v1219_v45  ;;  %v1228_v36 = vld [vmem:[#allocation11 + $0x1d8] sm:$0xff] }
 0x1bc   : > { %v11256_v45 = vpack.c.bf16 %v1228_v36, %v1225_v30  ;;  %v1234_v30 = vld [vmem:[#allocation11 + $0x208] sm:$0xff]  ;;  %v1229_v36 = vld [vmem:[#allocation11 + $0x1e0] sm:$0xff] }
 0x1bd   : > { %7891 = vmatpush1.bf16.msra.mxu0 %v11232_v24  ;;  %v1220_v24 = vld [vmem:[#allocation11 + $0x198] sm:$0xff]  ;;  %13446 = vst [vmem:[#allocation115_spill] sm:$0xff] %v11244_v1  ;;  %7993 = vmatprep.subr.bf16.mxu1 %v11244_v1 }
 0x1be   : > { %7893 = vmatprep.subr.bf16.mxu0 %v11236_v28  ;;  %v11246_v44 = vpack.c.bf16 %v1220_v24, %v1217_v27  ;;  %7995 = vmatpush3.bf16.msra.mxu1 %v11249_v41  ;;  %v1223_v24 = vld [vmem:[#allocation11 + $0x1b0] sm:$0xff]  ;;  %v1226_v27 = vld [vmem:[#allocation11 + $0x1c8] sm:$0xff]  ;;  %13450 = vst [vmem:[#allocation119_spill] sm:$0xff] %v11256_v45 }
 0x1bf   : > { %v11258_v28 = vpack.c.bf16 %v1226_v27, %v1223_v24  ;;  %7997 = vmatprep.subr.bf16.mxu1 %v11256_v45  ;;  %v1232_v24 = vld [vmem:[#allocation11 + $0x1f8] sm:$0xff]  ;;  %v1239_v45 = vld [vmem:[#allocation11 + $0x230] sm:$0xff] }
 0x1c0   : > { %13447 = vst [vmem:[#allocation116_spill] sm:$0xff] %v11246_v44  ;;  %v11270_v1 = vpack.c.bf16 %v1232_v24, %v1229_v36  ;;  %v1189_v36 = vld [vmem:[#allocation11 + $0xa0] sm:$0xff] }
 0x1c1   : > { %7895 = vmatpush1.bf16.msra.mxu0 %v11238_v18  ;;  %v11254_v18 = vpack.c.bf16 %v1227_v11, %v1224_v35  ;;  %13451 = vst [vmem:[#allocation120_spill] sm:$0xff] %v11258_v28  ;;  %v1233_v35 = vld [vmem:[#allocation11 + $0x200] sm:$0xff]  ;;  %v1231_v11 = vld [vmem:[#allocation11 + $0x1f0] sm:$0xff] }
 0x1c2   : > { %7897 = vmatprep.subr.bf16.mxu0 %v11242_v6  ;;  %v11261_v6 = vpack.c.bf16 %v1180_v31, %v1177_v57  ;;  %v11268_v27 = vpack.c.bf16 %v1234_v30, %v1231_v11  ;;  %13455 = vst [vmem:[#allocation124_spill] sm:$0xff] %v11270_v1  ;;  %v1183_v57 = vld [vmem:[#allocation11 + $0x70] sm:$0xff]  ;;  %v1186_v31 = vld [vmem:[#allocation11 + $0x88] sm:$0xff] }
 0x1c3   : > { %13449 = vst [vmem:[#allocation118_spill] sm:$0xff] %v11254_v18  ;;  %v1235_v11 = vld [vmem:[#allocation11 + $0x210] sm:$0xff]  ;;  %v1238_v30 = vld [vmem:[#allocation11 + $0x228] sm:$0xff] }
 0x1c4   : > { %13452 = vst [vmem:[#allocation121_spill] sm:$0xff] %v11261_v6  ;;  %7999 = vmatpush3.bf16.msra.mxu1 %v11261_v6  ;;  %13454 = vst [vmem:[#allocation123_spill] sm:$0xff] %v11268_v27  ;;  %v11282_v24 = vpack.c.bf16 %v1238_v30, %v1235_v11  ;;  %v1244_v6 = vld [vmem:[#allocation11 + $0x258] sm:$0xff]  ;;  %v1198_v11 = vld [vmem:[#allocation11 + $0xe8] sm:$0xff] }
 0x1c5   : > { %7899 = vmatpush1.bf16.msra.mxu0 %v11246_v44  ;;  %v1230_v44 = vld [vmem:[#allocation11 + $0x1e8] sm:$0xff]  ;;  %8001 = vmatprep.subr.bf16.mxu1 %v11268_v27 }
 0x1c6   : > { %7901 = vmatprep.subr.bf16.mxu0 %v11254_v18  ;;  %v11266_v41 = vpack.c.bf16 %v1233_v35, %v1230_v44  ;;  %v1236_v18 = vld [vmem:[#allocation11 + $0x218] sm:$0xff]  ;;  %v11279_v35 = vpack.c.bf16 %v1240_v32, %v1237_v15  ;;  %13459 = vst [vmem:[#allocation128_spill] sm:$0xff] %v11282_v24  ;;  %v1243_v32 = vld [vmem:[#allocation11 + $0x250] sm:$0xff]  ;;  %v1246_v15 = vld [vmem:[#allocation11 + $0x268] sm:$0xff] }
 0x1c7   : > { %v11277_v44 = vpack.c.bf16 %v1239_v45, %v1236_v18  ;;  %v1241_v45 = vld [vmem:[#allocation11 + $0x240] sm:$0xff] }
 0x1c8   : > { %13453 = vst [vmem:[#allocation122_spill] sm:$0xff] %v11266_v41  ;;  %13458 = vst [vmem:[#allocation127_spill] sm:$0xff] %v11279_v35  ;;  %v11293_v30 = vpack.c.bf16 %v1244_v6, %v1241_v45  ;;  %v1247_v6 = vld [vmem:[#allocation11 + $0x270] sm:$0xff]  ;;  %v1250_v45 = vld [vmem:[#allocation11 + $0x288] sm:$0xff] }
 0x1c9   : > { %7903 = vmatpush1.bf16.msra.mxu0 %v11258_v28  ;;  %v11273_v28 = vpack.c.bf16 %v1186_v31, %v1183_v57  ;;  %13457 = vst [vmem:[#allocation126_spill] sm:$0xff] %v11277_v44  ;;  %v1192_v57 = vld [vmem:[#allocation11 + $0xb8] sm:$0xff]  ;;  %v1242_v31 = vld [vmem:[#allocation11 + $0x248] sm:$0xff] }
 0x1ca   : > { %7905 = vmatprep.subr.bf16.mxu0 %v11266_v41  ;;  %v1245_v41 = vld [vmem:[#allocation11 + $0x260] sm:$0xff]  ;;  %v11286_v27 = vpack.c.bf16 %v1192_v57, %v1189_v36  ;;  %13463 = vst [vmem:[#allocation132_spill] sm:$0xff] %v11293_v30  ;;  %v1251_v57 = vld [vmem:[#allocation11 + $0x290] sm:$0xff] }
 0x1cb   : > { %13456 = vst [vmem:[#allocation125_spill] sm:$0xff] %v11273_v28  ;;  %8003 = vmatpush3.bf16.msra.mxu1 %v11273_v28  ;;  %v11288_v18 = vpack.c.bf16 %v1245_v41, %v1242_v31  ;;  %v1195_v28 = vld [vmem:[#allocation11 + $0xd0] sm:$0xff]  ;;  %v1248_v41 = vld [vmem:[#allocation11 + $0x278] sm:$0xff]  ;;  %v1249_v31 = vld [vmem:[#allocation11 + $0x280] sm:$0xff] }
 0x1cc   : > { %8005 = vmatprep.subr.bf16.mxu1 %v11279_v35  ;;  %13460 = vst [vmem:[#allocation129_spill] sm:$0xff] %v11286_v27  ;;  %v11297_v36 = vpack.c.bf16 %v1198_v11, %v1195_v28  ;;  %v1201_v28 = vld [vmem:[#allocation11 + $0x100] sm:$0xff]  ;;  %v1204_v11 = vld [vmem:[#allocation11 + $0x118] sm:$0xff] }
 0x1cd   : > { %7907 = vmatpush1.bf16.msra.mxu0 %v11270_v1  ;;  %13461 = vst [vmem:[#allocation130_spill] sm:$0xff] %v11288_v18  ;;  %v11290_v1 = vpack.c.bf16 %v1246_v15, %v1243_v32  ;;  %v11302_v32 = vpack.c.bf16 %v1251_v57, %v1248_v41  ;;  %v1252_v15 = vld [vmem:[#allocation11 + $0x298] sm:$0xff]  ;;  %v1257_v41 = vld [vmem:[#allocation11 + $0x2c0] sm:$0xff]  ;;  %v1255_v57 = vld [vmem:[#allocation11 + $0x2b0] sm:$0xff] }
 0x1ce   : > { %7909 = vmatprep.subr.bf16.mxu0 %v11277_v44  ;;  %13464 = vst [vmem:[#allocation133_spill] sm:$0xff] %v11297_v36  ;;  %v1261_v44 = vld [vmem:[#allocation11 + $0x2e0] sm:$0xff] }
 0x1cf   : > { %13462 = vst [vmem:[#allocation131_spill] sm:$0xff] %v11290_v1  ;;  %8007 = vmatpush3.bf16.msra.mxu1 %v11286_v27  ;;  %13465 = vst [vmem:[#allocation134_spill] sm:$0xff] %v11302_v32  ;;  %v11306_v27 = vpack.c.bf16 %v1250_v45, %v1247_v6  ;;  %v1256_v6 = vld [vmem:[#allocation11 + $0x2b8] sm:$0xff] }
 0x1d0   : > { %8009 = vmatprep.subr.bf16.mxu1 %v11290_v1 }
 0x1d1   : > { %7911 = vmatpush1.bf16.msra.mxu0 %v11282_v24  ;;  %v11304_v24 = vpack.c.bf16 %v1252_v15, %v1249_v31  ;;  %13467 = vst [vmem:[#allocation136_spill] sm:$0xff] %v11306_v27  ;;  %v1258_v31 = vld [vmem:[#allocation11 + $0x2c8] sm:$0xff]  ;;  %v1253_v15 = vld [vmem:[#allocation11 + $0x2a0] sm:$0xff] }
 0x1d2   : > { %7913 = vmatprep.subr.bf16.mxu0 %v11288_v18  ;;  %v11309_v18 = vpack.c.bf16 %v1204_v11, %v1201_v28  ;;  %v11316_v45 = vpack.c.bf16 %v1258_v31, %v1255_v57  ;;  %v11318_v1 = vpack.c.bf16 %v1256_v6, %v1253_v15  ;;  %v1207_v28 = vld [vmem:[#allocation11 + $0x130] sm:$0xff]  ;;  %v1210_v11 = vld [vmem:[#allocation11 + $0x148] sm:$0xff] }
 0x1d3   : > { %8011 = vmatpush3.bf16.msra.mxu1 %v11297_v36  ;;  %13466 = vst [vmem:[#allocation135_spill] sm:$0xff] %v11304_v24  ;;  %v1259_v57 = vld [vmem:[#allocation11 + $0x2d0] sm:$0xff]  ;;  %v1262_v31 = vld [vmem:[#allocation11 + $0x2e8] sm:$0xff] }
 0x1d4   : > { %13468 = vst [vmem:[#allocation137_spill] sm:$0xff] %v11309_v18  ;;  %8013 = vmatprep.subr.bf16.mxu1 %v11304_v24  ;;  %13470 = vst [vmem:[#allocation139_spill] sm:$0xff] %v11316_v45  ;;  %v1263_v24 = vld [vmem:[#allocation11 + $0x2f0] sm:$0xff] }
 0x1d5   : > { %7915 = vmatpush1.bf16.msra.mxu0 %v11293_v30  ;;  %v1254_v30 = vld [vmem:[#allocation11 + $0x2a8] sm:$0xff]  ;;  %13471 = vst [vmem:[#allocation140_spill] sm:$0xff] %v11318_v1 }
 0x1d6   : > { %7917 = vmatprep.subr.bf16.mxu0 %v11302_v32  ;;  %v11314_v36 = vpack.c.bf16 %v1257_v41, %v1254_v30  ;;  %v11321_v32 = vpack.c.bf16 %v1210_v11, %v1207_v28  ;;  %v1264_v41 = vld [vmem:[#allocation11 + $0x2f8] sm:$0xff]  ;;  %v11332_v28 = vpack.c.bf16 %v1262_v31, %v1259_v57  ;;  %v1213_v11 = vld [vmem:[#allocation11 + $0x160] sm:$0xff] }
 0x1d7   : > { %8015 = vmatpush3.bf16.msra.mxu1 %v11309_v18  ;;  %v11330_v6 = vpack.c.bf16 %v1264_v41, %v1261_v44  ;;  %v1266_v18 = vld [vmem:[#allocation11 + $0x308] sm:$0xff] }
 0x1d8   : > { %13469 = vst [vmem:[#allocation138_spill] sm:$0xff] %v11314_v36  ;;  %13472 = vst [vmem:[#allocation141_spill] sm:$0xff] %v11321_v32  ;;  %8017 = vmatprep.subr.bf16.mxu1 %v11316_v45  ;;  %v1318_v45 = vld [vmem:[#allocation11 + $0x4a8] sm:$0xff] }
 0x1d9   : > { %7919 = vmatpush1.bf16.msra.mxu0 %v11306_v27  ;;  %v1260_v27 = vld [vmem:[#allocation11 + $0x2d8] sm:$0xff]  ;;  %13475 = vst [vmem:[#allocation144_spill] sm:$0xff] %v11330_v6  ;;  %13476 = vst [vmem:[#allocation145_spill] sm:$0xff] %v11332_v28 }
 0x1da   : > { %7921 = vmatprep.subr.bf16.mxu0 %v11314_v36  ;;  %v11325_v30 = vpack.c.bf16 %v1263_v24, %v1260_v27  ;;  %v1216_v36 = vld [vmem:[#allocation11 + $0x178] sm:$0xff]  ;;  %v1269_v24 = vld [vmem:[#allocation11 + $0x320] sm:$0xff] }
 0x1db   : > { %8019 = vmatpush3.bf16.msra.mxu1 %v11321_v32  ;;  %v11337_v27 = vpack.c.bf16 %v1216_v36, %v1213_v11  ;;  %v11355_v36 = vld [vmem:[%s13483_s22 + $0x8] ss:$0 sm:$0xff] }
 0x1dc   : > { %13473 = vst [vmem:[#allocation142_spill] sm:$0xff] %v11325_v30  ;;  %8021 = vmatprep.subr.bf16.mxu1 %v11330_v6 }
 0x1dd   : > { %7923 = vmatpush1.bf16.msra.mxu0 %v11318_v1  ;;  %13478 = vst [vmem:[#allocation147_spill] sm:$0xff] %v11337_v27  ;;  %v1315_v1 = vld [vmem:[#allocation11 + $0x490] sm:$0xff] }
 0x1de   : > { %7925 = vmatprep.subr.bf16.mxu0 %v11325_v30  ;;  %v11342_v44 = vpack.c.bf16 %v1318_v45, %v1315_v1 }
 0x1df   : > { %8023 = vmatpush3.bf16.msra.mxu1 %v11337_v27 }
 0x1e0   : > { %13480 = vst [vmem:[#allocation149_spill] sm:$0xff] %v11342_v44  ;;  %8025 = vmatprep.subr.bf16.mxu1 %v11342_v44  ;;  %v486_v44 = vld [vmem:[%s13483_s22] sm:$0xff] }
 0x1e1   : > { %7927 = vmatpush1.bf16.msra.mxu0 %v11332_v28 }
 0x1e4   : > { %v11327_v15 = vpop.f32.mrb[0].mxu1 }
 0x1e5   : > { %13474 = vst [vmem:[#allocation143_spill] sm:$0xff] %v11327_v15  ;;  %v11334_v35 = vpop.f32.mrb[1].mxu1  ;;  %v11340_v15 = vpack.c.bf16 %v1269_v24, %v1266_v18 }
 0x1e6   : > { %13477 = vst [vmem:[#allocation146_spill] sm:$0xff] %v11334_v35 }
 0x1e7   : > { %13479 = vst [vmem:[#allocation148_spill] sm:$0xff] %v11340_v15  ;;  %7929 = vmatprep.subr.bf16.mxu0 %v11340_v15 }
 0x1e8   : > { %v11345_v41 = vpop.f32.mrb[2].mxu1 }
 0x1e9   : > { %13481 = vst [vmem:[#allocation150_spill] sm:$0xff] %v11345_v41  ;;  %v11349_v57 = vpop.f32.mrb[3].mxu1 }
 0x1ea   : > { %13482 = vst [vmem:[#allocation151_spill] sm:$0xff] %v11349_v57  ;;  %v490_v57 = vlaneseq }
 0x1ec   : > { %v11366_v35 = vshrl.u32 %v490_v57, 7 }
 0x1ee   : > { %v492_v15 = vsub.s32 0, %v11366_v35  ;;  %v500_v28 = vsub.s32 2, %v11366_v35  ;;  %v504_v30 = vsub.s32 3, %v11366_v35 }
 0x1f0   : > { %v11378_v6 = vrot.slane %v486_v44, %v500_v28 }
 0x1f2   : > { %13488 = vst [vmem:[#allocation156_spill] sm:$0xff] %v11378_v6 }
 0x1fc   : > { %v7072_v18 = vpop.f32.mrb[12].mxu0 }
 0x1fd   : > { %v11358_v1 = vadd.f32 %v7072_v18, %v11355_v36  ;;  %v970_v45 = vpop.f32.mrb[13].mxu0  ;;  %v11372_v18 = vrot.slane %v486_v44, %v492_v15  ;;  %v11382_v15 = vrot.slane %v486_v44, %v504_v30  ;;  %v512_v30 = vsub.s32 5, %v11366_v35 }
 0x1ff   : > { %13484 = vst [vmem:[#allocation152_spill] sm:$0xff] %v11358_v1  ;;  %13487 = vst [vmem:[#allocation155_spill] sm:$0xff] %v11372_v18 }
 0x200   : > { %v7075_v31 = vpop.f32.mrb[14].mxu0  ;;  %13490 = vst [vmem:[#allocation158_spill] sm:$0xff] %v11382_v15 }
 0x201   : > { %v11361_v11 = vadd.f32 %v7075_v31, %v11355_v36  ;;  %v980_v24 = vpop.f32.mrb[15].mxu0 }
 0x202   : > { %v11364_v41 = vadd.f32 %v11355_v36, %v980_v24 }
 0x203   : > { %13485 = vst [vmem:[#allocation153_spill] sm:$0xff] %v11361_v11 }
 0x204   : > { %13486 = vst [vmem:[#allocation154_spill] sm:$0xff] %v11364_v41  ;;  %v496_v41 = vsub.s32 1, %v11366_v35 }
 0x206   : > { %v11380_v32 = vrot.slane %v486_v44, %v496_v41  ;;  %v508_v41 = vsub.s32 4, %v11366_v35 }
 0x208   : > { %13489 = vst [vmem:[#allocation157_spill] sm:$0xff] %v11380_v32 }
 0x21c   : > { %v1589_v1 = vpop.f32.mrb[0].mxu0  ;;  %v1660_v31 = vpop.f32.mrb[4].mxu1 }
 0x21d   : > { %v9706_v11 = vadd.f32 %v1589_v1, %v11372_v18  ;;  %v1591_v27 = vpop.f32.mrb[1].mxu0  ;;  %v1662_v24 = vpop.f32.mrb[5].mxu1  ;;  %v9718_v17 = vadd.f32 %v1660_v31, %v11378_v6 }
 0x21e   : > { %v9707_v61 = vadd.f32 %v1591_v27, %v11380_v32  ;;  %v9719_v1 = vadd.f32 %v1662_v24, %v11382_v15  ;;  %v11389_v27 = vrot.slane %v486_v44, %v508_v41 }
 0x21f   : > { %v6327_v57 = vmul.f32 -1.442695, %v9706_v11  ;;  %v6329_v18 = vmul.f32 -1.442695, %v9718_v17 }
 0x220   : > { %v6328_v56 = vmul.f32 -1.442695, %v9707_v61  ;;  %13491 = vst [vmem:[#allocation159_spill] sm:$0xff] %v11389_v27  ;;  %v11391_v61 = vrot.slane %v486_v44, %v512_v30 }
 0x221   : > { %9934 = vpow2.f32 %v6327_v57 }
 0x222   : > { %9936 = vtanh.f32 %v9719_v1  ;;  %13492 = vst [vmem:[#allocation160_spill] sm:$0xff] %v11391_v61 }
 0x223   : > { %9938 = vpow2.f32 %v6329_v18 }
 0x224   : > { %9940 = vpow2.f32 %v6328_v56 }
 0x22b   : > { %v9935_v19 = vpop.eup %9934 }
 0x22c   : > { %v1895_v11 = vadd.f32 1.0, %v9935_v19  ;;  %v9937_v28 = vpop.eup %9936 }
 0x22d   : > { %v9939_v57 = vpop.eup %9938 }
 0x22e   : > { %9942 = vrcp.f32 %v1895_v11  ;;  %v9941_v58 = vpop.eup %9940  ;;  %v1897_v6 = vadd.f32 1.0, %v9939_v57 }
 0x22f   : > { %v1896_v17 = vadd.f32 1.0, %v9941_v58 }
 0x230   : > { %9944 = vrcp.f32 %v1897_v6  ;;  %v971_v6 = vadd.f32 %v11355_v36, %v970_v45  ;;  %v1265_v36 = vld [vmem:[#allocation11 + $0x300] sm:$0xff]  ;;  %v1268_v45 = vld [vmem:[#allocation11 + $0x318] sm:$0xff] }
 0x231   : > { %9946 = vrcp.f32 %v1896_v17 }
 0x238   : > { %v9943_v31 = vpop.eup %9942 }
 0x239   : > { %v2061_v24 = vmul.f32 %v9943_v31, %v9937_v28 }
 0x23a   : > { %v11399_v41 = vpop.eup %9944 }
 0x23b   : > { %v9947_v28 = vpop.eup %9946 }
 0x23c   : > { %v1731_v1 = vpop.f32.mrb[4].mxu0  ;;  %v11393_v19 = vpop.f32.mrb[12].mxu1  ;;  %v2065_v32 = vsub.f32 1.0, %v9947_v28 }
 0x23d   : > { %v9726_v56 = vadd.f32 %v1731_v1, %v11389_v27  ;;  %v1733_v18 = vpop.f32.mrb[5].mxu0  ;;  %v11396_v11 = vpop.f32.mrb[13].mxu1  ;;  %v2064_v1 = vsub.f32 1.0, %v9943_v31  ;;  %v1267_v31 = vld [vmem:[#allocation11 + $0x310] sm:$0xff] }
 0x23e   : > { %v9727_v15 = vadd.f32 %v1733_v18, %v11391_v61 }
 0x23f   : > { %9948 = vtanh.f32 %v9726_v56 }
 0x240   : > { %9950 = vtanh.f32 %v9727_v15 }
 0x249   : > { %v9949_v58 = vpop.eup %9948 }
 0x24a   : > { %v9951_v44 = vpop.eup %9950  ;;  %v2062_v57 = vmul.f32 %v9949_v58, %v9947_v28  ;;  %v1272_v28 = vld [vmem:[#allocation11 + $0x338] sm:$0xff]  ;;  %v1275_v58 = vld [vmem:[#allocation11 + $0x350] sm:$0xff] }
 0x24b   : > { %v11402_v30 = vmul.f32 %v9951_v44, %v11399_v41  ;;  %v1271_v44 = vld [vmem:[#allocation11 + $0x330] sm:$0xff] }
 0x25c   : > { %v1873_v27 = vpop.f32.mrb[20].mxu1  ;;  %v1986_v17 = vpop.f32.mrb[16].mxu0 }
 0x25d   : > { %v1885_v18 = vadd.f32 %v1873_v27, %v971_v6  ;;  %v2067_v56 = vmul.f32 %v2064_v1, %v1986_v17  ;;  %v7110_v15 = vpop.f32.mrb[21].mxu1  ;;  %v1988_v61 = vpop.f32.mrb[17].mxu0  ;;  %v1270_v27 = vld [vmem:[#allocation11 + $0x328] sm:$0xff]  ;;  %v11419_v6 = vpack.c.bf16 %v1275_v58, %v1272_v28  ;;  %v1273_v17 = vld [vmem:[#allocation11 + $0x340] sm:$0xff]  ;;  %v11433_v58 = vpack.c.bf16 %v1330_v43, %v1327_v50 }
 0x25e   : > { %v2068_v16 = vmul.f32 %v2065_v32, %v1988_v61  ;;  %v1321_v32 = vld [vmem:[#allocation11 + $0x4c0] sm:$0xff]  ;;  %v1324_v61 = vld [vmem:[#allocation11 + $0x4d8] sm:$0xff] }
 0x25f   : > { %9952 = vtanh.f32 %v1885_v18  ;;  %v11405_v5 = vadd.f32 %v2067_v56, %v2061_v24  ;;  %v11415_v24 = vpack.c.bf16 %v1268_v45, %v1265_v36  ;;  %13495 = vst [vmem:[#allocation163_spill] sm:$0xff] %v11419_v6  ;;  %v11421_v1 = vpack.c.bf16 %v1324_v61, %v1321_v32  ;;  %v1276_v18 = vld [vmem:[#allocation11 + $0x358] sm:$0xff]  ;;  %v1278_v56 = vld [vmem:[#allocation11 + $0x368] sm:$0xff]  ;;  %13500 = vst [vmem:[#allocation168_spill] sm:$0xff] %v11433_v58 }
 0x260   : > { %v11407_v4 = vadd.f32 %v2068_v16, %v2062_v57  ;;  %v11417_v16 = vpack.c.bf16 %v1270_v27, %v1267_v31  ;;  %v1274_v57 = vld [vmem:[#allocation11 + $0x348] sm:$0xff]  ;;  %v11427_v45 = vpack.c.bf16 %v1276_v18, %v1273_v17  ;;  %v1277_v31 = vld [vmem:[#allocation11 + $0x360] sm:$0xff]  ;;  %v1280_v27 = vld [vmem:[#allocation11 + $0x378] sm:$0xff]  ;;  %v11431_v28 = vpack.c.bf16 %v1281_v53, %v1278_v56 }
 0x261   : > { %2660 = vst [vmem:[%s10803_s19 + $0x8] sm:$0xff] %v11405_v5  ;;  %2137 = vmatprep.mubr.f32.mxu0 %v11405_v5  ;;  %2279 = vmatprep.mubr.f32.mxu1 %v11405_v5  ;;  %13493 = vst [vmem:[#allocation161_spill] sm:$0xff] %v11415_v24  ;;  %v11425_v36 = vpack.c.bf16 %v1274_v57, %v1271_v44  ;;  %v1279_v32 = vld [vmem:[#allocation11 + $0x370] sm:$0xff]  ;;  %v1282_v61 = vld [vmem:[#allocation11 + $0x388] sm:$0xff]  ;;  %v11437_v44 = vpack.c.bf16 %v1280_v27, %v1277_v31 }
 0x262   : > { %2661 = vst [vmem:[%s10803_s19 + $0x10] sm:$0xff] %v11407_v4  ;;  %13494 = vst [vmem:[#allocation162_spill] sm:$0xff] %v11417_v16  ;;  %v11439_v57 = vpack.c.bf16 %v1282_v61, %v1279_v32  ;;  %v1283_v17 = vld [vmem:[#allocation11 + $0x390] sm:$0xff]  ;;  %v1286_v18 = vld [vmem:[#allocation11 + $0x3a8] sm:$0xff] }
 0x263   : > { %13496 = vst [vmem:[#allocation164_spill] sm:$0xff] %v11421_v1  ;;  %13497 = vst [vmem:[#allocation165_spill] sm:$0xff] %v11425_v36  ;;  %v1285_v53 = vld [vmem:[#allocation11 + $0x3a0] sm:$0xff]  ;;  %v1288_v56 = vld [vmem:[#allocation11 + $0x3b8] sm:$0xff]  ;;  %v11449_v31 = vpack.c.bf16 %v1286_v18, %v1283_v17 }
 0x264   : > { %13498 = vst [vmem:[#allocation166_spill] sm:$0xff] %v11427_v45  ;;  %13499 = vst [vmem:[#allocation167_spill] sm:$0xff] %v11431_v28  ;;  %v11451_v27 = vpack.c.bf16 %v1288_v56, %v1285_v53  ;;  %v1289_v32 = vld [vmem:[#allocation11 + $0x3c0] sm:$0xff]  ;;  %v1292_v61 = vld [vmem:[#allocation11 + $0x3d8] sm:$0xff] }
 0x265   : > { %13501 = vst [vmem:[#allocation169_spill] sm:$0xff] %v11437_v44  ;;  %13502 = vst [vmem:[#allocation170_spill] sm:$0xff] %v11439_v57  ;;  %v11461_v17 = vpack.c.bf16 %v1292_v61, %v1289_v32  ;;  %v1295_v53 = vld [vmem:[#allocation11 + $0x3f0] sm:$0xff]  ;;  %v1298_v56 = vld [vmem:[#allocation11 + $0x408] sm:$0xff]  ;;  %v2066_v32 = vsub.f32 1.0, %v11399_v41 }
 0x266   : > { %13505 = vst [vmem:[#allocation173_spill] sm:$0xff] %v11449_v31  ;;  %13506 = vst [vmem:[#allocation174_spill] sm:$0xff] %v11451_v27  ;;  %v11474_v61 = vpack.c.bf16 %v1298_v56, %v1295_v53  ;;  %v1311_v41 = vld [vmem:[#allocation11 + $0x470] sm:$0xff]  ;;  %v1357_v53 = vld [vmem:[#allocation11 + $0x5e0] sm:$0xff] }
 0x267   : > { %13509 = vst [vmem:[#allocation177_spill] sm:$0xff] %v11461_v17  ;;  %v1360_v56 = vld [vmem:[#allocation11 + $0x5f8] sm:$0xff] }
 0x268   : > { %13512 = vst [vmem:[#allocation180_spill] sm:$0xff] %v11474_v61 }
 0x269   : > { %v9953_v15 = vpop.eup %9952 }
 0x26a   : > { %2138 = vmatmul.mubr.f32.vlgmr.msra.gmra.mrb[18].mxu0 %v9953_v15  ;;  %2280 = vmatmul.mubr.f32.vlgmr.msra.gmra.mrb[24].mxu1 %v9953_v15  ;;  %v1284_v15 = vld [vmem:[#allocation11 + $0x398] sm:$0xff] }
 0x26b   : > { %7931 = vmatpush1.bf16.msra.mxu0 %v11415_v24  ;;  %8027 = vmatpush3.bf16.msra.mxu1 %v11417_v16  ;;  %v1287_v24 = vld [vmem:[#allocation11 + $0x3b0] sm:$0xff]  ;;  %v1336_v16 = vld [vmem:[#allocation11 + $0x538] sm:$0xff] }
 0x26c   : > { %7933 = vmatprep.subr.bf16.mxu0 %v11419_v6  ;;  %8029 = vmatprep.subr.bf16.mxu1 %v11421_v1  ;;  %v11443_v43 = vpack.c.bf16 %v1287_v24, %v1284_v15  ;;  %v11445_v50 = vpack.c.bf16 %v1336_v16, %v1333_v42  ;;  %v1290_v1 = vld [vmem:[#allocation11 + $0x3c8] sm:$0xff]  ;;  %v1339_v6 = vld [vmem:[#allocation11 + $0x550] sm:$0xff] }
 0x26d   : > { %v1291_v16 = vld [vmem:[#allocation11 + $0x3d0] sm:$0xff]  ;;  %v1294_v15 = vld [vmem:[#allocation11 + $0x3e8] sm:$0xff] }
 0x26e   : > { %13503 = vst [vmem:[#allocation171_spill] sm:$0xff] %v11443_v43  ;;  %13504 = vst [vmem:[#allocation172_spill] sm:$0xff] %v11445_v50  ;;  %v11463_v18 = vpack.c.bf16 %v1294_v15, %v1291_v16 }
 0x26f   : > { %7935 = vmatpush1.bf16.msra.mxu0 %v11425_v36  ;;  %8031 = vmatpush3.bf16.msra.mxu1 %v11427_v45  ;;  %v1293_v36 = vld [vmem:[#allocation11 + $0x3e0] sm:$0xff]  ;;  %v1342_v45 = vld [vmem:[#allocation11 + $0x568] sm:$0xff] }
 0x270   : > { %7937 = vmatprep.subr.bf16.mxu0 %v11431_v28  ;;  %8033 = vmatprep.subr.bf16.mxu1 %v11433_v58  ;;  %v11455_v42 = vpack.c.bf16 %v1293_v36, %v1290_v1  ;;  %v11457_v24 = vpack.c.bf16 %v1342_v45, %v1339_v6  ;;  %v1296_v58 = vld [vmem:[#allocation11 + $0x3f8] sm:$0xff]  ;;  %v1345_v28 = vld [vmem:[#allocation11 + $0x580] sm:$0xff]  ;;  %13510 = vst [vmem:[#allocation178_spill] sm:$0xff] %v11463_v18 }
 0x271   : > { %v1297_v36 = vld [vmem:[#allocation11 + $0x400] sm:$0xff]  ;;  %v1300_v45 = vld [vmem:[#allocation11 + $0x418] sm:$0xff] }
 0x272   : > { %13507 = vst [vmem:[#allocation175_spill] sm:$0xff] %v11455_v42  ;;  %13508 = vst [vmem:[#allocation176_spill] sm:$0xff] %v11457_v24  ;;  %v11476_v16 = vpack.c.bf16 %v1300_v45, %v1297_v36 }
 0x273   : > { %7939 = vmatpush1.bf16.msra.mxu0 %v11437_v44  ;;  %8035 = vmatpush3.bf16.msra.mxu1 %v11439_v57  ;;  %v1299_v44 = vld [vmem:[#allocation11 + $0x410] sm:$0xff]  ;;  %v1348_v57 = vld [vmem:[#allocation11 + $0x598] sm:$0xff] }
 0x274   : > { %7941 = vmatprep.subr.bf16.mxu0 %v11443_v43  ;;  %8037 = vmatprep.subr.bf16.mxu1 %v11445_v50  ;;  %v11467_v6 = vpack.c.bf16 %v1299_v44, %v1296_v58  ;;  %v11469_v1 = vpack.c.bf16 %v1348_v57, %v1345_v28  ;;  %v1302_v50 = vld [vmem:[#allocation11 + $0x428] sm:$0xff]  ;;  %v1351_v43 = vld [vmem:[#allocation11 + $0x5b0] sm:$0xff]  ;;  %13513 = vst [vmem:[#allocation181_spill] sm:$0xff] %v11476_v16  ;;  %v1301_v58 = vld [vmem:[#allocation11 + $0x420] sm:$0xff] }
 0x275   : > { %v1304_v44 = vld [vmem:[#allocation11 + $0x438] sm:$0xff] }
 0x276   : > { %13511 = vst [vmem:[#allocation179_spill] sm:$0xff] %v11469_v1 }
 0x277   : > { %7943 = vmatpush1.bf16.msra.mxu0 %v11449_v31  ;;  %8039 = vmatpush3.bf16.msra.mxu1 %v11451_v27  ;;  %v1305_v31 = vld [vmem:[#allocation11 + $0x440] sm:$0xff]  ;;  %v1354_v27 = vld [vmem:[#allocation11 + $0x5c8] sm:$0xff] }
 0x278   : > { %7945 = vmatprep.subr.bf16.mxu0 %v11455_v42  ;;  %8041 = vmatprep.subr.bf16.mxu1 %v11457_v24  ;;  %v11480_v57 = vpack.c.bf16 %v1305_v31, %v1302_v50  ;;  %v11482_v15 = vpack.c.bf16 %v1354_v27, %v1351_v43  ;;  %v1306_v24 = vld [vmem:[#allocation11 + $0x448] sm:$0xff]  ;;  %v11489_v50 = vpack.c.bf16 %v1304_v44, %v1301_v58  ;;  %v1307_v31 = vld [vmem:[#allocation11 + $0x450] sm:$0xff] }
 0x27a   : > { %13514 = vst [vmem:[#allocation182_spill] sm:$0xff] %v11480_v57  ;;  %13515 = vst [vmem:[#allocation183_spill] sm:$0xff] %v11482_v15 }
 0x27b   : > { %7947 = vmatpush1.bf16.msra.mxu0 %v11461_v17  ;;  %8043 = vmatpush3.bf16.msra.mxu1 %v11463_v18  ;;  %v1303_v17 = vld [vmem:[#allocation11 + $0x430] sm:$0xff]  ;;  %v1308_v18 = vld [vmem:[#allocation11 + $0x458] sm:$0xff]  ;;  %13516 = vst [vmem:[#allocation184_spill] sm:$0xff] %v11489_v50 }
 0x27c   : > { %v2057_v28 = vpop.f32.mrb[22].mxu1  ;;  %7949 = vmatprep.subr.bf16.mxu0 %v11467_v6  ;;  %8045 = vmatprep.subr.bf16.mxu1 %v11469_v1  ;;  %v11491_v43 = vpack.c.bf16 %v1306_v24, %v1303_v17  ;;  %v11495_v27 = vpack.c.bf16 %v1311_v41, %v1308_v18  ;;  %v1314_v24 = vld [vmem:[#allocation11 + $0x488] sm:$0xff]  ;;  %v1317_v17 = vld [vmem:[#allocation11 + $0x4a0] sm:$0xff] }
 0x27d   : > { %v2069_v42 = vmul.f32 %v2066_v32, %v2057_v28  ;;  %v7145_v36 = vpop.f32.mrb[23].mxu1  ;;  %v11497_v32 = vpack.c.bf16 %v1360_v56, %v1357_v53  ;;  %v1310_v28 = vld [vmem:[#allocation11 + $0x468] sm:$0xff]  ;;  %v11511_v44 = vpack.c.bf16 %v1317_v17, %v1314_v24  ;;  %v1313_v41 = vld [vmem:[#allocation11 + $0x480] sm:$0xff]  ;;  %v1316_v53 = vld [vmem:[#allocation11 + $0x498] sm:$0xff] }
 0x27e   : > { %13517 = vst [vmem:[#allocation185_spill] sm:$0xff] %v11491_v43  ;;  %13518 = vst [vmem:[#allocation186_spill] sm:$0xff] %v11495_v27  ;;  %v11505_v58 = vpack.c.bf16 %v1310_v28, %v1307_v31  ;;  %v1320_v56 = vld [vmem:[#allocation11 + $0x4b8] sm:$0xff]  ;;  %v1323_v36 = vld [vmem:[#allocation11 + $0x4d0] sm:$0xff] }
 0x27f   : > { %v11485_v45 = vadd.f32 %v2069_v42, %v11402_v30  ;;  %7951 = vmatpush1.bf16.msra.mxu0 %v11474_v61  ;;  %8047 = vmatpush3.bf16.msra.mxu1 %v11476_v16  ;;  %13519 = vst [vmem:[#allocation187_spill] sm:$0xff] %v11497_v32  ;;  %v1309_v30 = vld [vmem:[#allocation11 + $0x460] sm:$0xff]  ;;  %v1312_v42 = vld [vmem:[#allocation11 + $0x478] sm:$0xff]  ;;  %13522 = vst [vmem:[#allocation190_spill] sm:$0xff] %v11511_v44  ;;  %v11518_v31 = vpack.c.bf16 %v1323_v36, %v1320_v56 }
 0x280   : > { %7953 = vmatprep.subr.bf16.mxu0 %v11480_v57  ;;  %8049 = vmatprep.subr.bf16.mxu1 %v11482_v15  ;;  %13520 = vst [vmem:[#allocation188_spill] sm:$0xff] %v11505_v58  ;;  %v11507_v18 = vpack.c.bf16 %v1312_v42, %v1309_v30  ;;  %v1319_v28 = vld [vmem:[#allocation11 + $0x4b0] sm:$0xff]  ;;  %v1322_v30 = vld [vmem:[#allocation11 + $0x4c8] sm:$0xff]  ;;  %v1468_v15 = vld [vmem:[#allocation16 + $0x58] sm:$0xff] }
 0x281   : > { %2662 = vst [vmem:[%s10803_s19 + $0x18] sm:$0xff] %v11485_v45  ;;  %2208 = vmatprep.mubr.f32.mxu0 %v11485_v45  ;;  %2349 = vmatprep.mubr.f32.mxu1 %v11485_v45  ;;  %13524 = vst [vmem:[#allocation192_spill] sm:$0xff] %v11518_v31  ;;  %v1326_v42 = vld [vmem:[#allocation11 + $0x4e8] sm:$0xff]  ;;  %v11522_v24 = vpack.c.bf16 %v1322_v30, %v1319_v28  ;;  %v1341_v30 = vld [vmem:[#allocation11 + $0x560] sm:$0xff] }
 0x282   : > { %13521 = vst [vmem:[#allocation189_spill] sm:$0xff] %v11507_v18  ;;  %v1338_v28 = vld [vmem:[#allocation11 + $0x548] sm:$0xff]  ;;  %v1476_v57 = vld [vmem:[#allocation16 + $0x98] sm:$0xff]  ;;  %v1485_v16 = vld [vmem:[#allocation16 + $0xe0] sm:$0xff] }
 0x283   : > { %7955 = vmatpush1.bf16.msra.mxu0 %v11489_v50  ;;  %8051 = vmatpush3.bf16.msra.mxu1 %v11491_v43  ;;  %v11515_v50 = vpack.c.bf16 %v1316_v53, %v1313_v41  ;;  %13525 = vst [vmem:[#allocation193_spill] sm:$0xff] %v11522_v24  ;;  %v1325_v41 = vld [vmem:[#allocation11 + $0x4e0] sm:$0xff]  ;;  %v1328_v53 = vld [vmem:[#allocation11 + $0x4f8] sm:$0xff] }
 0x284   : > { %7957 = vmatprep.subr.bf16.mxu0 %v11495_v27  ;;  %8053 = vmatprep.subr.bf16.mxu1 %v11497_v32  ;;  %v1329_v32 = vld [vmem:[#allocation11 + $0x500] sm:$0xff]  ;;  %v11528_v56 = vpack.c.bf16 %v1328_v53, %v1325_v41  ;;  %v1344_v41 = vld [vmem:[#allocation11 + $0x578] sm:$0xff]  ;;  %v1347_v53 = vld [vmem:[#allocation11 + $0x590] sm:$0xff] }
 0x285   : > { %13523 = vst [vmem:[#allocation191_spill] sm:$0xff] %v11515_v50  ;;  %v11525_v17 = vpack.c.bf16 %v1329_v32, %v1326_v42  ;;  %v11537_v42 = vpack.c.bf16 %v1341_v30, %v1338_v28 }
 0x286   : > { %13527 = vst [vmem:[#allocation195_spill] sm:$0xff] %v11528_v56 }
 0x287   : > { %7959 = vmatpush1.bf16.msra.mxu0 %v11505_v58  ;;  %8055 = vmatpush3.bf16.msra.mxu1 %v11507_v18  ;;  %13526 = vst [vmem:[#allocation194_spill] sm:$0xff] %v11525_v17  ;;  %v1332_v18 = vld [vmem:[#allocation11 + $0x518] sm:$0xff]  ;;  %v1331_v58 = vld [vmem:[#allocation11 + $0x510] sm:$0xff]  ;;  %13530 = vst [vmem:[#allocation198_spill] sm:$0xff] %v11537_v42 }
 0x288   : > { %7961 = vmatprep.subr.bf16.mxu0 %v11511_v44  ;;  %v1335_v44 = vld [vmem:[#allocation11 + $0x530] sm:$0xff] }
 0x289   : > { %v11531_v36 = vpack.c.bf16 %v1335_v44, %v1332_v18  ;;  %v11543_v44 = vpack.c.bf16 %v1347_v53, %v1344_v41 }
 0x28a   : > { %2350 = vmatmul.mubr.f32.vlgmr.msra.gmra.mrb[26].mxu1 %v11407_v4 }
 0x28b   : > { %7963 = vmatpush1.bf16.msra.mxu0 %v11515_v50  ;;  %13528 = vst [vmem:[#allocation196_spill] sm:$0xff] %v11531_v36  ;;  %v1334_v50 = vld [vmem:[#allocation11 + $0x528] sm:$0xff]  ;;  %13532 = vst [vmem:[#allocation200_spill] sm:$0xff] %v11543_v44 }
 0x28c   : > { %7965 = vmatprep.subr.bf16.mxu0 %v11518_v31  ;;  %v11534_v32 = vpack.c.bf16 %v1334_v50, %v1331_v58  ;;  %v1337_v31 = vld [vmem:[#allocation11 + $0x540] sm:$0xff]  ;;  %v1350_v50 = vld [vmem:[#allocation11 + $0x5a8] sm:$0xff] }
 0x28d   : > { %v1353_v58 = vld [vmem:[#allocation11 + $0x5c0] sm:$0xff] }
 0x28e   : > { %13529 = vst [vmem:[#allocation197_spill] sm:$0xff] %v11534_v32  ;;  %v11549_v30 = vpack.c.bf16 %v1353_v58, %v1350_v50  ;;  %v1362_v58 = vld [vmem:[#allocation13 + $0x8] sm:$0xff] }
 0x28f   : > { %7967 = vmatpush1.bf16.msra.mxu0 %v11522_v24  ;;  %v1340_v24 = vld [vmem:[#allocation11 + $0x558] sm:$0xff] }
 0x290   : > { %7969 = vmatprep.subr.bf16.mxu0 %v11525_v17  ;;  %v11540_v18 = vpack.c.bf16 %v1340_v24, %v1337_v31  ;;  %v1343_v17 = vld [vmem:[#allocation11 + $0x570] sm:$0xff]  ;;  %13534 = vst [vmem:[#allocation202_spill] sm:$0xff] %v11549_v30  ;;  %v1356_v31 = vld [vmem:[#allocation11 + $0x5d8] sm:$0xff] }
 0x291   : > { %v1359_v24 = vld [vmem:[#allocation11 + $0x5f0] sm:$0xff] }
 0x292   : > { %13531 = vst [vmem:[#allocation199_spill] sm:$0xff] %v11540_v18  ;;  %v11555_v53 = vpack.c.bf16 %v1359_v24, %v1356_v31  ;;  %v1379_v31 = vld [vmem:[#allocation13 + $0x90] sm:$0xff]  ;;  %v1380_v24 = vld [vmem:[#allocation13 + $0x98] sm:$0xff] }
 0x293   : > { %7971 = vmatpush1.bf16.msra.mxu0 %v11528_v56  ;;  %v1346_v56 = vld [vmem:[#allocation11 + $0x588] sm:$0xff] }
 0x294   : > { %7973 = vmatprep.subr.bf16.mxu0 %v11531_v36  ;;  %v11546_v28 = vpack.c.bf16 %v1346_v56, %v1343_v17  ;;  %v1349_v36 = vld [vmem:[#allocation11 + $0x5a0] sm:$0xff]  ;;  %13536 = vst [vmem:[#allocation204_spill] sm:$0xff] %v11555_v53 }
 0x295   : > { %v1377_v56 = vld [vmem:[#allocation13 + $0x80] sm:$0xff] }
 0x296   : > { %13533 = vst [vmem:[#allocation201_spill] sm:$0xff] %v11546_v28 }
 0x297   : > { %7975 = vmatpush1.bf16.msra.mxu0 %v11534_v32  ;;  %v1352_v32 = vld [vmem:[#allocation11 + $0x5b8] sm:$0xff] }
 0x298   : > { %7977 = vmatprep.subr.bf16.mxu0 %v11537_v42  ;;  %v11552_v41 = vpack.c.bf16 %v1352_v32, %v1349_v36  ;;  %v1355_v42 = vld [vmem:[#allocation11 + $0x5d0] sm:$0xff]  ;;  %v1378_v36 = vld [vmem:[#allocation13 + $0x88] sm:$0xff]  ;;  %v1361_v32 = vld [vmem:[#allocation13] sm:$0xff] }
 0x299   : > { %v11564_v50 = vpack.c.bf16 %v1378_v36, %v1377_v56  ;;  %v1365_v36 = vld [vmem:[#allocation13 + $0x20] sm:$0xff] }
 0x29a   : > { %13535 = vst [vmem:[#allocation203_spill] sm:$0xff] %v11552_v41 }
 0x29b   : > { %7979 = vmatpush1.bf16.msra.mxu0 %v11540_v18  ;;  %v1358_v18 = vld [vmem:[#allocation11 + $0x5e8] sm:$0xff]  ;;  %13538 = vst [vmem:[#allocation206_spill] sm:$0xff] %v11564_v50  ;;  %8057 = vmatprep.subr.bf16.mxu1 %v11564_v50  ;;  %v1367_v50 = vld [vmem:[#allocation13 + $0x30] sm:$0xff] }
 0x29c   : > { %7981 = vmatprep.subr.bf16.mxu0 %v11543_v44  ;;  %v11558_v17 = vpack.c.bf16 %v1358_v18, %v1355_v42  ;;  %v11568_v42 = vpack.c.bf16 %v1380_v24, %v1379_v31  ;;  %v1363_v18 = vld [vmem:[#allocation13 + $0x10] sm:$0xff]  ;;  %v1366_v44 = vld [vmem:[#allocation13 + $0x28] sm:$0xff] }
 0x29d   : > { %v11578_v31 = vpack.c.bf16 %v1366_v44, %v1365_v36  ;;  %v1387_v36 = vld [vmem:[#allocation13 + $0xd0] sm:$0xff] }
 0x29e   : > { %13537 = vst [vmem:[#allocation205_spill] sm:$0xff] %v11558_v17  ;;  %13540 = vst [vmem:[#allocation208_spill] sm:$0xff] %v11568_v42 }
 0x29f   : > { %7983 = vmatpush1.bf16.msra.mxu0 %v11546_v28  ;;  %13543 = vst [vmem:[#allocation211_spill] sm:$0xff] %v11578_v31 }
 0x2a0   : > { %7985 = vmatprep.subr.bf16.mxu0 %v11549_v30  ;;  %v11566_v30 = vpack.c.bf16 %v1362_v58, %v1361_v32  ;;  %v1383_v32 = vld [vmem:[#allocation13 + $0xb0] sm:$0xff]  ;;  %v1384_v58 = vld [vmem:[#allocation13 + $0xb8] sm:$0xff] }
 0x2a1   : > { %v11581_v24 = vpack.c.bf16 %v1384_v58, %v1383_v32  ;;  %v1388_v32 = vld [vmem:[#allocation13 + $0xd8] sm:$0xff] }
 0x2a2   : > { %13539 = vst [vmem:[#allocation207_spill] sm:$0xff] %v11566_v30  ;;  %8059 = vmatpush3.bf16.msra.mxu1 %v11566_v30  ;;  %v1368_v30 = vld [vmem:[#allocation13 + $0x38] sm:$0xff]  ;;  %v11594_v58 = vpack.c.bf16 %v1388_v32, %v1387_v36  ;;  %v1375_v32 = vld [vmem:[#allocation13 + $0x70] sm:$0xff] }
 0x2a3   : > { %7987 = vmatpush1.bf16.msra.mxu0 %v11552_v41  ;;  %v1381_v41 = vld [vmem:[#allocation13 + $0xa0] sm:$0xff]  ;;  %8061 = vmatprep.subr.bf16.mxu1 %v11568_v42  ;;  %13544 = vst [vmem:[#allocation212_spill] sm:$0xff] %v11581_v24 }
 0x2a4   : > { %7989 = vmatprep.subr.bf16.mxu0 %v11555_v53  ;;  %v1364_v53 = vld [vmem:[#allocation13 + $0x18] sm:$0xff]  ;;  %v1369_v42 = vld [vmem:[#allocation13 + $0x40] sm:$0xff]  ;;  %13548 = vst [vmem:[#allocation216_spill] sm:$0xff] %v11594_v58 }
 0x2a5   : > { %v11572_v28 = vpack.c.bf16 %v1364_v53, %v1363_v18  ;;  %v1385_v53 = vld [vmem:[#allocation13 + $0xc0] sm:$0xff]  ;;  %v1386_v18 = vld [vmem:[#allocation13 + $0xc8] sm:$0xff] }
 0x2a7   : > { %7991 = vmatpush1.bf16.msra.mxu0 %v11558_v17  ;;  %v1382_v17 = vld [vmem:[#allocation13 + $0xa8] sm:$0xff]  ;;  %13541 = vst [vmem:[#allocation209_spill] sm:$0xff] %v11572_v28  ;;  %8063 = vmatpush3.bf16.msra.mxu1 %v11572_v28 }
 0x2a8   : > { %v11575_v56 = vpack.c.bf16 %v1382_v17, %v1381_v41  ;;  %v11584_v41 = vpack.c.bf16 %v1368_v30, %v1367_v50  ;;  %v11587_v17 = vpack.c.bf16 %v1386_v18, %v1385_v53  ;;  %v1370_v28 = vld [vmem:[#allocation13 + $0x48] sm:$0xff]  ;;  %v1371_v30 = vld [vmem:[#allocation13 + $0x50] sm:$0xff]  ;;  %v1372_v50 = vld [vmem:[#allocation13 + $0x58] sm:$0xff] }
 0x2a9   : > { %v11590_v44 = vpack.c.bf16 %v1370_v28, %v1369_v42  ;;  %v1389_v53 = vld [vmem:[#allocation13 + $0xe0] sm:$0xff]  ;;  %v1390_v18 = vld [vmem:[#allocation13 + $0xe8] sm:$0xff] }
 0x2aa   : > { %2209 = vmatmul.mubr.f32.vlgmr.msra.gmra.mrb[18].mxu0 %v11407_v4  ;;  %13542 = vst [vmem:[#allocation210_spill] sm:$0xff] %v11575_v56  ;;  %8065 = vmatprep.subr.bf16.mxu1 %v11575_v56  ;;  %13545 = vst [vmem:[#allocation213_spill] sm:$0xff] %v11584_v41  ;;  %v1373_v28 = vld [vmem:[#allocation13 + $0x60] sm:$0xff]  ;;  %v11600_v42 = vpack.c.bf16 %v1390_v18, %v1389_v53  ;;  %v1376_v56 = vld [vmem:[#allocation13 + $0x78] sm:$0xff] }
 0x2ab   : > { %2571 = vmatprep.mubr.f32.mxu0 %v13403_v62  ;;  %8067 = vmatpush3.bf16.msra.mxu1 %v11578_v31  ;;  %13546 = vst [vmem:[#allocation214_spill] sm:$0xff] %v11587_v17  ;;  %13547 = vst [vmem:[#allocation215_spill] sm:$0xff] %v11590_v44  ;;  %v11596_v31 = vpack.c.bf16 %v1372_v50, %v1371_v30  ;;  %v11608_v30 = vpack.c.bf16 %v1376_v56, %v1375_v32  ;;  %v13554_v50 = vmov 0.0|0.0   ;;  %v1394_v56 = vld [vmem:[#allocation13 + $0x108] sm:$0xff] }
 0x2ac   : > { %8069 = vmatprep.subr.bf16.mxu1 %v11581_v24  ;;  %13550 = vst [vmem:[#allocation218_spill] sm:$0xff] %v11600_v42 }
 0x2ad   : > { %13549 = vst [vmem:[#allocation217_spill] sm:$0xff] %v11596_v31  ;;  %13553 = vst [vmem:[#allocation221_spill] sm:$0xff] %v11608_v30 }
 0x2af   : > { %8071 = vmatpush3.bf16.msra.mxu1 %v11584_v41  ;;  %v1391_v41 = vld [vmem:[#allocation13 + $0xf0] sm:$0xff] }
 0x2b0   : > { %8073 = vmatprep.subr.bf16.mxu1 %v11587_v17  ;;  %v1374_v17 = vld [vmem:[#allocation13 + $0x68] sm:$0xff] }
 0x2b1   : > { %v11602_v24 = vpack.c.bf16 %v1374_v17, %v1373_v28 }
 0x2b3   : > { %8075 = vmatpush3.bf16.msra.mxu1 %v11590_v44  ;;  %v1392_v44 = vld [vmem:[#allocation13 + $0xf8] sm:$0xff]  ;;  %13551 = vst [vmem:[#allocation219_spill] sm:$0xff] %v11602_v24 }
 0x2b4   : > { %8077 = vmatprep.subr.bf16.mxu1 %v11594_v58  ;;  %v11604_v36 = vpack.c.bf16 %v1392_v44, %v1391_v41 }
 0x2b6   : > { %13552 = vst [vmem:[#allocation220_spill] sm:$0xff] %v11604_v36 }
 0x2b7   : > { %8079 = vmatpush3.bf16.msra.mxu1 %v11596_v31 }
 0x2b8   : > { %8081 = vmatprep.subr.bf16.mxu1 %v11600_v42  ;;  %v1395_v42 = vld [vmem:[#allocation13 + $0x110] sm:$0xff] }
 0x2bb   : > { %8083 = vmatpush3.bf16.msra.mxu1 %v11602_v24  ;;  %v1393_v24 = vld [vmem:[#allocation13 + $0x100] sm:$0xff] }
 0x2bc   : > { %8085 = vmatprep.subr.bf16.mxu1 %v11604_v36  ;;  %v11613_v32 = vpack.c.bf16 %v1394_v56, %v1393_v24  ;;  %v1405_v56 = vld [vmem:[#allocation13 + $0x160] sm:$0xff] }
 0x2be   : > { %13555 = vst [vmem:[#allocation222_spill] sm:$0xff] %v11613_v32 }
 0x2bf   : > { %8087 = vmatpush3.bf16.msra.mxu1 %v11608_v30  ;;  %v1396_v30 = vld [vmem:[#allocation13 + $0x118] sm:$0xff] }
 0x2c0   : > { %8088 = vmatprep.subr.bf16.mxu1 %v13554_v50 }
 0x33d   : > { %v6440_v53 = vpop.f32.mrb[24].mxu1 }
 0x33e   : > { %v6441_v18 = vpop.f32.mrb[25].mxu1 }
 0x33f   : > { %v6442_v17 = vadd.f32 %v6441_v18, %v6440_v53  ;;  %v11616_v53 = vpack.c.bf16 %v1396_v30, %v1395_v42  ;;  %v1399_v18 = vld [vmem:[#allocation13 + $0x130] sm:$0xff]  ;;  %v1401_v42 = vld [vmem:[#allocation13 + $0x140] sm:$0xff]  ;;  %v1402_v30 = vld [vmem:[#allocation13 + $0x148] sm:$0xff] }
 0x341   : > { %13556 = vst [vmem:[#allocation223_spill] sm:$0xff] %v11616_v53 }
 0x35d   : > { %v6475_v28 = vpop.f32.mrb[26].mxu1 }
 0x35e   : > { %v6476_v41 = vpop.f32.mrb[27].mxu1 }
 0x35f   : > { %v6477_v44 = vadd.f32 %v6476_v41, %v6475_v28  ;;  %v1403_v28 = vld [vmem:[#allocation13 + $0x150] sm:$0xff]  ;;  %v1404_v41 = vld [vmem:[#allocation13 + $0x158] sm:$0xff] }
 0x361   : > { %v2352_v31 = vadd.f32 %v6477_v44, %v6442_v17  ;;  %v11630_v17 = vpack.c.bf16 %v1402_v30, %v1401_v42  ;;  %v11634_v44 = vpack.c.bf16 %v1404_v41, %v1403_v28 }
 0x363   : > { %13559 = vst [vmem:[#allocation226_spill] sm:$0xff] %v11630_v17  ;;  %13560 = vst [vmem:[#allocation227_spill] sm:$0xff] %v11634_v44 }
 0x37d   : > { %v2210_v58 = vpop.f32.mrb[18].mxu0 }
 0x37e   : > { %v2212_v27 = vpop.f32.mrb[19].mxu0 }
 0x37f   : > { %9954 = vtanh.f32 %v2212_v27  ;;  %v1397_v27 = vld [vmem:[#allocation13 + $0x120] sm:$0xff] }
 0x380   : > { %9956 = vtanh.f32 %v2210_v58  ;;  %v1398_v58 = vld [vmem:[#allocation13 + $0x128] sm:$0xff] }
 0x381   : > { %v11622_v24 = vpack.c.bf16 %v1398_v58, %v1397_v27  ;;  %v1406_v27 = vld [vmem:[#allocation13 + $0x168] sm:$0xff]  ;;  %9958 = vtanh.f32 %v2352_v31 }
 0x382   : > { %v11638_v58 = vpack.c.bf16 %v1406_v27, %v1405_v56  ;;  %v6326_v56 = vld [vmem:[%s13563_s13] ss:$0 sm:$0xff] }
 0x383   : > { %13557 = vst [vmem:[#allocation224_spill] sm:$0xff] %v11622_v24 }
 0x384   : > { %13561 = vst [vmem:[#allocation228_spill] sm:$0xff] %v11638_v58 }
 0x389   : > { %v9955_v36 = vpop.eup %9954 }
 0x38a   : > { %v9957_v43 = vpop.eup %9956  ;;  %2422 = vmatprep.mubr.f32.mxu1 %v9955_v36  ;;  %v1400_v36 = vld [vmem:[#allocation13 + $0x138] sm:$0xff] }
 0x38b   : > { %2423 = vmatmul.mubr.f32.vlgmr.msra.gmra.mrb[28].mxu1 %v9957_v43  ;;  %v11626_v43 = vpack.c.bf16 %v1400_v36, %v1399_v18  ;;  %v1407_v18 = vld [vmem:[#allocation13 + $0x170] sm:$0xff]  ;;  %v1408_v36 = vld [vmem:[#allocation13 + $0x178] sm:$0xff]  ;;  %v9959_v30 = vpop.eup %9958 }
 0x38c   : > { %8090 = vmatpush3.bf16.msra.mxu1 %v11613_v32  ;;  %7178 = vmatprep.mubr.msk.f32.mxu1 %vm10425_vm1, %v13403_v62  ;;  %v11642_v42 = vpack.c.bf16 %v1408_v36, %v1407_v18  ;;  %v1464_v32 = vld [vmem:[#allocation16 + $0x38] sm:$0xff] }
 0x38d   : > { %8091 = vmatprep.subr.bf16.mxu1 %v13554_v50  ;;  %13558 = vst [vmem:[#allocation225_spill] sm:$0xff] %v11626_v43 }
 0x38e   : > { %13562 = vst [vmem:[#allocation229_spill] sm:$0xff] %v11642_v42 }
 0x390   : > { %8093 = vmatpush3.bf16.msra.mxu1 %v11616_v53  ;;  %v1462_v53 = vld [vmem:[#allocation16 + $0x28] sm:$0xff] }
 0x391   : > { %8094 = vmatprep.subr.bf16.mxu1 %v13554_v50 }
 0x394   : > { %8096 = vmatpush3.bf16.msra.mxu1 %v11622_v24  ;;  %v1459_v24 = vld [vmem:[#allocation16 + $0x10] sm:$0xff] }
 0x395   : > { %8097 = vmatprep.subr.bf16.mxu1 %v13554_v50 }
 0x398   : > { %8099 = vmatpush3.bf16.msra.mxu1 %v11626_v43  ;;  %v1460_v43 = vld [vmem:[#allocation16 + $0x18] sm:$0xff] }
 0x399   : > { %8100 = vmatprep.subr.bf16.mxu1 %v13554_v50 }
 0x39c   : > { %8102 = vmatpush3.bf16.msra.mxu1 %v11630_v17 }
 0x39d   : > { %8103 = vmatprep.subr.bf16.mxu1 %v13554_v50 }
 0x3a0   : > { %8105 = vmatpush3.bf16.msra.mxu1 %v11634_v44  ;;  %v1461_v44 = vld [vmem:[#allocation16 + $0x20] sm:$0xff] }
 0x3a1   : > { %8106 = vmatprep.subr.bf16.mxu1 %v13554_v50 }
 0x3a4   : > { %8108 = vmatpush3.bf16.msra.mxu1 %v11638_v58 }
 0x3a5   : > { %8109 = vmatprep.subr.bf16.mxu1 %v13554_v50 }
 0x3a8   : > { %8111 = vmatpush3.bf16.msra.mxu1 %v11642_v42  ;;  %v1458_v42 = vld [vmem:[#allocation16 + $0x8] sm:$0xff] }
 0x3a9   : > { %8144 = vmatprep.subr.bf16.mxu1 %v13554_v50  ;;  %v11655_v17 = vpack.c.bf16 %v1461_v44, %v1458_v42  ;;  %v1469_v42 = vld [vmem:[#allocation16 + $0x60] sm:$0xff] }
 0x3ab   : > { %7179 = vmatmul.mubr.f32.vlgmr.msra.gmra.mrb[30].mxu1 %v9959_v30  ;;  %v1457_v30 = vld [vmem:[#allocation16] sm:$0xff]  ;;  %13565 = vst [vmem:[#allocation230_spill] sm:$0xff] %v11655_v17  ;;  %8113 = vmatprep.subr.bf16.mxu0 %v11655_v17  ;;  %v1474_v17 = vld [vmem:[#allocation16 + $0x88] sm:$0xff] }
 0x3ac   : > { %7213 = vmatprep.mubr.msk.f32.mxu1 %vm10425_vm1, %v13403_v62 }
 0x45e   : > { %v6510_v31 = vpop.f32.mrb[28].mxu1 }
 0x45f   : > { %v6511_v28 = vpop.f32.mrb[29].mxu1 }
 0x460   : > { %v6512_v41 = vadd.f32 %v6511_v28, %v6510_v31  ;;  %v11657_v31 = vpack.c.bf16 %v1460_v43, %v1457_v30  ;;  %v11659_v28 = vpack.c.bf16 %v1462_v53, %v1459_v24  ;;  %v1470_v53 = vld [vmem:[#allocation16 + $0x68] sm:$0xff]  ;;  %v1473_v24 = vld [vmem:[#allocation16 + $0x80] sm:$0xff]  ;;  %v1472_v30 = vld [vmem:[#allocation16 + $0x78] sm:$0xff] }
 0x462   : > { %v2425_v27 = vadd.f32 %v6512_v41, %v6326_v56  ;;  %13566 = vst [vmem:[#allocation231_spill] sm:$0xff] %v11657_v31  ;;  %13567 = vst [vmem:[#allocation232_spill] sm:$0xff] %v11659_v28  ;;  %v1467_v41 = vld [vmem:[#allocation16 + $0x50] sm:$0xff]  ;;  %8115 = vmatpush1.bf16.msra.mxu0 %v11657_v31  ;;  %8146 = vmatpush3.bf16.msra.mxu1 %v11659_v28  ;;  %v1480_v28 = vld [vmem:[#allocation16 + $0xb8] sm:$0xff] }
 0x463   : > { %v1463_v56 = vld [vmem:[#allocation16 + $0x30] sm:$0xff]  ;;  %8147 = vmatprep.subr.bf16.mxu1 %v13554_v50 }
 0x464   : > { %v1479_v31 = vld [vmem:[#allocation16 + $0xb0] sm:$0xff] }
 0x47e   : > { %v2494_v18 = vpop.f32.mrb[30].mxu1 }
 0x47f   : > { %v11652_v36 = vadd.f32 %v2494_v18, %v2425_v27  ;;  %v7180_v58 = vpop.f32.mrb[31].mxu1  ;;  %v1466_v27 = vld [vmem:[#allocation16 + $0x48] sm:$0xff]  ;;  %v1465_v18 = vld [vmem:[#allocation16 + $0x40] sm:$0xff] }
 0x480   : > { %v11662_v58 = vpack.c.bf16 %v1467_v41, %v1464_v32  ;;  %v11666_v44 = vpack.c.bf16 %v1466_v27, %v1463_v56  ;;  %v11668_v43 = vpack.c.bf16 %v1468_v15, %v1465_v18  ;;  %v11672_v32 = vpack.c.bf16 %v1473_v24, %v1470_v53  ;;  %v1471_v41 = vld [vmem:[#allocation16 + $0x70] sm:$0xff]  ;;  %v1478_v53 = vld [vmem:[#allocation16 + $0xa8] sm:$0xff]  ;;  %v1477_v24 = vld [vmem:[#allocation16 + $0xa0] sm:$0xff] }
 0x481   : > { %2498 = vmax.xlane.f32.xlu0 %v11652_v36  ;;  %v11676_v15 = vpack.c.bf16 %v1472_v30, %v1469_v42  ;;  %v11678_v56 = vpack.c.bf16 %v1474_v17, %v1471_v41  ;;  %v1475_v27 = vld [vmem:[#allocation16 + $0x90] sm:$0xff]  ;;  %v11682_v18 = vpack.c.bf16 %v1479_v31, %v1476_v57  ;;  %v11688_v17 = vpack.c.bf16 %v1480_v28, %v1477_v24  ;;  %v1481_v30 = vld [vmem:[#allocation16 + $0xc0] sm:$0xff]  ;;  %v1484_v31 = vld [vmem:[#allocation16 + $0xd8] sm:$0xff] }
 0x482   : > { %13568 = vst [vmem:[#allocation233_spill] sm:$0xff] %v11662_v58  ;;  %13569 = vst [vmem:[#allocation234_spill] sm:$0xff] %v11666_v44  ;;  %8117 = vmatprep.subr.bf16.mxu0 %v11662_v58  ;;  %8149 = vmatpush3.bf16.msra.mxu1 %v11668_v43  ;;  %v1482_v58 = vld [vmem:[#allocation16 + $0xc8] sm:$0xff]  ;;  %v11686_v42 = vpack.c.bf16 %v1478_v53, %v1475_v27  ;;  %v1483_v41 = vld [vmem:[#allocation16 + $0xd0] sm:$0xff] }
 0x483   : > { %13570 = vst [vmem:[#allocation235_spill] sm:$0xff] %v11668_v43  ;;  %13571 = vst [vmem:[#allocation236_spill] sm:$0xff] %v11672_v32  ;;  %8119 = vmatpush1.bf16.msra.mxu0 %v11666_v44  ;;  %8150 = vmatprep.subr.bf16.mxu1 %v13554_v50  ;;  %v11692_v57 = vpack.c.bf16 %v1485_v16, %v1482_v58  ;;  %v1486_v43 = vld [vmem:[#allocation16 + $0xe8] sm:$0xff]  ;;  %v1488_v24 = vld [vmem:[#allocation16 + $0xf8] sm:$0xff] }
 0x484   : > { %13572 = vst [vmem:[#allocation237_spill] sm:$0xff] %v11676_v15  ;;  %13573 = vst [vmem:[#allocation238_spill] sm:$0xff] %v11678_v56  ;;  %8121 = vmatprep.subr.bf16.mxu0 %v11672_v32  ;;  %v11698_v27 = vpack.c.bf16 %v1486_v43, %v1483_v41  ;;  %v1491_v43 = vld [vmem:[#allocation16 + $0x110] sm:$0xff]  ;;  %v1490_v41 = vld [vmem:[#allocation16 + $0x108] sm:$0xff] }
 0x485   : > { %13574 = vst [vmem:[#allocation239_spill] sm:$0xff] %v11682_v18  ;;  %13575 = vst [vmem:[#allocation240_spill] sm:$0xff] %v11686_v42 }
 0x486   : > { %8152 = vmatpush3.bf16.msra.mxu1 %v11678_v56  ;;  %13576 = vst [vmem:[#allocation241_spill] sm:$0xff] %v11688_v17  ;;  %13577 = vst [vmem:[#allocation242_spill] sm:$0xff] %v11692_v57 }
 0x487   : > { %8123 = vmatpush1.bf16.msra.mxu0 %v11676_v15  ;;  %8153 = vmatprep.subr.bf16.mxu1 %v13554_v50  ;;  %v11696_v15 = vpack.c.bf16 %v1484_v31, %v1481_v30  ;;  %13579 = vst [vmem:[#allocation244_spill] sm:$0xff] %v11698_v27  ;;  %v11706_v30 = vpack.c.bf16 %v1491_v43, %v1488_v24  ;;  %v1487_v31 = vld [vmem:[#allocation16 + $0xf0] sm:$0xff]  ;;  %v1498_v43 = vld [vmem:[#allocation16 + $0x148] sm:$0xff] }
 0x488   : > { %8125 = vmatprep.subr.bf16.mxu0 %v11682_v18  ;;  %v11708_v56 = vpack.c.bf16 %v1490_v41, %v1487_v31  ;;  %v1500_v18 = vld [vmem:[#allocation16 + $0x158] sm:$0xff]  ;;  %v1503_v31 = vld [vmem:[#allocation16 + $0x170] sm:$0xff] }
 0x489   : > { %13578 = vst [vmem:[#allocation243_spill] sm:$0xff] %v11696_v15  ;;  %13580 = vst [vmem:[#allocation245_spill] sm:$0xff] %v11706_v30 }
 0x48a   : > { %8155 = vmatpush3.bf16.msra.mxu1 %v11688_v17  ;;  %v1489_v17 = vld [vmem:[#allocation16 + $0x100] sm:$0xff]  ;;  %13581 = vst [vmem:[#allocation246_spill] sm:$0xff] %v11708_v56 }
 0x48b   : > { %8127 = vmatpush1.bf16.msra.mxu0 %v11686_v42  ;;  %8156 = vmatprep.subr.bf16.mxu1 %v13554_v50 }
 0x48c   : > { %8129 = vmatprep.subr.bf16.mxu0 %v11692_v57  ;;  %v1497_v57 = vld [vmem:[#allocation16 + $0x140] sm:$0xff] }
 0x48e   : > { %8158 = vmatpush3.bf16.msra.mxu1 %v11698_v27  ;;  %v1494_v27 = vld [vmem:[#allocation16 + $0x128] sm:$0xff] }
 0x48f   : > { %8131 = vmatpush1.bf16.msra.mxu0 %v11696_v15  ;;  %8159 = vmatprep.subr.bf16.mxu1 %v13554_v50  ;;  %v1492_v15 = vld [vmem:[#allocation16 + $0x118] sm:$0xff] }
 0x490   : > { %8133 = vmatprep.subr.bf16.mxu0 %v11706_v30  ;;  %v11711_v42 = vpack.c.bf16 %v1492_v15, %v1489_v17  ;;  %v11722_v15 = vpack.c.bf16 %v1503_v31, %v1500_v18  ;;  %v1499_v17 = vld [vmem:[#allocation16 + $0x150] sm:$0xff]  ;;  %v1504_v30 = vld [vmem:[#allocation16 + $0x178] sm:$0xff] }
 0x492   : > { %13582 = vst [vmem:[#allocation247_spill] sm:$0xff] %v11711_v42  ;;  %8161 = vmatpush3.bf16.msra.mxu1 %v11711_v42  ;;  %13585 = vst [vmem:[#allocation250_spill] sm:$0xff] %v11722_v15 }
 0x493   : > { %8135 = vmatpush1.bf16.msra.mxu0 %v11708_v56  ;;  %8162 = vmatprep.subr.bf16.mxu1 %v13554_v50 }
 0x50e   : > { %v2499_v16 = vpop.xlane.xlu0 %2498 }
 0x50f   : > { %v2500_v28 = vsub.f32 %v11652_v36, %v2499_v16  ;;  %v11713_v36 = vpack.c.bf16 %v1497_v57, %v1494_v27  ;;  %v1493_v16 = vld [vmem:[#allocation16 + $0x120] sm:$0xff]  ;;  %v1502_v57 = vld [vmem:[#allocation16 + $0x168] sm:$0xff] }
 0x510   : > { %v1501_v27 = vld [vmem:[#allocation16 + $0x160] sm:$0xff] }
 0x511   : > { %v2501_v58 = vmul.f32 1.442695, %v2500_v28  ;;  %13583 = vst [vmem:[#allocation248_spill] sm:$0xff] %v11713_v36  ;;  %v1496_v28 = vld [vmem:[#allocation16 + $0x138] sm:$0xff]  ;;  %8137 = vmatprep.subr.bf16.mxu0 %v11713_v36 }
 0x512   : > { %v11716_v24 = vpack.c.bf16 %v1496_v28, %v1493_v16  ;;  %v11726_v16 = vpack.c.bf16 %v1502_v57, %v1499_v17  ;;  %v11730_v28 = vpack.c.bf16 %v1504_v30, %v1501_v27  ;;  %v10094_v30 = vld [vmem:[%s13483_s22] sm:$0xff]  ;;  %v520_v27 = vsub.s32 7, %v11366_v35 }
 0x513   : > { %9960 = vpow2.f32 %v2501_v58  ;;  %v1495_v58 = vld [vmem:[#allocation16 + $0x130] sm:$0xff] }
 0x514   : > { %v11720_v41 = vpack.c.bf16 %v1498_v43, %v1495_v58  ;;  %8139 = vmatpush1.bf16.msra.mxu0 %v11716_v24  ;;  %13586 = vst [vmem:[#allocation251_spill] sm:$0xff] %v11730_v28 }
 0x515   : > { %8141 = vmatprep.subr.bf16.mxu0 %v11722_v15 }
 0x516   : > { %13584 = vst [vmem:[#allocation249_spill] sm:$0xff] %v11720_v41  ;;  %8164 = vmatpush3.bf16.msra.mxu1 %v11720_v41 }
 0x517   : > { %8165 = vmatprep.subr.bf16.mxu1 %v13554_v50 }
 0x518   : > { %8143 = vmatpush1.bf16.msra.mxu0 %v11726_v16 }
 0x519   : > { %8169 = vmatprep.subr.bf16.mxu0 %v10832_v37 }
 0x51a   : > { %8167 = vmatpush3.bf16.msra.mxu1 %v11730_v28 }
 0x51b   : > { %8201 = vmatprep.subr.bf16.mxu1 %v10834_v38 }
 0x51d   : > { %v9961_v53 = vpop.eup %9960 }
 0x51e   : > { %2503 = vadd.xlane.f32.xlu0 %v9961_v53 }
 0x5ab   : > { %v2504_v18 = vpop.xlane.xlu0 %2503 }
 0x5ac   : > { %9962 = vrcp.f32 %v2504_v18  ;;  %v11781_v18 = vrot.slane %v10094_v30, %v520_v27 }
 0x5ae   : > { %13588 = vst [vmem:[#allocation253_spill] sm:$0xff] %v11781_v18 }
 0x5b6   : > { %v9963_v58 = vpop.eup %9962 }
 0x5b7   : > { %v2506_v43 = vmul.f32 %v9963_v58, %v9961_v53  ;;  %v516_v53 = vsub.s32 6, %v11366_v35 }
 0x5b9   : > { %2572 = vmatmul.mubr.f32.vlgmr.msra.gmra.mrb[20].mxu0 %v2506_v43  ;;  %2663 = vst [vmem:[%s10803_s19 + $0x20] sm:$0xff] %v2506_v43  ;;  %7214 = vmatmul.mubr.f32.vlgmr.msra.gmra.mrb[32].mxu1 %v2506_v43  ;;  %v11776_v31 = vrot.slane %v10094_v30, %v516_v53  ;;  %v9735_v43 = vadd.f32 %v11396_v11, %v11781_v18 }
 0x5ba   : > { %8171 = vmatpush1.bf16.msra.mxu0 %v10863_v47  ;;  %8203 = vmatpush1.bf16.msra.mxu1 %v10865_v48 }
 0x5bb   : > { %8173 = vmatprep.subr.bf16.mxu0 %v10867_v51  ;;  %8205 = vmatprep.subr.bf16.mxu1 %v10869_v52  ;;  %13587 = vst [vmem:[#allocation252_spill] sm:$0xff] %v11776_v31  ;;  %v9734_v17 = vadd.f32 %v11393_v19, %v11776_v31 }
 0x5bc   : > { %2737 = vmatprep.mubr.f32.mxu0 %v13403_v62  ;;  %2808 = vmatprep.mubr.f32.mxu1 %v13403_v62 }
 0x5bd   : > { %v6330_v57 = vmul.f32 -1.442695, %v9734_v17 }
 0x5be   : > { %8175 = vmatpush1.bf16.msra.mxu0 %v10877_v59  ;;  %8207 = vmatpush1.bf16.msra.mxu1 %v10879_v60 }
 0x5bf   : > { %8177 = vmatprep.subr.bf16.mxu0 %v10883_v63  ;;  %8209 = vmatprep.subr.bf16.mxu1 %v10885_v0  ;;  %9964 = vpow2.f32 %v6330_v57 }
 0x5c2   : > { %8179 = vmatpush1.bf16.msra.mxu0 %v10896_v8  ;;  %8211 = vmatpush1.bf16.msra.mxu1 %v10898_v9 }
 0x5c3   : > { %8181 = vmatprep.subr.bf16.mxu0 %v10902_v13  ;;  %8213 = vmatprep.subr.bf16.mxu1 %v10904_v14 }
 0x5c6   : > { %8183 = vmatpush1.bf16.msra.mxu0 %v10912_v21  ;;  %8215 = vmatpush1.bf16.msra.mxu1 %v10914_v22 }
 0x5c7   : > { %8185 = vmatprep.subr.bf16.mxu0 %v10918_v25  ;;  %8217 = vmatprep.subr.bf16.mxu1 %v10920_v26 }
 0x5c9   : > { %v9965_v58 = vpop.eup %9964 }
 0x5ca   : > { %8187 = vmatpush1.bf16.msra.mxu0 %v10927_v33  ;;  %8219 = vmatpush1.bf16.msra.mxu1 %v10929_v34 }
 0x5cb   : > { %8189 = vmatprep.subr.bf16.mxu0 %v10933_v39  ;;  %8221 = vmatprep.subr.bf16.mxu1 %v10935_v40 }
 0x5ce   : > { %8191 = vmatpush1.bf16.msra.mxu0 %v10940_v46  ;;  %8223 = vmatpush1.bf16.msra.mxu1 %v10942_v49 }
 0x5cf   : > { %8193 = vmatprep.subr.bf16.mxu0 %v10946_v54  ;;  %8225 = vmatprep.subr.bf16.mxu1 %v10948_v55 }
 0x5d2   : > { %8195 = vmatpush1.bf16.msra.mxu0 %v10952_v2  ;;  %8227 = vmatpush1.bf16.msra.mxu1 %v10954_v3 }
 0x5d3   : > { %8197 = vmatprep.subr.bf16.mxu0 %v10958_v7  ;;  %8229 = vmatprep.subr.bf16.mxu1 %v10960_v10 }
 0x5d6   : > { %8199 = vmatpush1.bf16.msra.mxu0 %v10964_v20  ;;  %8231 = vmatpush1.bf16.msra.mxu1 %v10966_v23 }
 0x5d7   : > { %8233 = vmatprep.subr.bf16.mxu0 %v10970_v12  ;;  %8265 = vmatprep.subr.bf16.mxu1 %v10972_v29  ;;  %v1910_v29 = vadd.f32 1.0, %v9965_v58  ;;  %v6331_v12 = vmul.f32 -1.442695, %v9735_v43  ;;  %v10095_v43 = vld [vmem:[#allocation4] sm:$0xff] }
 0x5d9   : > { %9966 = vrcp.f32 %v1910_v29 }
 0x5da   : > { %9968 = vpow2.f32 %v6331_v12 }
 0x5e3   : > { %v9967_v20 = vpop.eup %9966 }
 0x5e4   : > { %v9969_v35 = vpop.eup %9968  ;;  %v2653_v31 = vsub.f32 1.0, %v9967_v20 }
 0x5e5   : > { %v1916_v58 = vadd.f32 1.0, %v9969_v35  ;;  %v13598_v35 = vld [vmem:[#allocation44_spill] sm:$0xff] }
 0x5e6   : > { %v2654_v29 = vmul.f32 %v10095_v43, %v2653_v31  ;;  %v13594_v31 = vld [vmem:[#allocation40_spill] sm:$0xff]  ;;  %v13603_v43 = vld [vmem:[#allocation49_spill] sm:$0xff] }
 0x5e7   : > { %9970 = vrcp.f32 %v1916_v58  ;;  %v13602_v58 = vld [vmem:[#allocation48_spill] sm:$0xff] }
 0x68c   : > { %v2573_v23 = vpop.f32.mrb[20].mxu0  ;;  %v2644_v53 = vpop.f32.mrb[32].mxu1 }
 0x68d   : > { %v2648_v10 = vmul.f32 %v2573_v23, %v11405_v5  ;;  %v2575_v19 = vpop.f32.mrb[21].mxu0  ;;  %v7215_v17 = vpop.f32.mrb[33].mxu1  ;;  %v2650_v30 = vmul.f32 %v2644_v53, %v11485_v45  ;;  %v13593_v45 = vld [vmem:[#allocation39_spill] sm:$0xff]  ;;  %v13595_v53 = vld [vmem:[#allocation41_spill] sm:$0xff] }
 0x68e   : > { %v2649_v57 = vmul.f32 %v2575_v19, %v11407_v4  ;;  %v9971_v23 = vpop.eup %9970  ;;  %v13591_v4 = vld [vmem:[#allocation37_spill] sm:$0xff]  ;;  %v13596_v19 = vld [vmem:[#allocation42_spill] sm:$0xff] }
 0x690   : > { %v2651_v27 = vadd.f32 %v2649_v57, %v2648_v10  ;;  %v13590_v10 = vld [vmem:[#allocation36_spill] sm:$0xff]  ;;  %v13597_v57 = vld [vmem:[#allocation43_spill] sm:$0xff] }
 0x692   : > { %v2652_v11 = vadd.f32 %v2651_v27, %v2650_v30  ;;  %v13599_v30 = vld [vmem:[#allocation45_spill] sm:$0xff]  ;;  %v13600_v27 = vld [vmem:[#allocation46_spill] sm:$0xff] }
 0x694   : > { %v2655_v12 = vmul.f32 %v9967_v20, %v2652_v11  ;;  %v13592_v20 = vld [vmem:[#allocation38_spill] sm:$0xff]  ;;  %v13601_v11 = vld [vmem:[#allocation47_spill] sm:$0xff] }
 0x696   : > { %v11788_v18 = vadd.f32 %v2655_v12, %v2654_v29  ;;  %v13604_v29 = vld [vmem:[#allocation50_spill] sm:$0xff]  ;;  %v13605_v12 = vld [vmem:[#allocation51_spill] sm:$0xff] }
 0x698   : > { %13589 = vst [vmem:[#allocation254_spill] sm:$0xff] %v11788_v18  ;;  %9972 = vtanh.f32 %v11788_v18 }
 0x6a2   : > { %v9973_v5 = vpop.eup %9972 }
 0x6a3   : > { %v11791_v17 = vmul.f32 %v9973_v5, %v9971_v23  ;;  %v13606_v23 = vld [vmem:[#allocation52_spill] sm:$0xff]  ;;  %v13607_v5 = vld [vmem:[#allocation53_spill] sm:$0xff] }
 0x6a5   : > { %2659 = vst [vmem:[%s10803_s19] sm:$0xff] %v11791_v17  ;;  %2738 = vmatmul.mubr.f32.vlgmr.msra.gmra.mrb[2].mxu0 %v11791_v17  ;;  %2809 = vmatmul.mubr.f32.vlgmr.msra.gmra.mrb[6].mxu1 %v11791_v17 }
 0x6a6   : > { %8235 = vmatpush1.bf16.msra.mxu0 %v13590_v10  ;;  %8267 = vmatpush1.bf16.msra.mxu1 %v13591_v4 }
 0x6a7   : > { %8237 = vmatprep.subr.bf16.mxu0 %v13592_v20  ;;  %8269 = vmatprep.subr.bf16.mxu1 %v13593_v45  ;;  %v13705_v45 = vld [vmem:[#allocation158_spill] sm:$0xff] }
 0x6a8   : > { %2879 = vmatprep.mubr.f32.mxu0 %v13403_v62  ;;  %2950 = vmatprep.mubr.f32.mxu1 %v13403_v62 }
 0x6aa   : > { %8239 = vmatpush1.bf16.msra.mxu0 %v13594_v31  ;;  %8271 = vmatpush1.bf16.msra.mxu1 %v13595_v53  ;;  %v13704_v31 = vld [vmem:[#allocation157_spill] sm:$0xff] }
 0x6ab   : > { %8241 = vmatprep.subr.bf16.mxu0 %v13596_v19  ;;  %8273 = vmatprep.subr.bf16.mxu1 %v13597_v57  ;;  %v13608_v57 = vld [vmem:[#allocation54_spill] sm:$0xff] }
 0x6ae   : > { %8243 = vmatpush1.bf16.msra.mxu0 %v13598_v35  ;;  %8275 = vmatpush1.bf16.msra.mxu1 %v13599_v30  ;;  %v13609_v35 = vld [vmem:[#allocation55_spill] sm:$0xff]  ;;  %v13610_v30 = vld [vmem:[#allocation56_spill] sm:$0xff] }
 0x6af   : > { %8245 = vmatprep.subr.bf16.mxu0 %v13600_v27  ;;  %8277 = vmatprep.subr.bf16.mxu1 %v13601_v11  ;;  %v13611_v27 = vld [vmem:[#allocation57_spill] sm:$0xff]  ;;  %v13612_v11 = vld [vmem:[#allocation58_spill] sm:$0xff] }
 0x6b2   : > { %8247 = vmatpush1.bf16.msra.mxu0 %v13602_v58  ;;  %8279 = vmatpush1.bf16.msra.mxu1 %v13603_v43  ;;  %v13613_v58 = vld [vmem:[#allocation59_spill] sm:$0xff]  ;;  %v13614_v43 = vld [vmem:[#allocation60_spill] sm:$0xff] }
 0x6b3   : > { %8249 = vmatprep.subr.bf16.mxu0 %v13604_v29  ;;  %8281 = vmatprep.subr.bf16.mxu1 %v13605_v12  ;;  %v13615_v29 = vld [vmem:[#allocation61_spill] sm:$0xff]  ;;  %v13616_v12 = vld [vmem:[#allocation62_spill] sm:$0xff] }
 0x6b6   : > { %8251 = vmatpush1.bf16.msra.mxu0 %v13606_v23  ;;  %8283 = vmatpush1.bf16.msra.mxu1 %v13607_v5  ;;  %v13617_v23 = vld [vmem:[#allocation63_spill] sm:$0xff]  ;;  %v13618_v5 = vld [vmem:[#allocation64_spill] sm:$0xff] }
 0x6b7   : > { %8253 = vmatprep.subr.bf16.mxu0 %v13608_v57  ;;  %8285 = vmatprep.subr.bf16.mxu1 %v13609_v35  ;;  %v13619_v57 = vld [vmem:[#allocation65_spill] sm:$0xff]  ;;  %v13702_v35 = vld [vmem:[#allocation155_spill] sm:$0xff] }
 0x6ba   : > { %8255 = vmatpush1.bf16.msra.mxu0 %v13610_v30  ;;  %8287 = vmatpush1.bf16.msra.mxu1 %v13611_v27  ;;  %v13620_v30 = vld [vmem:[#allocation66_spill] sm:$0xff]  ;;  %v13680_v27 = vld [vmem:[#allocation127_spill] sm:$0xff] }
 0x6bb   : > { %8257 = vmatprep.subr.bf16.mxu0 %v13612_v11  ;;  %8289 = vmatprep.subr.bf16.mxu1 %v13613_v58  ;;  %v13621_v58 = vld [vmem:[#allocation67_spill] sm:$0xff]  ;;  %v13634_v11 = vld [vmem:[#allocation80_spill] sm:$0xff] }
 0x6be   : > { %8259 = vmatpush1.bf16.msra.mxu0 %v13614_v43  ;;  %8291 = vmatpush1.bf16.msra.mxu1 %v13615_v29  ;;  %v13622_v43 = vld [vmem:[#allocation68_spill] sm:$0xff]  ;;  %v13631_v29 = vld [vmem:[#allocation77_spill] sm:$0xff] }
 0x6bf   : > { %8261 = vmatprep.subr.bf16.mxu0 %v13616_v12  ;;  %8293 = vmatprep.subr.bf16.mxu1 %v13617_v23  ;;  %v13623_v12 = vld [vmem:[#allocation69_spill] sm:$0xff]  ;;  %v13630_v23 = vld [vmem:[#allocation76_spill] sm:$0xff] }
 0x6c2   : > { %8263 = vmatpush1.bf16.msra.mxu0 %v13618_v5  ;;  %8295 = vmatpush1.bf16.msra.mxu1 %v13619_v57  ;;  %v13624_v57 = vld [vmem:[#allocation70_spill] sm:$0xff]  ;;  %v13626_v5 = vld [vmem:[#allocation72_spill] sm:$0xff] }
 0x6c3   : > { %8296 = vmatprep.subr.bf16.mxu0 %v13554_v50  ;;  %8321 = vmatprep.subr.bf16.mxu1 %v13620_v30  ;;  %v13625_v30 = vld [vmem:[#allocation71_spill] sm:$0xff] }
 0x6c5   : > { %2880 = vmatmul.mubr.f32.vlgmr.msra.gmra.mrb[6].mxu0 %v11791_v17  ;;  %2951 = vmatmul.mubr.f32.vlgmr.msra.gmra.mrb[14].mxu1 %v11791_v17 }
 0x6c6   : > { %8298 = vmatpush3.bf16.msra.mxu0 %v13621_v58  ;;  %8323 = vmatpush1.bf16.msra.mxu1 %v13622_v43  ;;  %v13627_v58 = vld [vmem:[#allocation73_spill] sm:$0xff]  ;;  %v13628_v43 = vld [vmem:[#allocation74_spill] sm:$0xff] }
 0x6c7   : > { %8299 = vmatprep.subr.bf16.mxu0 %v13554_v50  ;;  %8325 = vmatprep.subr.bf16.mxu1 %v13623_v12  ;;  %v13629_v12 = vld [vmem:[#allocation75_spill] sm:$0xff] }
 0x6c8   : > { %7248 = vmatprep.mubr.msk.f32.mxu0 %vm10425_vm1, %v13403_v62  ;;  %3134 = vmatprep.mubr.f32.mxu1 %v13403_v62 }
 0x6ca   : > { %8301 = vmatpush3.bf16.msra.mxu0 %v13624_v57  ;;  %8327 = vmatpush1.bf16.msra.mxu1 %v13625_v30  ;;  %v13632_v57 = vld [vmem:[#allocation78_spill] sm:$0xff]  ;;  %v13633_v30 = vld [vmem:[#allocation79_spill] sm:$0xff] }
 0x6cb   : > { %8302 = vmatprep.subr.bf16.mxu0 %v13554_v50  ;;  %8329 = vmatprep.subr.bf16.mxu1 %v13626_v5  ;;  %v13637_v5 = vld [vmem:[#allocation83_spill] sm:$0xff] }
 0x6ce   : > { %8304 = vmatpush3.bf16.msra.mxu0 %v13627_v58  ;;  %8331 = vmatpush1.bf16.msra.mxu1 %v13628_v43  ;;  %v13635_v58 = vld [vmem:[#allocation81_spill] sm:$0xff]  ;;  %v13636_v43 = vld [vmem:[#allocation82_spill] sm:$0xff] }
 0x6cf   : > { %8305 = vmatprep.subr.bf16.mxu0 %v13554_v50  ;;  %8333 = vmatprep.subr.bf16.mxu1 %v13629_v12  ;;  %v13640_v12 = vld [vmem:[#allocation86_spill] sm:$0xff] }
 0x6d2   : > { %8307 = vmatpush3.bf16.msra.mxu0 %v13630_v23  ;;  %8335 = vmatpush1.bf16.msra.mxu1 %v13631_v29  ;;  %v13638_v23 = vld [vmem:[#allocation84_spill] sm:$0xff]  ;;  %v13639_v29 = vld [vmem:[#allocation85_spill] sm:$0xff] }
 0x6d3   : > { %8308 = vmatprep.subr.bf16.mxu0 %v13554_v50  ;;  %8337 = vmatprep.subr.bf16.mxu1 %v13632_v57  ;;  %v13643_v57 = vld [vmem:[#allocation89_spill] sm:$0xff] }
 0x6d6   : > { %8310 = vmatpush3.bf16.msra.mxu0 %v13633_v30  ;;  %8339 = vmatpush1.bf16.msra.mxu1 %v13634_v11  ;;  %v13641_v30 = vld [vmem:[#allocation87_spill] sm:$0xff]  ;;  %v13642_v11 = vld [vmem:[#allocation88_spill] sm:$0xff] }
 0x6d7   : > { %8311 = vmatprep.subr.bf16.mxu0 %v13554_v50  ;;  %8341 = vmatprep.subr.bf16.mxu1 %v13635_v58  ;;  %v13673_v58 = vld [vmem:[#allocation118_spill] sm:$0xff] }
 0x6da   : > { %8313 = vmatpush3.bf16.msra.mxu0 %v13636_v43  ;;  %8343 = vmatpush1.bf16.msra.mxu1 %v13637_v5  ;;  %v13644_v43 = vld [vmem:[#allocation98_spill] sm:$0xff]  ;;  %v13654_v5 = vld [vmem:[#allocation93_spill] sm:$0xff] }
 0x6db   : > { %8314 = vmatprep.subr.bf16.mxu0 %v13554_v50  ;;  %8345 = vmatprep.subr.bf16.mxu1 %v13638_v23  ;;  %v13645_v23 = vld [vmem:[#allocation90_spill] sm:$0xff] }
 0x6de   : > { %8316 = vmatpush3.bf16.msra.mxu0 %v13639_v29  ;;  %8347 = vmatpush1.bf16.msra.mxu1 %v13640_v12  ;;  %v13651_v12 = vld [vmem:[#allocation92_spill] sm:$0xff] }
 0x6df   : > { %8317 = vmatprep.subr.bf16.mxu0 %v13554_v50  ;;  %8349 = vmatprep.subr.bf16.mxu1 %v13641_v30  ;;  %v13646_v30 = vld [vmem:[#allocation99_spill] sm:$0xff]  ;;  %v13653_v29 = vld [vmem:[#allocation104_spill] sm:$0xff] }
 0x6e2   : > { %8319 = vmatpush3.bf16.msra.mxu0 %v13642_v11  ;;  %8351 = vmatpush1.bf16.msra.mxu1 %v13643_v57  ;;  %v13647_v11 = vld [vmem:[#allocation100_spill] sm:$0xff]  ;;  %v13648_v57 = vld [vmem:[#allocation91_spill] sm:$0xff] }
 0x6e3   : > { %8352 = vmatprep.subr.bf16.mxu0 %v13554_v50  ;;  %8377 = vmatprep.subr.bf16.mxu1 %v13644_v43  ;;  %v13649_v43 = vld [vmem:[#allocation101_spill] sm:$0xff] }
 0x6e5   : > { %7249 = vmatmul.mubr.f32.vlgmr.msra.gmra.mrb[22].mxu0 %v11791_v17  ;;  %3135 = vmatmul.mubr.f32.vlgmr.msra.gmra.mrb[34].mxu1 %v11788_v18  ;;  %v13650_v17 = vld [vmem:[#allocation102_spill] sm:$0xff] }
 0x6e6   : > { %8354 = vmatpush3.bf16.msra.mxu0 %v13645_v23  ;;  %7283 = vmatprep.mubr.msk.f32.mxu0 %vm10425_vm1, %v13403_v62  ;;  %v13652_v23 = vld [vmem:[#allocation103_spill] sm:$0xff] }
 0x6e7   : > { %8355 = vmatprep.subr.bf16.mxu0 %v13554_v50  ;;  %8379 = vmatpush1.bf16.msra.mxu1 %v13646_v30  ;;  %v13657_v30 = vld [vmem:[#allocation94_spill] sm:$0xff] }
 0x6e8   : > { %8381 = vmatprep.subr.bf16.mxu1 %v13647_v11  ;;  %v13655_v11 = vld [vmem:[#allocation105_spill] sm:$0xff] }
 0x6ea   : > { %8357 = vmatpush3.bf16.msra.mxu0 %v13648_v57  ;;  %v13656_v57 = vld [vmem:[#allocation106_spill] sm:$0xff] }
 0x6eb   : > { %8358 = vmatprep.subr.bf16.mxu0 %v13554_v50  ;;  %8383 = vmatpush1.bf16.msra.mxu1 %v13649_v43  ;;  %v13660_v43 = vld [vmem:[#allocation95_spill] sm:$0xff] }
 0x6ec   : > { %8385 = vmatprep.subr.bf16.mxu1 %v13650_v17  ;;  %v13658_v17 = vld [vmem:[#allocation107_spill] sm:$0xff] }
 0x6ee   : > { %8360 = vmatpush3.bf16.msra.mxu0 %v13651_v12  ;;  %v13659_v12 = vld [vmem:[#allocation108_spill] sm:$0xff] }
 0x6ef   : > { %8361 = vmatprep.subr.bf16.mxu0 %v13554_v50  ;;  %8387 = vmatpush1.bf16.msra.mxu1 %v13652_v23  ;;  %v13663_v23 = vld [vmem:[#allocation96_spill] sm:$0xff] }
 0x6f0   : > { %8389 = vmatprep.subr.bf16.mxu1 %v13653_v29  ;;  %v13661_v29 = vld [vmem:[#allocation109_spill] sm:$0xff] }
 0x6f2   : > { %8363 = vmatpush3.bf16.msra.mxu0 %v13654_v5  ;;  %v13662_v5 = vld [vmem:[#allocation110_spill] sm:$0xff] }
 0x6f3   : > { %8364 = vmatprep.subr.bf16.mxu0 %v13554_v50  ;;  %8391 = vmatpush1.bf16.msra.mxu1 %v13655_v11  ;;  %v13666_v11 = vld [vmem:[#allocation97_spill] sm:$0xff] }
 0x6f4   : > { %8393 = vmatprep.subr.bf16.mxu1 %v13656_v57  ;;  %v13664_v57 = vld [vmem:[#allocation111_spill] sm:$0xff] }
 0x6f6   : > { %8366 = vmatpush3.bf16.msra.mxu0 %v13657_v30  ;;  %v13665_v30 = vld [vmem:[#allocation112_spill] sm:$0xff] }
 0x6f7   : > { %8367 = vmatprep.subr.bf16.mxu0 %v13554_v50  ;;  %8395 = vmatpush1.bf16.msra.mxu1 %v13658_v17  ;;  %v13667_v17 = vld [vmem:[#allocation113_spill] sm:$0xff] }
 0x6f8   : > { %8397 = vmatprep.subr.bf16.mxu1 %v13659_v12  ;;  %v13668_v12 = vld [vmem:[#allocation115_spill] sm:$0xff] }
 0x6fa   : > { %8369 = vmatpush3.bf16.msra.mxu0 %v13660_v43  ;;  %v13669_v43 = vld [vmem:[#allocation114_spill] sm:$0xff] }
 0x6fb   : > { %8370 = vmatprep.subr.bf16.mxu0 %v13554_v50  ;;  %8399 = vmatpush1.bf16.msra.mxu1 %v13661_v29  ;;  %v13670_v29 = vld [vmem:[#allocation117_spill] sm:$0xff] }
 0x6fc   : > { %8401 = vmatprep.subr.bf16.mxu1 %v13662_v5  ;;  %v13671_v5 = vld [vmem:[#allocation116_spill] sm:$0xff] }
 0x6fe   : > { %8372 = vmatpush3.bf16.msra.mxu0 %v13663_v23  ;;  %v13672_v23 = vld [vmem:[#allocation119_spill] sm:$0xff] }
 0x6ff   : > { %8373 = vmatprep.subr.bf16.mxu0 %v13554_v50  ;;  %8403 = vmatpush1.bf16.msra.mxu1 %v13664_v57  ;;  %v13674_v57 = vld [vmem:[#allocation121_spill] sm:$0xff] }
 0x700   : > { %8405 = vmatprep.subr.bf16.mxu1 %v13665_v30  ;;  %v13675_v30 = vld [vmem:[#allocation120_spill] sm:$0xff] }
 0x702   : > { %8375 = vmatpush3.bf16.msra.mxu0 %v13666_v11  ;;  %v13676_v11 = vld [vmem:[#allocation123_spill] sm:$0xff] }
 0x703   : > { %8407 = vmatpush1.bf16.msra.mxu1 %v13667_v17  ;;  %8505 = vmatprep.subr.bf16.mxu0 %v13668_v12  ;;  %v13677_v17 = vld [vmem:[#allocation122_spill] sm:$0xff]  ;;  %v13678_v12 = vld [vmem:[#allocation125_spill] sm:$0xff] }
 0x704   : > { %8409 = vmatprep.subr.bf16.mxu1 %v13669_v43  ;;  %v13679_v43 = vld [vmem:[#allocation124_spill] sm:$0xff] }
 0x705   : > { %7284 = vmatmul.mubr.f32.vlgmr.msra.gmra.mrb[24].mxu0 %v11788_v18 }
 0x706   : > { %8507 = vmatpush3.bf16.msra.mxu0 %v13670_v29  ;;  %v13681_v29 = vld [vmem:[#allocation126_spill] sm:$0xff] }
 0x707   : > { %8411 = vmatpush1.bf16.msra.mxu1 %v13671_v5  ;;  %8509 = vmatprep.subr.bf16.mxu0 %v13672_v23  ;;  %v13682_v5 = vld [vmem:[#allocation129_spill] sm:$0xff]  ;;  %v13683_v23 = vld [vmem:[#allocation128_spill] sm:$0xff] }
 0x708   : > { %8413 = vmatprep.subr.bf16.mxu1 %v13673_v58  ;;  %v13684_v58 = vld [vmem:[#allocation131_spill] sm:$0xff] }
 0x70a   : > { %8511 = vmatpush3.bf16.msra.mxu0 %v13674_v57  ;;  %v13685_v57 = vld [vmem:[#allocation130_spill] sm:$0xff] }
 0x70b   : > { %8415 = vmatpush1.bf16.msra.mxu1 %v13675_v30  ;;  %8513 = vmatprep.subr.bf16.mxu0 %v13676_v11  ;;  %v13686_v30 = vld [vmem:[#allocation133_spill] sm:$0xff]  ;;  %v13687_v11 = vld [vmem:[#allocation132_spill] sm:$0xff] }
 0x70c   : > { %8417 = vmatprep.subr.bf16.mxu1 %v13677_v17  ;;  %v13688_v17 = vld [vmem:[#allocation135_spill] sm:$0xff] }
 0x70e   : > { %8515 = vmatpush3.bf16.msra.mxu0 %v13678_v12  ;;  %v13689_v12 = vld [vmem:[#allocation134_spill] sm:$0xff] }
 0x70f   : > { %8419 = vmatpush1.bf16.msra.mxu1 %v13679_v43  ;;  %8517 = vmatprep.subr.bf16.mxu0 %v13680_v27  ;;  %v13690_v43 = vld [vmem:[#allocation137_spill] sm:$0xff]  ;;  %v13691_v27 = vld [vmem:[#allocation136_spill] sm:$0xff] }
 0x710   : > { %8421 = vmatprep.subr.bf16.mxu1 %v13681_v29  ;;  %v13692_v29 = vld [vmem:[#allocation139_spill] sm:$0xff] }
 0x712   : > { %8519 = vmatpush3.bf16.msra.mxu0 %v13682_v5  ;;  %v13693_v5 = vld [vmem:[#allocation138_spill] sm:$0xff] }
 0x713   : > { %8423 = vmatpush1.bf16.msra.mxu1 %v13683_v23  ;;  %8521 = vmatprep.subr.bf16.mxu0 %v13684_v58  ;;  %v13694_v23 = vld [vmem:[#allocation141_spill] sm:$0xff]  ;;  %v13695_v58 = vld [vmem:[#allocation140_spill] sm:$0xff] }
 0x714   : > { %8425 = vmatprep.subr.bf16.mxu1 %v13685_v57  ;;  %v13696_v57 = vld [vmem:[#allocation144_spill] sm:$0xff] }
 0x716   : > { %8523 = vmatpush3.bf16.msra.mxu0 %v13686_v30  ;;  %v13697_v30 = vld [vmem:[#allocation142_spill] sm:$0xff] }
 0x717   : > { %8427 = vmatpush1.bf16.msra.mxu1 %v13687_v11  ;;  %8525 = vmatprep.subr.bf16.mxu0 %v13688_v17  ;;  %v13698_v11 = vld [vmem:[#allocation147_spill] sm:$0xff]  ;;  %v13699_v17 = vld [vmem:[#allocation145_spill] sm:$0xff] }
 0x718   : > { %8429 = vmatprep.subr.bf16.mxu1 %v13689_v12  ;;  %v13700_v12 = vld [vmem:[#allocation149_spill] sm:$0xff] }
 0x71a   : > { %8527 = vmatpush3.bf16.msra.mxu0 %v13690_v43  ;;  %v13701_v43 = vld [vmem:[#allocation148_spill] sm:$0xff] }
 0x71b   : > { %8431 = vmatpush1.bf16.msra.mxu1 %v13691_v27  ;;  %8529 = vmatprep.subr.bf16.mxu0 %v13692_v29 }
 0x71c   : > { %8433 = vmatprep.subr.bf16.mxu1 %v13693_v5 }
 0x71e   : > { %8531 = vmatpush3.bf16.msra.mxu0 %v13694_v23 }
 0x71f   : > { %8435 = vmatpush1.bf16.msra.mxu1 %v13695_v58  ;;  %8533 = vmatprep.subr.bf16.mxu0 %v13696_v57  ;;  %v13703_v58 = vld [vmem:[#allocation156_spill] sm:$0xff] }
 0x720   : > { %8437 = vmatprep.subr.bf16.mxu1 %v13697_v30 }
 0x722   : > { %8535 = vmatpush3.bf16.msra.mxu0 %v13698_v11 }
 0x723   : > { %8439 = vmatpush1.bf16.msra.mxu1 %v13699_v17  ;;  %8537 = vmatprep.subr.bf16.mxu0 %v13700_v12 }
 0x724   : > { %8441 = vmatprep.subr.bf16.mxu1 %v13701_v43 }
 0x778   : > { %v2739_v27 = vpop.f32.mrb[2].mxu0  ;;  %v2810_v29 = vpop.f32.mrb[6].mxu1 }
 0x779   : > { %v9708_v5 = vadd.f32 %v2739_v27, %v13702_v35  ;;  %v2741_v19 = vpop.f32.mrb[3].mxu0  ;;  %v2812_v23 = vpop.f32.mrb[7].mxu1  ;;  %v9720_v57 = vadd.f32 %v2810_v29, %v13703_v58 }
 0x77a   : > { %v9709_v30 = vadd.f32 %v2741_v19, %v13704_v31  ;;  %v9721_v11 = vadd.f32 %v2812_v23, %v13705_v45  ;;  %v13707_v19 = vld [vmem:[#allocation159_spill] sm:$0xff] }
 0x77b   : > { %v6332_v53 = vmul.f32 -1.442695, %v9708_v5  ;;  %v6334_v20 = vmul.f32 -1.442695, %v9720_v57 }
 0x77c   : > { %v6333_v17 = vmul.f32 -1.442695, %v9709_v30 }
 0x77d   : > { %9974 = vpow2.f32 %v6332_v53 }
 0x77e   : > { %9976 = vtanh.f32 %v9721_v11 }
 0x77f   : > { %9978 = vpow2.f32 %v6334_v20 }
 0x780   : > { %9980 = vpow2.f32 %v6333_v17 }
 0x787   : > { %v9975_v4 = vpop.eup %9974 }
 0x788   : > { %v3045_v12 = vadd.f32 1.0, %v9975_v4  ;;  %v9977_v43 = vpop.eup %9976  ;;  %v13709_v4 = vld [vmem:[#allocation160_spill] sm:$0xff] }
 0x789   : > { %v9979_v27 = vpop.eup %9978 }
 0x78a   : > { %9982 = vrcp.f32 %v3045_v12  ;;  %v9981_v35 = vpop.eup %9980  ;;  %v3047_v5 = vadd.f32 1.0, %v9979_v27 }
 0x78b   : > { %v3046_v18 = vadd.f32 1.0, %v9981_v35 }
 0x78c   : > { %9984 = vrcp.f32 %v3047_v5 }
 0x78d   : > { %9986 = vrcp.f32 %v3046_v18 }
 0x794   : > { %v9983_v10 = vpop.eup %9982 }
 0x795   : > { %v3211_v53 = vmul.f32 %v9983_v10, %v9977_v43  ;;  %v3214_v45 = vsub.f32 1.0, %v9983_v10 }
 0x796   : > { %v9985_v11 = vpop.eup %9984 }
 0x797   : > { %v9987_v12 = vpop.eup %9986 }
 0x798   : > { %v2881_v29 = vpop.f32.mrb[6].mxu0  ;;  %v11941_v58 = vpop.f32.mrb[14].mxu1 }
 0x799   : > { %13706 = vst [vmem:[#allocation255_spill] sm:$0xff] %v11941_v58  ;;  %v9728_v57 = vadd.f32 %v2881_v29, %v13707_v19  ;;  %v2883_v30 = vpop.f32.mrb[7].mxu0  ;;  %v11944_v23 = vpop.f32.mrb[15].mxu1  ;;  %v3215_v29 = vsub.f32 1.0, %v9987_v12  ;;  %v13710_v19 = vld [vmem:[#allocation152_spill] sm:$0xff] }
 0x79a   : > { %13708 = vst [vmem:[#allocation256_spill] sm:$0xff] %v11944_v23  ;;  %v9729_v20 = vadd.f32 %v2883_v30, %v13709_v4 }
 0x79b   : > { %9988 = vtanh.f32 %v9728_v57 }
 0x79c   : > { %9990 = vtanh.f32 %v9729_v20 }
 0x7a5   : > { %v9989_v17 = vpop.eup %9988 }
 0x7a6   : > { %v9991_v43 = vpop.eup %9990  ;;  %v3212_v35 = vmul.f32 %v9989_v17, %v9987_v12  ;;  %v13718_v12 = vld [vmem:[#allocation168_spill] sm:$0xff]  ;;  %v13719_v17 = vld [vmem:[#allocation169_spill] sm:$0xff] }
 0x7a7   : > { %v3213_v27 = vmul.f32 %v9991_v43, %v9985_v11  ;;  %v13720_v43 = vld [vmem:[#allocation170_spill] sm:$0xff] }
 0x7b8   : > { %v3023_v5 = vpop.f32.mrb[22].mxu0  ;;  %v3136_v31 = vpop.f32.mrb[34].mxu1 }
 0x7b9   : > { %v3035_v58 = vadd.f32 %v3023_v5, %v13710_v19  ;;  %v3217_v23 = vmul.f32 %v3214_v45, %v3136_v31  ;;  %v7250_v18 = vpop.f32.mrb[23].mxu0  ;;  %v3138_v7 = vpop.f32.mrb[35].mxu1  ;;  %v13711_v45 = vld [vmem:[#allocation161_spill] sm:$0xff]  ;;  %v13712_v31 = vld [vmem:[#allocation162_spill] sm:$0xff]  ;;  %v13722_v5 = vld [vmem:[#allocation172_spill] sm:$0xff] }
 0x7ba   : > { %v3218_v30 = vmul.f32 %v3215_v29, %v3138_v7  ;;  %v13713_v7 = vld [vmem:[#allocation163_spill] sm:$0xff]  ;;  %v13716_v19 = vld [vmem:[#allocation166_spill] sm:$0xff]  ;;  %v13723_v29 = vld [vmem:[#allocation173_spill] sm:$0xff] }
 0x7bb   : > { %9992 = vtanh.f32 %v3035_v58  ;;  %v11948_v57 = vadd.f32 %v3217_v23, %v3211_v53  ;;  %v13714_v58 = vld [vmem:[#allocation164_spill] sm:$0xff]  ;;  %v13715_v53 = vld [vmem:[#allocation165_spill] sm:$0xff]  ;;  %v13717_v23 = vld [vmem:[#allocation167_spill] sm:$0xff] }
 0x7bc   : > { %v11950_v20 = vadd.f32 %v3218_v30, %v3212_v35  ;;  %v13721_v35 = vld [vmem:[#allocation171_spill] sm:$0xff]  ;;  %v13724_v18 = vld [vmem:[#allocation174_spill] sm:$0xff] }
 0x7bd   : > { %6338 = vst [vmem:[%s10803_s19 + $0x30] sm:$0xff] %v11948_v57  ;;  %3287 = vmatprep.mubr.f32.mxu1 %v11948_v57  ;;  %3429 = vmatprep.mubr.f32.mxu0 %v11948_v57  ;;  %v13725_v30 = vld [vmem:[#allocation175_spill] sm:$0xff] }
 0x7be   : > { %6339 = vst [vmem:[%s10803_s19 + $0x38] sm:$0xff] %v11950_v20 }
 0x7c5   : > { %v9993_v10 = vpop.eup %9992 }
 0x7c6   : > { %3288 = vmatmul.mubr.f32.vlgmr.msra.gmra.mrb[36].mxu1 %v9993_v10  ;;  %3430 = vmatmul.mubr.f32.vlgmr.msra.gmra.mrb[26].mxu0 %v9993_v10  ;;  %v13726_v10 = vld [vmem:[#allocation176_spill] sm:$0xff] }
 0x7c7   : > { %8443 = vmatpush1.bf16.msra.mxu1 %v13711_v45  ;;  %8539 = vmatpush3.bf16.msra.mxu0 %v13712_v31 }
 0x7c8   : > { %8445 = vmatprep.subr.bf16.mxu1 %v13713_v7  ;;  %8541 = vmatprep.subr.bf16.mxu0 %v13714_v58 }
 0x7cb   : > { %8447 = vmatpush1.bf16.msra.mxu1 %v13715_v53  ;;  %8543 = vmatpush3.bf16.msra.mxu0 %v13716_v19 }
 0x7cc   : > { %8449 = vmatprep.subr.bf16.mxu1 %v13717_v23  ;;  %8545 = vmatprep.subr.bf16.mxu0 %v13718_v12  ;;  %v13727_v23 = vld [vmem:[#allocation177_spill] sm:$0xff]  ;;  %v13728_v12 = vld [vmem:[#allocation178_spill] sm:$0xff] }
 0x7cf   : > { %8451 = vmatpush1.bf16.msra.mxu1 %v13719_v17  ;;  %8547 = vmatpush3.bf16.msra.mxu0 %v13720_v43  ;;  %v3216_v17 = vsub.f32 1.0, %v9985_v11  ;;  %v13732_v11 = vld [vmem:[#allocation184_spill] sm:$0xff] }
 0x7d0   : > { %8453 = vmatprep.subr.bf16.mxu1 %v13721_v35  ;;  %8549 = vmatprep.subr.bf16.mxu0 %v13722_v5 }
 0x7d3   : > { %8455 = vmatpush1.bf16.msra.mxu1 %v13723_v29  ;;  %8551 = vmatpush3.bf16.msra.mxu0 %v13724_v18  ;;  %v13729_v18 = vld [vmem:[#allocation181_spill] sm:$0xff] }
 0x7d4   : > { %8457 = vmatprep.subr.bf16.mxu1 %v13725_v30  ;;  %8553 = vmatprep.subr.bf16.mxu0 %v13726_v10  ;;  %v13730_v30 = vld [vmem:[#allocation182_spill] sm:$0xff]  ;;  %v13731_v10 = vld [vmem:[#allocation183_spill] sm:$0xff] }
 0x7d7   : > { %8459 = vmatpush1.bf16.msra.mxu1 %v13727_v23  ;;  %8555 = vmatpush3.bf16.msra.mxu0 %v13728_v12 }
 0x7d8   : > { %v3207_v19 = vpop.f32.mrb[24].mxu0  ;;  %8461 = vmatprep.subr.bf16.mxu1 %v11467_v6  ;;  %8557 = vmatprep.subr.bf16.mxu0 %v11469_v1  ;;  %v13750_v1 = vld [vmem:[#allocation196_spill] sm:$0xff] }
 0x7d9   : > { %v3219_v5 = vmul.f32 %v3216_v17, %v3207_v19  ;;  %v7285_v35 = vpop.f32.mrb[25].mxu0  ;;  %v13733_v19 = vld [vmem:[#allocation185_spill] sm:$0xff]  ;;  %v13735_v17 = vld [vmem:[#allocation187_spill] sm:$0xff] }
 0x7da   : > { %v13736_v35 = vld [vmem:[#allocation188_spill] sm:$0xff] }
 0x7db   : > { %v11978_v29 = vadd.f32 %v3219_v5, %v3213_v27  ;;  %8463 = vmatpush1.bf16.msra.mxu1 %v11474_v61  ;;  %8559 = vmatpush3.bf16.msra.mxu0 %v13729_v18  ;;  %v13734_v27 = vld [vmem:[#allocation186_spill] sm:$0xff]  ;;  %v13737_v5 = vld [vmem:[#allocation189_spill] sm:$0xff]  ;;  %v13740_v18 = vld [vmem:[#allocation191_spill] sm:$0xff] }
 0x7dc   : > { %8465 = vmatprep.subr.bf16.mxu1 %v13730_v30  ;;  %8561 = vmatprep.subr.bf16.mxu0 %v13731_v10  ;;  %v13738_v30 = vld [vmem:[#allocation190_spill] sm:$0xff]  ;;  %v13741_v61 = vld [vmem:[#allocation207_spill] sm:$0xff] }
 0x7dd   : > { %6340 = vst [vmem:[%s10803_s19 + $0x40] sm:$0xff] %v11978_v29  ;;  %3358 = vmatprep.mubr.f32.mxu1 %v11978_v29  ;;  %3499 = vmatprep.mubr.f32.mxu0 %v11978_v29  ;;  %v13739_v10 = vld [vmem:[#allocation206_spill] sm:$0xff] }
 0x7df   : > { %8467 = vmatpush1.bf16.msra.mxu1 %v13732_v11  ;;  %8563 = vmatpush3.bf16.msra.mxu0 %v13733_v19  ;;  %v13742_v11 = vld [vmem:[#allocation192_spill] sm:$0xff] }
 0x7e0   : > { %8469 = vmatprep.subr.bf16.mxu1 %v13734_v27  ;;  %8565 = vmatprep.subr.bf16.mxu0 %v13735_v17  ;;  %v13743_v19 = vld [vmem:[#allocation208_spill] sm:$0xff]  ;;  %v13744_v27 = vld [vmem:[#allocation193_spill] sm:$0xff] }
 0x7e1   : > { %v13745_v17 = vld [vmem:[#allocation209_spill] sm:$0xff] }
 0x7e3   : > { %8471 = vmatpush1.bf16.msra.mxu1 %v13736_v35  ;;  %8567 = vmatpush3.bf16.msra.mxu0 %v13737_v5  ;;  %v13746_v35 = vld [vmem:[#allocation194_spill] sm:$0xff] }
 0x7e4   : > { %8473 = vmatprep.subr.bf16.mxu1 %v13738_v30  ;;  %8569 = vmatprep.subr.bf16.mxu0 %v13739_v10  ;;  %v13747_v5 = vld [vmem:[#allocation210_spill] sm:$0xff]  ;;  %v13748_v30 = vld [vmem:[#allocation195_spill] sm:$0xff] }
 0x7e5   : > { %v13749_v10 = vld [vmem:[#allocation211_spill] sm:$0xff] }
 0x7e6   : > { %3500 = vmatmul.mubr.f32.vlgmr.msra.gmra.mrb[28].mxu0 %v11950_v20 }
 0x7e7   : > { %8475 = vmatpush1.bf16.msra.mxu1 %v13740_v18  ;;  %8571 = vmatpush3.bf16.msra.mxu0 %v13741_v61  ;;  %v13751_v18 = vld [vmem:[#allocation212_spill] sm:$0xff]  ;;  %v13752_v61 = vld [vmem:[#allocation197_spill] sm:$0xff] }
 0x7e8   : > { %8477 = vmatprep.subr.bf16.mxu1 %v13742_v11  ;;  %8573 = vmatprep.subr.bf16.mxu0 %v13743_v19  ;;  %v13753_v11 = vld [vmem:[#allocation213_spill] sm:$0xff]  ;;  %v13754_v19 = vld [vmem:[#allocation198_spill] sm:$0xff] }
 0x7eb   : > { %8479 = vmatpush1.bf16.msra.mxu1 %v13744_v27  ;;  %8575 = vmatpush3.bf16.msra.mxu0 %v13745_v17  ;;  %v13755_v27 = vld [vmem:[#allocation214_spill] sm:$0xff]  ;;  %v13756_v17 = vld [vmem:[#allocation199_spill] sm:$0xff] }
 0x7ec   : > { %8481 = vmatprep.subr.bf16.mxu1 %v13746_v35  ;;  %8577 = vmatprep.subr.bf16.mxu0 %v13747_v5  ;;  %v13757_v35 = vld [vmem:[#allocation215_spill] sm:$0xff]  ;;  %v13758_v5 = vld [vmem:[#allocation200_spill] sm:$0xff] }
 0x7ef   : > { %8483 = vmatpush1.bf16.msra.mxu1 %v13748_v30  ;;  %8579 = vmatpush3.bf16.msra.mxu0 %v13749_v10  ;;  %v13759_v30 = vld [vmem:[#allocation216_spill] sm:$0xff]  ;;  %v13760_v10 = vld [vmem:[#allocation201_spill] sm:$0xff] }
 0x7f0   : > { %8485 = vmatprep.subr.bf16.mxu1 %v13750_v1  ;;  %8581 = vmatprep.subr.bf16.mxu0 %v13751_v18  ;;  %v13761_v1 = vld [vmem:[#allocation217_spill] sm:$0xff]  ;;  %v13762_v18 = vld [vmem:[#allocation202_spill] sm:$0xff] }
 0x7f3   : > { %8487 = vmatpush1.bf16.msra.mxu1 %v13752_v61  ;;  %8583 = vmatpush3.bf16.msra.mxu0 %v13753_v11  ;;  %v13763_v61 = vld [vmem:[#allocation218_spill] sm:$0xff]  ;;  %v13764_v11 = vld [vmem:[#allocation203_spill] sm:$0xff] }
 0x7f4   : > { %8489 = vmatprep.subr.bf16.mxu1 %v13754_v19  ;;  %8585 = vmatprep.subr.bf16.mxu0 %v13755_v27  ;;  %v13765_v19 = vld [vmem:[#allocation219_spill] sm:$0xff]  ;;  %v13766_v27 = vld [vmem:[#allocation204_spill] sm:$0xff] }
 0x7f7   : > { %8491 = vmatpush1.bf16.msra.mxu1 %v13756_v17  ;;  %8587 = vmatpush3.bf16.msra.mxu0 %v13757_v35  ;;  %v13767_v17 = vld [vmem:[#allocation220_spill] sm:$0xff]  ;;  %v13768_v35 = vld [vmem:[#allocation205_spill] sm:$0xff] }
 0x7f8   : > { %8493 = vmatprep.subr.bf16.mxu1 %v13758_v5  ;;  %8589 = vmatprep.subr.bf16.mxu0 %v13759_v30  ;;  %v13769_v5 = vld [vmem:[#allocation221_spill] sm:$0xff] }
 0x7fb   : > { %8495 = vmatpush1.bf16.msra.mxu1 %v13760_v10  ;;  %8591 = vmatpush3.bf16.msra.mxu0 %v13761_v1  ;;  %v13770_v10 = vld [vmem:[#allocation230_spill] sm:$0xff] }
 0x7fc   : > { %8497 = vmatprep.subr.bf16.mxu1 %v13762_v18  ;;  %8593 = vmatprep.subr.bf16.mxu0 %v13763_v61  ;;  %v13771_v18 = vld [vmem:[#allocation231_spill] sm:$0xff] }
 0x7ff   : > { %8499 = vmatpush1.bf16.msra.mxu1 %v13764_v11  ;;  %8595 = vmatpush3.bf16.msra.mxu0 %v13765_v19  ;;  %v13772_v11 = vld [vmem:[#allocation233_spill] sm:$0xff] }
 0x800   : > { %8501 = vmatprep.subr.bf16.mxu1 %v13766_v27  ;;  %8597 = vmatprep.subr.bf16.mxu0 %v13767_v17  ;;  %v13773_v17 = vld [vmem:[#allocation237_spill] sm:$0xff]  ;;  %v13776_v27 = vld [vmem:[#allocation242_spill] sm:$0xff] }
 0x801   : > { %v13778_v19 = vld [vmem:[#allocation245_spill] sm:$0xff] }
 0x803   : > { %8503 = vmatpush1.bf16.msra.mxu1 %v13768_v35  ;;  %8599 = vmatpush3.bf16.msra.mxu0 %v13769_v5  ;;  %v13774_v35 = vld [vmem:[#allocation239_spill] sm:$0xff]  ;;  %v13775_v5 = vld [vmem:[#allocation240_spill] sm:$0xff] }
 0x804   : > { %8600 = vmatprep.subr.bf16.mxu0 %v13554_v50  ;;  %8625 = vmatprep.subr.bf16.mxu1 %v13770_v10  ;;  %v13777_v10 = vld [vmem:[#allocation243_spill] sm:$0xff] }
 0x806   : > { %3359 = vmatmul.mubr.f32.vlgmr.msra.gmra.mrb[36].mxu1 %v11950_v20 }
 0x807   : > { %8627 = vmatpush1.bf16.msra.mxu1 %v13771_v18  ;;  %3721 = vmatprep.mubr.f32.mxu1 %v13403_v62 }
 0x808   : > { %8629 = vmatprep.subr.bf16.mxu1 %v13772_v11 }
 0x80b   : > { %8631 = vmatpush1.bf16.msra.mxu1 %v11666_v44 }
 0x80c   : > { %8633 = vmatprep.subr.bf16.mxu1 %v11672_v32 }
 0x80f   : > { %8635 = vmatpush1.bf16.msra.mxu1 %v13773_v17 }
 0x810   : > { %8637 = vmatprep.subr.bf16.mxu1 %v13774_v35 }
 0x813   : > { %8639 = vmatpush1.bf16.msra.mxu1 %v13775_v5 }
 0x814   : > { %8641 = vmatprep.subr.bf16.mxu1 %v13776_v27 }
 0x817   : > { %8643 = vmatpush1.bf16.msra.mxu1 %v13777_v10 }
 0x818   : > { %8645 = vmatprep.subr.bf16.mxu1 %v13778_v19 }
 0x81b   : > { %8647 = vmatpush1.bf16.msra.mxu1 %v11708_v56 }
 0x81c   : > { %8649 = vmatprep.subr.bf16.mxu1 %v11713_v36 }
 0x81f   : > { %8651 = vmatpush1.bf16.msra.mxu1 %v11716_v24 }
 0x820   : > { %8653 = vmatprep.subr.bf16.mxu1 %v11722_v15  ;;  %v13779_v15 = vld [vmem:[#allocation222_spill] sm:$0xff] }
 0x823   : > { %8655 = vmatpush1.bf16.msra.mxu1 %v11726_v16 }
 0x824   : > { %8713 = vmatprep.subr.bf16.mxu1 %v10834_v38  ;;  %v13790_v38 = vld [vmem:[#allocation241_spill] sm:$0xff] }
 0x899   : > { %v6613_v35 = vpop.f32.mrb[26].mxu0 }
 0x89a   : > { %v6614_v5 = vpop.f32.mrb[27].mxu0 }
 0x89b   : > { %v6615_v17 = vadd.f32 %v6614_v5, %v6613_v35  ;;  %v13780_v35 = vld [vmem:[#allocation223_spill] sm:$0xff]  ;;  %v13789_v5 = vld [vmem:[#allocation238_spill] sm:$0xff] }
 0x8b9   : > { %v6648_v27 = vpop.f32.mrb[28].mxu0 }
 0x8ba   : > { %v6649_v32 = vpop.f32.mrb[29].mxu0 }
 0x8bb   : > { %v6650_v10 = vadd.f32 %v6649_v32, %v6648_v27  ;;  %v13781_v32 = vld [vmem:[#allocation224_spill] sm:$0xff] }
 0x8bd   : > { %v3502_v44 = vadd.f32 %v6650_v10, %v6615_v17  ;;  %v13782_v10 = vld [vmem:[#allocation225_spill] sm:$0xff]  ;;  %v13787_v17 = vld [vmem:[#allocation232_spill] sm:$0xff] }
 0x8d9   : > { %v3360_v19 = vpop.f32.mrb[36].mxu1 }
 0x8da   : > { %v3362_v11 = vpop.f32.mrb[37].mxu1 }
 0x8db   : > { %9994 = vtanh.f32 %v3362_v11  ;;  %v13785_v11 = vld [vmem:[#allocation228_spill] sm:$0xff] }
 0x8dc   : > { %9996 = vtanh.f32 %v3360_v19  ;;  %v13786_v19 = vld [vmem:[#allocation229_spill] sm:$0xff] }
 0x8dd   : > { %9998 = vtanh.f32 %v3502_v44  ;;  %v13788_v44 = vld [vmem:[#allocation235_spill] sm:$0xff] }
 0x8e5   : > { %v9995_v36 = vpop.eup %9994 }
 0x8e6   : > { %v9997_v56 = vpop.eup %9996  ;;  %3572 = vmatprep.mubr.f32.mxu0 %v9995_v36  ;;  %v13784_v36 = vld [vmem:[#allocation227_spill] sm:$0xff] }
 0x8e7   : > { %3573 = vmatmul.mubr.f32.vlgmr.msra.gmra.mrb[30].mxu0 %v9997_v56  ;;  %v13783_v56 = vld [vmem:[#allocation226_spill] sm:$0xff]  ;;  %v9999_v27 = vpop.eup %9998 }
 0x8e8   : > { %8602 = vmatpush3.bf16.msra.mxu0 %v13779_v15  ;;  %7318 = vmatprep.mubr.msk.f32.mxu0 %vm10425_vm1, %v13403_v62 }
 0x8e9   : > { %8603 = vmatprep.subr.bf16.mxu0 %v13554_v50 }
 0x8ec   : > { %8605 = vmatpush3.bf16.msra.mxu0 %v13780_v35 }
 0x8ed   : > { %8606 = vmatprep.subr.bf16.mxu0 %v13554_v50 }
 0x8f0   : > { %8608 = vmatpush3.bf16.msra.mxu0 %v13781_v32 }
 0x8f1   : > { %8609 = vmatprep.subr.bf16.mxu0 %v13554_v50 }
 0x8f4   : > { %8611 = vmatpush3.bf16.msra.mxu0 %v13782_v10 }
 0x8f5   : > { %8612 = vmatprep.subr.bf16.mxu0 %v13554_v50 }
 0x8f8   : > { %8614 = vmatpush3.bf16.msra.mxu0 %v13783_v56 }
 0x8f9   : > { %8615 = vmatprep.subr.bf16.mxu0 %v13554_v50 }
 0x8fc   : > { %8617 = vmatpush3.bf16.msra.mxu0 %v13784_v36 }
 0x8fd   : > { %8618 = vmatprep.subr.bf16.mxu0 %v13554_v50 }
 0x900   : > { %8620 = vmatpush3.bf16.msra.mxu0 %v13785_v11 }
 0x901   : > { %8621 = vmatprep.subr.bf16.mxu0 %v13554_v50 }
 0x904   : > { %8623 = vmatpush3.bf16.msra.mxu0 %v13786_v19 }
 0x905   : > { %8656 = vmatprep.subr.bf16.mxu0 %v13554_v50 }
 0x907   : > { %7319 = vmatmul.mubr.f32.vlgmr.msra.gmra.mrb[32].mxu0 %v9999_v27  ;;  %v13791_v27 = vld [vmem:[#allocation244_spill] sm:$0xff] }
 0x908   : > { %8658 = vmatpush3.bf16.msra.mxu0 %v13787_v17  ;;  %7353 = vmatprep.mubr.msk.f32.mxu0 %vm10425_vm1, %v13403_v62 }
 0x909   : > { %8659 = vmatprep.subr.bf16.mxu0 %v13554_v50 }
 0x90c   : > { %8661 = vmatpush3.bf16.msra.mxu0 %v13788_v44 }
 0x90d   : > { %8662 = vmatprep.subr.bf16.mxu0 %v13554_v50 }
 0x910   : > { %8664 = vmatpush3.bf16.msra.mxu0 %v13789_v5 }
 0x911   : > { %8665 = vmatprep.subr.bf16.mxu0 %v13554_v50 }
 0x914   : > { %8667 = vmatpush3.bf16.msra.mxu0 %v13790_v38 }
 0x915   : > { %8668 = vmatprep.subr.bf16.mxu0 %v13554_v50 }
 0x918   : > { %8670 = vmatpush3.bf16.msra.mxu0 %v13791_v27  ;;  %v12086_v27 = vld [vmem:[%s13564_s26] ss:$0 sm:$0xff] }
 0x919   : > { %8671 = vmatprep.subr.bf16.mxu0 %v13554_v50 }
 0x91c   : > { %8673 = vmatpush3.bf16.msra.mxu0 %v11711_v42 }
 0x91d   : > { %8674 = vmatprep.subr.bf16.mxu0 %v13554_v50 }
 0x920   : > { %8676 = vmatpush3.bf16.msra.mxu0 %v11720_v41 }
 0x921   : > { %8677 = vmatprep.subr.bf16.mxu0 %v13554_v50 }
 0x924   : > { %8679 = vmatpush3.bf16.msra.mxu0 %v11730_v28 }
 0x925   : > { %8681 = vmatprep.subr.bf16.mxu0 %v10832_v37 }
 0x9ba   : > { %v6683_v5 = vpop.f32.mrb[30].mxu0 }
 0x9bb   : > { %v6684_v38 = vpop.f32.mrb[31].mxu0 }
 0x9bc   : > { %v6685_v44 = vadd.f32 %v6684_v38, %v6683_v5 }
 0x9be   : > { %v3575_v42 = vadd.f32 %v12086_v27, %v6685_v44 }
 0x9da   : > { %v3644_v17 = vpop.f32.mrb[32].mxu0 }
 0x9db   : > { %v3645_v19 = vadd.f32 %v3644_v17, %v3575_v42  ;;  %v7320_v41 = vpop.f32.mrb[33].mxu0  ;;  %v13792_v42 = vld [vmem:[#allocation30_spill] sm:$0xff] }
 0x9dc   : > { %v13793_v41 = vld [vmem:[#allocation31_spill] sm:$0xff] }
 0x9dd   : > { %3648 = vmax.xlane.f32.xlu1 %v3645_v19 }
 0xa6a   : > { %v3649_v11 = vpop.xlane.xlu1 %3648 }
 0xa6b   : > { %v3650_v36 = vsub.f32 %v3645_v19, %v3649_v11  ;;  %v13798_v11 = vld [vmem:[#allocation252_spill] sm:$0xff]  ;;  %v13799_v19 = vld [vmem:[#allocation255_spill] sm:$0xff] }
 0xa6c   : > { %v9736_v17 = vadd.f32 %v13799_v19, %v13798_v11 }
 0xa6d   : > { %v3651_v28 = vmul.f32 1.442695, %v3650_v36  ;;  %v13797_v36 = vld [vmem:[#allocation35_spill] sm:$0xff] }
 0xa6e   : > { %v6335_v44 = vmul.f32 -1.442695, %v9736_v17 }
 0xa6f   : > { %10000 = vpow2.f32 %v3651_v28  ;;  %v13794_v28 = vld [vmem:[#allocation32_spill] sm:$0xff] }
 0xa79   : > { %v10001_v56 = vpop.eup %10000 }
 0xa7a   : > { %3653 = vadd.xlane.f32.xlu1 %v10001_v56 }
 0xb07   : > { %v3654_v10 = vpop.xlane.xlu1 %3653 }
 0xb08   : > { %10002 = vrcp.f32 %v3654_v10  ;;  %v13795_v10 = vld [vmem:[#allocation33_spill] sm:$0xff] }
 0xb09   : > { %10004 = vpow2.f32 %v6335_v44 }
 0xb12   : > { %v10003_v38 = vpop.eup %10002 }
 0xb13   : > { %v3656_v5 = vmul.f32 %v10003_v38, %v10001_v56  ;;  %v13796_v56 = vld [vmem:[#allocation34_spill] sm:$0xff]  ;;  %v10005_v38 = vpop.eup %10004 }
 0xb15   : > { %3722 = vmatmul.mubr.f32.vlgmr.msra.gmra.mrb[38].mxu1 %v3656_v5  ;;  %6341 = vst [vmem:[%s10803_s19 + $0x48] sm:$0xff] %v3656_v5  ;;  %7354 = vmatmul.mubr.f32.vlgmr.msra.gmra.mrb[34].mxu0 %v3656_v5  ;;  %v13800_v5 = vld [vmem:[#allocation253_spill] sm:$0xff] }
 0xb16   : > { %8683 = vmatpush1.bf16.msra.mxu0 %v10863_v47  ;;  %8715 = vmatpush1.bf16.msra.mxu1 %v10865_v48 }
 0xb17   : > { %8685 = vmatprep.subr.bf16.mxu0 %v10867_v51  ;;  %8717 = vmatprep.subr.bf16.mxu1 %v10869_v52 }
 0xb18   : > { %3888 = vmatprep.mubr.f32.mxu0 %v13403_v62  ;;  %3959 = vmatprep.mubr.f32.mxu1 %v13403_v62 }
 0xb1a   : > { %8687 = vmatpush1.bf16.msra.mxu0 %v10877_v59  ;;  %8719 = vmatpush1.bf16.msra.mxu1 %v10879_v60 }
 0xb1b   : > { %8689 = vmatprep.subr.bf16.mxu0 %v10883_v63  ;;  %8721 = vmatprep.subr.bf16.mxu1 %v10885_v0 }
 0xb1e   : > { %8691 = vmatpush1.bf16.msra.mxu0 %v10896_v8  ;;  %8723 = vmatpush1.bf16.msra.mxu1 %v10898_v9 }
 0xb1f   : > { %8693 = vmatprep.subr.bf16.mxu0 %v10902_v13  ;;  %8725 = vmatprep.subr.bf16.mxu1 %v10904_v14 }
 0xb22   : > { %8695 = vmatpush1.bf16.msra.mxu0 %v10912_v21  ;;  %8727 = vmatpush1.bf16.msra.mxu1 %v10914_v22 }
 0xb23   : > { %8697 = vmatprep.subr.bf16.mxu0 %v10918_v25  ;;  %8729 = vmatprep.subr.bf16.mxu1 %v10920_v26 }
 0xb26   : > { %8699 = vmatpush1.bf16.msra.mxu0 %v10927_v33  ;;  %8731 = vmatpush1.bf16.msra.mxu1 %v10929_v34 }
 0xb27   : > { %8701 = vmatprep.subr.bf16.mxu0 %v10933_v39  ;;  %8733 = vmatprep.subr.bf16.mxu1 %v10935_v40 }
 0xb2a   : > { %8703 = vmatpush1.bf16.msra.mxu0 %v10940_v46  ;;  %8735 = vmatpush1.bf16.msra.mxu1 %v10942_v49 }
 0xb2b   : > { %8705 = vmatprep.subr.bf16.mxu0 %v10946_v54  ;;  %8737 = vmatprep.subr.bf16.mxu1 %v10948_v55 }
 0xb2e   : > { %8707 = vmatpush1.bf16.msra.mxu0 %v10952_v2  ;;  %8739 = vmatpush1.bf16.msra.mxu1 %v10954_v3  ;;  %v13801_v3 = vld [vmem:[#allocation256_spill] sm:$0xff] }
 0xb2f   : > { %8709 = vmatprep.subr.bf16.mxu0 %v13792_v42  ;;  %8741 = vmatprep.subr.bf16.mxu1 %v13793_v41  ;;  %v9737_v2 = vadd.f32 %v13801_v3, %v13800_v5  ;;  %v3060_v42 = vadd.f32 1.0, %v10005_v38 }
 0xb31   : > { %v6336_v55 = vmul.f32 -1.442695, %v9737_v2  ;;  %10006 = vrcp.f32 %v3060_v42  ;;  %v13802_v2 = vld [vmem:[#allocation254_spill] sm:$0xff] }
 0xb32   : > { %8711 = vmatpush1.bf16.msra.mxu0 %v13794_v28  ;;  %8743 = vmatpush1.bf16.msra.mxu1 %v13795_v10 }
 0xb33   : > { %8745 = vmatprep.subr.bf16.mxu0 %v13796_v56  ;;  %8777 = vmatprep.subr.bf16.mxu1 %v13797_v36  ;;  %10008 = vpow2.f32 %v6336_v55 }
 0xb3b   : > { %v10007_v10 = vpop.eup %10006 }
 0xb3c   : > { %v3803_v49 = vsub.f32 1.0, %v10007_v10 }
 0xb3d   : > { %v10009_v17 = vpop.eup %10008 }
 0xb3e   : > { %v3066_v38 = vadd.f32 1.0, %v10009_v17  ;;  %v3804_v42 = vmul.f32 %v3803_v49, %v13802_v2  ;;  %v13806_v49 = vld [vmem:[#allocation38_spill] sm:$0xff]  ;;  %v13813_v17 = vld [vmem:[#allocation45_spill] sm:$0xff] }
 0xb3f   : > { %v13817_v2 = vld [vmem:[#allocation49_spill] sm:$0xff] }
 0xb40   : > { %10010 = vrcp.f32 %v3066_v38  ;;  %v13816_v38 = vld [vmem:[#allocation48_spill] sm:$0xff] }
 0xbe8   : > { %v3723_v28 = vpop.f32.mrb[38].mxu1  ;;  %v3794_v41 = vpop.f32.mrb[34].mxu0 }
 0xbe9   : > { %v3798_v56 = vmul.f32 %v3723_v28, %v11948_v57  ;;  %v3725_v54 = vpop.f32.mrb[39].mxu1  ;;  %v7355_v36 = vpop.f32.mrb[35].mxu0  ;;  %v3800_v44 = vmul.f32 %v3794_v41, %v11978_v29  ;;  %v13807_v29 = vld [vmem:[#allocation39_spill] sm:$0xff]  ;;  %v13808_v41 = vld [vmem:[#allocation40_spill] sm:$0xff] }
 0xbea   : > { %v3799_v19 = vmul.f32 %v3725_v54, %v11950_v20  ;;  %v10011_v57 = vpop.eup %10010  ;;  %v13804_v54 = vld [vmem:[#allocation36_spill] sm:$0xff]  ;;  %v13805_v20 = vld [vmem:[#allocation37_spill] sm:$0xff] }
 0xbec   : > { %v3801_v11 = vadd.f32 %v3799_v19, %v3798_v56  ;;  %v13810_v56 = vld [vmem:[#allocation42_spill] sm:$0xff]  ;;  %v13812_v19 = vld [vmem:[#allocation44_spill] sm:$0xff] }
 0xbee   : > { %v3802_v3 = vadd.f32 %v3801_v11, %v3800_v44  ;;  %v13811_v11 = vld [vmem:[#allocation43_spill] sm:$0xff]  ;;  %v13814_v44 = vld [vmem:[#allocation46_spill] sm:$0xff] }
 0xbf0   : > { %v3805_v55 = vmul.f32 %v10007_v10, %v3802_v3  ;;  %v13809_v10 = vld [vmem:[#allocation41_spill] sm:$0xff]  ;;  %v13815_v3 = vld [vmem:[#allocation47_spill] sm:$0xff] }
 0xbf2   : > { %v12132_v5 = vadd.f32 %v3805_v55, %v3804_v42  ;;  %v13818_v42 = vld [vmem:[#allocation50_spill] sm:$0xff]  ;;  %v13819_v55 = vld [vmem:[#allocation51_spill] sm:$0xff] }
 0xbf4   : > { %13803 = vst [vmem:[#allocation160_spill] sm:$0xff] %v12132_v5  ;;  %10012 = vtanh.f32 %v12132_v5 }
 0xbfe   : > { %v10013_v28 = vpop.eup %10012 }
 0xbff   : > { %v12135_v36 = vmul.f32 %v10013_v28, %v10011_v57  ;;  %v13820_v57 = vld [vmem:[#allocation52_spill] sm:$0xff]  ;;  %v13821_v28 = vld [vmem:[#allocation53_spill] sm:$0xff] }
 0xc01   : > { %6337 = vst [vmem:[%s10803_s19 + $0x28] sm:$0xff] %v12135_v36  ;;  %3889 = vmatmul.mubr.f32.vlgmr.msra.gmra.mrb[36].mxu0 %v12135_v36  ;;  %3960 = vmatmul.mubr.f32.vlgmr.msra.gmra.mrb[8].mxu1 %v12135_v36 }
 0xc02   : > { %8747 = vmatpush1.bf16.msra.mxu0 %v13804_v54  ;;  %8779 = vmatpush1.bf16.msra.mxu1 %v13805_v20  ;;  %v13921_v20 = vld [vmem:[#allocation158_spill] sm:$0xff] }
 0xc03   : > { %8749 = vmatprep.subr.bf16.mxu0 %v13806_v49  ;;  %8781 = vmatprep.subr.bf16.mxu1 %v13807_v29 }
 0xc04   : > { %4030 = vmatprep.mubr.f32.mxu0 %v13403_v62  ;;  %4101 = vmatprep.mubr.f32.mxu1 %v13403_v62 }
 0xc06   : > { %8751 = vmatpush1.bf16.msra.mxu0 %v13808_v41  ;;  %8783 = vmatpush1.bf16.msra.mxu1 %v13809_v10 }
 0xc07   : > { %8753 = vmatprep.subr.bf16.mxu0 %v13810_v56  ;;  %8785 = vmatprep.subr.bf16.mxu1 %v13811_v11  ;;  %v13822_v11 = vld [vmem:[#allocation54_spill] sm:$0xff] }
 0xc08   : > { %v13919_v56 = vld [vmem:[#allocation146_spill] sm:$0xff] }
 0xc0a   : > { %8755 = vmatpush1.bf16.msra.mxu0 %v13812_v19  ;;  %8787 = vmatpush1.bf16.msra.mxu1 %v13813_v17  ;;  %v13823_v19 = vld [vmem:[#allocation55_spill] sm:$0xff]  ;;  %v13824_v17 = vld [vmem:[#allocation56_spill] sm:$0xff] }
 0xc0b   : > { %8757 = vmatprep.subr.bf16.mxu0 %v13814_v44  ;;  %8789 = vmatprep.subr.bf16.mxu1 %v13815_v3  ;;  %v13825_v44 = vld [vmem:[#allocation57_spill] sm:$0xff]  ;;  %v13826_v3 = vld [vmem:[#allocation58_spill] sm:$0xff] }
 0xc0e   : > { %8759 = vmatpush1.bf16.msra.mxu0 %v13816_v38  ;;  %8791 = vmatpush1.bf16.msra.mxu1 %v13817_v2  ;;  %v13827_v38 = vld [vmem:[#allocation59_spill] sm:$0xff]  ;;  %v13828_v2 = vld [vmem:[#allocation60_spill] sm:$0xff] }
 0xc0f   : > { %8761 = vmatprep.subr.bf16.mxu0 %v13818_v42  ;;  %8793 = vmatprep.subr.bf16.mxu1 %v13819_v55  ;;  %v13829_v42 = vld [vmem:[#allocation61_spill] sm:$0xff]  ;;  %v13830_v55 = vld [vmem:[#allocation62_spill] sm:$0xff] }
 0xc12   : > { %8763 = vmatpush1.bf16.msra.mxu0 %v13820_v57  ;;  %8795 = vmatpush1.bf16.msra.mxu1 %v13821_v28  ;;  %v13831_v57 = vld [vmem:[#allocation63_spill] sm:$0xff]  ;;  %v13832_v28 = vld [vmem:[#allocation64_spill] sm:$0xff] }
 0xc13   : > { %8765 = vmatprep.subr.bf16.mxu0 %v13822_v11  ;;  %8797 = vmatprep.subr.bf16.mxu1 %v13823_v19  ;;  %v13833_v11 = vld [vmem:[#allocation65_spill] sm:$0xff] }
 0xc16   : > { %8767 = vmatpush1.bf16.msra.mxu0 %v13824_v17  ;;  %8799 = vmatpush1.bf16.msra.mxu1 %v13825_v44  ;;  %v13834_v17 = vld [vmem:[#allocation66_spill] sm:$0xff]  ;;  %v13894_v44 = vld [vmem:[#allocation127_spill] sm:$0xff] }
 0xc17   : > { %8769 = vmatprep.subr.bf16.mxu0 %v13826_v3  ;;  %8801 = vmatprep.subr.bf16.mxu1 %v13827_v38  ;;  %v13835_v38 = vld [vmem:[#allocation67_spill] sm:$0xff]  ;;  %v13848_v3 = vld [vmem:[#allocation80_spill] sm:$0xff] }
 0xc1a   : > { %8771 = vmatpush1.bf16.msra.mxu0 %v13828_v2  ;;  %8803 = vmatpush1.bf16.msra.mxu1 %v13829_v42  ;;  %v13836_v2 = vld [vmem:[#allocation68_spill] sm:$0xff]  ;;  %v13845_v42 = vld [vmem:[#allocation77_spill] sm:$0xff] }
 0xc1b   : > { %8773 = vmatprep.subr.bf16.mxu0 %v13830_v55  ;;  %8805 = vmatprep.subr.bf16.mxu1 %v13831_v57  ;;  %v13837_v55 = vld [vmem:[#allocation69_spill] sm:$0xff]  ;;  %v13844_v57 = vld [vmem:[#allocation76_spill] sm:$0xff] }
 0xc1e   : > { %8775 = vmatpush1.bf16.msra.mxu0 %v13832_v28  ;;  %8807 = vmatpush1.bf16.msra.mxu1 %v13833_v11  ;;  %v13838_v11 = vld [vmem:[#allocation70_spill] sm:$0xff]  ;;  %v13840_v28 = vld [vmem:[#allocation72_spill] sm:$0xff] }
 0xc1f   : > { %8808 = vmatprep.subr.bf16.mxu1 %v13554_v50  ;;  %8833 = vmatprep.subr.bf16.mxu0 %v13834_v17  ;;  %v13839_v17 = vld [vmem:[#allocation71_spill] sm:$0xff] }
 0xc21   : > { %4031 = vmatmul.mubr.f32.vlgmr.msra.gmra.mrb[8].mxu0 %v12135_v36  ;;  %4102 = vmatmul.mubr.f32.vlgmr.msra.gmra.mrb[16].mxu1 %v12135_v36 }
 0xc22   : > { %8810 = vmatpush3.bf16.msra.mxu1 %v13835_v38  ;;  %8835 = vmatpush1.bf16.msra.mxu0 %v13836_v2  ;;  %v13841_v38 = vld [vmem:[#allocation73_spill] sm:$0xff]  ;;  %v13842_v2 = vld [vmem:[#allocation74_spill] sm:$0xff] }
 0xc23   : > { %8811 = vmatprep.subr.bf16.mxu1 %v13554_v50  ;;  %8837 = vmatprep.subr.bf16.mxu0 %v13837_v55  ;;  %v13843_v55 = vld [vmem:[#allocation75_spill] sm:$0xff] }
 0xc24   : > { %7388 = vmatprep.mubr.msk.f32.mxu1 %vm10425_vm1, %v13403_v62  ;;  %4285 = vmatprep.mubr.f32.mxu0 %v13403_v62 }
 0xc26   : > { %8813 = vmatpush3.bf16.msra.mxu1 %v13838_v11  ;;  %8839 = vmatpush1.bf16.msra.mxu0 %v13839_v17  ;;  %v13846_v11 = vld [vmem:[#allocation78_spill] sm:$0xff]  ;;  %v13847_v17 = vld [vmem:[#allocation79_spill] sm:$0xff] }
 0xc27   : > { %8814 = vmatprep.subr.bf16.mxu1 %v13554_v50  ;;  %8841 = vmatprep.subr.bf16.mxu0 %v13840_v28  ;;  %v13851_v28 = vld [vmem:[#allocation83_spill] sm:$0xff] }
 0xc2a   : > { %8816 = vmatpush3.bf16.msra.mxu1 %v13841_v38  ;;  %8843 = vmatpush1.bf16.msra.mxu0 %v13842_v2  ;;  %v13849_v38 = vld [vmem:[#allocation81_spill] sm:$0xff]  ;;  %v13850_v2 = vld [vmem:[#allocation82_spill] sm:$0xff] }
 0xc2b   : > { %8817 = vmatprep.subr.bf16.mxu1 %v13554_v50  ;;  %8845 = vmatprep.subr.bf16.mxu0 %v13843_v55  ;;  %v13854_v55 = vld [vmem:[#allocation86_spill] sm:$0xff] }
 0xc2e   : > { %8819 = vmatpush3.bf16.msra.mxu1 %v13844_v57  ;;  %8847 = vmatpush1.bf16.msra.mxu0 %v13845_v42  ;;  %v13852_v57 = vld [vmem:[#allocation84_spill] sm:$0xff]  ;;  %v13853_v42 = vld [vmem:[#allocation85_spill] sm:$0xff] }
 0xc2f   : > { %8820 = vmatprep.subr.bf16.mxu1 %v13554_v50  ;;  %8849 = vmatprep.subr.bf16.mxu0 %v13846_v11  ;;  %v13857_v11 = vld [vmem:[#allocation89_spill] sm:$0xff] }
 0xc32   : > { %8822 = vmatpush3.bf16.msra.mxu1 %v13847_v17  ;;  %8851 = vmatpush1.bf16.msra.mxu0 %v13848_v3  ;;  %v13855_v17 = vld [vmem:[#allocation87_spill] sm:$0xff]  ;;  %v13856_v3 = vld [vmem:[#allocation88_spill] sm:$0xff] }
 0xc33   : > { %8823 = vmatprep.subr.bf16.mxu1 %v13554_v50  ;;  %8853 = vmatprep.subr.bf16.mxu0 %v13849_v38  ;;  %v13887_v38 = vld [vmem:[#allocation118_spill] sm:$0xff] }
 0xc36   : > { %8825 = vmatpush3.bf16.msra.mxu1 %v13850_v2  ;;  %8855 = vmatpush1.bf16.msra.mxu0 %v13851_v28  ;;  %v13858_v2 = vld [vmem:[#allocation98_spill] sm:$0xff]  ;;  %v13868_v28 = vld [vmem:[#allocation93_spill] sm:$0xff] }
 0xc37   : > { %8826 = vmatprep.subr.bf16.mxu1 %v13554_v50  ;;  %8857 = vmatprep.subr.bf16.mxu0 %v13852_v57  ;;  %v13859_v57 = vld [vmem:[#allocation90_spill] sm:$0xff] }
 0xc3a   : > { %8828 = vmatpush3.bf16.msra.mxu1 %v13853_v42  ;;  %8859 = vmatpush1.bf16.msra.mxu0 %v13854_v55  ;;  %v13865_v55 = vld [vmem:[#allocation92_spill] sm:$0xff] }
 0xc3b   : > { %8829 = vmatprep.subr.bf16.mxu1 %v13554_v50  ;;  %8861 = vmatprep.subr.bf16.mxu0 %v13855_v17  ;;  %v13860_v17 = vld [vmem:[#allocation99_spill] sm:$0xff]  ;;  %v13867_v42 = vld [vmem:[#allocation104_spill] sm:$0xff] }
 0xc3e   : > { %8831 = vmatpush3.bf16.msra.mxu1 %v13856_v3  ;;  %8863 = vmatpush1.bf16.msra.mxu0 %v13857_v11  ;;  %v13861_v3 = vld [vmem:[#allocation100_spill] sm:$0xff]  ;;  %v13862_v11 = vld [vmem:[#allocation91_spill] sm:$0xff] }
 0xc3f   : > { %8864 = vmatprep.subr.bf16.mxu1 %v13554_v50  ;;  %8889 = vmatprep.subr.bf16.mxu0 %v13858_v2  ;;  %v13863_v2 = vld [vmem:[#allocation101_spill] sm:$0xff] }
 0xc41   : > { %7389 = vmatmul.mubr.f32.vlgmr.msra.gmra.mrb[40].mxu1 %v12135_v36  ;;  %4286 = vmatmul.mubr.f32.vlgmr.msra.gmra.mrb[38].mxu0 %v12132_v5  ;;  %v13864_v36 = vld [vmem:[#allocation102_spill] sm:$0xff] }
 0xc42   : > { %8866 = vmatpush3.bf16.msra.mxu1 %v13859_v57  ;;  %7423 = vmatprep.mubr.msk.f32.mxu1 %vm10425_vm1, %v13403_v62  ;;  %v13866_v57 = vld [vmem:[#allocation103_spill] sm:$0xff] }
 0xc43   : > { %8867 = vmatprep.subr.bf16.mxu1 %v13554_v50  ;;  %8891 = vmatpush1.bf16.msra.mxu0 %v13860_v17  ;;  %v13871_v17 = vld [vmem:[#allocation94_spill] sm:$0xff] }
 0xc44   : > { %8893 = vmatprep.subr.bf16.mxu0 %v13861_v3  ;;  %v13869_v3 = vld [vmem:[#allocation105_spill] sm:$0xff] }
 0xc46   : > { %8869 = vmatpush3.bf16.msra.mxu1 %v13862_v11  ;;  %v13870_v11 = vld [vmem:[#allocation106_spill] sm:$0xff] }
 0xc47   : > { %8870 = vmatprep.subr.bf16.mxu1 %v13554_v50  ;;  %8895 = vmatpush1.bf16.msra.mxu0 %v13863_v2  ;;  %v13874_v2 = vld [vmem:[#allocation95_spill] sm:$0xff] }
 0xc48   : > { %8897 = vmatprep.subr.bf16.mxu0 %v13864_v36  ;;  %v13872_v36 = vld [vmem:[#allocation107_spill] sm:$0xff] }
 0xc4a   : > { %8872 = vmatpush3.bf16.msra.mxu1 %v13865_v55  ;;  %v13873_v55 = vld [vmem:[#allocation108_spill] sm:$0xff] }
 0xc4b   : > { %8873 = vmatprep.subr.bf16.mxu1 %v13554_v50  ;;  %8899 = vmatpush1.bf16.msra.mxu0 %v13866_v57  ;;  %v13877_v57 = vld [vmem:[#allocation96_spill] sm:$0xff] }
 0xc4c   : > { %8901 = vmatprep.subr.bf16.mxu0 %v13867_v42  ;;  %v13875_v42 = vld [vmem:[#allocation109_spill] sm:$0xff] }
 0xc4e   : > { %8875 = vmatpush3.bf16.msra.mxu1 %v13868_v28  ;;  %v13876_v28 = vld [vmem:[#allocation110_spill] sm:$0xff] }
 0xc4f   : > { %8876 = vmatprep.subr.bf16.mxu1 %v13554_v50  ;;  %8903 = vmatpush1.bf16.msra.mxu0 %v13869_v3  ;;  %v13880_v3 = vld [vmem:[#allocation97_spill] sm:$0xff] }
 0xc50   : > { %8905 = vmatprep.subr.bf16.mxu0 %v13870_v11  ;;  %v13878_v11 = vld [vmem:[#allocation111_spill] sm:$0xff] }
 0xc52   : > { %8878 = vmatpush3.bf16.msra.mxu1 %v13871_v17  ;;  %v13879_v17 = vld [vmem:[#allocation112_spill] sm:$0xff] }
 0xc53   : > { %8879 = vmatprep.subr.bf16.mxu1 %v13554_v50  ;;  %8907 = vmatpush1.bf16.msra.mxu0 %v13872_v36  ;;  %v13881_v36 = vld [vmem:[#allocation113_spill] sm:$0xff] }
 0xc54   : > { %8909 = vmatprep.subr.bf16.mxu0 %v13873_v55  ;;  %v13882_v55 = vld [vmem:[#allocation115_spill] sm:$0xff] }
 0xc56   : > { %8881 = vmatpush3.bf16.msra.mxu1 %v13874_v2  ;;  %v13883_v2 = vld [vmem:[#allocation114_spill] sm:$0xff] }
 0xc57   : > { %8882 = vmatprep.subr.bf16.mxu1 %v13554_v50  ;;  %8911 = vmatpush1.bf16.msra.mxu0 %v13875_v42  ;;  %v13884_v42 = vld [vmem:[#allocation117_spill] sm:$0xff] }
 0xc58   : > { %8913 = vmatprep.subr.bf16.mxu0 %v13876_v28  ;;  %v13885_v28 = vld [vmem:[#allocation116_spill] sm:$0xff] }
 0xc5a   : > { %8884 = vmatpush3.bf16.msra.mxu1 %v13877_v57  ;;  %v13886_v57 = vld [vmem:[#allocation119_spill] sm:$0xff] }
 0xc5b   : > { %8885 = vmatprep.subr.bf16.mxu1 %v13554_v50  ;;  %8915 = vmatpush1.bf16.msra.mxu0 %v13878_v11  ;;  %v13888_v11 = vld [vmem:[#allocation121_spill] sm:$0xff] }
 0xc5c   : > { %8917 = vmatprep.subr.bf16.mxu0 %v13879_v17  ;;  %v13889_v17 = vld [vmem:[#allocation120_spill] sm:$0xff] }
 0xc5e   : > { %8887 = vmatpush3.bf16.msra.mxu1 %v13880_v3  ;;  %v13890_v3 = vld [vmem:[#allocation123_spill] sm:$0xff] }
 0xc5f   : > { %8919 = vmatpush1.bf16.msra.mxu0 %v13881_v36  ;;  %9017 = vmatprep.subr.bf16.mxu1 %v13882_v55  ;;  %v13891_v36 = vld [vmem:[#allocation122_spill] sm:$0xff]  ;;  %v13892_v55 = vld [vmem:[#allocation125_spill] sm:$0xff] }
 0xc60   : > { %8921 = vmatprep.subr.bf16.mxu0 %v13883_v2  ;;  %v13893_v2 = vld [vmem:[#allocation124_spill] sm:$0xff] }
 0xc61   : > { %7424 = vmatmul.mubr.f32.vlgmr.msra.gmra.mrb[42].mxu1 %v12132_v5 }
 0xc62   : > { %9019 = vmatpush3.bf16.msra.mxu1 %v13884_v42  ;;  %v13895_v42 = vld [vmem:[#allocation126_spill] sm:$0xff] }
 0xc63   : > { %8923 = vmatpush1.bf16.msra.mxu0 %v13885_v28  ;;  %9021 = vmatprep.subr.bf16.mxu1 %v13886_v57  ;;  %v13896_v28 = vld [vmem:[#allocation129_spill] sm:$0xff]  ;;  %v13897_v57 = vld [vmem:[#allocation128_spill] sm:$0xff] }
 0xc64   : > { %8925 = vmatprep.subr.bf16.mxu0 %v13887_v38  ;;  %v13898_v38 = vld [vmem:[#allocation131_spill] sm:$0xff] }
 0xc66   : > { %9023 = vmatpush3.bf16.msra.mxu1 %v13888_v11  ;;  %v13899_v11 = vld [vmem:[#allocation130_spill] sm:$0xff] }
 0xc67   : > { %8927 = vmatpush1.bf16.msra.mxu0 %v13889_v17  ;;  %9025 = vmatprep.subr.bf16.mxu1 %v13890_v3  ;;  %v13900_v17 = vld [vmem:[#allocation133_spill] sm:$0xff]  ;;  %v13901_v3 = vld [vmem:[#allocation132_spill] sm:$0xff] }
 0xc68   : > { %8929 = vmatprep.subr.bf16.mxu0 %v13891_v36  ;;  %v13902_v36 = vld [vmem:[#allocation135_spill] sm:$0xff] }
 0xc6a   : > { %9027 = vmatpush3.bf16.msra.mxu1 %v13892_v55  ;;  %v13903_v55 = vld [vmem:[#allocation134_spill] sm:$0xff] }
 0xc6b   : > { %8931 = vmatpush1.bf16.msra.mxu0 %v13893_v2  ;;  %9029 = vmatprep.subr.bf16.mxu1 %v13894_v44  ;;  %v13904_v2 = vld [vmem:[#allocation137_spill] sm:$0xff]  ;;  %v13905_v44 = vld [vmem:[#allocation136_spill] sm:$0xff] }
 0xc6c   : > { %8933 = vmatprep.subr.bf16.mxu0 %v13895_v42  ;;  %v13906_v42 = vld [vmem:[#allocation139_spill] sm:$0xff] }
 0xc6e   : > { %9031 = vmatpush3.bf16.msra.mxu1 %v13896_v28  ;;  %v13907_v28 = vld [vmem:[#allocation138_spill] sm:$0xff] }
 0xc6f   : > { %8935 = vmatpush1.bf16.msra.mxu0 %v13897_v57  ;;  %9033 = vmatprep.subr.bf16.mxu1 %v13898_v38  ;;  %v13908_v57 = vld [vmem:[#allocation141_spill] sm:$0xff]  ;;  %v13909_v38 = vld [vmem:[#allocation140_spill] sm:$0xff] }
 0xc70   : > { %8937 = vmatprep.subr.bf16.mxu0 %v13899_v11  ;;  %v13910_v11 = vld [vmem:[#allocation144_spill] sm:$0xff] }
 0xc72   : > { %9035 = vmatpush3.bf16.msra.mxu1 %v13900_v17  ;;  %v13911_v17 = vld [vmem:[#allocation142_spill] sm:$0xff] }
 0xc73   : > { %8939 = vmatpush1.bf16.msra.mxu0 %v13901_v3  ;;  %9037 = vmatprep.subr.bf16.mxu1 %v13902_v36  ;;  %v13912_v3 = vld [vmem:[#allocation147_spill] sm:$0xff]  ;;  %v13913_v36 = vld [vmem:[#allocation145_spill] sm:$0xff] }
 0xc74   : > { %8941 = vmatprep.subr.bf16.mxu0 %v13903_v55  ;;  %v13914_v55 = vld [vmem:[#allocation149_spill] sm:$0xff] }
 0xc76   : > { %9039 = vmatpush3.bf16.msra.mxu1 %v13904_v2  ;;  %v13915_v2 = vld [vmem:[#allocation148_spill] sm:$0xff] }
 0xc77   : > { %8943 = vmatpush1.bf16.msra.mxu0 %v13905_v44  ;;  %9041 = vmatprep.subr.bf16.mxu1 %v13906_v42  ;;  %v13916_v44 = vld [vmem:[#allocation155_spill] sm:$0xff] }
 0xc78   : > { %8945 = vmatprep.subr.bf16.mxu0 %v13907_v28  ;;  %v13917_v42 = vld [vmem:[#allocation143_spill] sm:$0xff]  ;;  %v13918_v28 = vld [vmem:[#allocation157_spill] sm:$0xff] }
 0xc79   : > { %v627_v19 = vadd.f32 %v13917_v42, %v13916_v44 }
 0xc7a   : > { %9043 = vmatpush3.bf16.msra.mxu1 %v13908_v57  ;;  %v629_v57 = vadd.f32 %v13919_v56, %v13918_v28 }
 0xc7b   : > { %8947 = vmatpush1.bf16.msra.mxu0 %v13909_v38  ;;  %9045 = vmatprep.subr.bf16.mxu1 %v13910_v11 }
 0xc7c   : > { %8949 = vmatprep.subr.bf16.mxu0 %v13911_v17 }
 0xc7e   : > { %9047 = vmatpush3.bf16.msra.mxu1 %v13912_v3  ;;  %v13920_v3 = vld [vmem:[#allocation156_spill] sm:$0xff] }
 0xc7f   : > { %8951 = vmatpush1.bf16.msra.mxu0 %v13913_v36  ;;  %9049 = vmatprep.subr.bf16.mxu1 %v13914_v55 }
 0xc80   : > { %8953 = vmatprep.subr.bf16.mxu0 %v13915_v2 }
 0xcd4   : > { %v3890_v10 = vpop.f32.mrb[36].mxu0  ;;  %v3961_v38 = vpop.f32.mrb[8].mxu1 }
 0xcd5   : > { %v4178_v41 = vadd.f32 %v3890_v10, %v627_v19  ;;  %v3892_v11 = vpop.f32.mrb[37].mxu0  ;;  %v3963_v29 = vpop.f32.mrb[9].mxu1  ;;  %v9722_v36 = vadd.f32 %v3961_v38, %v13920_v3 }
 0xcd6   : > { %v4179_v17 = vadd.f32 %v3892_v11, %v629_v57  ;;  %v9723_v55 = vadd.f32 %v3963_v29, %v13921_v20  ;;  %v13923_v29 = vld [vmem:[#allocation159_spill] sm:$0xff] }
 0xcd7   : > { %v6342_v49 = vmul.f32 -1.442695, %v4178_v41  ;;  %v6344_v54 = vmul.f32 -1.442695, %v9722_v36 }
 0xcd8   : > { %v6343_v2 = vmul.f32 -1.442695, %v4179_v17 }
 0xcd9   : > { %10014 = vpow2.f32 %v6342_v49 }
 0xcda   : > { %10016 = vtanh.f32 %v9723_v55 }
 0xcdb   : > { %10018 = vpow2.f32 %v6344_v54 }
 0xcdc   : > { %10020 = vpow2.f32 %v6343_v2 }
 0xce3   : > { %v10015_v5 = vpop.eup %10014 }
 0xce4   : > { %v4196_v42 = vadd.f32 1.0, %v10015_v5  ;;  %v10017_v56 = vpop.eup %10016 }
 0xce5   : > { %v10019_v28 = vpop.eup %10018 }
 0xce6   : > { %10022 = vrcp.f32 %v4196_v42  ;;  %v10021_v10 = vpop.eup %10020  ;;  %v4198_v44 = vadd.f32 1.0, %v10019_v28 }
 0xce7   : > { %v4197_v41 = vadd.f32 1.0, %v10021_v10 }
 0xce8   : > { %10024 = vrcp.f32 %v4198_v44 }
 0xce9   : > { %10026 = vrcp.f32 %v4197_v41 }
 0xcf0   : > { %v10023_v19 = vpop.eup %10022 }
 0xcf1   : > { %v4362_v11 = vmul.f32 %v10023_v19, %v10017_v56  ;;  %v4365_v10 = vsub.f32 1.0, %v10023_v19 }
 0xcf2   : > { %v10025_v54 = vpop.eup %10024 }
 0xcf3   : > { %v10027_v2 = vpop.eup %10026 }
 0xcf4   : > { %v4032_v49 = vpop.f32.mrb[8].mxu0  ;;  %v12287_v57 = vpop.f32.mrb[16].mxu1 }
 0xcf5   : > { %13922 = vst [vmem:[#allocation152_spill] sm:$0xff] %v12287_v57  ;;  %v9730_v38 = vadd.f32 %v4032_v49, %v13923_v29  ;;  %v4034_v17 = vpop.f32.mrb[9].mxu0  ;;  %v12290_v36 = vpop.f32.mrb[17].mxu1  ;;  %v4366_v49 = vsub.f32 1.0, %v10027_v2  ;;  %v13925_v29 = vld [vmem:[#allocation154_spill] sm:$0xff] }
 0xcf6   : > { %13924 = vst [vmem:[#allocation161_spill] sm:$0xff] %v12290_v36  ;;  %v9731_v5 = vadd.f32 %v4034_v17, %v13709_v4 }
 0xcf7   : > { %10028 = vtanh.f32 %v9730_v38 }
 0xcf8   : > { %10030 = vtanh.f32 %v9731_v5 }
 0xd01   : > { %v10029_v55 = vpop.eup %10028 }
 0xd02   : > { %v10031_v28 = vpop.eup %10030  ;;  %v4363_v42 = vmul.f32 %v10029_v55, %v10027_v2  ;;  %v13932_v2 = vld [vmem:[#allocation173_spill] sm:$0xff]  ;;  %v13933_v55 = vld [vmem:[#allocation174_spill] sm:$0xff] }
 0xd03   : > { %v4364_v56 = vmul.f32 %v10031_v28, %v10025_v54  ;;  %v13934_v28 = vld [vmem:[#allocation175_spill] sm:$0xff] }
 0xd14   : > { %v4174_v44 = vpop.f32.mrb[40].mxu1  ;;  %v4287_v20 = vpop.f32.mrb[38].mxu0 }
 0xd15   : > { %v4186_v3 = vadd.f32 %v4174_v44, %v13925_v29  ;;  %v4368_v36 = vmul.f32 %v4365_v10, %v4287_v20  ;;  %v7390_v41 = vpop.f32.mrb[41].mxu1  ;;  %v4289_v57 = vpop.f32.mrb[39].mxu0  ;;  %v13926_v20 = vld [vmem:[#allocation166_spill] sm:$0xff]  ;;  %v13930_v29 = vld [vmem:[#allocation171_spill] sm:$0xff]  ;;  %v4367_v10 = vsub.f32 1.0, %v10025_v54  ;;  %v13941_v54 = vld [vmem:[#allocation184_spill] sm:$0xff] }
 0xd16   : > { %v4369_v17 = vmul.f32 %v4366_v49, %v4289_v57  ;;  %v13929_v57 = vld [vmem:[#allocation169_spill] sm:$0xff]  ;;  %v13936_v49 = vld [vmem:[#allocation179_spill] sm:$0xff] }
 0xd17   : > { %10032 = vtanh.f32 %v4186_v3  ;;  %v12294_v38 = vadd.f32 %v4368_v36, %v4362_v11  ;;  %v13927_v3 = vld [vmem:[#allocation167_spill] sm:$0xff]  ;;  %v13928_v11 = vld [vmem:[#allocation168_spill] sm:$0xff] }
 0xd18   : > { %v12296_v5 = vadd.f32 %v4369_v17, %v4363_v42  ;;  %v13931_v36 = vld [vmem:[#allocation172_spill] sm:$0xff] }
 0xd19   : > { %6348 = vst [vmem:[%s10803_s19 + $0x58] sm:$0xff] %v12294_v38  ;;  %4438 = vmatprep.mubr.f32.mxu0 %v12294_v38  ;;  %4580 = vmatprep.mubr.f32.mxu1 %v12294_v38  ;;  %v13935_v42 = vld [vmem:[#allocation176_spill] sm:$0xff] }
 0xd1a   : > { %6349 = vst [vmem:[%s10803_s19 + $0x60] sm:$0xff] %v12296_v5 }
 0xd21   : > { %v10033_v19 = vpop.eup %10032 }
 0xd22   : > { %4439 = vmatmul.mubr.f32.vlgmr.msra.gmra.mrb[40].mxu0 %v10033_v19  ;;  %4581 = vmatmul.mubr.f32.vlgmr.msra.gmra.mrb[44].mxu1 %v10033_v19 }
 0xd23   : > { %8955 = vmatpush1.bf16.msra.mxu0 %v13711_v45  ;;  %9051 = vmatpush3.bf16.msra.mxu1 %v13712_v31 }
 0xd24   : > { %8957 = vmatprep.subr.bf16.mxu0 %v13713_v7  ;;  %9053 = vmatprep.subr.bf16.mxu1 %v13714_v58 }
 0xd27   : > { %8959 = vmatpush1.bf16.msra.mxu0 %v13715_v53  ;;  %9055 = vmatpush3.bf16.msra.mxu1 %v13926_v20 }
 0xd28   : > { %8961 = vmatprep.subr.bf16.mxu0 %v13927_v3  ;;  %9057 = vmatprep.subr.bf16.mxu1 %v13928_v11 }
 0xd2b   : > { %8963 = vmatpush1.bf16.msra.mxu0 %v13929_v57  ;;  %9059 = vmatpush3.bf16.msra.mxu1 %v13720_v43 }
 0xd2c   : > { %8965 = vmatprep.subr.bf16.mxu0 %v13930_v29  ;;  %9061 = vmatprep.subr.bf16.mxu1 %v13931_v36 }
 0xd2f   : > { %8967 = vmatpush1.bf16.msra.mxu0 %v13932_v2  ;;  %9063 = vmatpush3.bf16.msra.mxu1 %v13933_v55  ;;  %v13937_v55 = vld [vmem:[#allocation180_spill] sm:$0xff]  ;;  %v13938_v2 = vld [vmem:[#allocation181_spill] sm:$0xff] }
 0xd30   : > { %8969 = vmatprep.subr.bf16.mxu0 %v13934_v28  ;;  %9065 = vmatprep.subr.bf16.mxu1 %v13935_v42  ;;  %v13939_v28 = vld [vmem:[#allocation182_spill] sm:$0xff]  ;;  %v13940_v42 = vld [vmem:[#allocation183_spill] sm:$0xff] }
 0xd33   : > { %8971 = vmatpush1.bf16.msra.mxu0 %v13727_v23  ;;  %9067 = vmatpush3.bf16.msra.mxu1 %v13728_v12 }
 0xd34   : > { %v4358_v44 = vpop.f32.mrb[42].mxu1  ;;  %8973 = vmatprep.subr.bf16.mxu0 %v11467_v6  ;;  %9069 = vmatprep.subr.bf16.mxu1 %v13936_v49  ;;  %v13959_v49 = vld [vmem:[#allocation196_spill] sm:$0xff] }
 0xd35   : > { %v4370_v41 = vmul.f32 %v4367_v10, %v4358_v44  ;;  %v7425_v17 = vpop.f32.mrb[43].mxu1  ;;  %v13942_v10 = vld [vmem:[#allocation185_spill] sm:$0xff]  ;;  %v13944_v44 = vld [vmem:[#allocation187_spill] sm:$0xff] }
 0xd36   : > { %v13946_v17 = vld [vmem:[#allocation189_spill] sm:$0xff] }
 0xd37   : > { %v12324_v19 = vadd.f32 %v4370_v41, %v4364_v56  ;;  %8975 = vmatpush1.bf16.msra.mxu0 %v13937_v55  ;;  %9071 = vmatpush3.bf16.msra.mxu1 %v13938_v2  ;;  %v13943_v56 = vld [vmem:[#allocation186_spill] sm:$0xff]  ;;  %v13945_v41 = vld [vmem:[#allocation188_spill] sm:$0xff]  ;;  %v13949_v2 = vld [vmem:[#allocation191_spill] sm:$0xff] }
 0xd38   : > { %8977 = vmatprep.subr.bf16.mxu0 %v13939_v28  ;;  %9073 = vmatprep.subr.bf16.mxu1 %v13940_v42  ;;  %v13947_v28 = vld [vmem:[#allocation190_spill] sm:$0xff]  ;;  %v13950_v55 = vld [vmem:[#allocation207_spill] sm:$0xff] }
 0xd39   : > { %6350 = vst [vmem:[%s10803_s19 + $0x68] sm:$0xff] %v12324_v19  ;;  %4509 = vmatprep.mubr.f32.mxu0 %v12324_v19  ;;  %4650 = vmatprep.mubr.f32.mxu1 %v12324_v19  ;;  %v13948_v42 = vld [vmem:[#allocation206_spill] sm:$0xff] }
 0xd3b   : > { %8979 = vmatpush1.bf16.msra.mxu0 %v13941_v54  ;;  %9075 = vmatpush3.bf16.msra.mxu1 %v13942_v10  ;;  %v13951_v54 = vld [vmem:[#allocation192_spill] sm:$0xff] }
 0xd3c   : > { %8981 = vmatprep.subr.bf16.mxu0 %v13943_v56  ;;  %9077 = vmatprep.subr.bf16.mxu1 %v13944_v44  ;;  %v13952_v10 = vld [vmem:[#allocation208_spill] sm:$0xff]  ;;  %v13953_v56 = vld [vmem:[#allocation193_spill] sm:$0xff] }
 0xd3d   : > { %v13954_v44 = vld [vmem:[#allocation209_spill] sm:$0xff] }
 0xd3f   : > { %8983 = vmatpush1.bf16.msra.mxu0 %v13945_v41  ;;  %9079 = vmatpush3.bf16.msra.mxu1 %v13946_v17  ;;  %v13955_v41 = vld [vmem:[#allocation194_spill] sm:$0xff] }
 0xd40   : > { %8985 = vmatprep.subr.bf16.mxu0 %v13947_v28  ;;  %9081 = vmatprep.subr.bf16.mxu1 %v13948_v42  ;;  %v13956_v17 = vld [vmem:[#allocation210_spill] sm:$0xff]  ;;  %v13957_v28 = vld [vmem:[#allocation195_spill] sm:$0xff] }
 0xd41   : > { %v13958_v42 = vld [vmem:[#allocation211_spill] sm:$0xff] }
 0xd42   : > { %4651 = vmatmul.mubr.f32.vlgmr.msra.gmra.mrb[46].mxu1 %v12296_v5 }
 0xd43   : > { %8987 = vmatpush1.bf16.msra.mxu0 %v13949_v2  ;;  %9083 = vmatpush3.bf16.msra.mxu1 %v13950_v55  ;;  %v13960_v2 = vld [vmem:[#allocation212_spill] sm:$0xff]  ;;  %v13961_v55 = vld [vmem:[#allocation197_spill] sm:$0xff] }
 0xd44   : > { %8989 = vmatprep.subr.bf16.mxu0 %v13951_v54  ;;  %9085 = vmatprep.subr.bf16.mxu1 %v13952_v10  ;;  %v13962_v54 = vld [vmem:[#allocation213_spill] sm:$0xff]  ;;  %v13963_v10 = vld [vmem:[#allocation198_spill] sm:$0xff] }
 0xd47   : > { %8991 = vmatpush1.bf16.msra.mxu0 %v13953_v56  ;;  %9087 = vmatpush3.bf16.msra.mxu1 %v13954_v44  ;;  %v13964_v56 = vld [vmem:[#allocation214_spill] sm:$0xff]  ;;  %v13965_v44 = vld [vmem:[#allocation199_spill] sm:$0xff] }
 0xd48   : > { %8993 = vmatprep.subr.bf16.mxu0 %v13955_v41  ;;  %9089 = vmatprep.subr.bf16.mxu1 %v13956_v17  ;;  %v13966_v41 = vld [vmem:[#allocation215_spill] sm:$0xff]  ;;  %v13967_v17 = vld [vmem:[#allocation200_spill] sm:$0xff] }
 0xd4b   : > { %8995 = vmatpush1.bf16.msra.mxu0 %v13957_v28  ;;  %9091 = vmatpush3.bf16.msra.mxu1 %v13958_v42  ;;  %v13968_v42 = vld [vmem:[#allocation201_spill] sm:$0xff] }
 0xd4c   : > { %8997 = vmatprep.subr.bf16.mxu0 %v13959_v49  ;;  %9093 = vmatprep.subr.bf16.mxu1 %v13960_v2  ;;  %v13969_v2 = vld [vmem:[#allocation202_spill] sm:$0xff] }
 0xd4f   : > { %8999 = vmatpush1.bf16.msra.mxu0 %v13961_v55  ;;  %9095 = vmatpush3.bf16.msra.mxu1 %v13962_v54  ;;  %v13970_v54 = vld [vmem:[#allocation203_spill] sm:$0xff] }
 0xd50   : > { %9001 = vmatprep.subr.bf16.mxu0 %v13963_v10  ;;  %9097 = vmatprep.subr.bf16.mxu1 %v13964_v56  ;;  %v13971_v10 = vld [vmem:[#allocation219_spill] sm:$0xff]  ;;  %v13972_v56 = vld [vmem:[#allocation204_spill] sm:$0xff] }
 0xd53   : > { %9003 = vmatpush1.bf16.msra.mxu0 %v13965_v44  ;;  %9099 = vmatpush3.bf16.msra.mxu1 %v13966_v41  ;;  %v13973_v44 = vld [vmem:[#allocation220_spill] sm:$0xff]  ;;  %v13974_v41 = vld [vmem:[#allocation205_spill] sm:$0xff] }
 0xd54   : > { %9005 = vmatprep.subr.bf16.mxu0 %v13967_v17  ;;  %9101 = vmatprep.subr.bf16.mxu1 %v13759_v30  ;;  %v13975_v17 = vld [vmem:[#allocation221_spill] sm:$0xff] }
 0xd57   : > { %9007 = vmatpush1.bf16.msra.mxu0 %v13968_v42  ;;  %9103 = vmatpush3.bf16.msra.mxu1 %v13761_v1  ;;  %v13976_v42 = vld [vmem:[#allocation230_spill] sm:$0xff]  ;;  %v13987_v1 = vld [vmem:[#allocation248_spill] sm:$0xff] }
 0xd58   : > { %9009 = vmatprep.subr.bf16.mxu0 %v13969_v2  ;;  %9105 = vmatprep.subr.bf16.mxu1 %v13763_v61  ;;  %v13983_v61 = vld [vmem:[#allocation242_spill] sm:$0xff]  ;;  %v13985_v2 = vld [vmem:[#allocation245_spill] sm:$0xff] }
 0xd5b   : > { %9011 = vmatpush1.bf16.msra.mxu0 %v13970_v54  ;;  %9107 = vmatpush3.bf16.msra.mxu1 %v13971_v10  ;;  %v13977_v54 = vld [vmem:[#allocation233_spill] sm:$0xff]  ;;  %v13978_v10 = vld [vmem:[#allocation234_spill] sm:$0xff] }
 0xd5c   : > { %9013 = vmatprep.subr.bf16.mxu0 %v13972_v56  ;;  %9109 = vmatprep.subr.bf16.mxu1 %v13973_v44  ;;  %v13979_v56 = vld [vmem:[#allocation236_spill] sm:$0xff]  ;;  %v13980_v44 = vld [vmem:[#allocation237_spill] sm:$0xff] }
 0xd5f   : > { %9015 = vmatpush1.bf16.msra.mxu0 %v13974_v41  ;;  %9111 = vmatpush3.bf16.msra.mxu1 %v13975_v17  ;;  %v13981_v41 = vld [vmem:[#allocation239_spill] sm:$0xff]  ;;  %v13982_v17 = vld [vmem:[#allocation240_spill] sm:$0xff] }
 0xd60   : > { %9112 = vmatprep.subr.bf16.mxu1 %v13554_v50  ;;  %9137 = vmatprep.subr.bf16.mxu0 %v13976_v42  ;;  %v13984_v42 = vld [vmem:[#allocation243_spill] sm:$0xff] }
 0xd62   : > { %4510 = vmatmul.mubr.f32.vlgmr.msra.gmra.mrb[40].mxu0 %v12296_v5 }
 0xd63   : > { %9139 = vmatpush1.bf16.msra.mxu0 %v13771_v18  ;;  %4872 = vmatprep.mubr.f32.mxu0 %v13403_v62  ;;  %v13986_v18 = vld [vmem:[#allocation246_spill] sm:$0xff] }
 0xd64   : > { %9141 = vmatprep.subr.bf16.mxu0 %v13977_v54 }
 0xd67   : > { %9143 = vmatpush1.bf16.msra.mxu0 %v13978_v10  ;;  %v13988_v10 = vld [vmem:[#allocation250_spill] sm:$0xff] }
 0xd68   : > { %9145 = vmatprep.subr.bf16.mxu0 %v13979_v56 }
 0xd6b   : > { %9147 = vmatpush1.bf16.msra.mxu0 %v13980_v44 }
 0xd6c   : > { %9149 = vmatprep.subr.bf16.mxu0 %v13981_v41 }
 0xd6f   : > { %9151 = vmatpush1.bf16.msra.mxu0 %v13982_v17 }
 0xd70   : > { %9153 = vmatprep.subr.bf16.mxu0 %v13983_v61 }
 0xd73   : > { %9155 = vmatpush1.bf16.msra.mxu0 %v13984_v42 }
 0xd74   : > { %9157 = vmatprep.subr.bf16.mxu0 %v13985_v2 }
 0xd77   : > { %9159 = vmatpush1.bf16.msra.mxu0 %v13986_v18 }
 0xd78   : > { %9161 = vmatprep.subr.bf16.mxu0 %v13987_v1 }
 0xd7b   : > { %9163 = vmatpush1.bf16.msra.mxu0 %v11716_v24 }
 0xd7c   : > { %9165 = vmatprep.subr.bf16.mxu0 %v13988_v10 }
 0xd7f   : > { %9167 = vmatpush1.bf16.msra.mxu0 %v11726_v16 }
 0xd80   : > { %9193 = vmatprep.subr.bf16.mxu0 %v10832_v37  ;;  %v13989_v37 = vld [vmem:[#allocation225_spill] sm:$0xff] }
 0xdf5   : > { %v6786_v41 = vpop.f32.mrb[44].mxu1 }
 0xdf6   : > { %v6787_v17 = vpop.f32.mrb[45].mxu1 }
 0xdf7   : > { %v6788_v44 = vadd.f32 %v6787_v17, %v6786_v41  ;;  %v13998_v41 = vld [vmem:[#allocation244_spill] sm:$0xff]  ;;  %v13999_v17 = vld [vmem:[#allocation247_spill] sm:$0xff] }
 0xe15   : > { %v6821_v61 = vpop.f32.mrb[46].mxu1 }
 0xe16   : > { %v6822_v56 = vpop.f32.mrb[47].mxu1 }
 0xe17   : > { %v6823_v42 = vadd.f32 %v6822_v56, %v6821_v61  ;;  %v13991_v61 = vld [vmem:[#allocation227_spill] sm:$0xff]  ;;  %v13996_v56 = vld [vmem:[#allocation238_spill] sm:$0xff] }
 0xe19   : > { %v4653_v54 = vadd.f32 %v6823_v42, %v6788_v44  ;;  %v13994_v42 = vld [vmem:[#allocation232_spill] sm:$0xff]  ;;  %v13997_v44 = vld [vmem:[#allocation241_spill] sm:$0xff] }
 0xe35   : > { %v4511_v2 = vpop.f32.mrb[40].mxu0 }
 0xe36   : > { %v4513_v30 = vpop.f32.mrb[41].mxu0 }
 0xe37   : > { %10034 = vtanh.f32 %v4513_v30  ;;  %v13993_v30 = vld [vmem:[#allocation229_spill] sm:$0xff] }
 0xe38   : > { %10036 = vtanh.f32 %v4511_v2 }
 0xe39   : > { %10038 = vtanh.f32 %v4653_v54  ;;  %v13995_v54 = vld [vmem:[#allocation235_spill] sm:$0xff] }
 0xe41   : > { %v10035_v1 = vpop.eup %10034 }
 0xe42   : > { %v10037_v18 = vpop.eup %10036  ;;  %4723 = vmatprep.mubr.f32.mxu1 %v10035_v1  ;;  %v13990_v1 = vld [vmem:[#allocation226_spill] sm:$0xff] }
 0xe43   : > { %4724 = vmatmul.mubr.f32.vlgmr.msra.gmra.mrb[48].mxu1 %v10037_v18  ;;  %v13992_v18 = vld [vmem:[#allocation228_spill] sm:$0xff]  ;;  %v10039_v2 = vpop.eup %10038 }
 0xe44   : > { %9114 = vmatpush3.bf16.msra.mxu1 %v13779_v15  ;;  %7458 = vmatprep.mubr.msk.f32.mxu1 %vm10425_vm1, %v13403_v62 }
 0xe45   : > { %9115 = vmatprep.subr.bf16.mxu1 %v13554_v50 }
 0xe48   : > { %9117 = vmatpush3.bf16.msra.mxu1 %v13780_v35 }
 0xe49   : > { %9118 = vmatprep.subr.bf16.mxu1 %v13554_v50 }
 0xe4c   : > { %9120 = vmatpush3.bf16.msra.mxu1 %v13781_v32 }
 0xe4d   : > { %9121 = vmatprep.subr.bf16.mxu1 %v13554_v50 }
 0xe50   : > { %9123 = vmatpush3.bf16.msra.mxu1 %v13989_v37 }
 0xe51   : > { %9124 = vmatprep.subr.bf16.mxu1 %v13554_v50 }
 0xe54   : > { %9126 = vmatpush3.bf16.msra.mxu1 %v13990_v1 }
 0xe55   : > { %9127 = vmatprep.subr.bf16.mxu1 %v13554_v50 }
 0xe58   : > { %9129 = vmatpush3.bf16.msra.mxu1 %v13991_v61 }
 0xe59   : > { %9130 = vmatprep.subr.bf16.mxu1 %v13554_v50 }
 0xe5c   : > { %9132 = vmatpush3.bf16.msra.mxu1 %v13992_v18 }
 0xe5d   : > { %9133 = vmatprep.subr.bf16.mxu1 %v13554_v50 }
 0xe60   : > { %9135 = vmatpush3.bf16.msra.mxu1 %v13993_v30 }
 0xe61   : > { %9168 = vmatprep.subr.bf16.mxu1 %v13554_v50 }
 0xe63   : > { %7459 = vmatmul.mubr.f32.vlgmr.msra.gmra.mrb[50].mxu1 %v10039_v2  ;;  %v14000_v2 = vld [vmem:[#allocation249_spill] sm:$0xff] }
 0xe64   : > { %9170 = vmatpush3.bf16.msra.mxu1 %v13994_v42  ;;  %7493 = vmatprep.mubr.msk.f32.mxu1 %vm10425_vm1, %v13403_v62 }
 0xe65   : > { %9171 = vmatprep.subr.bf16.mxu1 %v13554_v50 }
 0xe68   : > { %9173 = vmatpush3.bf16.msra.mxu1 %v13995_v54  ;;  %v14001_v54 = vld [vmem:[#allocation251_spill] sm:$0xff] }
 0xe69   : > { %9174 = vmatprep.subr.bf16.mxu1 %v13554_v50 }
 0xe6c   : > { %9176 = vmatpush3.bf16.msra.mxu1 %v13996_v56  ;;  %v14002_v56 = vld [vmem:[#allocation24_spill] sm:$0xff] }
 0xe6d   : > { %9177 = vmatprep.subr.bf16.mxu1 %v13554_v50 }
 0xe70   : > { %9179 = vmatpush3.bf16.msra.mxu1 %v13997_v44 }
 0xe71   : > { %9180 = vmatprep.subr.bf16.mxu1 %v13554_v50 }
 0xe74   : > { %9182 = vmatpush3.bf16.msra.mxu1 %v13998_v41 }
 0xe75   : > { %9183 = vmatprep.subr.bf16.mxu1 %v13554_v50 }
 0xe78   : > { %9185 = vmatpush3.bf16.msra.mxu1 %v13999_v17 }
 0xe79   : > { %9186 = vmatprep.subr.bf16.mxu1 %v13554_v50 }
 0xe7c   : > { %9188 = vmatpush3.bf16.msra.mxu1 %v14000_v2 }
 0xe7d   : > { %9189 = vmatprep.subr.bf16.mxu1 %v13554_v50 }
 0xe80   : > { %9191 = vmatpush3.bf16.msra.mxu1 %v14001_v54 }
 0xe81   : > { %9225 = vmatprep.subr.bf16.mxu1 %v14002_v56 }
 0xf16   : > { %v6856_v42 = vpop.f32.mrb[48].mxu1 }
 0xf17   : > { %v6857_v44 = vpop.f32.mrb[49].mxu1 }
 0xf18   : > { %v6858_v30 = vadd.f32 %v6857_v44, %v6856_v42 }
 0xf1a   : > { %v4726_v18 = vadd.f32 %v12086_v27, %v6858_v30 }
 0xf36   : > { %v4795_v41 = vpop.f32.mrb[50].mxu1 }
 0xf37   : > { %v4796_v61 = vadd.f32 %v4795_v41, %v4726_v18  ;;  %v7460_v1 = vpop.f32.mrb[51].mxu1 }
 0xf39   : > { %4799 = vmax.xlane.f32.xlu0 %v4796_v61 }
 0xfc6   : > { %v4800_v17 = vpop.xlane.xlu0 %4799 }
 0xfc7   : > { %v4801_v37 = vsub.f32 %v4796_v61, %v4800_v17 }
 0xfc9   : > { %v4802_v32 = vmul.f32 1.442695, %v4801_v37 }
 0xfcb   : > { %10040 = vpow2.f32 %v4802_v32 }
 0xfd5   : > { %v10041_v2 = vpop.eup %10040 }
 0xfd6   : > { %4804 = vadd.xlane.f32.xlu1 %v10041_v2 }
0x1063   : > { %v4805_v35 = vpop.xlane.xlu1 %4804 }
0x1064   : > { %10042 = vrcp.f32 %v4805_v35 }
0x106e   : > { %v10043_v54 = vpop.eup %10042 }
0x106f   : > { %v4807_v56 = vmul.f32 %v10043_v54, %v10041_v2  ;;  %v14018_v2 = vld [vmem:[#allocation160_spill] sm:$0xff] }
0x1071   : > { %4873 = vmatmul.mubr.f32.vlgmr.msra.gmra.mrb[42].mxu0 %v4807_v56  ;;  %6351 = vst [vmem:[%s10803_s19 + $0x70] sm:$0xff] %v4807_v56  ;;  %7494 = vmatmul.mubr.f32.vlgmr.msra.gmra.mrb[52].mxu1 %v4807_v56 }
0x1072   : > { %9195 = vmatpush1.bf16.msra.mxu0 %v10863_v47  ;;  %9227 = vmatpush1.bf16.msra.mxu1 %v10865_v48  ;;  %v14003_v47 = vld [vmem:[#allocation25_spill] sm:$0xff]  ;;  %v14004_v48 = vld [vmem:[#allocation26_spill] sm:$0xff] }
0x1073   : > { %9197 = vmatprep.subr.bf16.mxu0 %v10867_v51  ;;  %9229 = vmatprep.subr.bf16.mxu1 %v10869_v52  ;;  %v14005_v51 = vld [vmem:[#allocation27_spill] sm:$0xff]  ;;  %v14006_v52 = vld [vmem:[#allocation28_spill] sm:$0xff] }
0x1074   : > { %5039 = vmatprep.mubr.f32.mxu0 %v13403_v62  ;;  %5110 = vmatprep.mubr.f32.mxu1 %v13403_v62 }
0x1076   : > { %9199 = vmatpush1.bf16.msra.mxu0 %v10877_v59  ;;  %9231 = vmatpush1.bf16.msra.mxu1 %v10879_v60  ;;  %v14007_v59 = vld [vmem:[#allocation29_spill] sm:$0xff]  ;;  %v14008_v60 = vld [vmem:[#allocation30_spill] sm:$0xff] }
0x1077   : > { %9201 = vmatprep.subr.bf16.mxu0 %v10883_v63  ;;  %9233 = vmatprep.subr.bf16.mxu1 %v10885_v0  ;;  %v14009_v63 = vld [vmem:[#allocation31_spill] sm:$0xff]  ;;  %v14010_v0 = vld [vmem:[#allocation32_spill] sm:$0xff] }
0x107a   : > { %9203 = vmatpush1.bf16.msra.mxu0 %v10896_v8  ;;  %9235 = vmatpush1.bf16.msra.mxu1 %v10898_v9  ;;  %v14011_v8 = vld [vmem:[#allocation33_spill] sm:$0xff]  ;;  %v14012_v9 = vld [vmem:[#allocation34_spill] sm:$0xff] }
0x107b   : > { %9205 = vmatprep.subr.bf16.mxu0 %v10902_v13  ;;  %9237 = vmatprep.subr.bf16.mxu1 %v10904_v14  ;;  %v14013_v13 = vld [vmem:[#allocation35_spill] sm:$0xff]  ;;  %v14014_v14 = vld [vmem:[#allocation252_spill] sm:$0xff] }
0x107e   : > { %9207 = vmatpush1.bf16.msra.mxu0 %v10912_v21  ;;  %9239 = vmatpush1.bf16.msra.mxu1 %v10914_v22  ;;  %v14015_v21 = vld [vmem:[#allocation152_spill] sm:$0xff] }
0x107f   : > { %9209 = vmatprep.subr.bf16.mxu0 %v10918_v25  ;;  %9241 = vmatprep.subr.bf16.mxu1 %v10920_v26  ;;  %v9738_v22 = vadd.f32 %v14015_v21, %v14014_v14  ;;  %v14028_v21 = vld [vmem:[#allocation45_spill] sm:$0xff] }
0x1081   : > { %v6345_v25 = vmul.f32 -1.442695, %v9738_v22  ;;  %v14029_v22 = vld [vmem:[#allocation46_spill] sm:$0xff] }
0x1082   : > { %9211 = vmatpush1.bf16.msra.mxu0 %v10927_v33  ;;  %9243 = vmatpush1.bf16.msra.mxu1 %v10929_v34  ;;  %v14016_v33 = vld [vmem:[#allocation253_spill] sm:$0xff] }
0x1083   : > { %9213 = vmatprep.subr.bf16.mxu0 %v10933_v39  ;;  %9245 = vmatprep.subr.bf16.mxu1 %v10935_v40  ;;  %10044 = vpow2.f32 %v6345_v25  ;;  %v14017_v34 = vld [vmem:[#allocation161_spill] sm:$0xff]  ;;  %v14030_v25 = vld [vmem:[#allocation47_spill] sm:$0xff] }
0x1084   : > { %v9739_v39 = vadd.f32 %v14017_v34, %v14016_v33  ;;  %v14032_v34 = vld [vmem:[#allocation49_spill] sm:$0xff] }
0x1086   : > { %9215 = vmatpush1.bf16.msra.mxu0 %v10940_v46  ;;  %9247 = vmatpush1.bf16.msra.mxu1 %v14003_v47  ;;  %v6346_v46 = vmul.f32 -1.442695, %v9739_v39  ;;  %v14033_v39 = vld [vmem:[#allocation50_spill] sm:$0xff] }
0x1087   : > { %9217 = vmatprep.subr.bf16.mxu0 %v14004_v48  ;;  %9249 = vmatprep.subr.bf16.mxu1 %v14005_v51 }
0x108a   : > { %9219 = vmatpush1.bf16.msra.mxu0 %v14006_v52  ;;  %9251 = vmatpush1.bf16.msra.mxu1 %v14007_v59  ;;  %v14021_v59 = vld [vmem:[#allocation38_spill] sm:$0xff] }
0x108b   : > { %9221 = vmatprep.subr.bf16.mxu0 %v14008_v60  ;;  %9253 = vmatprep.subr.bf16.mxu1 %v14009_v63  ;;  %v14022_v60 = vld [vmem:[#allocation39_spill] sm:$0xff]  ;;  %v14023_v63 = vld [vmem:[#allocation40_spill] sm:$0xff] }
0x108d   : > { %v10045_v26 = vpop.eup %10044 }
0x108e   : > { %9223 = vmatpush1.bf16.msra.mxu0 %v14010_v0  ;;  %9255 = vmatpush1.bf16.msra.mxu1 %v14011_v8  ;;  %v4211_v40 = vadd.f32 1.0, %v10045_v26  ;;  %v14024_v0 = vld [vmem:[#allocation41_spill] sm:$0xff]  ;;  %v14025_v8 = vld [vmem:[#allocation42_spill] sm:$0xff]  ;;  %v14031_v26 = vld [vmem:[#allocation48_spill] sm:$0xff] }
0x108f   : > { %9257 = vmatprep.subr.bf16.mxu0 %v14012_v9  ;;  %9289 = vmatprep.subr.bf16.mxu1 %v14013_v13  ;;  %v14026_v9 = vld [vmem:[#allocation43_spill] sm:$0xff]  ;;  %v14027_v13 = vld [vmem:[#allocation44_spill] sm:$0xff] }
0x1090   : > { %10046 = vrcp.f32 %v4211_v40  ;;  %v14034_v40 = vld [vmem:[#allocation51_spill] sm:$0xff] }
0x1091   : > { %10048 = vpow2.f32 %v6346_v46  ;;  %v14035_v46 = vld [vmem:[#allocation52_spill] sm:$0xff] }
0x109a   : > { %v10047_v27 = vpop.eup %10046 }
0x109b   : > { %v10049_v30 = vpop.eup %10048  ;;  %v4954_v44 = vsub.f32 1.0, %v10047_v27 }
0x109c   : > { %v4217_v17 = vadd.f32 1.0, %v10049_v30  ;;  %v14043_v30 = vld [vmem:[#allocation60_spill] sm:$0xff] }
0x109d   : > { %v4955_v56 = vmul.f32 %v4954_v44, %v14018_v2  ;;  %v14046_v44 = vld [vmem:[#allocation63_spill] sm:$0xff]  ;;  %v14049_v2 = vld [vmem:[#allocation66_spill] sm:$0xff] }
0x109e   : > { %10050 = vrcp.f32 %v4217_v17  ;;  %v14048_v17 = vld [vmem:[#allocation65_spill] sm:$0xff] }
0x1144   : > { %v4874_v35 = vpop.f32.mrb[42].mxu0  ;;  %v4945_v32 = vpop.f32.mrb[52].mxu1 }
0x1145   : > { %v4949_v37 = vmul.f32 %v4874_v35, %v12294_v38  ;;  %v4876_v1 = vpop.f32.mrb[43].mxu0  ;;  %v7495_v61 = vpop.f32.mrb[53].mxu1  ;;  %v4951_v42 = vmul.f32 %v4945_v32, %v12324_v19  ;;  %v14020_v19 = vld [vmem:[#allocation37_spill] sm:$0xff]  ;;  %v14037_v32 = vld [vmem:[#allocation54_spill] sm:$0xff] }
0x1146   : > { %v4950_v18 = vmul.f32 %v4876_v1, %v12296_v5  ;;  %v10051_v38 = vpop.eup %10050  ;;  %v14019_v5 = vld [vmem:[#allocation36_spill] sm:$0xff]  ;;  %v14036_v35 = vld [vmem:[#allocation53_spill] sm:$0xff]  ;;  %v14041_v61 = vld [vmem:[#allocation58_spill] sm:$0xff] }
0x1147   : > { %v14040_v1 = vld [vmem:[#allocation57_spill] sm:$0xff] }
0x1148   : > { %v4952_v54 = vadd.f32 %v4950_v18, %v4949_v37  ;;  %v14039_v37 = vld [vmem:[#allocation56_spill] sm:$0xff]  ;;  %v14042_v18 = vld [vmem:[#allocation59_spill] sm:$0xff] }
0x114a   : > { %v4953_v41 = vadd.f32 %v4952_v54, %v4951_v42  ;;  %v14044_v42 = vld [vmem:[#allocation61_spill] sm:$0xff]  ;;  %v14045_v54 = vld [vmem:[#allocation62_spill] sm:$0xff] }
0x114c   : > { %v4956_v47 = vmul.f32 %v10047_v27, %v4953_v41  ;;  %v14038_v27 = vld [vmem:[#allocation55_spill] sm:$0xff]  ;;  %v14047_v41 = vld [vmem:[#allocation64_spill] sm:$0xff] }
0x114e   : > { %v12473_v48 = vadd.f32 %v4956_v47, %v4955_v56  ;;  %v14050_v56 = vld [vmem:[#allocation67_spill] sm:$0xff]  ;;  %v14051_v47 = vld [vmem:[#allocation68_spill] sm:$0xff] }
0x1150   : > { %10052 = vtanh.f32 %v12473_v48 }
0x115a   : > { %v10053_v51 = vpop.eup %10052 }
0x115b   : > { %v12476_v52 = vmul.f32 %v10053_v51, %v10051_v38  ;;  %v14052_v38 = vld [vmem:[#allocation69_spill] sm:$0xff]  ;;  %v14053_v51 = vld [vmem:[#allocation70_spill] sm:$0xff] }
0x115d   : > { %6347 = vst [vmem:[%s10803_s19 + $0x50] sm:$0xff] %v12476_v52  ;;  %5040 = vmatmul.mubr.f32.vlgmr.msra.gmra.mrb[44].mxu0 %v12476_v52  ;;  %5111 = vmatmul.mubr.f32.vlgmr.msra.gmra.mrb[10].mxu1 %v12476_v52 }
0x115e   : > { %9259 = vmatpush1.bf16.msra.mxu0 %v14019_v5  ;;  %9291 = vmatpush1.bf16.msra.mxu1 %v14020_v19  ;;  %v14054_v5 = vld [vmem:[#allocation71_spill] sm:$0xff]  ;;  %v14055_v19 = vld [vmem:[#allocation72_spill] sm:$0xff] }
0x115f   : > { %9261 = vmatprep.subr.bf16.mxu0 %v14021_v59  ;;  %9293 = vmatprep.subr.bf16.mxu1 %v14022_v60  ;;  %v14056_v59 = vld [vmem:[#allocation73_spill] sm:$0xff]  ;;  %v14057_v60 = vld [vmem:[#allocation74_spill] sm:$0xff] }
0x1160   : > { %5181 = vmatprep.mubr.f32.mxu0 %v13403_v62  ;;  %5252 = vmatprep.mubr.f32.mxu1 %v13403_v62 }
0x1162   : > { %9263 = vmatpush1.bf16.msra.mxu0 %v14023_v63  ;;  %9295 = vmatpush1.bf16.msra.mxu1 %v14024_v0  ;;  %v14058_v63 = vld [vmem:[#allocation75_spill] sm:$0xff]  ;;  %v14059_v0 = vld [vmem:[#allocation76_spill] sm:$0xff] }
0x1163   : > { %9265 = vmatprep.subr.bf16.mxu0 %v14025_v8  ;;  %9297 = vmatprep.subr.bf16.mxu1 %v14026_v9  ;;  %v14060_v8 = vld [vmem:[#allocation77_spill] sm:$0xff]  ;;  %v14061_v9 = vld [vmem:[#allocation78_spill] sm:$0xff] }
0x1166   : > { %9267 = vmatpush1.bf16.msra.mxu0 %v14027_v13  ;;  %9299 = vmatpush1.bf16.msra.mxu1 %v14028_v21  ;;  %v14062_v13 = vld [vmem:[#allocation79_spill] sm:$0xff]  ;;  %v14063_v21 = vld [vmem:[#allocation80_spill] sm:$0xff] }
0x1167   : > { %9269 = vmatprep.subr.bf16.mxu0 %v14029_v22  ;;  %9301 = vmatprep.subr.bf16.mxu1 %v14030_v25  ;;  %v14064_v22 = vld [vmem:[#allocation81_spill] sm:$0xff]  ;;  %v14065_v25 = vld [vmem:[#allocation82_spill] sm:$0xff] }
0x116a   : > { %9271 = vmatpush1.bf16.msra.mxu0 %v14031_v26  ;;  %9303 = vmatpush1.bf16.msra.mxu1 %v14032_v34  ;;  %v14066_v26 = vld [vmem:[#allocation83_spill] sm:$0xff]  ;;  %v14067_v34 = vld [vmem:[#allocation84_spill] sm:$0xff] }
0x116b   : > { %9273 = vmatprep.subr.bf16.mxu0 %v14033_v39  ;;  %9305 = vmatprep.subr.bf16.mxu1 %v14034_v40  ;;  %v14068_v39 = vld [vmem:[#allocation85_spill] sm:$0xff]  ;;  %v14069_v40 = vld [vmem:[#allocation86_spill] sm:$0xff] }
0x116e   : > { %9275 = vmatpush1.bf16.msra.mxu0 %v14035_v46  ;;  %9307 = vmatpush1.bf16.msra.mxu1 %v14036_v35  ;;  %v14070_v46 = vld [vmem:[#allocation87_spill] sm:$0xff]  ;;  %v14071_v35 = vld [vmem:[#allocation88_spill] sm:$0xff] }
0x116f   : > { %9277 = vmatprep.subr.bf16.mxu0 %v14037_v32  ;;  %9309 = vmatprep.subr.bf16.mxu1 %v14038_v27  ;;  %v14072_v32 = vld [vmem:[#allocation89_spill] sm:$0xff]  ;;  %v14073_v27 = vld [vmem:[#allocation98_spill] sm:$0xff] }
0x1172   : > { %9279 = vmatpush1.bf16.msra.mxu0 %v14039_v37  ;;  %9311 = vmatpush1.bf16.msra.mxu1 %v14040_v1  ;;  %v14074_v37 = vld [vmem:[#allocation90_spill] sm:$0xff]  ;;  %v14075_v1 = vld [vmem:[#allocation99_spill] sm:$0xff] }
0x1173   : > { %9281 = vmatprep.subr.bf16.mxu0 %v14041_v61  ;;  %9313 = vmatprep.subr.bf16.mxu1 %v14042_v18  ;;  %v14076_v61 = vld [vmem:[#allocation100_spill] sm:$0xff]  ;;  %v14077_v18 = vld [vmem:[#allocation91_spill] sm:$0xff] }
0x1176   : > { %9283 = vmatpush1.bf16.msra.mxu0 %v14043_v30  ;;  %9315 = vmatpush1.bf16.msra.mxu1 %v14044_v42  ;;  %v14078_v30 = vld [vmem:[#allocation101_spill] sm:$0xff]  ;;  %v14080_v42 = vld [vmem:[#allocation92_spill] sm:$0xff] }
0x1177   : > { %9285 = vmatprep.subr.bf16.mxu0 %v14045_v54  ;;  %9317 = vmatprep.subr.bf16.mxu1 %v14046_v44  ;;  %v14081_v54 = vld [vmem:[#allocation103_spill] sm:$0xff]  ;;  %v14082_v44 = vld [vmem:[#allocation104_spill] sm:$0xff] }
0x117a   : > { %9287 = vmatpush1.bf16.msra.mxu0 %v14047_v41  ;;  %9319 = vmatpush1.bf16.msra.mxu1 %v14048_v17  ;;  %v14083_v41 = vld [vmem:[#allocation93_spill] sm:$0xff] }
0x117b   : > { %9320 = vmatprep.subr.bf16.mxu0 %v13554_v50  ;;  %9345 = vmatprep.subr.bf16.mxu1 %v14049_v2  ;;  %v14084_v17 = vld [vmem:[#allocation105_spill] sm:$0xff]  ;;  %v14085_v2 = vld [vmem:[#allocation106_spill] sm:$0xff] }
0x117d   : > { %5182 = vmatmul.mubr.f32.vlgmr.msra.gmra.mrb[10].mxu0 %v12476_v52  ;;  %5253 = vmatmul.mubr.f32.vlgmr.msra.gmra.mrb[18].mxu1 %v12476_v52 }
0x117e   : > { %9322 = vmatpush3.bf16.msra.mxu0 %v14050_v56  ;;  %9347 = vmatpush1.bf16.msra.mxu1 %v14051_v47  ;;  %v14086_v56 = vld [vmem:[#allocation94_spill] sm:$0xff]  ;;  %v14087_v47 = vld [vmem:[#allocation107_spill] sm:$0xff] }
0x117f   : > { %9323 = vmatprep.subr.bf16.mxu0 %v13554_v50  ;;  %9349 = vmatprep.subr.bf16.mxu1 %v14052_v38  ;;  %v14088_v38 = vld [vmem:[#allocation108_spill] sm:$0xff] }
0x1180   : > { %7528 = vmatprep.mubr.msk.f32.mxu0 %vm10425_vm1, %v13403_v62  ;;  %5436 = vmatprep.mubr.f32.mxu1 %v13403_v62 }
0x1182   : > { %9325 = vmatpush3.bf16.msra.mxu0 %v14053_v51  ;;  %9351 = vmatpush1.bf16.msra.mxu1 %v14054_v5  ;;  %v14089_v51 = vld [vmem:[#allocation95_spill] sm:$0xff]  ;;  %v14090_v5 = vld [vmem:[#allocation109_spill] sm:$0xff] }
0x1183   : > { %9326 = vmatprep.subr.bf16.mxu0 %v13554_v50  ;;  %9353 = vmatprep.subr.bf16.mxu1 %v14055_v19  ;;  %v14091_v19 = vld [vmem:[#allocation110_spill] sm:$0xff] }
0x1186   : > { %9328 = vmatpush3.bf16.msra.mxu0 %v14056_v59  ;;  %9355 = vmatpush1.bf16.msra.mxu1 %v14057_v60  ;;  %v14092_v59 = vld [vmem:[#allocation96_spill] sm:$0xff]  ;;  %v14093_v60 = vld [vmem:[#allocation111_spill] sm:$0xff] }
0x1187   : > { %9329 = vmatprep.subr.bf16.mxu0 %v13554_v50  ;;  %9357 = vmatprep.subr.bf16.mxu1 %v14058_v63  ;;  %v14094_v63 = vld [vmem:[#allocation112_spill] sm:$0xff] }
0x118a   : > { %9331 = vmatpush3.bf16.msra.mxu0 %v14059_v0  ;;  %9359 = vmatpush1.bf16.msra.mxu1 %v14060_v8  ;;  %v14095_v0 = vld [vmem:[#allocation97_spill] sm:$0xff] }
0x118b   : > { %9332 = vmatprep.subr.bf16.mxu0 %v13554_v50  ;;  %9361 = vmatprep.subr.bf16.mxu1 %v14061_v9  ;;  %v14096_v8 = vld [vmem:[#allocation113_spill] sm:$0xff]  ;;  %v14097_v9 = vld [vmem:[#allocation115_spill] sm:$0xff] }
0x118e   : > { %9334 = vmatpush3.bf16.msra.mxu0 %v14062_v13  ;;  %9363 = vmatpush1.bf16.msra.mxu1 %v14063_v21  ;;  %v14098_v13 = vld [vmem:[#allocation114_spill] sm:$0xff]  ;;  %v14099_v21 = vld [vmem:[#allocation117_spill] sm:$0xff] }
0x118f   : > { %9335 = vmatprep.subr.bf16.mxu0 %v13554_v50  ;;  %9365 = vmatprep.subr.bf16.mxu1 %v14064_v22  ;;  %v14100_v22 = vld [vmem:[#allocation116_spill] sm:$0xff] }
0x1192   : > { %9337 = vmatpush3.bf16.msra.mxu0 %v14065_v25  ;;  %9367 = vmatpush1.bf16.msra.mxu1 %v14066_v26  ;;  %v14101_v25 = vld [vmem:[#allocation119_spill] sm:$0xff]  ;;  %v14102_v26 = vld [vmem:[#allocation118_spill] sm:$0xff] }
0x1193   : > { %9338 = vmatprep.subr.bf16.mxu0 %v13554_v50  ;;  %9369 = vmatprep.subr.bf16.mxu1 %v14067_v34  ;;  %v14103_v34 = vld [vmem:[#allocation121_spill] sm:$0xff] }
0x1196   : > { %9340 = vmatpush3.bf16.msra.mxu0 %v14068_v39  ;;  %9371 = vmatpush1.bf16.msra.mxu1 %v14069_v40  ;;  %v14104_v39 = vld [vmem:[#allocation120_spill] sm:$0xff]  ;;  %v14105_v40 = vld [vmem:[#allocation123_spill] sm:$0xff] }
0x1197   : > { %9341 = vmatprep.subr.bf16.mxu0 %v13554_v50  ;;  %9373 = vmatprep.subr.bf16.mxu1 %v14070_v46  ;;  %v14106_v46 = vld [vmem:[#allocation122_spill] sm:$0xff] }
0x119a   : > { %9343 = vmatpush3.bf16.msra.mxu0 %v14071_v35  ;;  %9375 = vmatpush1.bf16.msra.mxu1 %v14072_v32  ;;  %v14107_v35 = vld [vmem:[#allocation125_spill] sm:$0xff]  ;;  %v14108_v32 = vld [vmem:[#allocation124_spill] sm:$0xff] }
0x119b   : > { %9376 = vmatprep.subr.bf16.mxu0 %v13554_v50  ;;  %9401 = vmatprep.subr.bf16.mxu1 %v14073_v27  ;;  %v14109_v27 = vld [vmem:[#allocation127_spill] sm:$0xff] }
0x119d   : > { %7529 = vmatmul.mubr.f32.vlgmr.msra.gmra.mrb[46].mxu0 %v12476_v52  ;;  %5437 = vmatmul.mubr.f32.vlgmr.msra.gmra.mrb[54].mxu1 %v12473_v48  ;;  %v14079_v52 = vld [vmem:[#allocation102_spill] sm:$0xff] }
0x119e   : > { %9378 = vmatpush3.bf16.msra.mxu0 %v14074_v37  ;;  %7563 = vmatprep.mubr.msk.f32.mxu0 %vm10425_vm1, %v13403_v62  ;;  %v14110_v37 = vld [vmem:[#allocation126_spill] sm:$0xff] }
0x119f   : > { %9379 = vmatprep.subr.bf16.mxu0 %v13554_v50  ;;  %9403 = vmatpush1.bf16.msra.mxu1 %v14075_v1  ;;  %v14111_v1 = vld [vmem:[#allocation129_spill] sm:$0xff] }
0x11a0   : > { %9405 = vmatprep.subr.bf16.mxu1 %v14076_v61  ;;  %v14112_v61 = vld [vmem:[#allocation128_spill] sm:$0xff] }
0x11a2   : > { %9381 = vmatpush3.bf16.msra.mxu0 %v14077_v18  ;;  %v14113_v18 = vld [vmem:[#allocation131_spill] sm:$0xff] }
0x11a3   : > { %9382 = vmatprep.subr.bf16.mxu0 %v13554_v50  ;;  %9407 = vmatpush1.bf16.msra.mxu1 %v14078_v30  ;;  %v14114_v30 = vld [vmem:[#allocation130_spill] sm:$0xff] }
0x11a4   : > { %9409 = vmatprep.subr.bf16.mxu1 %v14079_v52  ;;  %v14115_v52 = vld [vmem:[#allocation133_spill] sm:$0xff] }
0x11a6   : > { %9384 = vmatpush3.bf16.msra.mxu0 %v14080_v42  ;;  %v14116_v42 = vld [vmem:[#allocation132_spill] sm:$0xff] }
0x11a7   : > { %9385 = vmatprep.subr.bf16.mxu0 %v13554_v50  ;;  %9411 = vmatpush1.bf16.msra.mxu1 %v14081_v54  ;;  %v14117_v54 = vld [vmem:[#allocation135_spill] sm:$0xff] }
0x11a8   : > { %9413 = vmatprep.subr.bf16.mxu1 %v14082_v44  ;;  %v14118_v44 = vld [vmem:[#allocation134_spill] sm:$0xff] }
0x11aa   : > { %9387 = vmatpush3.bf16.msra.mxu0 %v14083_v41  ;;  %v14119_v41 = vld [vmem:[#allocation137_spill] sm:$0xff] }
0x11ab   : > { %9388 = vmatprep.subr.bf16.mxu0 %v13554_v50  ;;  %9415 = vmatpush1.bf16.msra.mxu1 %v14084_v17  ;;  %v14120_v17 = vld [vmem:[#allocation136_spill] sm:$0xff] }
0x11ac   : > { %9417 = vmatprep.subr.bf16.mxu1 %v14085_v2  ;;  %v14121_v2 = vld [vmem:[#allocation139_spill] sm:$0xff] }
0x11ae   : > { %9390 = vmatpush3.bf16.msra.mxu0 %v14086_v56  ;;  %v14122_v56 = vld [vmem:[#allocation138_spill] sm:$0xff] }
0x11af   : > { %9391 = vmatprep.subr.bf16.mxu0 %v13554_v50  ;;  %9419 = vmatpush1.bf16.msra.mxu1 %v14087_v47  ;;  %v14123_v47 = vld [vmem:[#allocation141_spill] sm:$0xff] }
0x11b0   : > { %9421 = vmatprep.subr.bf16.mxu1 %v14088_v38  ;;  %v14124_v38 = vld [vmem:[#allocation140_spill] sm:$0xff] }
0x11b2   : > { %9393 = vmatpush3.bf16.msra.mxu0 %v14089_v51  ;;  %v14125_v51 = vld [vmem:[#allocation144_spill] sm:$0xff] }
0x11b3   : > { %9394 = vmatprep.subr.bf16.mxu0 %v13554_v50  ;;  %9423 = vmatpush1.bf16.msra.mxu1 %v14090_v5  ;;  %v14126_v5 = vld [vmem:[#allocation142_spill] sm:$0xff] }
0x11b4   : > { %9425 = vmatprep.subr.bf16.mxu1 %v14091_v19  ;;  %v14127_v19 = vld [vmem:[#allocation147_spill] sm:$0xff] }
0x11b6   : > { %9396 = vmatpush3.bf16.msra.mxu0 %v14092_v59  ;;  %v14128_v59 = vld [vmem:[#allocation145_spill] sm:$0xff] }
0x11b7   : > { %9397 = vmatprep.subr.bf16.mxu0 %v13554_v50  ;;  %9427 = vmatpush1.bf16.msra.mxu1 %v14093_v60  ;;  %v14129_v60 = vld [vmem:[#allocation149_spill] sm:$0xff] }
0x11b8   : > { %9429 = vmatprep.subr.bf16.mxu1 %v14094_v63  ;;  %v14130_v63 = vld [vmem:[#allocation148_spill] sm:$0xff] }
0x11ba   : > { %9399 = vmatpush3.bf16.msra.mxu0 %v14095_v0  ;;  %v14131_v0 = vld [vmem:[#allocation155_spill] sm:$0xff] }
0x11bb   : > { %9431 = vmatpush1.bf16.msra.mxu1 %v14096_v8  ;;  %9529 = vmatprep.subr.bf16.mxu0 %v14097_v9  ;;  %v14132_v8 = vld [vmem:[#allocation150_spill] sm:$0xff] }
0x11bc   : > { %9433 = vmatprep.subr.bf16.mxu1 %v14098_v13  ;;  %v633_v9 = vadd.f32 %v14132_v8, %v14131_v0  ;;  %v14133_v13 = vld [vmem:[#allocation157_spill] sm:$0xff] }
0x11bd   : > { %7564 = vmatmul.mubr.f32.vlgmr.msra.gmra.mrb[48].mxu0 %v12473_v48 }
0x11be   : > { %9531 = vmatpush3.bf16.msra.mxu0 %v14099_v21  ;;  %v14134_v21 = vld [vmem:[#allocation151_spill] sm:$0xff] }
0x11bf   : > { %9435 = vmatpush1.bf16.msra.mxu1 %v14100_v22  ;;  %9533 = vmatprep.subr.bf16.mxu0 %v14101_v25  ;;  %v635_v22 = vadd.f32 %v14134_v21, %v14133_v13 }
0x11c0   : > { %9437 = vmatprep.subr.bf16.mxu1 %v14102_v26 }
0x11c2   : > { %9535 = vmatpush3.bf16.msra.mxu0 %v14103_v34 }
0x11c3   : > { %9439 = vmatpush1.bf16.msra.mxu1 %v14104_v39  ;;  %9537 = vmatprep.subr.bf16.mxu0 %v14105_v40 }
0x11c4   : > { %9441 = vmatprep.subr.bf16.mxu1 %v14106_v46 }
0x11c6   : > { %9539 = vmatpush3.bf16.msra.mxu0 %v14107_v35 }
0x11c7   : > { %9443 = vmatpush1.bf16.msra.mxu1 %v14108_v32  ;;  %9541 = vmatprep.subr.bf16.mxu0 %v14109_v27  ;;  %v14135_v32 = vld [vmem:[#allocation156_spill] sm:$0xff] }
0x11c8   : > { %9445 = vmatprep.subr.bf16.mxu1 %v14110_v37  ;;  %v14136_v37 = vld [vmem:[#allocation158_spill] sm:$0xff] }
0x11ca   : > { %9543 = vmatpush3.bf16.msra.mxu0 %v14111_v1 }
0x11cb   : > { %9447 = vmatpush1.bf16.msra.mxu1 %v14112_v61  ;;  %9545 = vmatprep.subr.bf16.mxu0 %v14113_v18 }
0x11cc   : > { %9449 = vmatprep.subr.bf16.mxu1 %v14114_v30 }
0x11ce   : > { %9547 = vmatpush3.bf16.msra.mxu0 %v14115_v52 }
0x11cf   : > { %9451 = vmatpush1.bf16.msra.mxu1 %v14116_v42  ;;  %9549 = vmatprep.subr.bf16.mxu0 %v14117_v54 }
0x11d0   : > { %9453 = vmatprep.subr.bf16.mxu1 %v14118_v44 }
0x11d2   : > { %9551 = vmatpush3.bf16.msra.mxu0 %v14119_v41 }
0x11d3   : > { %9455 = vmatpush1.bf16.msra.mxu1 %v14120_v17  ;;  %9553 = vmatprep.subr.bf16.mxu0 %v14121_v2 }
0x11d4   : > { %9457 = vmatprep.subr.bf16.mxu1 %v14122_v56 }
0x11d6   : > { %9555 = vmatpush3.bf16.msra.mxu0 %v14123_v47 }
0x11d7   : > { %9459 = vmatpush1.bf16.msra.mxu1 %v14124_v38  ;;  %9557 = vmatprep.subr.bf16.mxu0 %v14125_v51  ;;  %v14137_v51 = vld [vmem:[#allocation159_spill] sm:$0xff] }
0x11d8   : > { %9461 = vmatprep.subr.bf16.mxu1 %v14126_v5 }
0x11da   : > { %9559 = vmatpush3.bf16.msra.mxu0 %v14127_v19 }
0x11db   : > { %9463 = vmatpush1.bf16.msra.mxu1 %v14128_v59  ;;  %9561 = vmatprep.subr.bf16.mxu0 %v14129_v60 }
0x11dc   : > { %9465 = vmatprep.subr.bf16.mxu1 %v14130_v63 }
0x1230   : > { %v5041_v25 = vpop.f32.mrb[44].mxu0  ;;  %v5112_v26 = vpop.f32.mrb[10].mxu1 }
0x1231   : > { %v5329_v34 = vadd.f32 %v5041_v25, %v633_v9  ;;  %v5043_v39 = vpop.f32.mrb[45].mxu0  ;;  %v5114_v40 = vpop.f32.mrb[11].mxu1  ;;  %v9724_v27 = vadd.f32 %v5112_v26, %v14135_v32 }
0x1232   : > { %v5330_v46 = vadd.f32 %v5043_v39, %v635_v22  ;;  %v9725_v1 = vadd.f32 %v5114_v40, %v14136_v37  ;;  %v14138_v39 = vld [vmem:[#allocation153_spill] sm:$0xff] }
0x1233   : > { %v6352_v35 = vmul.f32 -1.442695, %v5329_v34  ;;  %v6354_v61 = vmul.f32 -1.442695, %v9724_v27 }
0x1234   : > { %v6353_v18 = vmul.f32 -1.442695, %v5330_v46 }
0x1235   : > { %10054 = vpow2.f32 %v6352_v35 }
0x1236   : > { %10056 = vtanh.f32 %v9725_v1 }
0x1237   : > { %10058 = vpow2.f32 %v6354_v61  ;;  %v14146_v61 = vld [vmem:[#allocation182_spill] sm:$0xff] }
0x1238   : > { %10060 = vpow2.f32 %v6353_v18  ;;  %v14147_v18 = vld [vmem:[#allocation183_spill] sm:$0xff] }
0x123f   : > { %v10055_v30 = vpop.eup %10054 }
0x1240   : > { %v5347_v52 = vadd.f32 1.0, %v10055_v30  ;;  %v10057_v42 = vpop.eup %10056  ;;  %v14151_v30 = vld [vmem:[#allocation187_spill] sm:$0xff] }
0x1241   : > { %v10059_v54 = vpop.eup %10058 }
0x1242   : > { %10062 = vrcp.f32 %v5347_v52  ;;  %v10061_v44 = vpop.eup %10060  ;;  %v5349_v17 = vadd.f32 1.0, %v10059_v54  ;;  %v14152_v52 = vld [vmem:[#allocation188_spill] sm:$0xff]  ;;  %v14154_v54 = vld [vmem:[#allocation190_spill] sm:$0xff] }
0x1243   : > { %v5348_v56 = vadd.f32 1.0, %v10061_v44  ;;  %v14155_v44 = vld [vmem:[#allocation206_spill] sm:$0xff] }
0x1244   : > { %10064 = vrcp.f32 %v5349_v17  ;;  %v14157_v17 = vld [vmem:[#allocation207_spill] sm:$0xff] }
0x1245   : > { %10066 = vrcp.f32 %v5348_v56  ;;  %v14159_v56 = vld [vmem:[#allocation208_spill] sm:$0xff] }
0x124c   : > { %v10063_v41 = vpop.eup %10062 }
0x124d   : > { %v5513_v2 = vmul.f32 %v10063_v41, %v10057_v42  ;;  %v5516_v22 = vsub.f32 1.0, %v10063_v41  ;;  %v14153_v42 = vld [vmem:[#allocation189_spill] sm:$0xff]  ;;  %v14156_v41 = vld [vmem:[#allocation191_spill] sm:$0xff] }
0x124e   : > { %v10065_v63 = vpop.eup %10064 }
0x124f   : > { %v10067_v0 = vpop.eup %10066 }
0x1250   : > { %v5183_v47 = vpop.f32.mrb[10].mxu0  ;;  %v12628_v38 = vpop.f32.mrb[18].mxu1  ;;  %v5517_v34 = vsub.f32 1.0, %v10067_v0 }
0x1251   : > { %v9732_v5 = vadd.f32 %v5183_v47, %v14137_v51  ;;  %v5185_v19 = vpop.f32.mrb[11].mxu0  ;;  %v12631_v59 = vpop.f32.mrb[19].mxu1  ;;  %v14160_v47 = vld [vmem:[#allocation193_spill] sm:$0xff] }
0x1252   : > { %v9733_v60 = vadd.f32 %v5185_v19, %v13709_v4  ;;  %v14161_v51 = vld [vmem:[#allocation209_spill] sm:$0xff]  ;;  %v14163_v19 = vld [vmem:[#allocation210_spill] sm:$0xff] }
0x1253   : > { %10068 = vtanh.f32 %v9732_v5  ;;  %v14162_v5 = vld [vmem:[#allocation194_spill] sm:$0xff] }
0x1254   : > { %10070 = vtanh.f32 %v9733_v60  ;;  %v14164_v60 = vld [vmem:[#allocation211_spill] sm:$0xff] }
0x125d   : > { %v10069_v8 = vpop.eup %10068 }
0x125e   : > { %v10071_v9 = vpop.eup %10070  ;;  %v5514_v13 = vmul.f32 %v10069_v8, %v10067_v0  ;;  %v14166_v0 = vld [vmem:[#allocation213_spill] sm:$0xff]  ;;  %v14167_v8 = vld [vmem:[#allocation198_spill] sm:$0xff] }
0x125f   : > { %v5515_v21 = vmul.f32 %v10071_v9, %v10065_v63  ;;  %v14168_v9 = vld [vmem:[#allocation214_spill] sm:$0xff] }
0x1270   : > { %v5325_v25 = vpop.f32.mrb[46].mxu0  ;;  %v5438_v26 = vpop.f32.mrb[54].mxu1 }
0x1271   : > { %v5337_v40 = vadd.f32 %v5325_v25, %v14138_v39  ;;  %v5519_v46 = vmul.f32 %v5516_v22, %v5438_v26  ;;  %v7530_v35 = vpop.f32.mrb[47].mxu0  ;;  %v5440_v32 = vpop.f32.mrb[55].mxu1  ;;  %v14171_v22 = vld [vmem:[#allocation200_spill] sm:$0xff]  ;;  %v14173_v25 = vld [vmem:[#allocation201_spill] sm:$0xff]  ;;  %v14175_v26 = vld [vmem:[#allocation202_spill] sm:$0xff] }
0x1272   : > { %v5520_v4 = vmul.f32 %v5517_v34, %v5440_v32  ;;  %v14177_v34 = vld [vmem:[#allocation203_spill] sm:$0xff]  ;;  %v14181_v35 = vld [vmem:[#allocation205_spill] sm:$0xff] }
0x1273   : > { %10072 = vtanh.f32 %v5337_v40  ;;  %v12635_v27 = vadd.f32 %v5519_v46, %v5513_v2  ;;  %v14158_v2 = vld [vmem:[#allocation192_spill] sm:$0xff]  ;;  %v14178_v39 = vld [vmem:[#allocation219_spill] sm:$0xff]  ;;  %v14182_v32 = vld [vmem:[#allocation221_spill] sm:$0xff] }
0x1274   : > { %v12637_v37 = vadd.f32 %v5520_v4, %v5514_v13  ;;  %v14169_v13 = vld [vmem:[#allocation199_spill] sm:$0xff]  ;;  %v14179_v40 = vld [vmem:[#allocation204_spill] sm:$0xff]  ;;  %v14183_v4 = vld [vmem:[#allocation230_spill] sm:$0xff] }
0x1275   : > { %6358 = vst [vmem:[%s10803_s19 + $0x80] sm:$0xff] %v12635_v27  ;;  %5589 = vmatprep.mubr.f32.mxu1 %v12635_v27  ;;  %5731 = vmatprep.mubr.f32.mxu0 %v12635_v27  ;;  %v14180_v46 = vld [vmem:[#allocation220_spill] sm:$0xff] }
0x1276   : > { %6359 = vst [vmem:[%s10803_s19 + $0x88] sm:$0xff] %v12637_v37 }
0x127d   : > { %v10073_v1 = vpop.eup %10072 }
0x127e   : > { %5590 = vmatmul.mubr.f32.vlgmr.msra.gmra.mrb[56].mxu1 %v10073_v1  ;;  %5732 = vmatmul.mubr.f32.vlgmr.msra.gmra.mrb[50].mxu0 %v10073_v1  ;;  %v14184_v1 = vld [vmem:[#allocation231_spill] sm:$0xff] }
0x127f   : > { %9467 = vmatpush1.bf16.msra.mxu1 %v13711_v45  ;;  %9563 = vmatpush3.bf16.msra.mxu0 %v13712_v31  ;;  %v14139_v45 = vld [vmem:[#allocation173_spill] sm:$0xff]  ;;  %v14140_v31 = vld [vmem:[#allocation174_spill] sm:$0xff] }
0x1280   : > { %9469 = vmatprep.subr.bf16.mxu1 %v13713_v7  ;;  %9565 = vmatprep.subr.bf16.mxu0 %v13714_v58  ;;  %v14141_v7 = vld [vmem:[#allocation175_spill] sm:$0xff]  ;;  %v14142_v58 = vld [vmem:[#allocation176_spill] sm:$0xff] }
0x1283   : > { %9471 = vmatpush1.bf16.msra.mxu1 %v13715_v53  ;;  %9567 = vmatpush3.bf16.msra.mxu0 %v13926_v20  ;;  %v5518_v53 = vsub.f32 1.0, %v10065_v63  ;;  %v14165_v63 = vld [vmem:[#allocation212_spill] sm:$0xff] }
0x1284   : > { %9473 = vmatprep.subr.bf16.mxu1 %v13927_v3  ;;  %9569 = vmatprep.subr.bf16.mxu0 %v13928_v11 }
0x1287   : > { %9475 = vmatpush1.bf16.msra.mxu1 %v13929_v57  ;;  %9571 = vmatpush3.bf16.msra.mxu0 %v13720_v43  ;;  %v14143_v43 = vld [vmem:[#allocation179_spill] sm:$0xff] }
0x1288   : > { %9477 = vmatprep.subr.bf16.mxu1 %v13930_v29  ;;  %9573 = vmatprep.subr.bf16.mxu0 %v13931_v36  ;;  %v14144_v29 = vld [vmem:[#allocation180_spill] sm:$0xff]  ;;  %v14145_v36 = vld [vmem:[#allocation181_spill] sm:$0xff] }
0x128b   : > { %9479 = vmatpush1.bf16.msra.mxu1 %v14139_v45  ;;  %9575 = vmatpush3.bf16.msra.mxu0 %v14140_v31  ;;  %v14185_v45 = vld [vmem:[#allocation233_spill] sm:$0xff]  ;;  %v14186_v31 = vld [vmem:[#allocation234_spill] sm:$0xff] }
0x128c   : > { %9481 = vmatprep.subr.bf16.mxu1 %v14141_v7  ;;  %9577 = vmatprep.subr.bf16.mxu0 %v14142_v58  ;;  %v14187_v7 = vld [vmem:[#allocation236_spill] sm:$0xff]  ;;  %v14188_v58 = vld [vmem:[#allocation237_spill] sm:$0xff] }
0x128f   : > { %9483 = vmatpush1.bf16.msra.mxu1 %v13727_v23  ;;  %9579 = vmatpush3.bf16.msra.mxu0 %v13728_v12  ;;  %v14149_v23 = vld [vmem:[#allocation185_spill] sm:$0xff]  ;;  %v14150_v12 = vld [vmem:[#allocation186_spill] sm:$0xff] }
0x1290   : > { %v5509_v20 = vpop.f32.mrb[48].mxu0  ;;  %9485 = vmatprep.subr.bf16.mxu1 %v11467_v6  ;;  %9581 = vmatprep.subr.bf16.mxu0 %v14143_v43  ;;  %v14148_v6 = vld [vmem:[#allocation184_spill] sm:$0xff]  ;;  %v14191_v43 = vld [vmem:[#allocation242_spill] sm:$0xff] }
0x1291   : > { %v5521_v3 = vmul.f32 %v5518_v53, %v5509_v20  ;;  %v7565_v11 = vpop.f32.mrb[49].mxu0  ;;  %v14189_v53 = vld [vmem:[#allocation239_spill] sm:$0xff]  ;;  %v14190_v20 = vld [vmem:[#allocation240_spill] sm:$0xff] }
0x1292   : > { %v14193_v11 = vld [vmem:[#allocation245_spill] sm:$0xff] }
0x1293   : > { %v12665_v57 = vadd.f32 %v5521_v3, %v5515_v21  ;;  %9487 = vmatpush1.bf16.msra.mxu1 %v14144_v29  ;;  %9583 = vmatpush3.bf16.msra.mxu0 %v14145_v36  ;;  %v14170_v21 = vld [vmem:[#allocation215_spill] sm:$0xff]  ;;  %v14194_v29 = vld [vmem:[#allocation246_spill] sm:$0xff]  ;;  %v14195_v36 = vld [vmem:[#allocation248_spill] sm:$0xff] }
0x1294   : > { %9489 = vmatprep.subr.bf16.mxu1 %v14146_v61  ;;  %9585 = vmatprep.subr.bf16.mxu0 %v14147_v18  ;;  %v14192_v3 = vld [vmem:[#allocation243_spill] sm:$0xff] }
0x1295   : > { %6360 = vst [vmem:[%s10803_s19 + $0x90] sm:$0xff] %v12665_v57  ;;  %5660 = vmatprep.mubr.f32.mxu1 %v12665_v57  ;;  %5801 = vmatprep.mubr.f32.mxu0 %v12665_v57 }
0x1297   : > { %9491 = vmatpush1.bf16.msra.mxu1 %v14148_v6  ;;  %9587 = vmatpush3.bf16.msra.mxu0 %v14149_v23 }
0x1298   : > { %9493 = vmatprep.subr.bf16.mxu1 %v14150_v12  ;;  %9589 = vmatprep.subr.bf16.mxu0 %v14151_v30 }
0x129b   : > { %9495 = vmatpush1.bf16.msra.mxu1 %v14152_v52  ;;  %9591 = vmatpush3.bf16.msra.mxu0 %v14153_v42 }
0x129c   : > { %9497 = vmatprep.subr.bf16.mxu1 %v14154_v54  ;;  %9593 = vmatprep.subr.bf16.mxu0 %v14155_v44 }
0x129e   : > { %5802 = vmatmul.mubr.f32.vlgmr.msra.gmra.mrb[52].mxu0 %v12637_v37 }
0x129f   : > { %9499 = vmatpush1.bf16.msra.mxu1 %v14156_v41  ;;  %9595 = vmatpush3.bf16.msra.mxu0 %v14157_v17  ;;  %v14199_v17 = vld [vmem:[#allocation226_spill] sm:$0xff] }
0x12a0   : > { %9501 = vmatprep.subr.bf16.mxu1 %v14158_v2  ;;  %9597 = vmatprep.subr.bf16.mxu0 %v14159_v56  ;;  %v14201_v2 = vld [vmem:[#allocation228_spill] sm:$0xff]  ;;  %v14202_v56 = vld [vmem:[#allocation229_spill] sm:$0xff] }
0x12a3   : > { %9503 = vmatpush1.bf16.msra.mxu1 %v14160_v47  ;;  %9599 = vmatpush3.bf16.msra.mxu0 %v14161_v51  ;;  %v14203_v51 = vld [vmem:[#allocation232_spill] sm:$0xff] }
0x12a4   : > { %9505 = vmatprep.subr.bf16.mxu1 %v14162_v5  ;;  %9601 = vmatprep.subr.bf16.mxu0 %v14163_v19  ;;  %v14204_v5 = vld [vmem:[#allocation235_spill] sm:$0xff]  ;;  %v14205_v19 = vld [vmem:[#allocation238_spill] sm:$0xff] }
0x12a7   : > { %9507 = vmatpush1.bf16.msra.mxu1 %v13957_v28  ;;  %9603 = vmatpush3.bf16.msra.mxu0 %v14164_v60  ;;  %v14172_v28 = vld [vmem:[#allocation216_spill] sm:$0xff]  ;;  %v14206_v60 = vld [vmem:[#allocation241_spill] sm:$0xff] }
0x12a8   : > { %9509 = vmatprep.subr.bf16.mxu1 %v13959_v49  ;;  %9605 = vmatprep.subr.bf16.mxu0 %v14165_v63  ;;  %v14174_v49 = vld [vmem:[#allocation217_spill] sm:$0xff]  ;;  %v14207_v63 = vld [vmem:[#allocation244_spill] sm:$0xff] }
0x12ab   : > { %9511 = vmatpush1.bf16.msra.mxu1 %v13961_v55  ;;  %9607 = vmatpush3.bf16.msra.mxu0 %v14166_v0  ;;  %v14176_v55 = vld [vmem:[#allocation218_spill] sm:$0xff]  ;;  %v14208_v0 = vld [vmem:[#allocation247_spill] sm:$0xff] }
0x12ac   : > { %9513 = vmatprep.subr.bf16.mxu1 %v14167_v8  ;;  %9609 = vmatprep.subr.bf16.mxu0 %v14168_v9  ;;  %v14210_v8 = vld [vmem:[#allocation251_spill] sm:$0xff] }
0x12af   : > { %9515 = vmatpush1.bf16.msra.mxu1 %v14169_v13  ;;  %9611 = vmatpush3.bf16.msra.mxu0 %v14170_v21 }
0x12b0   : > { %9517 = vmatprep.subr.bf16.mxu1 %v14171_v22  ;;  %9613 = vmatprep.subr.bf16.mxu0 %v14172_v28  ;;  %v10097_v22 = vld [vmem:[%s13564_s26] ss:$0 sm:$0xff] }
0x12b3   : > { %9519 = vmatpush1.bf16.msra.mxu1 %v14173_v25  ;;  %9615 = vmatpush3.bf16.msra.mxu0 %v14174_v49 }
0x12b4   : > { %9521 = vmatprep.subr.bf16.mxu1 %v14175_v26  ;;  %9617 = vmatprep.subr.bf16.mxu0 %v14176_v55 }
0x12b7   : > { %9523 = vmatpush1.bf16.msra.mxu1 %v14177_v34  ;;  %9619 = vmatpush3.bf16.msra.mxu0 %v14178_v39 }
0x12b8   : > { %9525 = vmatprep.subr.bf16.mxu1 %v14179_v40  ;;  %9621 = vmatprep.subr.bf16.mxu0 %v14180_v46 }
0x12bb   : > { %9527 = vmatpush1.bf16.msra.mxu1 %v14181_v35  ;;  %9623 = vmatpush3.bf16.msra.mxu0 %v14182_v32  ;;  %v9740_v32 = vadd.f32 %v12628_v38, %v14014_v14 }
0x12bc   : > { %9624 = vmatprep.subr.bf16.mxu0 %v13554_v50  ;;  %9649 = vmatprep.subr.bf16.mxu1 %v14183_v4 }
0x12bd   : > { %v6355_v4 = vmul.f32 -1.442695, %v9740_v32 }
0x12be   : > { %5661 = vmatmul.mubr.f32.vlgmr.msra.gmra.mrb[56].mxu1 %v12637_v37 }
0x12bf   : > { %9651 = vmatpush1.bf16.msra.mxu1 %v14184_v1  ;;  %6023 = vmatprep.mubr.f32.mxu1 %v13403_v62 }
0x12c0   : > { %9653 = vmatprep.subr.bf16.mxu1 %v14185_v45  ;;  %v9741_v45 = vadd.f32 %v12631_v59, %v14016_v33 }
0x12c3   : > { %9655 = vmatpush1.bf16.msra.mxu1 %v14186_v31 }
0x12c4   : > { %9657 = vmatprep.subr.bf16.mxu1 %v14187_v7  ;;  %v6356_v7 = vmul.f32 -1.442695, %v9741_v45 }
0x12c7   : > { %9659 = vmatpush1.bf16.msra.mxu1 %v14188_v58 }
0x12c8   : > { %9661 = vmatprep.subr.bf16.mxu1 %v14189_v53 }
0x12cb   : > { %9663 = vmatpush1.bf16.msra.mxu1 %v14190_v20 }
0x12cc   : > { %9665 = vmatprep.subr.bf16.mxu1 %v14191_v43 }
0x12cf   : > { %9667 = vmatpush1.bf16.msra.mxu1 %v14192_v3 }
0x12d0   : > { %9669 = vmatprep.subr.bf16.mxu1 %v14193_v11 }
0x12d3   : > { %9671 = vmatpush1.bf16.msra.mxu1 %v14194_v29 }
0x12d4   : > { %9673 = vmatprep.subr.bf16.mxu1 %v14195_v36 }
0x12d7   : > { %9675 = vmatpush1.bf16.msra.mxu1 %v11716_v24  ;;  %v14196_v24 = vld [vmem:[#allocation223_spill] sm:$0xff] }
0x12d8   : > { %9677 = vmatprep.subr.bf16.mxu1 %v13988_v10  ;;  %v14198_v10 = vld [vmem:[#allocation225_spill] sm:$0xff] }
0x12db   : > { %9679 = vmatpush1.bf16.msra.mxu1 %v11726_v16  ;;  %v14197_v16 = vld [vmem:[#allocation224_spill] sm:$0xff] }
0x1351   : > { %v6959_v61 = vpop.f32.mrb[50].mxu0 }
0x1352   : > { %v6960_v18 = vpop.f32.mrb[51].mxu0 }
0x1353   : > { %v6961_v6 = vadd.f32 %v6960_v18, %v6959_v61 }
0x1371   : > { %v6994_v23 = vpop.f32.mrb[52].mxu0 }
0x1372   : > { %v6995_v12 = vpop.f32.mrb[53].mxu0 }
0x1373   : > { %v6996_v30 = vadd.f32 %v6995_v12, %v6994_v23 }
0x1375   : > { %v5804_v52 = vadd.f32 %v6996_v30, %v6961_v6 }
0x1391   : > { %v5662_v42 = vpop.f32.mrb[56].mxu1 }
0x1392   : > { %v5664_v54 = vpop.f32.mrb[57].mxu1 }
0x1393   : > { %10074 = vtanh.f32 %v5664_v54 }
0x1394   : > { %10076 = vtanh.f32 %v5662_v42 }
0x1395   : > { %10078 = vtanh.f32 %v5804_v52 }
0x139d   : > { %v10075_v44 = vpop.eup %10074 }
0x139e   : > { %v10077_v41 = vpop.eup %10076  ;;  %5874 = vmatprep.mubr.f32.mxu0 %v10075_v44 }
0x139f   : > { %5875 = vmatmul.mubr.f32.vlgmr.msra.gmra.mrb[54].mxu0 %v10077_v41  ;;  %v10079_v47 = vpop.eup %10078 }
0x13a0   : > { %9626 = vmatpush3.bf16.msra.mxu0 %v13779_v15  ;;  %7598 = vmatprep.mubr.msk.f32.mxu0 %vm10425_vm1, %v13403_v62  ;;  %v14200_v15 = vld [vmem:[#allocation227_spill] sm:$0xff] }
0x13a1   : > { %9627 = vmatprep.subr.bf16.mxu0 %v13554_v50 }
0x13a4   : > { %9629 = vmatpush3.bf16.msra.mxu0 %v14196_v24 }
0x13a5   : > { %9630 = vmatprep.subr.bf16.mxu0 %v13554_v50 }
0x13a8   : > { %9632 = vmatpush3.bf16.msra.mxu0 %v14197_v16 }
0x13a9   : > { %9633 = vmatprep.subr.bf16.mxu0 %v13554_v50 }
0x13ac   : > { %9635 = vmatpush3.bf16.msra.mxu0 %v14198_v10 }
0x13ad   : > { %9636 = vmatprep.subr.bf16.mxu0 %v13554_v50 }
0x13b0   : > { %9638 = vmatpush3.bf16.msra.mxu0 %v14199_v17 }
0x13b1   : > { %9639 = vmatprep.subr.bf16.mxu0 %v13554_v50 }
0x13b4   : > { %9641 = vmatpush3.bf16.msra.mxu0 %v14200_v15 }
0x13b5   : > { %9642 = vmatprep.subr.bf16.mxu0 %v13554_v50 }
0x13b8   : > { %9644 = vmatpush3.bf16.msra.mxu0 %v14201_v2 }
0x13b9   : > { %9645 = vmatprep.subr.bf16.mxu0 %v13554_v50 }
0x13bc   : > { %9647 = vmatpush3.bf16.msra.mxu0 %v14202_v56 }
0x13bd   : > { %9680 = vmatprep.subr.bf16.mxu0 %v13554_v50 }
0x13bf   : > { %7599 = vmatmul.mubr.f32.vlgmr.msra.gmra.mrb[56].mxu0 %v10079_v47 }
0x13c0   : > { %9682 = vmatpush3.bf16.msra.mxu0 %v14203_v51  ;;  %7633 = vmatprep.mubr.msk.f32.mxu0 %vm10425_vm1, %v13403_v62  ;;  %v14209_v62 = vld [vmem:[#allocation249_spill] sm:$0xff] }
0x13c1   : > { %9683 = vmatprep.subr.bf16.mxu0 %v13554_v50 }
0x13c4   : > { %9685 = vmatpush3.bf16.msra.mxu0 %v14204_v5 }
0x13c5   : > { %9686 = vmatprep.subr.bf16.mxu0 %v13554_v50 }
0x13c8   : > { %9688 = vmatpush3.bf16.msra.mxu0 %v14205_v19 }
0x13c9   : > { %9689 = vmatprep.subr.bf16.mxu0 %v13554_v50 }
0x13cc   : > { %9691 = vmatpush3.bf16.msra.mxu0 %v14206_v60 }
0x13cd   : > { %9692 = vmatprep.subr.bf16.mxu0 %v13554_v50 }
0x13d0   : > { %9694 = vmatpush3.bf16.msra.mxu0 %v14207_v63 }
0x13d1   : > { %9695 = vmatprep.subr.bf16.mxu0 %v13554_v50 }
0x13d4   : > { %9697 = vmatpush3.bf16.msra.mxu0 %v14208_v0 }
0x13d5   : > { %9698 = vmatprep.subr.bf16.mxu0 %v13554_v50 }
0x13d8   : > { %9700 = vmatpush3.bf16.msra.mxu0 %v14209_v62 }
0x13d9   : > { %9701 = vmatprep.subr.bf16.mxu0 %v13554_v50 }
0x13dc   : > { %9703 = vmatpush3.bf16.msra.mxu0 %v14210_v8 }
0x1472   : > { %v7029_v9 = vpop.f32.mrb[54].mxu0 }
0x1473   : > { %v7030_v13 = vpop.f32.mrb[55].mxu0 }
0x1474   : > { %v7031_v21 = vadd.f32 %v7030_v13, %v7029_v9 }
0x1476   : > { %v5877_v28 = vadd.f32 %v10097_v22, %v7031_v21 }
0x1492   : > { %v5946_v25 = vpop.f32.mrb[56].mxu0 }
0x1493   : > { %v5947_v49 = vadd.f32 %v5946_v25, %v5877_v28  ;;  %v7600_v26 = vpop.f32.mrb[57].mxu0 }
0x1495   : > { %5950 = vmax.xlane.f32.xlu0 %v5947_v49 }
0x1522   : > { %v5951_v55 = vpop.xlane.xlu0 %5950 }
0x1523   : > { %v5952_v34 = vsub.f32 %v5947_v49, %v5951_v55 }
0x1525   : > { %v5953_v39 = vmul.f32 1.442695, %v5952_v34 }
0x1527   : > { %10080 = vpow2.f32 %v5953_v39 }
0x1531   : > { %v10081_v50 = vpop.eup %10080 }
0x1532   : > { %5955 = vadd.xlane.f32.xlu1 %v10081_v50 }
0x15bf   : > { %v5956_v40 = vpop.xlane.xlu1 %5955 }
0x15c0   : > { %10082 = vrcp.f32 %v5956_v40 }
0x15c1   : > { %10084 = vpow2.f32 %v6355_v4 }
0x15ca   : > { %v10083_v46 = vpop.eup %10082 }
0x15cb   : > { %v5958_v35 = vmul.f32 %v10083_v46, %v10081_v50  ;;  %v10085_v1 = vpop.eup %10084 }
0x15cc   : > { %v5362_v31 = vadd.f32 1.0, %v10085_v1 }
0x15cd   : > { %6024 = vmatmul.mubr.f32.vlgmr.msra.gmra.mrb[58].mxu1 %v5958_v35  ;;  %6361 = vst [vmem:[%s10803_s19 + $0x98] sm:$0xff] %v5958_v35  ;;  %7634 = vmatmul.mubr.f32.vlgmr.msra.gmra.mrb[58].mxu0 %v5958_v35 }
0x15ce   : > { %10086 = vrcp.f32 %v5362_v31 }
0x15cf   : > { %10088 = vpow2.f32 %v6356_v7 }
0x15d8   : > { %v10087_v20 = vpop.eup %10086 }
0x15d9   : > { %v10089_v38 = vpop.eup %10088  ;;  %v6105_v59 = vsub.f32 1.0, %v10087_v20 }
0x15da   : > { %v5368_v61 = vadd.f32 1.0, %v10089_v38 }
0x15db   : > { %v6106_v18 = vmul.f32 %v6105_v59, %v12473_v48 }
0x15dc   : > { %10090 = vrcp.f32 %v5368_v61 }
0x16a0   : > { %v6025_v58 = vpop.f32.mrb[58].mxu1  ;;  %v6096_v53 = vpop.f32.mrb[58].mxu0 }
0x16a1   : > { %v6100_v43 = vmul.f32 %v6025_v58, %v12635_v27  ;;  %v6027_v3 = vpop.f32.mrb[59].mxu1  ;;  %v7635_v11 = vpop.f32.mrb[59].mxu0  ;;  %v6102_v29 = vmul.f32 %v6096_v53, %v12665_v57 }
0x16a2   : > { %v6101_v14 = vmul.f32 %v6027_v3, %v12637_v37  ;;  %v10091_v27 = vpop.eup %10090 }
0x16a4   : > { %v6103_v33 = vadd.f32 %v6101_v14, %v6100_v43 }
0x16a6   : > { %v6104_v36 = vadd.f32 %v6103_v33, %v6102_v29 }
0x16a8   : > { %v6107_v6 = vmul.f32 %v10087_v20, %v6104_v36 }
0x16aa   : > { %v6108_v23 = vadd.f32 %v6107_v6, %v6106_v18 }
0x16ac   : > { %10092 = vtanh.f32 %v6108_v23  ;;  %6118 = vst [vmem:[#allocation4] sm:$0xff] %v6108_v23 }
0x16b6   : > { %v10093_v48 = vpop.eup %10092 }
0x16b7   : > { %v6110_v37 = vmul.f32 %v10093_v48, %v10091_v27 }
0x16b9   : > { %6357 = vst [vmem:[%s10803_s19 + $0x78] sm:$0xff] %v6110_v37  ;;  %6117 = vst [vmem:[#allocation3] sm:$0xff] %v6110_v37 }
0x16ba   : > { %10309 = shalt.err (!%p10306_p6)
}
0x16bb   : > { %s10310_s19 = scalar_lea.hbm %s12786_s9, 2560  ;;  %s10314_s27 = scalar_lea.hbm %s14212_s17, 10240 }
0x16bc   : > { %p10311_p8 = scmp.ne.s32.totalorder %s12786_s9, %s10310_s19  ;;  %p10315_p3 = scmp.lt.u32.totalorder %s12786_s9, %s14212_s17 }
0x16bd   : > { %p10316_p12 = scmp.lt.u32.totalorder %s10314_s27, %s10310_s19  ;;  %p10318_p4 = scmp.lt.u32.totalorder %s10310_s19, %s12786_s9 }
0x16be   : > { %p10312_p9 = pnand %p10311_p8, %p14213_p7 }
0x16bf   : > { %p10317_p11 = por %p10316_p12, %p10315_p3 }
0x16c0   : > { %p10313_p10 = pneg %p10312_p9 }
0x16c1   : > { %p10319_p5 = por %p10318_p4, %p10317_p11 }
0x16c3   : > { %p10320_p13 = pnand %p10319_p5, %p10313_p10 }
0x16c5   : > { %10323 = shalt.err (!%p10320_p13)
}
0x16c6   : > { %s10427_s29 = smov 640   ;;  %s10428_s13 = smov 1280  }
0x16c7   : > { %s10429_s2 = smov 40  }
0x16c8   : > { %9807 = dma.vmem_to_hbm [thread:$0]  (%p14213_p7), %s12788_s28, 2560, %s12786_s9, %s6120_s12, %s10427_s29, %s10428_s13, %s10429_s2  }
0x16c9 PF: > { %p9849_p0 = scmp.ge.s32.totalorder %s10406_s16, 2  ;;  %s6151_s7 = sand.u32 1, %s10378_s30  }
0x16ca   : > { %p14214_p2 = scmp.ne.s32.totalorder %s13348_s3, 0  ;;  %s6152_s1 = scalar_lea.sflag [#allocation7], %s6151_s7 }
0x16cc   : > { %p9833_p1 = pnand %p9849_p0, %p14214_p2 }
0x16ce   : > { %10373 = dma.done.wait (!%p9833_p1), %s6152_s1, 2560  }
0x16cf   : > { %10375 = vsyncadd (!%p9833_p1), %s6152_s1, 4294964736  ;;  %s28_s16 = sadd.s32 1, %s10406_s16   ;;  %s14215_s30 = smov %s10382_s10 }
0x16d0   : > { %p25_p6 = scmp.ge.s32.totalorder %s28_s16, 6   ;;  %s14216_s10 = smov %s10386_s11 }
0x16d1   : > { %s14217_s11 = smov %s10729_s24  ;;  %s14218_s12 = smov %s10398_s14 }
0x16d2   : > { %s14219_s13 = smov %s10402_s15  ;;  %s14220_s14 = smov %s14223_s20 }
0x16d3   : > { %s14221_s15 = smov %s14227_s25  ;;  %27 = sbr.rel (!%p25_p6) target bundleno = 20 (0x14), region = 132 }
0x16da   :  { %6157 = vsyncpa [#allocation6], 1 }
0x16db   :  { %6159 = vsyncpa [#allocation6 + $0x1], 1 }
0x16dc   :  { %6160 = vsyncpa [#allocation9], 1 }
0x16dd   :  { %6161 = vsyncpa [#allocation12], 1 }
0x16de   :  { %6162 = vsyncpa [#allocation15], 1 }
0x16df   :  { %6163 = vsyncpa [#allocation7], 1 }
0x16e0   :  { %6165 = vsyncpa [#allocation7 + $0x1], 1 }

</bundles_post_ra>
